<compile_context>
chip_gen: v5e
topology: v5e:2x2
jax: 0.10.0
libtpu: 0.0.40
codegen_flags: <defaults>
</compile_context>

<pallas_src>
import jax
import jax.numpy as jnp
import numpy as np
from jax import lax
from jax.experimental import pallas as pl
from jax.experimental.pallas import tpu as pltpu

BT_MAX = 16                      # images per grid step (always a multiple of 8)
VMEM_LIMIT = 32 * 1024 * 1024    # explicit scoped-VMEM budget (fits v5e/v6e/v7x)


# ----------------------------------------------------------------------------
# Fused kernel: conv1+pool -> conv2+pool -> flatten -> fc for one batch tile
# ----------------------------------------------------------------------------

def _net_kernel(x1_ref, w1_ref, b1_ref, w2_ref, b2_ref, wf_ref, bf_ref,
                o_ref, y1s_ref, l2_ref, xf_ref):
    """
    x1_ref : (7, 7, bt, 64)  conv1 LHS, rows (sh, sw, b); lanes = 2x2 shifted
                             4x4 super-cells of the zero-padded input
    w1_ref : (64, 256)       conv1 weights, out lanes (hp,wp, ip,jp, c1)
    b1_ref : (1, 64)         conv1 bias tiled over the (ip,jp) phases
    w2_ref : (576, 128)      conv2 weights, K = 9 x (ip,jp,c1), N = (hp,wp,c2)
    b2_ref : (1, 32)
    wf_ref : (1568, 128)     fc weight (flatten permutation folded in, N->128)
    bf_ref : (1, 128)
    o_ref  : (bt, 128)       logits, lane-dense (sliced to 10 outside)
    y1s_ref: (9, 9, bt, 64)  scratch: conv2 phase-packed, zero-padded input
    l2_ref : (49*bt, 576)    scratch: conv2 LHS (9 shifted views, lane-dense)
    xf_ref : (bt, 1568)      scratch: fc LHS (lane-dense flatten)
    """
    bt = x1_ref.shape[2]
    M = 49 * bt
    f32 = jnp.float32

    # ---- conv1: 5x5 conv + 2x2 maxpool as ONE matmul (K=64, N=256) ----------
    l1 = x1_ref[...].reshape(M, 64)
    acc1 = jnp.dot(l1, w1_ref[...], preferred_element_type=f32)       # (M, 256)
    p1 = jnp.maximum(jnp.maximum(acc1[:, 0:64], acc1[:, 64:128]),
                     jnp.maximum(acc1[:, 128:192], acc1[:, 192:256]))
    # maxpool(relu(y + b)) == relu(max(y) + b)
    y1 = jnp.maximum(p1 + b1_ref[...], 0.0)                           # (M, 64)

    # ---- repack into conv2's zero-padded phase-packed input (VMEM only) -----
    y1s_ref[0:1, :, :, :] = jnp.zeros((1, 9, bt, 64), f32)
    y1s_ref[8:9, :, :, :] = jnp.zeros((1, 9, bt, 64), f32)
    y1s_ref[1:8, 0:1, :, :] = jnp.zeros((7, 1, bt, 64), f32)
    y1s_ref[1:8, 8:9, :, :] = jnp.zeros((7, 1, bt, 64), f32)
    y1s_ref[1:8, 1:8, :, :] = y1.reshape(7, 7, bt, 64)

    # ---- conv2: 9 shifted views concatenated into K=576 -> ONE matmul -------
    for sh in range(3):
        for sw in range(3):
            k = 3 * sh + sw
            l2_ref[:, 64 * k:64 * (k + 1)] = (
                y1s_ref[sh:sh + 7, sw:sw + 7, :, :].reshape(M, 64))
    acc2 = jnp.dot(l2_ref[...], w2_ref[...], preferred_element_type=f32)  # (M,128)
    p2 = jnp.maximum(jnp.maximum(acc2[:, 0:32], acc2[:, 32:64]),
                     jnp.maximum(acc2[:, 64:96], acc2[:, 96:128]))
    y2 = jnp.maximum(p2 + b2_ref[...], 0.0)                           # (M, 32)

    # ---- flatten: rows are (p = h2*7+w2, b), so each position is a
    # contiguous, tile-aligned slab of bt rows -> lane-dense (bt, 1568) -------
    for p in range(49):
        xf_ref[:, 32 * p:32 * (p + 1)] = y2[p * bt:(p + 1) * bt, :]

    # ---- fc: (bt, 1568) @ (1568, 128) + bias, lane-dense store --------------
    logits = jnp.dot(xf_ref[...], wf_ref[...], preferred_element_type=f32)
    o_ref[...] = (logits + bf_ref[...]).astype(o_ref.dtype)


# ----------------------------------------------------------------------------
# Wrapper: one cheap input-packing pass + a single pallas_call
# ----------------------------------------------------------------------------

def _pick_bt(n):
    bt = 8
    while bt < BT_MAX and (2 * bt) * 2 <= n:
        bt *= 2
    return bt


def _build_conv1_lhs(x_nchw, n_pad):
    """(N,1,28,28) -> (7, 7, Np, 64): rows (sh, sw, b); lanes are the 2x2
    shifted 4x4 super-cells of the (pad=2) zero-padded input."""
    n = x_nchw.shape[0]
    x = jnp.pad(x_nchw[:, 0, :, :], ((0, n_pad - n), (2, 2), (2, 2)))  # (Np,32,32)
    xs = (x.reshape(n_pad, 8, 4, 8, 4)
           .transpose(0, 1, 3, 2, 4)
           .reshape(n_pad, 8, 8, 16))                                  # 4x4 cells
    l1 = jnp.concatenate([xs[:, du:du + 7, dv:dv + 7, :]
                          for du in (0, 1) for dv in (0, 1)], axis=-1) # (Np,7,7,64)
    return jnp.transpose(l1, (1, 2, 0, 3))                             # (7,7,Np,64)


@jax.jit
def model_forward(x_nchw, params):
    n = x_nchw.shape[0]
    bt = _pick_bt(n)
    steps = max(2, (n + bt - 1) // bt)     # >= 2 grid steps (v7x: 2 TensorCores)
    n_pad = steps * bt

    l1 = _build_conv1_lhs(x_nchw, n_pad)

    out = pl.pallas_call(
        _net_kernel,
        out_shape=jax.ShapeDtypeStruct((n_pad, 128), jnp.float32),
        grid_spec=pltpu.PrefetchScalarGridSpec(
            num_scalar_prefetch=0,
            grid=(steps,),
            in_specs=[
                pl.BlockSpec((7, 7, bt, 64), lambda i: (0, 0, i, 0)),  # per tile
                pl.BlockSpec((64, 256), lambda i: (0, 0)),             # resident
                pl.BlockSpec((1, 64), lambda i: (0, 0)),               # resident
                pl.BlockSpec((576, 128), lambda i: (0, 0)),            # resident
                pl.BlockSpec((1, 32), lambda i: (0, 0)),               # resident
                pl.BlockSpec((1568, 128), lambda i: (0, 0)),           # resident
                pl.BlockSpec((1, 128), lambda i: (0, 0)),              # resident
            ],
            out_specs=pl.BlockSpec((bt, 128), lambda i: (i, 0)),
            scratch_shapes=[
                pltpu.VMEM((9, 9, bt, 64), jnp.float32),
                pltpu.VMEM((49 * bt, 576), jnp.float32),
                pltpu.VMEM((bt, 1568), jnp.float32),
            ],
        ),
        compiler_params=pltpu.CompilerParams(
            dimension_semantics=("parallel",),
            vmem_limit_bytes=VMEM_LIMIT,
        ),
    )(l1, params["w1"], params["b1"], params["w2"], params["b2"],
      params["wf"], params["bf"])
    return out[:n, :10]


# ----------------------------------------------------------------------------
# Parameters: PyTorch-layout init + one-time host-side packing
# ----------------------------------------------------------------------------

def init_raw_params(key):
    ks = jax.random.split(key, 6)
    s = 0.05
    return {
        "conv1_w": s * jax.random.normal(ks[0], (16, 1, 5, 5), jnp.float32),
        "conv1_b": s * jax.random.normal(ks[1], (16,), jnp.float32),
        "conv2_w": s * jax.random.normal(ks[2], (32, 16, 5, 5), jnp.float32),
        "conv2_b": s * jax.random.normal(ks[3], (32,), jnp.float32),
        "fc_w":    s * jax.random.normal(ks[4], (10, 32 * 7 * 7), jnp.float32),
        "fc_b":    s * jax.random.normal(ks[5], (10,), jnp.float32),
    }


def _pack_conv1(w_oihw):
    """torch (16,1,5,5) -> (64, 256):
    K = (du, dv, 4x4 super-cell pixel), N = (hp, wp, ip, jp, c1)."""
    w = np.asarray(w_oihw)
    out = np.zeros((64, 256), np.float32)
    for du in range(2):
        for a in range(4):
            for dv in range(2):
                for bc in range(4):
                    k1 = (2 * du + dv) * 16 + 4 * a + bc
                    for ip in range(2):
                        for hp in range(2):
                            for jp in range(2):
                                for wp in range(2):
                                    kh = 4 * du + a - 2 * ip - hp
                                    kw = 4 * dv + bc - 2 * jp - wp
                                    if 0 <= kh < 5 and 0 <= kw < 5:
                                        n0 = (2 * hp + wp) * 64 + (2 * ip + jp) * 16
                                        out[k1, n0:n0 + 16] = w[:, 0, kh, kw]
    return out


def _pack_conv2(w_oihw):
    """torch (32,16,5,5) -> (576, 128):
    K = (sh, sw, ip, jp, c1), N = (hp, wp, c2)."""
    w = np.asarray(w_oihw).transpose(2, 3, 1, 0)          # (kh, kw, ci, co)
    out = np.zeros((3, 3, 64, 128), np.float32)
    for sh in range(3):
        for sw in range(3):
            for ip in range(2):
                for jp in range(2):
                    for hp in range(2):
                        for wp in range(2):
                            kh = 2 * sh + ip - hp
                            kw = 2 * sw + jp - wp
                            if 0 <= kh < 5 and 0 <= kw < 5:
                                q0 = (2 * ip + jp) * 16
                                n0 = (2 * hp + wp) * 32
                                out[sh, sw, q0:q0 + 16, n0:n0 + 32] = w[kh, kw]
    return out.reshape(576, 128)


def prepare_params(raw):
    """One-time host-side weight re-layout (never inside the forward pass)."""
    w1 = _pack_conv1(raw["conv1_w"])
    b1 = np.tile(np.asarray(raw["conv1_b"]).reshape(1, 16), (1, 4))    # (1, 64)
    w2 = _pack_conv2(raw["conv2_w"])
    b2 = np.asarray(raw["conv2_b"]).reshape(1, 32)
    # Fold the PyTorch NCHW flatten (c, h, w) into our (p=h*7+w, c) row order
    # and pad the 10 outputs to 128 lanes for a lane-dense store.
    wf = (np.asarray(raw["fc_w"]).reshape(10, 32, 7, 7)
            .transpose(2, 3, 1, 0).reshape(1568, 10))
    wf_p = np.zeros((1568, 128), np.float32)
    wf_p[:, :10] = wf
    bf_p = np.zeros((1, 128), np.float32)
    bf_p[0, :10] = np.asarray(raw["fc_b"])
    packed = dict(w1=w1, b1=b1, w2=w2, b2=b2, wf=wf_p, bf=bf_p)
    return {k: jnp.asarray(v) for k, v in packed.items()}


# ----------------------------------------------------------------------------
# Plain-JAX reference (mirrors the PyTorch module) for the correctness check
# ----------------------------------------------------------------------------

def reference_forward(x_nchw, raw):
    x = jnp.transpose(x_nchw, (0, 2, 3, 1))

    def block(x, w_oihw, b):
        w = jnp.transpose(w_oihw, (2, 3, 1, 0))            # HWIO
        y = lax.conv_general_dilated(
            x, w, (1, 1), ((2, 2), (2, 2)),
            dimension_numbers=("NHWC", "HWIO", "NHWC"),
            precision=lax.Precision.HIGHEST)
        y = jnp.maximum(y + b, 0.0)
        return lax.reduce_window(y, -jnp.inf, lax.max,
                                 (1, 2, 2, 1), (1, 2, 2, 1), "VALID")

    y = block(x, raw["conv1_w"], raw["conv1_b"])
    y = block(y, raw["conv2_w"], raw["conv2_b"])
    n = y.shape[0]
    yf = jnp.transpose(y, (0, 3, 1, 2)).reshape(n, -1)     # PyTorch NCHW flatten
    return jnp.dot(yf, raw["fc_w"].T,
                   precision=lax.Precision.HIGHEST) + raw["fc_b"]


if __name__ == "__main__":
    key = jax.random.PRNGKey(0)
    kx, kp = jax.random.split(key)
    # The 32*7*7 linear layer pins the input at 1x28x28; batch = 2.
    x = jax.random.normal(kx, (2, 1, 28, 28), jnp.float32)

    raw = init_raw_params(kp)
    params = prepare_params(raw)

    out = jax.block_until_ready(model_forward(x, params))
    assert out.shape == (2, 10) and out.dtype == jnp.float32

    ref = jax.block_until_ready(reference_forward(x, raw))
    err = float(np.max(np.abs(np.asarray(out) - np.asarray(ref))))
    # f32 end-to-end: layout/packing bugs show up as O(0.1) errors, so this is
    # tight enough to catch them while leaving room for MXU accumulation order.
    assert err < 2e-3, f"max abs error vs reference: {err}"

    print("KERNEL_OK")
</pallas_src>

<mosaic_0001>
module attributes {stable_mosaic.version = 11 : i64} {
  func.func @_net_kernel(%arg0: i32, %arg1: memref<7x7x8x64xf32, #tpu.memory_space<vmem>>, %arg2: memref<64x256xf32, #tpu.memory_space<vmem>>, %arg3: memref<1x64xf32, #tpu.memory_space<vmem>>, %arg4: memref<576x128xf32, #tpu.memory_space<vmem>>, %arg5: memref<1x32xf32, #tpu.memory_space<vmem>>, %arg6: memref<1568x128xf32, #tpu.memory_space<vmem>>, %arg7: memref<1x128xf32, #tpu.memory_space<vmem>>, %arg8: memref<8x128xf32, #tpu.memory_space<vmem>>, %arg9: memref<9x9x8x64xf32, #tpu.memory_space<vmem>>, %arg10: memref<392x576xf32, #tpu.memory_space<vmem>>, %arg11: memref<8x1568xf32, #tpu.memory_space<vmem>>) attributes {dimension_semantics = [#tpu.dimension_semantics<parallel>], iteration_bounds = array<i64: 2>, scalar_prefetch = 0 : i64, scratch_operands = 3 : i64, tpu.core_type = #tpu.core_type<tc>, window_params = [{transform_indices = @transform_0, window_bounds = array<i64: 7, 7, 8, 64>}, {pipeline_mode = #tpu.pipeline_mode<synchronous>, transform_indices = @transform_1, window_bounds = array<i64: 64, 256>}, {pipeline_mode = #tpu.pipeline_mode<synchronous>, transform_indices = @transform_2, window_bounds = array<i64: 1, 64>}, {pipeline_mode = #tpu.pipeline_mode<synchronous>, transform_indices = @transform_3, window_bounds = array<i64: 576, 128>}, {pipeline_mode = #tpu.pipeline_mode<synchronous>, transform_indices = @transform_4, window_bounds = array<i64: 1, 32>}, {pipeline_mode = #tpu.pipeline_mode<synchronous>, transform_indices = @transform_5, window_bounds = array<i64: 1568, 128>}, {pipeline_mode = #tpu.pipeline_mode<synchronous>, transform_indices = @transform_6, window_bounds = array<i64: 1, 128>}, {transform_indices = @transform_7, window_bounds = array<i64: 8, 128>}]} {
    %c0 = arith.constant 0 : index
    %c0_0 = arith.constant 0 : index
    %c0_1 = arith.constant 0 : index
    %c0_2 = arith.constant 0 : index
    %0 = vector.load %arg1[%c0, %c0_0, %c0_1, %c0_2] : memref<7x7x8x64xf32, #tpu.memory_space<vmem>>, vector<7x7x8x64xf32>
    %1 = vector.shape_cast %0 : vector<7x7x8x64xf32> to vector<392x64xf32>
    %c0_3 = arith.constant 0 : index
    %c0_4 = arith.constant 0 : index
    %2 = vector.load %arg2[%c0_3, %c0_4] : memref<64x256xf32, #tpu.memory_space<vmem>>, vector<64x256xf32>
    %cst = arith.constant dense<0.000000e+00> : vector<392x256xf32>
    %3 = tpu.matmul %1, %2, %cst {dimension_numbers = #tpu.dot_dimension_numbers<[1], [0], [0], [1], [0, 0, 1, 1], [], []>} : vector<392x64xf32>, vector<64x256xf32>, vector<392x256xf32> -> vector<392x256xf32>
    %4 = vector.extract_strided_slice %3 {offsets = [0, 0], sizes = [392, 64], strides = [1, 1]} : vector<392x256xf32> to vector<392x64xf32>
    %5 = vector.extract_strided_slice %3 {offsets = [0, 64], sizes = [392, 64], strides = [1, 1]} : vector<392x256xf32> to vector<392x64xf32>
    %6 = arith.maximumf %4, %5 : vector<392x64xf32>
    %7 = vector.extract_strided_slice %3 {offsets = [0, 128], sizes = [392, 64], strides = [1, 1]} : vector<392x256xf32> to vector<392x64xf32>
    %8 = vector.extract_strided_slice %3 {offsets = [0, 192], sizes = [392, 64], strides = [1, 1]} : vector<392x256xf32> to vector<392x64xf32>
    %9 = arith.maximumf %7, %8 : vector<392x64xf32>
    %10 = arith.maximumf %6, %9 : vector<392x64xf32>
    %c0_5 = arith.constant 0 : index
    %c0_6 = arith.constant 0 : index
    %11 = vector.load %arg3[%c0_5, %c0_6] : memref<1x64xf32, #tpu.memory_space<vmem>>, vector<1x64xf32>
    %12 = vector.broadcast %11 : vector<1x64xf32> to vector<392x64xf32>
    %13 = arith.addf %10, %12 : vector<392x64xf32>
    %cst_7 = arith.constant 0.000000e+00 : f32
    %14 = vector.broadcast %cst_7 : f32 to vector<392x64xf32>
    %15 = arith.maximumf %13, %14 : vector<392x64xf32>
    %cst_8 = arith.constant 0.000000e+00 : f32
    %16 = vector.broadcast %cst_8 : f32 to vector<1x9x8x64xf32>
    %c0_9 = arith.constant 0 : index
    %c0_10 = arith.constant 0 : index
    %c0_11 = arith.constant 0 : index
    %c0_12 = arith.constant 0 : index
    %17 = vector.load %arg9[%c0_9, %c0_10, %c0_11, %c0_12] : memref<9x9x8x64xf32, #tpu.memory_space<vmem>>, vector<1x9x8x64xf32>
    tpu.vector_store %arg9[%c0_9, %c0_10, %c0_11, %c0_12], %16 {strides = array<i32>} : memref<9x9x8x64xf32, #tpu.memory_space<vmem>>, vector<1x9x8x64xf32>,
    %cst_13 = arith.constant 0.000000e+00 : f32
    %18 = vector.broadcast %cst_13 : f32 to vector<1x9x8x64xf32>
    %c8 = arith.constant 8 : index
    %c0_14 = arith.constant 0 : index
    %c0_15 = arith.constant 0 : index
    %c0_16 = arith.constant 0 : index
    %19 = vector.load %arg9[%c8, %c0_14, %c0_15, %c0_16] : memref<9x9x8x64xf32, #tpu.memory_space<vmem>>, vector<1x9x8x64xf32>
    tpu.vector_store %arg9[%c8, %c0_14, %c0_15, %c0_16], %18 {strides = array<i32>} : memref<9x9x8x64xf32, #tpu.memory_space<vmem>>, vector<1x9x8x64xf32>,
    %cst_17 = arith.constant 0.000000e+00 : f32
    %20 = vector.broadcast %cst_17 : f32 to vector<7x1x8x64xf32>
    %c1 = arith.constant 1 : index
    %c0_18 = arith.constant 0 : index
    %c0_19 = arith.constant 0 : index
    %c0_20 = arith.constant 0 : index
    %21 = vector.load %arg9[%c1, %c0_18, %c0_19, %c0_20] : memref<9x9x8x64xf32, #tpu.memory_space<vmem>>, vector<7x1x8x64xf32>
    tpu.vector_store %arg9[%c1, %c0_18, %c0_19, %c0_20], %20 {strides = array<i32>} : memref<9x9x8x64xf32, #tpu.memory_space<vmem>>, vector<7x1x8x64xf32>,
    %cst_21 = arith.constant 0.000000e+00 : f32
    %22 = vector.broadcast %cst_21 : f32 to vector<7x1x8x64xf32>
    %c1_22 = arith.constant 1 : index
    %c8_23 = arith.constant 8 : index
    %c0_24 = arith.constant 0 : index
    %c0_25 = arith.constant 0 : index
    %23 = vector.load %arg9[%c1_22, %c8_23, %c0_24, %c0_25] : memref<9x9x8x64xf32, #tpu.memory_space<vmem>>, vector<7x1x8x64xf32>
    tpu.vector_store %arg9[%c1_22, %c8_23, %c0_24, %c0_25], %22 {strides = array<i32>} : memref<9x9x8x64xf32, #tpu.memory_space<vmem>>, vector<7x1x8x64xf32>,
    %24 = vector.shape_cast %15 : vector<392x64xf32> to vector<7x7x8x64xf32>
    %c1_26 = arith.constant 1 : index
    %c1_27 = arith.constant 1 : index
    %c0_28 = arith.constant 0 : index
    %c0_29 = arith.constant 0 : index
    %25 = vector.load %arg9[%c1_26, %c1_27, %c0_28, %c0_29] : memref<9x9x8x64xf32, #tpu.memory_space<vmem>>, vector<7x7x8x64xf32>
    tpu.vector_store %arg9[%c1_26, %c1_27, %c0_28, %c0_29], %24 {strides = array<i32>} : memref<9x9x8x64xf32, #tpu.memory_space<vmem>>, vector<7x7x8x64xf32>,
    %c0_30 = arith.constant 0 : index
    %c0_31 = arith.constant 0 : index
    %c0_32 = arith.constant 0 : index
    %c0_33 = arith.constant 0 : index
    %26 = vector.load %arg9[%c0_30, %c0_31, %c0_32, %c0_33] : memref<9x9x8x64xf32, #tpu.memory_space<vmem>>, vector<7x7x8x64xf32>
    %27 = vector.shape_cast %26 : vector<7x7x8x64xf32> to vector<392x64xf32>
    %c0_34 = arith.constant 0 : index
    %c0_35 = arith.constant 0 : index
    %28 = vector.load %arg10[%c0_34, %c0_35] : memref<392x576xf32, #tpu.memory_space<vmem>>, vector<392x64xf32>
    tpu.vector_store %arg10[%c0_34, %c0_35], %27 {strides = array<i32>} : memref<392x576xf32, #tpu.memory_space<vmem>>, vector<392x64xf32>,
    %c0_36 = arith.constant 0 : index
    %c1_37 = arith.constant 1 : index
    %c0_38 = arith.constant 0 : index
    %c0_39 = arith.constant 0 : index
    %29 = vector.load %arg9[%c0_36, %c1_37, %c0_38, %c0_39] : memref<9x9x8x64xf32, #tpu.memory_space<vmem>>, vector<7x7x8x64xf32>
    %30 = vector.shape_cast %29 : vector<7x7x8x64xf32> to vector<392x64xf32>
    %c0_40 = arith.constant 0 : index
    %c64 = arith.constant 64 : index
    %31 = vector.load %arg10[%c0_40, %c64] : memref<392x576xf32, #tpu.memory_space<vmem>>, vector<392x64xf32>
    tpu.vector_store %arg10[%c0_40, %c64], %30 {strides = array<i32>} : memref<392x576xf32, #tpu.memory_space<vmem>>, vector<392x64xf32>,
    %c0_41 = arith.constant 0 : index
    %c2 = arith.constant 2 : index
    %c0_42 = arith.constant 0 : index
    %c0_43 = arith.constant 0 : index
    %32 = vector.load %arg9[%c0_41, %c2, %c0_42, %c0_43] : memref<9x9x8x64xf32, #tpu.memory_space<vmem>>, vector<7x7x8x64xf32>
    %33 = vector.shape_cast %32 : vector<7x7x8x64xf32> to vector<392x64xf32>
    %c0_44 = arith.constant 0 : index
    %c128 = arith.constant 128 : index
    %34 = vector.load %arg10[%c0_44, %c128] : memref<392x576xf32, #tpu.memory_space<vmem>>, vector<392x64xf32>
    tpu.vector_store %arg10[%c0_44, %c128], %33 {strides = array<i32>} : memref<392x576xf32, #tpu.memory_space<vmem>>, vector<392x64xf32>,
    %c1_45 = arith.constant 1 : index
    %c0_46 = arith.constant 0 : index
    %c0_47 = arith.constant 0 : index
    %c0_48 = arith.constant 0 : index
    %35 = vector.load %arg9[%c1_45, %c0_46, %c0_47, %c0_48] : memref<9x9x8x64xf32, #tpu.memory_space<vmem>>, vector<7x7x8x64xf32>
    %36 = vector.shape_cast %35 : vector<7x7x8x64xf32> to vector<392x64xf32>
    %c0_49 = arith.constant 0 : index
    %c192 = arith.constant 192 : index
    %37 = vector.load %arg10[%c0_49, %c192] : memref<392x576xf32, #tpu.memory_space<vmem>>, vector<392x64xf32>
    tpu.vector_store %arg10[%c0_49, %c192], %36 {strides = array<i32>} : memref<392x576xf32, #tpu.memory_space<vmem>>, vector<392x64xf32>,
    %c1_50 = arith.constant 1 : index
    %c1_51 = arith.constant 1 : index
    %c0_52 = arith.constant 0 : index
    %c0_53 = arith.constant 0 : index
    %38 = vector.load %arg9[%c1_50, %c1_51, %c0_52, %c0_53] : memref<9x9x8x64xf32, #tpu.memory_space<vmem>>, vector<7x7x8x64xf32>
    %39 = vector.shape_cast %38 : vector<7x7x8x64xf32> to vector<392x64xf32>
    %c0_54 = arith.constant 0 : index
    %c256 = arith.constant 256 : index
    %40 = vector.load %arg10[%c0_54, %c256] : memref<392x576xf32, #tpu.memory_space<vmem>>, vector<392x64xf32>
    tpu.vector_store %arg10[%c0_54, %c256], %39 {strides = array<i32>} : memref<392x576xf32, #tpu.memory_space<vmem>>, vector<392x64xf32>,
    %c1_55 = arith.constant 1 : index
    %c2_56 = arith.constant 2 : index
    %c0_57 = arith.constant 0 : index
    %c0_58 = arith.constant 0 : index
    %41 = vector.load %arg9[%c1_55, %c2_56, %c0_57, %c0_58] : memref<9x9x8x64xf32, #tpu.memory_space<vmem>>, vector<7x7x8x64xf32>
    %42 = vector.shape_cast %41 : vector<7x7x8x64xf32> to vector<392x64xf32>
    %c0_59 = arith.constant 0 : index
    %c320 = arith.constant 320 : index
    %43 = vector.load %arg10[%c0_59, %c320] : memref<392x576xf32, #tpu.memory_space<vmem>>, vector<392x64xf32>
    tpu.vector_store %arg10[%c0_59, %c320], %42 {strides = array<i32>} : memref<392x576xf32, #tpu.memory_space<vmem>>, vector<392x64xf32>,
    %c2_60 = arith.constant 2 : index
    %c0_61 = arith.constant 0 : index
    %c0_62 = arith.constant 0 : index
    %c0_63 = arith.constant 0 : index
    %44 = vector.load %arg9[%c2_60, %c0_61, %c0_62, %c0_63] : memref<9x9x8x64xf32, #tpu.memory_space<vmem>>, vector<7x7x8x64xf32>
    %45 = vector.shape_cast %44 : vector<7x7x8x64xf32> to vector<392x64xf32>
    %c0_64 = arith.constant 0 : index
    %c384 = arith.constant 384 : index
    %46 = vector.load %arg10[%c0_64, %c384] : memref<392x576xf32, #tpu.memory_space<vmem>>, vector<392x64xf32>
    tpu.vector_store %arg10[%c0_64, %c384], %45 {strides = array<i32>} : memref<392x576xf32, #tpu.memory_space<vmem>>, vector<392x64xf32>,
    %c2_65 = arith.constant 2 : index
    %c1_66 = arith.constant 1 : index
    %c0_67 = arith.constant 0 : index
    %c0_68 = arith.constant 0 : index
    %47 = vector.load %arg9[%c2_65, %c1_66, %c0_67, %c0_68] : memref<9x9x8x64xf32, #tpu.memory_space<vmem>>, vector<7x7x8x64xf32>
    %48 = vector.shape_cast %47 : vector<7x7x8x64xf32> to vector<392x64xf32>
    %c0_69 = arith.constant 0 : index
    %c448 = arith.constant 448 : index
    %49 = vector.load %arg10[%c0_69, %c448] : memref<392x576xf32, #tpu.memory_space<vmem>>, vector<392x64xf32>
    tpu.vector_store %arg10[%c0_69, %c448], %48 {strides = array<i32>} : memref<392x576xf32, #tpu.memory_space<vmem>>, vector<392x64xf32>,
    %c2_70 = arith.constant 2 : index
    %c2_71 = arith.constant 2 : index
    %c0_72 = arith.constant 0 : index
    %c0_73 = arith.constant 0 : index
    %50 = vector.load %arg9[%c2_70, %c2_71, %c0_72, %c0_73] : memref<9x9x8x64xf32, #tpu.memory_space<vmem>>, vector<7x7x8x64xf32>
    %51 = vector.shape_cast %50 : vector<7x7x8x64xf32> to vector<392x64xf32>
    %c0_74 = arith.constant 0 : index
    %c512 = arith.constant 512 : index
    %52 = vector.load %arg10[%c0_74, %c512] : memref<392x576xf32, #tpu.memory_space<vmem>>, vector<392x64xf32>
    tpu.vector_store %arg10[%c0_74, %c512], %51 {strides = array<i32>} : memref<392x576xf32, #tpu.memory_space<vmem>>, vector<392x64xf32>,
    %c0_75 = arith.constant 0 : index
    %c0_76 = arith.constant 0 : index
    %53 = vector.load %arg10[%c0_75, %c0_76] : memref<392x576xf32, #tpu.memory_space<vmem>>, vector<392x576xf32>
    %c0_77 = arith.constant 0 : index
    %c0_78 = arith.constant 0 : index
    %54 = vector.load %arg4[%c0_77, %c0_78] : memref<576x128xf32, #tpu.memory_space<vmem>>, vector<576x128xf32>
    %cst_79 = arith.constant dense<0.000000e+00> : vector<392x128xf32>
    %55 = tpu.matmul %53, %54, %cst_79 {dimension_numbers = #tpu.dot_dimension_numbers<[1], [0], [0], [1], [0, 0, 1, 1], [], []>} : vector<392x576xf32>, vector<576x128xf32>, vector<392x128xf32> -> vector<392x128xf32>
    %56 = vector.extract_strided_slice %55 {offsets = [0, 0], sizes = [392, 32], strides = [1, 1]} : vector<392x128xf32> to vector<392x32xf32>
    %57 = vector.extract_strided_slice %55 {offsets = [0, 32], sizes = [392, 32], strides = [1, 1]} : vector<392x128xf32> to vector<392x32xf32>
    %58 = arith.maximumf %56, %57 : vector<392x32xf32>
    %59 = vector.extract_strided_slice %55 {offsets = [0, 64], sizes = [392, 32], strides = [1, 1]} : vector<392x128xf32> to vector<392x32xf32>
    %60 = vector.extract_strided_slice %55 {offsets = [0, 96], sizes = [392, 32], strides = [1, 1]} : vector<392x128xf32> to vector<392x32xf32>
    %61 = arith.maximumf %59, %60 : vector<392x32xf32>
    %62 = arith.maximumf %58, %61 : vector<392x32xf32>
    %c0_80 = arith.constant 0 : index
    %c0_81 = arith.constant 0 : index
    %63 = vector.load %arg5[%c0_80, %c0_81] : memref<1x32xf32, #tpu.memory_space<vmem>>, vector<1x32xf32>
    %64 = vector.broadcast %63 : vector<1x32xf32> to vector<392x32xf32>
    %65 = arith.addf %62, %64 : vector<392x32xf32>
    %cst_82 = arith.constant 0.000000e+00 : f32
    %66 = vector.broadcast %cst_82 : f32 to vector<392x32xf32>
    %67 = arith.maximumf %65, %66 : vector<392x32xf32>
    %68 = vector.extract_strided_slice %67 {offsets = [0, 0], sizes = [8, 32], strides = [1, 1]} : vector<392x32xf32> to vector<8x32xf32>
    %c0_83 = arith.constant 0 : index
    %c0_84 = arith.constant 0 : index
    %69 = vector.load %arg11[%c0_83, %c0_84] : memref<8x1568xf32, #tpu.memory_space<vmem>>, vector<8x32xf32>
    tpu.vector_store %arg11[%c0_83, %c0_84], %68 {strides = array<i32>} : memref<8x1568xf32, #tpu.memory_space<vmem>>, vector<8x32xf32>,
    %70 = vector.extract_strided_slice %67 {offsets = [8, 0], sizes = [8, 32], strides = [1, 1]} : vector<392x32xf32> to vector<8x32xf32>
    %c0_85 = arith.constant 0 : index
    %c32 = arith.constant 32 : index
    %71 = vector.load %arg11[%c0_85, %c32] : memref<8x1568xf32, #tpu.memory_space<vmem>>, vector<8x32xf32>
    tpu.vector_store %arg11[%c0_85, %c32], %70 {strides = array<i32>} : memref<8x1568xf32, #tpu.memory_space<vmem>>, vector<8x32xf32>,
    %72 = vector.extract_strided_slice %67 {offsets = [16, 0], sizes = [8, 32], strides = [1, 1]} : vector<392x32xf32> to vector<8x32xf32>
    %c0_86 = arith.constant 0 : index
    %c64_87 = arith.constant 64 : index
    %73 = vector.load %arg11[%c0_86, %c64_87] : memref<8x1568xf32, #tpu.memory_space<vmem>>, vector<8x32xf32>
    tpu.vector_store %arg11[%c0_86, %c64_87], %72 {strides = array<i32>} : memref<8x1568xf32, #tpu.memory_space<vmem>>, vector<8x32xf32>,
    %74 = vector.extract_strided_slice %67 {offsets = [24, 0], sizes = [8, 32], strides = [1, 1]} : vector<392x32xf32> to vector<8x32xf32>
    %c0_88 = arith.constant 0 : index
    %c96 = arith.constant 96 : index
    %75 = vector.load %arg11[%c0_88, %c96] : memref<8x1568xf32, #tpu.memory_space<vmem>>, vector<8x32xf32>
    tpu.vector_store %arg11[%c0_88, %c96], %74 {strides = array<i32>} : memref<8x1568xf32, #tpu.memory_space<vmem>>, vector<8x32xf32>,
    %76 = vector.extract_strided_slice %67 {offsets = [32, 0], sizes = [8, 32], strides = [1, 1]} : vector<392x32xf32> to vector<8x32xf32>
    %c0_89 = arith.constant 0 : index
    %c128_90 = arith.constant 128 : index
    %77 = vector.load %arg11[%c0_89, %c128_90] : memref<8x1568xf32, #tpu.memory_space<vmem>>, vector<8x32xf32>
    tpu.vector_store %arg11[%c0_89, %c128_90], %76 {strides = array<i32>} : memref<8x1568xf32, #tpu.memory_space<vmem>>, vector<8x32xf32>,
    %78 = vector.extract_strided_slice %67 {offsets = [40, 0], sizes = [8, 32], strides = [1, 1]} : vector<392x32xf32> to vector<8x32xf32>
    %c0_91 = arith.constant 0 : index
    %c160 = arith.constant 160 : index
    %79 = vector.load %arg11[%c0_91, %c160] : memref<8x1568xf32, #tpu.memory_space<vmem>>, vector<8x32xf32>
    tpu.vector_store %arg11[%c0_91, %c160], %78 {strides = array<i32>} : memref<8x1568xf32, #tpu.memory_space<vmem>>, vector<8x32xf32>,
    %80 = vector.extract_strided_slice %67 {offsets = [48, 0], sizes = [8, 32], strides = [1, 1]} : vector<392x32xf32> to vector<8x32xf32>
    %c0_92 = arith.constant 0 : index
    %c192_93 = arith.constant 192 : index
    %81 = vector.load %arg11[%c0_92, %c192_93] : memref<8x1568xf32, #tpu.memory_space<vmem>>, vector<8x32xf32>
    tpu.vector_store %arg11[%c0_92, %c192_93], %80 {strides = array<i32>} : memref<8x1568xf32, #tpu.memory_space<vmem>>, vector<8x32xf32>,
    %82 = vector.extract_strided_slice %67 {offsets = [56, 0], sizes = [8, 32], strides = [1, 1]} : vector<392x32xf32> to vector<8x32xf32>
    %c0_94 = arith.constant 0 : index
    %c224 = arith.constant 224 : index
    %83 = vector.load %arg11[%c0_94, %c224] : memref<8x1568xf32, #tpu.memory_space<vmem>>, vector<8x32xf32>
    tpu.vector_store %arg11[%c0_94, %c224], %82 {strides = array<i32>} : memref<8x1568xf32, #tpu.memory_space<vmem>>, vector<8x32xf32>,
    %84 = vector.extract_strided_slice %67 {offsets = [64, 0], sizes = [8, 32], strides = [1, 1]} : vector<392x32xf32> to vector<8x32xf32>
    %c0_95 = arith.constant 0 : index
    %c256_96 = arith.constant 256 : index
    %85 = vector.load %arg11[%c0_95, %c256_96] : memref<8x1568xf32, #tpu.memory_space<vmem>>, vector<8x32xf32>
    tpu.vector_store %arg11[%c0_95, %c256_96], %84 {strides = array<i32>} : memref<8x1568xf32, #tpu.memory_space<vmem>>, vector<8x32xf32>,
    %86 = vector.extract_strided_slice %67 {offsets = [72, 0], sizes = [8, 32], strides = [1, 1]} : vector<392x32xf32> to vector<8x32xf32>
    %c0_97 = arith.constant 0 : index
    %c288 = arith.constant 288 : index
    %87 = vector.load %arg11[%c0_97, %c288] : memref<8x1568xf32, #tpu.memory_space<vmem>>, vector<8x32xf32>
    tpu.vector_store %arg11[%c0_97, %c288], %86 {strides = array<i32>} : memref<8x1568xf32, #tpu.memory_space<vmem>>, vector<8x32xf32>,
    %88 = vector.extract_strided_slice %67 {offsets = [80, 0], sizes = [8, 32], strides = [1, 1]} : vector<392x32xf32> to vector<8x32xf32>
    %c0_98 = arith.constant 0 : index
    %c320_99 = arith.constant 320 : index
    %89 = vector.load %arg11[%c0_98, %c320_99] : memref<8x1568xf32, #tpu.memory_space<vmem>>, vector<8x32xf32>
    tpu.vector_store %arg11[%c0_98, %c320_99], %88 {strides = array<i32>} : memref<8x1568xf32, #tpu.memory_space<vmem>>, vector<8x32xf32>,
    %90 = vector.extract_strided_slice %67 {offsets = [88, 0], sizes = [8, 32], strides = [1, 1]} : vector<392x32xf32> to vector<8x32xf32>
    %c0_100 = arith.constant 0 : index
    %c352 = arith.constant 352 : index
    %91 = vector.load %arg11[%c0_100, %c352] : memref<8x1568xf32, #tpu.memory_space<vmem>>, vector<8x32xf32>
    tpu.vector_store %arg11[%c0_100, %c352], %90 {strides = array<i32>} : memref<8x1568xf32, #tpu.memory_space<vmem>>, vector<8x32xf32>,
    %92 = vector.extract_strided_slice %67 {offsets = [96, 0], sizes = [8, 32], strides = [1, 1]} : vector<392x32xf32> to vector<8x32xf32>
    %c0_101 = arith.constant 0 : index
    %c384_102 = arith.constant 384 : index
    %93 = vector.load %arg11[%c0_101, %c384_102] : memref<8x1568xf32, #tpu.memory_space<vmem>>, vector<8x32xf32>
    tpu.vector_store %arg11[%c0_101, %c384_102], %92 {strides = array<i32>} : memref<8x1568xf32, #tpu.memory_space<vmem>>, vector<8x32xf32>,
    %94 = vector.extract_strided_slice %67 {offsets = [104, 0], sizes = [8, 32], strides = [1, 1]} : vector<392x32xf32> to vector<8x32xf32>
    %c0_103 = arith.constant 0 : index
    %c416 = arith.constant 416 : index
    %95 = vector.load %arg11[%c0_103, %c416] : memref<8x1568xf32, #tpu.memory_space<vmem>>, vector<8x32xf32>
    tpu.vector_store %arg11[%c0_103, %c416], %94 {strides = array<i32>} : memref<8x1568xf32, #tpu.memory_space<vmem>>, vector<8x32xf32>,
    %96 = vector.extract_strided_slice %67 {offsets = [112, 0], sizes = [8, 32], strides = [1, 1]} : vector<392x32xf32> to vector<8x32xf32>
    %c0_104 = arith.constant 0 : index
    %c448_105 = arith.constant 448 : index
    %97 = vector.load %arg11[%c0_104, %c448_105] : memref<8x1568xf32, #tpu.memory_space<vmem>>, vector<8x32xf32>
    tpu.vector_store %arg11[%c0_104, %c448_105], %96 {strides = array<i32>} : memref<8x1568xf32, #tpu.memory_space<vmem>>, vector<8x32xf32>,
    %98 = vector.extract_strided_slice %67 {offsets = [120, 0], sizes = [8, 32], strides = [1, 1]} : vector<392x32xf32> to vector<8x32xf32>
    %c0_106 = arith.constant 0 : index
    %c480 = arith.constant 480 : index
    %99 = vector.load %arg11[%c0_106, %c480] : memref<8x1568xf32, #tpu.memory_space<vmem>>, vector<8x32xf32>
    tpu.vector_store %arg11[%c0_106, %c480], %98 {strides = array<i32>} : memref<8x1568xf32, #tpu.memory_space<vmem>>, vector<8x32xf32>,
    %100 = vector.extract_strided_slice %67 {offsets = [128, 0], sizes = [8, 32], strides = [1, 1]} : vector<392x32xf32> to vector<8x32xf32>
    %c0_107 = arith.constant 0 : index
    %c512_108 = arith.constant 512 : index
    %101 = vector.load %arg11[%c0_107, %c512_108] : memref<8x1568xf32, #tpu.memory_space<vmem>>, vector<8x32xf32>
    tpu.vector_store %arg11[%c0_107, %c512_108], %100 {strides = array<i32>} : memref<8x1568xf32, #tpu.memory_space<vmem>>, vector<8x32xf32>,
    %102 = vector.extract_strided_slice %67 {offsets = [136, 0], sizes = [8, 32], strides = [1, 1]} : vector<392x32xf32> to vector<8x32xf32>
    %c0_109 = arith.constant 0 : index
    %c544 = arith.constant 544 : index
    %103 = vector.load %arg11[%c0_109, %c544] : memref<8x1568xf32, #tpu.memory_space<vmem>>, vector<8x32xf32>
    tpu.vector_store %arg11[%c0_109, %c544], %102 {strides = array<i32>} : memref<8x1568xf32, #tpu.memory_space<vmem>>, vector<8x32xf32>,
    %104 = vector.extract_strided_slice %67 {offsets = [144, 0], sizes = [8, 32], strides = [1, 1]} : vector<392x32xf32> to vector<8x32xf32>
    %c0_110 = arith.constant 0 : index
    %c576 = arith.constant 576 : index
    %105 = vector.load %arg11[%c0_110, %c576] : memref<8x1568xf32, #tpu.memory_space<vmem>>, vector<8x32xf32>
    tpu.vector_store %arg11[%c0_110, %c576], %104 {strides = array<i32>} : memref<8x1568xf32, #tpu.memory_space<vmem>>, vector<8x32xf32>,
    %106 = vector.extract_strided_slice %67 {offsets = [152, 0], sizes = [8, 32], strides = [1, 1]} : vector<392x32xf32> to vector<8x32xf32>
    %c0_111 = arith.constant 0 : index
    %c608 = arith.constant 608 : index
    %107 = vector.load %arg11[%c0_111, %c608] : memref<8x1568xf32, #tpu.memory_space<vmem>>, vector<8x32xf32>
    tpu.vector_store %arg11[%c0_111, %c608], %106 {strides = array<i32>} : memref<8x1568xf32, #tpu.memory_space<vmem>>, vector<8x32xf32>,
    %108 = vector.extract_strided_slice %67 {offsets = [160, 0], sizes = [8, 32], strides = [1, 1]} : vector<392x32xf32> to vector<8x32xf32>
    %c0_112 = arith.constant 0 : index
    %c640 = arith.constant 640 : index
    %109 = vector.load %arg11[%c0_112, %c640] : memref<8x1568xf32, #tpu.memory_space<vmem>>, vector<8x32xf32>
    tpu.vector_store %arg11[%c0_112, %c640], %108 {strides = array<i32>} : memref<8x1568xf32, #tpu.memory_space<vmem>>, vector<8x32xf32>,
    %110 = vector.extract_strided_slice %67 {offsets = [168, 0], sizes = [8, 32], strides = [1, 1]} : vector<392x32xf32> to vector<8x32xf32>
    %c0_113 = arith.constant 0 : index
    %c672 = arith.constant 672 : index
    %111 = vector.load %arg11[%c0_113, %c672] : memref<8x1568xf32, #tpu.memory_space<vmem>>, vector<8x32xf32>
    tpu.vector_store %arg11[%c0_113, %c672], %110 {strides = array<i32>} : memref<8x1568xf32, #tpu.memory_space<vmem>>, vector<8x32xf32>,
    %112 = vector.extract_strided_slice %67 {offsets = [176, 0], sizes = [8, 32], strides = [1, 1]} : vector<392x32xf32> to vector<8x32xf32>
    %c0_114 = arith.constant 0 : index
    %c704 = arith.constant 704 : index
    %113 = vector.load %arg11[%c0_114, %c704] : memref<8x1568xf32, #tpu.memory_space<vmem>>, vector<8x32xf32>
    tpu.vector_store %arg11[%c0_114, %c704], %112 {strides = array<i32>} : memref<8x1568xf32, #tpu.memory_space<vmem>>, vector<8x32xf32>,
    %114 = vector.extract_strided_slice %67 {offsets = [184, 0], sizes = [8, 32], strides = [1, 1]} : vector<392x32xf32> to vector<8x32xf32>
    %c0_115 = arith.constant 0 : index
    %c736 = arith.constant 736 : index
    %115 = vector.load %arg11[%c0_115, %c736] : memref<8x1568xf32, #tpu.memory_space<vmem>>, vector<8x32xf32>
    tpu.vector_store %arg11[%c0_115, %c736], %114 {strides = array<i32>} : memref<8x1568xf32, #tpu.memory_space<vmem>>, vector<8x32xf32>,
    %116 = vector.extract_strided_slice %67 {offsets = [192, 0], sizes = [8, 32], strides = [1, 1]} : vector<392x32xf32> to vector<8x32xf32>
    %c0_116 = arith.constant 0 : index
    %c768 = arith.constant 768 : index
    %117 = vector.load %arg11[%c0_116, %c768] : memref<8x1568xf32, #tpu.memory_space<vmem>>, vector<8x32xf32>
    tpu.vector_store %arg11[%c0_116, %c768], %116 {strides = array<i32>} : memref<8x1568xf32, #tpu.memory_space<vmem>>, vector<8x32xf32>,
    %118 = vector.extract_strided_slice %67 {offsets = [200, 0], sizes = [8, 32], strides = [1, 1]} : vector<392x32xf32> to vector<8x32xf32>
    %c0_117 = arith.constant 0 : index
    %c800 = arith.constant 800 : index
    %119 = vector.load %arg11[%c0_117, %c800] : memref<8x1568xf32, #tpu.memory_space<vmem>>, vector<8x32xf32>
    tpu.vector_store %arg11[%c0_117, %c800], %118 {strides = array<i32>} : memref<8x1568xf32, #tpu.memory_space<vmem>>, vector<8x32xf32>,
    %120 = vector.extract_strided_slice %67 {offsets = [208, 0], sizes = [8, 32], strides = [1, 1]} : vector<392x32xf32> to vector<8x32xf32>
    %c0_118 = arith.constant 0 : index
    %c832 = arith.constant 832 : index
    %121 = vector.load %arg11[%c0_118, %c832] : memref<8x1568xf32, #tpu.memory_space<vmem>>, vector<8x32xf32>
    tpu.vector_store %arg11[%c0_118, %c832], %120 {strides = array<i32>} : memref<8x1568xf32, #tpu.memory_space<vmem>>, vector<8x32xf32>,
    %122 = vector.extract_strided_slice %67 {offsets = [216, 0], sizes = [8, 32], strides = [1, 1]} : vector<392x32xf32> to vector<8x32xf32>
    %c0_119 = arith.constant 0 : index
    %c864 = arith.constant 864 : index
    %123 = vector.load %arg11[%c0_119, %c864] : memref<8x1568xf32, #tpu.memory_space<vmem>>, vector<8x32xf32>
    tpu.vector_store %arg11[%c0_119, %c864], %122 {strides = array<i32>} : memref<8x1568xf32, #tpu.memory_space<vmem>>, vector<8x32xf32>,
    %124 = vector.extract_strided_slice %67 {offsets = [224, 0], sizes = [8, 32], strides = [1, 1]} : vector<392x32xf32> to vector<8x32xf32>
    %c0_120 = arith.constant 0 : index
    %c896 = arith.constant 896 : index
    %125 = vector.load %arg11[%c0_120, %c896] : memref<8x1568xf32, #tpu.memory_space<vmem>>, vector<8x32xf32>
    tpu.vector_store %arg11[%c0_120, %c896], %124 {strides = array<i32>} : memref<8x1568xf32, #tpu.memory_space<vmem>>, vector<8x32xf32>,
    %126 = vector.extract_strided_slice %67 {offsets = [232, 0], sizes = [8, 32], strides = [1, 1]} : vector<392x32xf32> to vector<8x32xf32>
    %c0_121 = arith.constant 0 : index
    %c928 = arith.constant 928 : index
    %127 = vector.load %arg11[%c0_121, %c928] : memref<8x1568xf32, #tpu.memory_space<vmem>>, vector<8x32xf32>
    tpu.vector_store %arg11[%c0_121, %c928], %126 {strides = array<i32>} : memref<8x1568xf32, #tpu.memory_space<vmem>>, vector<8x32xf32>,
    %128 = vector.extract_strided_slice %67 {offsets = [240, 0], sizes = [8, 32], strides = [1, 1]} : vector<392x32xf32> to vector<8x32xf32>
    %c0_122 = arith.constant 0 : index
    %c960 = arith.constant 960 : index
    %129 = vector.load %arg11[%c0_122, %c960] : memref<8x1568xf32, #tpu.memory_space<vmem>>, vector<8x32xf32>
    tpu.vector_store %arg11[%c0_122, %c960], %128 {strides = array<i32>} : memref<8x1568xf32, #tpu.memory_space<vmem>>, vector<8x32xf32>,
    %130 = vector.extract_strided_slice %67 {offsets = [248, 0], sizes = [8, 32], strides = [1, 1]} : vector<392x32xf32> to vector<8x32xf32>
    %c0_123 = arith.constant 0 : index
    %c992 = arith.constant 992 : index
    %131 = vector.load %arg11[%c0_123, %c992] : memref<8x1568xf32, #tpu.memory_space<vmem>>, vector<8x32xf32>
    tpu.vector_store %arg11[%c0_123, %c992], %130 {strides = array<i32>} : memref<8x1568xf32, #tpu.memory_space<vmem>>, vector<8x32xf32>,
    %132 = vector.extract_strided_slice %67 {offsets = [256, 0], sizes = [8, 32], strides = [1, 1]} : vector<392x32xf32> to vector<8x32xf32>
    %c0_124 = arith.constant 0 : index
    %c1024 = arith.constant 1024 : index
    %133 = vector.load %arg11[%c0_124, %c1024] : memref<8x1568xf32, #tpu.memory_space<vmem>>, vector<8x32xf32>
    tpu.vector_store %arg11[%c0_124, %c1024], %132 {strides = array<i32>} : memref<8x1568xf32, #tpu.memory_space<vmem>>, vector<8x32xf32>,
    %134 = vector.extract_strided_slice %67 {offsets = [264, 0], sizes = [8, 32], strides = [1, 1]} : vector<392x32xf32> to vector<8x32xf32>
    %c0_125 = arith.constant 0 : index
    %c1056 = arith.constant 1056 : index
    %135 = vector.load %arg11[%c0_125, %c1056] : memref<8x1568xf32, #tpu.memory_space<vmem>>, vector<8x32xf32>
    tpu.vector_store %arg11[%c0_125, %c1056], %134 {strides = array<i32>} : memref<8x1568xf32, #tpu.memory_space<vmem>>, vector<8x32xf32>,
    %136 = vector.extract_strided_slice %67 {offsets = [272, 0], sizes = [8, 32], strides = [1, 1]} : vector<392x32xf32> to vector<8x32xf32>
    %c0_126 = arith.constant 0 : index
    %c1088 = arith.constant 1088 : index
    %137 = vector.load %arg11[%c0_126, %c1088] : memref<8x1568xf32, #tpu.memory_space<vmem>>, vector<8x32xf32>
    tpu.vector_store %arg11[%c0_126, %c1088], %136 {strides = array<i32>} : memref<8x1568xf32, #tpu.memory_space<vmem>>, vector<8x32xf32>,
    %138 = vector.extract_strided_slice %67 {offsets = [280, 0], sizes = [8, 32], strides = [1, 1]} : vector<392x32xf32> to vector<8x32xf32>
    %c0_127 = arith.constant 0 : index
    %c1120 = arith.constant 1120 : index
    %139 = vector.load %arg11[%c0_127, %c1120] : memref<8x1568xf32, #tpu.memory_space<vmem>>, vector<8x32xf32>
    tpu.vector_store %arg11[%c0_127, %c1120], %138 {strides = array<i32>} : memref<8x1568xf32, #tpu.memory_space<vmem>>, vector<8x32xf32>,
    %140 = vector.extract_strided_slice %67 {offsets = [288, 0], sizes = [8, 32], strides = [1, 1]} : vector<392x32xf32> to vector<8x32xf32>
    %c0_128 = arith.constant 0 : index
    %c1152 = arith.constant 1152 : index
    %141 = vector.load %arg11[%c0_128, %c1152] : memref<8x1568xf32, #tpu.memory_space<vmem>>, vector<8x32xf32>
    tpu.vector_store %arg11[%c0_128, %c1152], %140 {strides = array<i32>} : memref<8x1568xf32, #tpu.memory_space<vmem>>, vector<8x32xf32>,
    %142 = vector.extract_strided_slice %67 {offsets = [296, 0], sizes = [8, 32], strides = [1, 1]} : vector<392x32xf32> to vector<8x32xf32>
    %c0_129 = arith.constant 0 : index
    %c1184 = arith.constant 1184 : index
    %143 = vector.load %arg11[%c0_129, %c1184] : memref<8x1568xf32, #tpu.memory_space<vmem>>, vector<8x32xf32>
    tpu.vector_store %arg11[%c0_129, %c1184], %142 {strides = array<i32>} : memref<8x1568xf32, #tpu.memory_space<vmem>>, vector<8x32xf32>,
    %144 = vector.extract_strided_slice %67 {offsets = [304, 0], sizes = [8, 32], strides = [1, 1]} : vector<392x32xf32> to vector<8x32xf32>
    %c0_130 = arith.constant 0 : index
    %c1216 = arith.constant 1216 : index
    %145 = vector.load %arg11[%c0_130, %c1216] : memref<8x1568xf32, #tpu.memory_space<vmem>>, vector<8x32xf32>
    tpu.vector_store %arg11[%c0_130, %c1216], %144 {strides = array<i32>} : memref<8x1568xf32, #tpu.memory_space<vmem>>, vector<8x32xf32>,
    %146 = vector.extract_strided_slice %67 {offsets = [312, 0], sizes = [8, 32], strides = [1, 1]} : vector<392x32xf32> to vector<8x32xf32>
    %c0_131 = arith.constant 0 : index
    %c1248 = arith.constant 1248 : index
    %147 = vector.load %arg11[%c0_131, %c1248] : memref<8x1568xf32, #tpu.memory_space<vmem>>, vector<8x32xf32>
    tpu.vector_store %arg11[%c0_131, %c1248], %146 {strides = array<i32>} : memref<8x1568xf32, #tpu.memory_space<vmem>>, vector<8x32xf32>,
    %148 = vector.extract_strided_slice %67 {offsets = [320, 0], sizes = [8, 32], strides = [1, 1]} : vector<392x32xf32> to vector<8x32xf32>
    %c0_132 = arith.constant 0 : index
    %c1280 = arith.constant 1280 : index
    %149 = vector.load %arg11[%c0_132, %c1280] : memref<8x1568xf32, #tpu.memory_space<vmem>>, vector<8x32xf32>
    tpu.vector_store %arg11[%c0_132, %c1280], %148 {strides = array<i32>} : memref<8x1568xf32, #tpu.memory_space<vmem>>, vector<8x32xf32>,
    %150 = vector.extract_strided_slice %67 {offsets = [328, 0], sizes = [8, 32], strides = [1, 1]} : vector<392x32xf32> to vector<8x32xf32>
    %c0_133 = arith.constant 0 : index
    %c1312 = arith.constant 1312 : index
    %151 = vector.load %arg11[%c0_133, %c1312] : memref<8x1568xf32, #tpu.memory_space<vmem>>, vector<8x32xf32>
    tpu.vector_store %arg11[%c0_133, %c1312], %150 {strides = array<i32>} : memref<8x1568xf32, #tpu.memory_space<vmem>>, vector<8x32xf32>,
    %152 = vector.extract_strided_slice %67 {offsets = [336, 0], sizes = [8, 32], strides = [1, 1]} : vector<392x32xf32> to vector<8x32xf32>
    %c0_134 = arith.constant 0 : index
    %c1344 = arith.constant 1344 : index
    %153 = vector.load %arg11[%c0_134, %c1344] : memref<8x1568xf32, #tpu.memory_space<vmem>>, vector<8x32xf32>
    tpu.vector_store %arg11[%c0_134, %c1344], %152 {strides = array<i32>} : memref<8x1568xf32, #tpu.memory_space<vmem>>, vector<8x32xf32>,
    %154 = vector.extract_strided_slice %67 {offsets = [344, 0], sizes = [8, 32], strides = [1, 1]} : vector<392x32xf32> to vector<8x32xf32>
    %c0_135 = arith.constant 0 : index
    %c1376 = arith.constant 1376 : index
    %155 = vector.load %arg11[%c0_135, %c1376] : memref<8x1568xf32, #tpu.memory_space<vmem>>, vector<8x32xf32>
    tpu.vector_store %arg11[%c0_135, %c1376], %154 {strides = array<i32>} : memref<8x1568xf32, #tpu.memory_space<vmem>>, vector<8x32xf32>,
    %156 = vector.extract_strided_slice %67 {offsets = [352, 0], sizes = [8, 32], strides = [1, 1]} : vector<392x32xf32> to vector<8x32xf32>
    %c0_136 = arith.constant 0 : index
    %c1408 = arith.constant 1408 : index
    %157 = vector.load %arg11[%c0_136, %c1408] : memref<8x1568xf32, #tpu.memory_space<vmem>>, vector<8x32xf32>
    tpu.vector_store %arg11[%c0_136, %c1408], %156 {strides = array<i32>} : memref<8x1568xf32, #tpu.memory_space<vmem>>, vector<8x32xf32>,
    %158 = vector.extract_strided_slice %67 {offsets = [360, 0], sizes = [8, 32], strides = [1, 1]} : vector<392x32xf32> to vector<8x32xf32>
    %c0_137 = arith.constant 0 : index
    %c1440 = arith.constant 1440 : index
    %159 = vector.load %arg11[%c0_137, %c1440] : memref<8x1568xf32, #tpu.memory_space<vmem>>, vector<8x32xf32>
    tpu.vector_store %arg11[%c0_137, %c1440], %158 {strides = array<i32>} : memref<8x1568xf32, #tpu.memory_space<vmem>>, vector<8x32xf32>,
    %160 = vector.extract_strided_slice %67 {offsets = [368, 0], sizes = [8, 32], strides = [1, 1]} : vector<392x32xf32> to vector<8x32xf32>
    %c0_138 = arith.constant 0 : index
    %c1472 = arith.constant 1472 : index
    %161 = vector.load %arg11[%c0_138, %c1472] : memref<8x1568xf32, #tpu.memory_space<vmem>>, vector<8x32xf32>
    tpu.vector_store %arg11[%c0_138, %c1472], %160 {strides = array<i32>} : memref<8x1568xf32, #tpu.memory_space<vmem>>, vector<8x32xf32>,
    %162 = vector.extract_strided_slice %67 {offsets = [376, 0], sizes = [8, 32], strides = [1, 1]} : vector<392x32xf32> to vector<8x32xf32>
    %c0_139 = arith.constant 0 : index
    %c1504 = arith.constant 1504 : index
    %163 = vector.load %arg11[%c0_139, %c1504] : memref<8x1568xf32, #tpu.memory_space<vmem>>, vector<8x32xf32>
    tpu.vector_store %arg11[%c0_139, %c1504], %162 {strides = array<i32>} : memref<8x1568xf32, #tpu.memory_space<vmem>>, vector<8x32xf32>,
    %164 = vector.extract_strided_slice %67 {offsets = [384, 0], sizes = [8, 32], strides = [1, 1]} : vector<392x32xf32> to vector<8x32xf32>
    %c0_140 = arith.constant 0 : index
    %c1536 = arith.constant 1536 : index
    %165 = vector.load %arg11[%c0_140, %c1536] : memref<8x1568xf32, #tpu.memory_space<vmem>>, vector<8x32xf32>
    tpu.vector_store %arg11[%c0_140, %c1536], %164 {strides = array<i32>} : memref<8x1568xf32, #tpu.memory_space<vmem>>, vector<8x32xf32>,
    %c0_141 = arith.constant 0 : index
    %c0_142 = arith.constant 0 : index
    %166 = vector.load %arg11[%c0_141, %c0_142] : memref<8x1568xf32, #tpu.memory_space<vmem>>, vector<8x1568xf32>
    %c0_143 = arith.constant 0 : index
    %c0_144 = arith.constant 0 : index
    %167 = vector.load %arg6[%c0_143, %c0_144] : memref<1568x128xf32, #tpu.memory_space<vmem>>, vector<1568x128xf32>
    %cst_145 = arith.constant dense<0.000000e+00> : vector<8x128xf32>
    %168 = tpu.matmul %166, %167, %cst_145 {dimension_numbers = #tpu.dot_dimension_numbers<[1], [0], [0], [1], [0, 0, 1, 1], [], []>} : vector<8x1568xf32>, vector<1568x128xf32>, vector<8x128xf32> -> vector<8x128xf32>
    %c0_146 = arith.constant 0 : index
    %c0_147 = arith.constant 0 : index
    %169 = vector.load %arg7[%c0_146, %c0_147] : memref<1x128xf32, #tpu.memory_space<vmem>>, vector<1x128xf32>
    %170 = vector.broadcast %169 : vector<1x128xf32> to vector<8x128xf32>
    %171 = arith.addf %168, %170 : vector<8x128xf32>
    %c0_148 = arith.constant 0 : index
    %c0_149 = arith.constant 0 : index
    %172 = vector.load %arg8[%c0_148, %c0_149] : memref<8x128xf32, #tpu.memory_space<vmem>>, vector<8x128xf32>
    tpu.vector_store %arg8[%c0_148, %c0_149], %171 {strides = array<i32>} : memref<8x128xf32, #tpu.memory_space<vmem>>, vector<8x128xf32>,
    return
  }
  func.func @transform_0(%arg0: i32) -> (i32, i32, i32, i32) {
    %c0_i32 = arith.constant 0 : i32
    %c0_i32_0 = arith.constant 0 : i32
    %c0_i32_1 = arith.constant 0 : i32
    %c0_i32_2 = arith.constant 0 : i32
    return %c0_i32, %c0_i32_0, %arg0, %c0_i32_1 : i32, i32, i32, i32
  }
  func.func @transform_1(%arg0: i32) -> (i32, i32) {
    %c0_i32 = arith.constant 0 : i32
    %c0_i32_0 = arith.constant 0 : i32
    %c0_i32_1 = arith.constant 0 : i32
    return %c0_i32, %c0_i32_0 : i32, i32
  }
  func.func @transform_2(%arg0: i32) -> (i32, i32) {
    %c0_i32 = arith.constant 0 : i32
    %c0_i32_0 = arith.constant 0 : i32
    %c0_i32_1 = arith.constant 0 : i32
    return %c0_i32, %c0_i32_0 : i32, i32
  }
  func.func @transform_3(%arg0: i32) -> (i32, i32) {
    %c0_i32 = arith.constant 0 : i32
    %c0_i32_0 = arith.constant 0 : i32
    %c0_i32_1 = arith.constant 0 : i32
    return %c0_i32, %c0_i32_0 : i32, i32
  }
  func.func @transform_4(%arg0: i32) -> (i32, i32) {
    %c0_i32 = arith.constant 0 : i32
    %c0_i32_0 = arith.constant 0 : i32
    %c0_i32_1 = arith.constant 0 : i32
    return %c0_i32, %c0_i32_0 : i32, i32
  }
  func.func @transform_5(%arg0: i32) -> (i32, i32) {
    %c0_i32 = arith.constant 0 : i32
    %c0_i32_0 = arith.constant 0 : i32
    %c0_i32_1 = arith.constant 0 : i32
    return %c0_i32, %c0_i32_0 : i32, i32
  }
  func.func @transform_6(%arg0: i32) -> (i32, i32) {
    %c0_i32 = arith.constant 0 : i32
    %c0_i32_0 = arith.constant 0 : i32
    %c0_i32_1 = arith.constant 0 : i32
    return %c0_i32, %c0_i32_0 : i32, i32
  }
  func.func @transform_7(%arg0: i32) -> (i32, i32) {
    %c0_i32 = arith.constant 0 : i32
    %c0_i32_0 = arith.constant 0 : i32
    return %arg0, %c0_i32 : i32, i32
  }
}

</mosaic_0001>

<bundles_post_ra>
// kernel: model_forward.1
= control target key start
LH: loop header
LB: loop body
LE: loop exit
PB: predicated region body
PF: predicated region fallthrough
CT: control target
= control target key end

     0   :  { %s6314_s24 = smov 0   ;;  %s6316_s25 = smov 0   ;;  %s10504_s0 = inlined_call_operand.vmem [shape: f32[7,7,16,64], index: 0, kind: input, shape index: {}]   ;;  %s10505_s1 = inlined_call_operand.vmem [shape: f32[64,256], index: 1, kind: input, shape index: {}]   ;;  %s10506_s2 = inlined_call_operand.vmem [shape: f32[1,64], index: 2, kind: input, shape index: {}]   ;;  %s10507_s3 = inlined_call_operand.vmem [shape: f32[576,128], index: 3, kind: input, shape index: {}]   ;;  %s10508_s4 = inlined_call_operand.vmem [shape: f32[1,32], index: 4, kind: input, shape index: {}]   ;;  %s10509_s5 = inlined_call_operand.vmem [shape: f32[1568,128], index: 5, kind: input, shape index: {}]   ;;  %s10510_s6 = inlined_call_operand.vmem [shape: f32[1,128], index: 6, kind: input, shape index: {}]   ;;  %s10511_s7 = inlined_call_operand.vmem [shape: f32[16,128], index: 7, kind: output, shape index: {}]  }
   0x1   :  { %s6318_s26 = smov 0  }
   0x2 LB: > { %s6053_s27 = sadd.s32 4294967295, %s6268_s26   ;;  %s6331_s28 = sadd.s32 1, %s6268_s26   ;;  %s6268_s26 = sphi %s6318_s26, %s10741_s26   ;;  %s6264_s25 = sphi %s6316_s25, %s10740_s25   ;;  %s6260_s24 = sphi %s6314_s24, %s10739_s24  }
   0x3   : > { %s21_s29 = ssub.s32 %s6268_s26, %s6331_s28  ;;  %s24_s30 = sadd.s32 1, %s6264_s25 }
   0x4   : > { %p22_p0 = scmp.eq.s32.totalorder %s21_s29, 0  ;;  %p31_p1 = scmp.ne.s32.totalorder %s6264_s25, %s6260_s24 }
   0x5   : > { %p32_p2 = scmp.eq.s32.totalorder %s6268_s26, 0  ;;  %p6056_p4 = scmp.ge.s32.totalorder %s6268_s26, 2 }
   0x6   : > { %s6340_s8 = scalar_select %p22_p0, %s6264_s25, %s24_s30  }
   0x7   : > { %p33_p3 = por %p32_p2, %p31_p1  ;;  %227 = sbr.rel (%p6056_p4) target bundleno = 65 (0x41), region = 40 }
   0xc   : > { %230 = sbr.rel (!%p33_p3) target bundleno = 65 (0x41), region = 44  ;;  %s232_s9 = sand.u32 (%p33_p3), 1, %s6264_s25  }
   0xd   : > { %s6057_s10 = sshll.u32 (%p33_p3), %s6268_s26, 3  ;;  %s6210_s11 = smul.u32 (%p33_p3), 392, %s232_s9 }
   0xe   : > { %s6348_s14 = scalar_lea.vmem (%p33_p3), %s10504_s0, %s6057_s10 }
   0xf   : > { %v361_v0 = vld [vmem:[%s6348_s14] sm:$0xff] (%p33_p3)  ;;  %v363_v1 = vld [vmem:[%s6348_s14 + $0x10] sm:$0xff] (%p33_p3)  ;;  %s6353_s15 = scalar_lea.vmem (%p33_p3), [#allocation5], %s6210_s11 }
  0x10   : > { %v365_v2 = vld [vmem:[%s6348_s14 + $0x20] sm:$0xff] (%p33_p3)  ;;  %362 = vst [vmem:[%s6353_s15] sm:$0xff] (%p33_p3), %v361_v0  ;;  %v367_v3 = vld [vmem:[%s6348_s14 + $0x30] sm:$0xff] (%p33_p3) }
  0x11   : > { %364 = vst [vmem:[%s6353_s15 + $0x8] sm:$0xff] %v363_v1  ;;  %v369_v4 = vld [vmem:[%s6348_s14 + $0x40] sm:$0xff]  ;;  %v371_v5 = vld [vmem:[%s6348_s14 + $0x50] sm:$0xff] }
  0x12   : > { %366 = vst [vmem:[%s6353_s15 + $0x10] sm:$0xff] %v365_v2  ;;  %v373_v6 = vld [vmem:[%s6348_s14 + $0x60] sm:$0xff]  ;;  %v375_v7 = vld [vmem:[%s6348_s14 + $0x70] sm:$0xff] }
  0x13   : > { %368 = vst [vmem:[%s6353_s15 + $0x18] sm:$0xff] %v367_v3  ;;  %v377_v8 = vld [vmem:[%s6348_s14 + $0x80] sm:$0xff]  ;;  %v379_v9 = vld [vmem:[%s6348_s14 + $0x90] sm:$0xff] }
  0x14   : > { %370 = vst [vmem:[%s6353_s15 + $0x20] sm:$0xff] %v369_v4  ;;  %v381_v10 = vld [vmem:[%s6348_s14 + $0xa0] sm:$0xff]  ;;  %v383_v11 = vld [vmem:[%s6348_s14 + $0xb0] sm:$0xff] }
  0x15   : > { %372 = vst [vmem:[%s6353_s15 + $0x28] sm:$0xff] %v371_v5  ;;  %v385_v12 = vld [vmem:[%s6348_s14 + $0xc0] sm:$0xff]  ;;  %v387_v13 = vld [vmem:[%s6348_s14 + $0xd0] sm:$0xff] }
  0x16   : > { %374 = vst [vmem:[%s6353_s15 + $0x30] sm:$0xff] %v373_v6  ;;  %v389_v14 = vld [vmem:[%s6348_s14 + $0xe0] sm:$0xff]  ;;  %v391_v15 = vld [vmem:[%s6348_s14 + $0xf0] sm:$0xff] }
  0x17   : > { %376 = vst [vmem:[%s6353_s15 + $0x38] sm:$0xff] %v375_v7  ;;  %v393_v16 = vld [vmem:[%s6348_s14 + $0x100] sm:$0xff]  ;;  %v395_v17 = vld [vmem:[%s6348_s14 + $0x110] sm:$0xff] }
  0x18   : > { %378 = vst [vmem:[%s6353_s15 + $0x40] sm:$0xff] %v377_v8  ;;  %v397_v18 = vld [vmem:[%s6348_s14 + $0x120] sm:$0xff]  ;;  %v399_v19 = vld [vmem:[%s6348_s14 + $0x130] sm:$0xff] }
  0x19   : > { %380 = vst [vmem:[%s6353_s15 + $0x48] sm:$0xff] %v379_v9  ;;  %v401_v20 = vld [vmem:[%s6348_s14 + $0x140] sm:$0xff]  ;;  %v403_v21 = vld [vmem:[%s6348_s14 + $0x150] sm:$0xff] }
  0x1a   : > { %382 = vst [vmem:[%s6353_s15 + $0x50] sm:$0xff] %v381_v10  ;;  %v405_v22 = vld [vmem:[%s6348_s14 + $0x160] sm:$0xff]  ;;  %v407_v23 = vld [vmem:[%s6348_s14 + $0x170] sm:$0xff] }
  0x1b   : > { %384 = vst [vmem:[%s6353_s15 + $0x58] sm:$0xff] %v383_v11  ;;  %v409_v24 = vld [vmem:[%s6348_s14 + $0x180] sm:$0xff]  ;;  %v411_v25 = vld [vmem:[%s6348_s14 + $0x190] sm:$0xff] }
  0x1c   : > { %386 = vst [vmem:[%s6353_s15 + $0x60] sm:$0xff] %v385_v12  ;;  %v413_v26 = vld [vmem:[%s6348_s14 + $0x1a0] sm:$0xff]  ;;  %v415_v27 = vld [vmem:[%s6348_s14 + $0x1b0] sm:$0xff] }
  0x1d   : > { %388 = vst [vmem:[%s6353_s15 + $0x68] sm:$0xff] %v387_v13  ;;  %v417_v28 = vld [vmem:[%s6348_s14 + $0x1c0] sm:$0xff]  ;;  %v419_v29 = vld [vmem:[%s6348_s14 + $0x1d0] sm:$0xff] }
  0x1e   : > { %390 = vst [vmem:[%s6353_s15 + $0x70] sm:$0xff] %v389_v14  ;;  %v421_v30 = vld [vmem:[%s6348_s14 + $0x1e0] sm:$0xff]  ;;  %v423_v31 = vld [vmem:[%s6348_s14 + $0x1f0] sm:$0xff] }
  0x1f   : > { %392 = vst [vmem:[%s6353_s15 + $0x78] sm:$0xff] %v391_v15  ;;  %v425_v32 = vld [vmem:[%s6348_s14 + $0x200] sm:$0xff]  ;;  %v427_v33 = vld [vmem:[%s6348_s14 + $0x210] sm:$0xff] }
  0x20   : > { %394 = vst [vmem:[%s6353_s15 + $0x80] sm:$0xff] %v393_v16  ;;  %v429_v34 = vld [vmem:[%s6348_s14 + $0x220] sm:$0xff]  ;;  %v431_v35 = vld [vmem:[%s6348_s14 + $0x230] sm:$0xff] }
  0x21   : > { %396 = vst [vmem:[%s6353_s15 + $0x88] sm:$0xff] %v395_v17  ;;  %v433_v36 = vld [vmem:[%s6348_s14 + $0x240] sm:$0xff]  ;;  %v435_v37 = vld [vmem:[%s6348_s14 + $0x250] sm:$0xff] }
  0x22   : > { %398 = vst [vmem:[%s6353_s15 + $0x90] sm:$0xff] %v397_v18  ;;  %v437_v38 = vld [vmem:[%s6348_s14 + $0x260] sm:$0xff]  ;;  %v439_v39 = vld [vmem:[%s6348_s14 + $0x270] sm:$0xff] }
  0x23   : > { %400 = vst [vmem:[%s6353_s15 + $0x98] sm:$0xff] %v399_v19  ;;  %v441_v40 = vld [vmem:[%s6348_s14 + $0x280] sm:$0xff]  ;;  %v443_v41 = vld [vmem:[%s6348_s14 + $0x290] sm:$0xff] }
  0x24   : > { %402 = vst [vmem:[%s6353_s15 + $0xa0] sm:$0xff] %v401_v20  ;;  %v445_v42 = vld [vmem:[%s6348_s14 + $0x2a0] sm:$0xff]  ;;  %v447_v43 = vld [vmem:[%s6348_s14 + $0x2b0] sm:$0xff] }
  0x25   : > { %404 = vst [vmem:[%s6353_s15 + $0xa8] sm:$0xff] %v403_v21  ;;  %v449_v44 = vld [vmem:[%s6348_s14 + $0x2c0] sm:$0xff]  ;;  %v451_v45 = vld [vmem:[%s6348_s14 + $0x2d0] sm:$0xff] }
  0x26   : > { %406 = vst [vmem:[%s6353_s15 + $0xb0] sm:$0xff] %v405_v22  ;;  %v453_v46 = vld [vmem:[%s6348_s14 + $0x2e0] sm:$0xff]  ;;  %v455_v47 = vld [vmem:[%s6348_s14 + $0x2f0] sm:$0xff] }
  0x27   : > { %408 = vst [vmem:[%s6353_s15 + $0xb8] sm:$0xff] %v407_v23  ;;  %v457_v48 = vld [vmem:[%s6348_s14 + $0x300] sm:$0xff] }
  0x28   : > { %410 = vst [vmem:[%s6353_s15 + $0xc0] sm:$0xff] %v409_v24 }
  0x29   : > { %412 = vst [vmem:[%s6353_s15 + $0xc8] sm:$0xff] %v411_v25 }
  0x2a   : > { %414 = vst [vmem:[%s6353_s15 + $0xd0] sm:$0xff] %v413_v26 }
  0x2b   : > { %416 = vst [vmem:[%s6353_s15 + $0xd8] sm:$0xff] %v415_v27 }
  0x2c   : > { %418 = vst [vmem:[%s6353_s15 + $0xe0] sm:$0xff] %v417_v28 }
  0x2d   : > { %420 = vst [vmem:[%s6353_s15 + $0xe8] sm:$0xff] %v419_v29 }
  0x2e   : > { %422 = vst [vmem:[%s6353_s15 + $0xf0] sm:$0xff] %v421_v30 }
  0x2f   : > { %424 = vst [vmem:[%s6353_s15 + $0xf8] sm:$0xff] %v423_v31 }
  0x30   : > { %426 = vst [vmem:[%s6353_s15 + $0x100] sm:$0xff] %v425_v32 }
  0x31   : > { %428 = vst [vmem:[%s6353_s15 + $0x108] sm:$0xff] %v427_v33 }
  0x32   : > { %430 = vst [vmem:[%s6353_s15 + $0x110] sm:$0xff] %v429_v34 }
  0x33   : > { %432 = vst [vmem:[%s6353_s15 + $0x118] sm:$0xff] %v431_v35 }
  0x34   : > { %434 = vst [vmem:[%s6353_s15 + $0x120] sm:$0xff] %v433_v36 }
  0x35   : > { %436 = vst [vmem:[%s6353_s15 + $0x128] sm:$0xff] %v435_v37 }
  0x36   : > { %438 = vst [vmem:[%s6353_s15 + $0x130] sm:$0xff] %v437_v38 }
  0x37   : > { %440 = vst [vmem:[%s6353_s15 + $0x138] sm:$0xff] %v439_v39 }
  0x38   : > { %442 = vst [vmem:[%s6353_s15 + $0x140] sm:$0xff] %v441_v40 }
  0x39   : > { %444 = vst [vmem:[%s6353_s15 + $0x148] sm:$0xff] %v443_v41 }
  0x3a   : > { %446 = vst [vmem:[%s6353_s15 + $0x150] sm:$0xff] %v445_v42 }
  0x3b   : > { %448 = vst [vmem:[%s6353_s15 + $0x158] sm:$0xff] %v447_v43 }
  0x3c   : > { %450 = vst [vmem:[%s6353_s15 + $0x160] sm:$0xff] %v449_v44 }
  0x3d   : > { %452 = vst [vmem:[%s6353_s15 + $0x168] sm:$0xff] %v451_v45 }
  0x3e   : > { %454 = vst [vmem:[%s6353_s15 + $0x170] sm:$0xff] %v453_v46 }
  0x3f   : > { %456 = vst [vmem:[%s6353_s15 + $0x178] sm:$0xff] %v455_v47 }
  0x40   : > { %458 = vst [vmem:[%s6353_s15 + $0x180] sm:$0xff] %v457_v48 }
  0x41 PF: > { %p6058_p5 = scmp.ge.s32.totalorder %s6268_s26, 1  ;;  %p463_p6 = scmp.lt.s32.totalorder %s6268_s26, 3 }
  0x43   : > { %p464_p7 = pnand %p6058_p5, %p463_p6 }
  0x45   : > { %467 = sbr.rel (%p464_p7) target bundleno = 1947 (0x79b), region = 82 }
  0x4a   : > { %v567_v49 = vld [vmem:[%s10505_s1 + $0x70] sm:$0xff]  ;;  %v568_v50 = vld [vmem:[%s10505_s1 + $0x78] sm:$0xff]  ;;  %v565_v51 = vld [vmem:[%s10505_s1 + $0x60] sm:$0xff]  ;;  %s470_s11 = sand.u32 1, %s6260_s24   ;;  %vm569_vm0 = vcmask 523264   ;;  %v6270_v8 = vmov 0.0  }
  0x4b   : > { %725 = vmatpush.msra.mxu0 %v567_v49  ;;  %889 = vmatpush.msra.mxu1 %v568_v50  ;;  %v566_v52 = vld [vmem:[%s10505_s1 + $0x68] sm:$0xff]  ;;  %v563_v53 = vld [vmem:[%s10505_s1 + $0x50] sm:$0xff]  ;;  %v564_v54 = vld [vmem:[%s10505_s1 + $0x58] sm:$0xff]  ;;  %s6211_s20 = smul.u32 392, %s470_s11  ;;  %1690 = vst.msk [vmem:[#allocation2 + $0x20] sm:$0xff] %vm569_vm0, %v6270_v8  ;;  %s6271_s16 = smov 64  }
  0x4c   : > { %v561_v55 = vld [vmem:[%s10505_s1 + $0x40] sm:$0xff]  ;;  %v562_v56 = vld [vmem:[%s10505_s1 + $0x48] sm:$0xff]  ;;  %v559_v57 = vld [vmem:[%s10505_s1 + $0x30] sm:$0xff]  ;;  %1686 = vst.msk [vmem:[#allocation2] sm:$0xff] %vm569_vm0, %v6270_v8  ;;  %vm2115_vm1 = vcmask 1048064   ;;  %s6272_s19 = smov 96  }
  0x4d   : > { %726 = vmatpush.msra.mxu0 %v565_v51  ;;  %890 = vmatpush.msra.mxu1 %v566_v52  ;;  %v560_v58 = vld [vmem:[%s10505_s1 + $0x38] sm:$0xff]  ;;  %v557_v59 = vld [vmem:[%s10505_s1 + $0x20] sm:$0xff]  ;;  %v558_v60 = vld [vmem:[%s10505_s1 + $0x28] sm:$0xff]  ;;  %s6501_s15 = scalar_lea.vmem [#allocation5], %s6211_s20  ;;  %1687 = vst.msk [vmem:[#allocation2 + $0x8] sm:$0xff] %vm569_vm0, %v6270_v8  ;;  %vm5320_vm2 = vcmask 261120  }
  0x4e   : > { %v555_v61 = vld [vmem:[%s10505_s1 + $0x10] sm:$0xff]  ;;  %v556_v62 = vld [vmem:[%s10505_s1 + $0x18] sm:$0xff]  ;;  %v553_v63 = vld [vmem:[%s10505_s1] sm:$0xff]  ;;  %1688 = vst.msk [vmem:[#allocation2 + $0x10] sm:$0xff] %vm569_vm0, %v6270_v8  ;;  %s6273_s12 = smov 32   ;;  %vm5326_vm3 = vcmask 523520  }
  0x4f   : > { %727 = vmatpush.msra.mxu0 %v563_v53  ;;  %891 = vmatpush.msra.mxu1 %v564_v54  ;;  %v554_v0 = vld [vmem:[%s10505_s1 + $0x8] sm:$0xff]  ;;  %v504_v1 = vld [vmem:[%s6501_s15] sm:$0xff]  ;;  %v507_v4 = vld [vmem:[%s6501_s15 + $0x18] sm:$0xff]  ;;  %1689 = vst.msk [vmem:[#allocation2 + $0x18] sm:$0xff] %vm569_vm0, %v6270_v8  ;;  %vm5332_vm4 = vcmask 785920   ;;  %vm5338_vm5 = vcmask 1048320  }
  0x50   : > { %v505_v2 = vld [vmem:[%s6501_s15 + $0x8] sm:$0xff]  ;;  %v506_v3 = vld [vmem:[%s6501_s15 + $0x10] sm:$0xff]  ;;  %v508_v5 = vld [vmem:[%s6501_s15 + $0x20] sm:$0xff]  ;;  %1691 = vst.msk [vmem:[#allocation2 + $0x28] sm:$0xff] %vm569_vm0, %v6270_v8  ;;  %p500_p8 = scmp.lt.s32.totalorder %s6053_s27, 1 }
  0x51   : > { %728 = vmatpush.msra.mxu0 %v561_v55  ;;  %892 = vmatpush.msra.mxu1 %v562_v56  ;;  %v509_v6 = vld [vmem:[%s6501_s15 + $0x28] sm:$0xff]  ;;  %v510_v7 = vld [vmem:[%s6501_s15 + $0x30] sm:$0xff]  ;;  %1692 = vst.msk [vmem:[#allocation2 + $0x30] sm:$0xff] %vm569_vm0, %v6270_v8  ;;  %v511_v9 = vld [vmem:[%s6501_s15 + $0x38] sm:$0xff] }
  0x52   : > { %v1873_v10 = vld [vmem:[#allocation2 + $0x20] sm:$0xff]  ;;  %1693 = vst.msk [vmem:[#allocation2 + $0x38] sm:$0xff] %vm569_vm0, %v6270_v8  ;;  %v514_v19 = vld [vmem:[%s6501_s15 + $0x50] sm:$0xff]  ;;  %v515_v21 = vld [vmem:[%s6501_s15 + $0x58] sm:$0xff]  ;;  %s10743_s27 = smov (!%p500_p8, %s6053_s27), 1 }
  0x53   : > { %729 = vmatpush.msra.mxu0 %v559_v57  ;;  %893 = vmatpush.msra.mxu1 %v560_v58  ;;  %1694 = vst.msk [vmem:[#allocation2 + $0x40] sm:$0xff] %vm569_vm0, %v6270_v8  ;;  %v512_v13 = vld [vmem:[%s6501_s15 + $0x40] sm:$0xff]  ;;  %v513_v16 = vld [vmem:[%s6501_s15 + $0x48] sm:$0xff]  ;;  %v518_v24 = vld [vmem:[%s6501_s15 + $0x70] sm:$0xff]  ;;  %s6059_s22 = sshll.u32 %s10743_s27, 3 }
  0x54   : > { %1974 = vrot.lane.b32.xlu1 %v1873_v10, %s6271_s16  ;;  %1696 = vst.msk [vmem:[#allocation2 + $0x240] sm:$0xff] %vm569_vm0, %v6270_v8  ;;  %v1870_v11 = vld [vmem:[#allocation2 + $0x8] sm:$0xff]  ;;  %v516_v22 = vld [vmem:[%s6501_s15 + $0x60] sm:$0xff]  ;;  %v519_v25 = vld [vmem:[%s6501_s15 + $0x78] sm:$0xff]  ;;  %s503_s29 = scalar_lea.vmem %s10511_s7, %s6059_s22 }
  0x55   : > { %730 = vmatpush.msra.mxu0 %v557_v59  ;;  %894 = vmatpush.msra.mxu1 %v558_v60  ;;  %1697 = vst.msk [vmem:[#allocation2 + $0x248] sm:$0xff] %vm569_vm0, %v6270_v8  ;;  %v1871_v14 = vld [vmem:[#allocation2 + $0x10] sm:$0xff]  ;;  %v517_v23 = vld [vmem:[%s6501_s15 + $0x68] sm:$0xff]  ;;  %v3704_v26 = vld [vmem:[%s10507_s3 + $0x78] sm:$0xff] }
  0x56   : > { %1698 = vst.msk [vmem:[#allocation2 + $0x250] sm:$0xff] %vm569_vm0, %v6270_v8  ;;  %1968 = vrot.lane.b32.xlu2 %v1870_v11, %s6271_s16  ;;  %v1872_v17 = vld [vmem:[#allocation2 + $0x18] sm:$0xff]  ;;  %v3703_v27 = vld [vmem:[%s10507_s3 + $0x70] sm:$0xff]  ;;  %3908 = vmatpush.msra.mxu2 %v3704_v26  ;;  %v3702_v31 = vld [vmem:[%s10507_s3 + $0x68] sm:$0xff] }
  0x57   : > { %731 = vmatpush.msra.mxu0 %v555_v61  ;;  %895 = vmatpush.msra.mxu1 %v556_v62  ;;  %1699 = vst.msk [vmem:[#allocation2 + $0x258] sm:$0xff] %vm569_vm0, %v6270_v8  ;;  %v1874_v12 = vld [vmem:[#allocation2 + $0x28] sm:$0xff]  ;;  %v520_v30 = vld [vmem:[%s6501_s15 + $0x80] sm:$0xff]  ;;  %v3699_v34 = vld [vmem:[%s10507_s3 + $0x50] sm:$0xff] }
  0x58   : > { %1700 = vst.msk [vmem:[#allocation2 + $0x260] sm:$0xff] %vm569_vm0, %v6270_v8  ;;  %v1875_v15 = vld [vmem:[#allocation2 + $0x30] sm:$0xff]  ;;  %3909 = vmatpush.msra.mxu2 %v3703_v27  ;;  %v3701_v32 = vld [vmem:[%s10507_s3 + $0x60] sm:$0xff]  ;;  %v3700_v33 = vld [vmem:[%s10507_s3 + $0x58] sm:$0xff] }
  0x59   : > { %732 = vmatpush.msra.mxu0 %v553_v63  ;;  %896 = vmatpush.msra.mxu1 %v554_v0  ;;  %1701 = vst.msk [vmem:[#allocation2 + $0x268] sm:$0xff] %vm569_vm0, %v6270_v8  ;;  %v1876_v18 = vld [vmem:[#allocation2 + $0x38] sm:$0xff]  ;;  %v521_v37 = vld [vmem:[%s6501_s15 + $0x88] sm:$0xff]  ;;  %v3695_v41 = vld [vmem:[%s10507_s3 + $0x30] sm:$0xff] }
  0x5a   : > { %6060 = vmatmul.msk.f32.vlgmr.msra.gmra.mxu0 %vm569_vm0, %v504_v1  ;;  %6109 = vmatmul.msk.f32.vlgmr.msra.gmra.mxu1 %vm569_vm0, %v504_v1  ;;  %1702 = vst.msk [vmem:[#allocation2 + $0x270] sm:$0xff] %vm569_vm0, %v6270_v8  ;;  %v3698_v38 = vld [vmem:[%s10507_s3 + $0x48] sm:$0xff]  ;;  %v3697_v39 = vld [vmem:[%s10507_s3 + $0x40] sm:$0xff]  ;;  %v3696_v40 = vld [vmem:[%s10507_s3 + $0x38] sm:$0xff] }
  0x5b   : > { %1703 = vst.msk [vmem:[#allocation2 + $0x278] sm:$0xff] %vm569_vm0, %v6270_v8  ;;  %1980 = vrot.lane.b32.xlu0 %v1876_v18, %s6271_s16  ;;  %3910 = vmatpush.msra.mxu2 %v3702_v31  ;;  %v522_v44 = vld [vmem:[%s6501_s15 + $0x90] sm:$0xff]  ;;  %v3693_v46 = vld [vmem:[%s10507_s3 + $0x20] sm:$0xff]  ;;  %v3692_v48 = vld [vmem:[%s10507_s3 + $0x18] sm:$0xff] }
  0x5c   : > { %1976 = vrot.lane.b32.xlu1 %v1874_v12, %s6271_s16  ;;  %1704 = vst.msk [vmem:[#allocation2 + $0x280] sm:$0xff] %vm569_vm0, %v6270_v8  ;;  %v3694_v45 = vld [vmem:[%s10507_s3 + $0x28] sm:$0xff]  ;;  %v1771_v47 = vld [vmem:[#allocation2] sm:$0xff]  ;;  %v3691_v49 = vld [vmem:[%s10507_s3 + $0x10] sm:$0xff] }
  0x5d   : > { %1706 = vst.msk [vmem:[#allocation2 + $0x48] sm:$0xff] %vm569_vm0, %v6270_v8  ;;  %3911 = vmatpush.msra.mxu2 %v3701_v32  ;;  %v523_v53 = vld [vmem:[%s6501_s15 + $0x98] sm:$0xff]  ;;  %v3690_v54 = vld [vmem:[%s10507_s3 + $0x8] sm:$0xff]  ;;  %v3689_v55 = vld [vmem:[%s10507_s3] sm:$0xff] }
  0x5e   : > { %1707 = vst.msk [vmem:[#allocation2 + $0x90] sm:$0xff] %vm569_vm0, %v6270_v8  ;;  %1970 = vrot.lane.b32.xlu2 %v1871_v14, %s6271_s16  ;;  %v524_v60 = vld [vmem:[%s6501_s15 + $0xa0] sm:$0xff]  ;;  %v525_v1 = vld [vmem:[%s6501_s15 + $0xa8] sm:$0xff] }
  0x5f   : > { %1708 = vst.msk [vmem:[#allocation2 + $0xd8] sm:$0xff] %vm569_vm0, %v6270_v8  ;;  %3912 = vmatpush.msra.mxu2 %v3700_v33  ;;  %v3712_v26 = vld [vmem:[%s10507_s3 + $0xb8] sm:$0xff]  ;;  %v529_v33 = vld [vmem:[%s6501_s15 + $0xc8] sm:$0xff] }
  0x60   : > { %1709 = vst.msk [vmem:[#allocation2 + $0x120] sm:$0xff] %vm569_vm0, %v6270_v8 }
  0x61   : > { %1710 = vst.msk [vmem:[#allocation2 + $0x168] sm:$0xff] %vm569_vm0, %v6270_v8  ;;  %3913 = vmatpush.msra.mxu2 %v3699_v34  ;;  %v3710_v34 = vld [vmem:[%s10507_s3 + $0xa8] sm:$0xff] }
  0x62   : > { %6061 = vmatmul.msk.f32.gmra.mxu0 %vm569_vm0, %v505_v2  ;;  %6110 = vmatmul.msk.f32.gmra.mxu1 %vm569_vm0, %v505_v2  ;;  %1711 = vst.msk [vmem:[#allocation2 + $0x1b0] sm:$0xff] %vm569_vm0, %v6270_v8 }
  0x63   : > { %1712 = vst.msk [vmem:[#allocation2 + $0x1f8] sm:$0xff] %vm569_vm0, %v6270_v8  ;;  %3914 = vmatpush.msra.mxu2 %v3698_v38 }
  0x64   : > { %1978 = vrot.lane.b32.xlu1 %v1875_v15, %s6271_s16  ;;  %1714 = vst.msk [vmem:[#allocation2 + $0x88] sm:$0xff] %vm569_vm0, %v6270_v8  ;;  %v2264_v20 = vld [vmem:[#allocation2 + $0x48] sm:$0xff] }
  0x65   : > { %1715 = vst.msk [vmem:[#allocation2 + $0xd0] sm:$0xff] %vm569_vm0, %v6270_v8  ;;  %2362 = vrot.lane.b32.xlu0 %v2264_v20, %s6271_s16  ;;  %3915 = vmatpush.msra.mxu2 %v3697_v39  ;;  %v3708_v39 = vld [vmem:[%s10507_s3 + $0x98] sm:$0xff] }
  0x66   : > { %1716 = vst.msk [vmem:[#allocation2 + $0x118] sm:$0xff] %vm569_vm0, %v6270_v8  ;;  %1972 = vrot.lane.b32.xlu2 %v1872_v17, %s6271_s16 }
  0x67   : > { %1717 = vst.msk [vmem:[#allocation2 + $0x160] sm:$0xff] %vm569_vm0, %v6270_v8  ;;  %3916 = vmatpush.msra.mxu2 %v3696_v40 }
  0x68   : > { %1718 = vst.msk [vmem:[#allocation2 + $0x1a8] sm:$0xff] %vm569_vm0, %v6270_v8 }
  0x69   : > { %1719 = vst.msk [vmem:[#allocation2 + $0x1f0] sm:$0xff] %vm569_vm0, %v6270_v8  ;;  %3917 = vmatpush.msra.mxu2 %v3695_v41  ;;  %v3707_v41 = vld [vmem:[%s10507_s3 + $0x90] sm:$0xff] }
  0x6a   : > { %6062 = vmatmul.msk.f32.gmra.mxu0 %vm569_vm0, %v506_v3  ;;  %6111 = vmatmul.msk.f32.gmra.mxu1 %vm569_vm0, %v506_v3  ;;  %1720 = vst.msk [vmem:[#allocation2 + $0x238] sm:$0xff] %vm569_vm0, %v6270_v8  ;;  %v3720_v8 = vld [vmem:[%s10507_s3 + $0xf8] sm:$0xff] }
  0x6b   : > { %1821 = vst.msk [vmem:[#allocation3 + $0x28] sm:$0xff] %vm569_vm0, %v1870_v11  ;;  %3918 = vmatpush.msra.mxu2 %v3694_v45  ;;  %4072 = vmatpush.msra.mxu3 %v3720_v8 }
  0x6c   : > { %1822 = vst.msk [vmem:[#allocation3 + $0x50] sm:$0xff] %vm569_vm0, %v1871_v14 }
  0x6d   : > { %1823 = vst.msk [vmem:[#allocation3 + $0x78] sm:$0xff] %vm569_vm0, %v1872_v17  ;;  %3919 = vmatpush.msra.mxu2 %v3693_v46  ;;  %v3716_v17 = vld [vmem:[%s10507_s3 + $0xd8] sm:$0xff]  ;;  %v530_v46 = vld [vmem:[%s6501_s15 + $0xd0] sm:$0xff] }
  0x6e   : > { %1824 = vst.msk [vmem:[#allocation3 + $0xa0] sm:$0xff] %vm569_vm0, %v1873_v10 }
  0x6f   : > { %1825 = vst.msk [vmem:[#allocation3 + $0xc8] sm:$0xff] %vm569_vm0, %v1874_v12  ;;  %3920 = vmatpush.msra.mxu2 %v3692_v48  ;;  %v3705_v48 = vld [vmem:[%s10507_s3 + $0x80] sm:$0xff] }
  0x70   : > { %1826 = vst.msk [vmem:[#allocation3 + $0xf0] sm:$0xff] %vm569_vm0, %v1875_v15  ;;  %v3717_v15 = vld [vmem:[%s10507_s3 + $0xe0] sm:$0xff] }
  0x71   : > { %2215 = vst.msk [vmem:[#allocation3 + $0x8] sm:$0xff] %vm569_vm0, %v1871_v14  ;;  %3921 = vmatpush.msra.mxu2 %v3691_v49  ;;  %v3718_v14 = vld [vmem:[%s10507_s3 + $0xe8] sm:$0xff] }
  0x72   : > { %6063 = vmatmul.msk.f32.gmra.mxu0 %vm569_vm0, %v507_v4  ;;  %6112 = vmatmul.msk.f32.gmra.mxu1 %vm569_vm0, %v507_v4  ;;  %1820 = vst.msk [vmem:[#allocation3] sm:$0xff] %vm569_vm0, %v1771_v47  ;;  %v3706_v47 = vld [vmem:[%s10507_s3 + $0x88] sm:$0xff] }
  0x73   : > { %3922 = vmatpush.msra.mxu2 %v3690_v54  ;;  %v531_v54 = vld [vmem:[%s6501_s15 + $0xd8] sm:$0xff] }
  0x75   : > { %3923 = vmatpush.msra.mxu2 %v3689_v55 }
  0x7a   : > { %6064 = vmatmul.msk.f32.gmra.mxu0 %vm569_vm0, %v508_v5  ;;  %6113 = vmatmul.msk.f32.gmra.mxu1 %vm569_vm0, %v508_v5 }
  0x82   : > { %6065 = vmatmul.msk.f32.gmra.mxu0 %vm569_vm0, %v509_v6  ;;  %6114 = vmatmul.msk.f32.gmra.mxu1 %vm569_vm0, %v509_v6  ;;  %v526_v6 = vld [vmem:[%s6501_s15 + $0xb0] sm:$0xff] }
  0x8a   : > { %6066 = vmatmul.msk.f32.gmra.mxu0 %vm569_vm0, %v510_v7  ;;  %6115 = vmatmul.msk.f32.gmra.mxu1 %vm569_vm0, %v510_v7 }
  0x92   : > { %6067 = vmatmul.msk.f32.gmra.mxu0 %vm569_vm0, %v511_v9  ;;  %6116 = vmatmul.msk.f32.gmra.mxu1 %vm569_vm0, %v511_v9  ;;  %v3719_v9 = vld [vmem:[%s10507_s3 + $0xf0] sm:$0xff] }
  0x93   : > { %4073 = vmatpush.msra.mxu3 %v3719_v9 }
  0x95   : > { %4074 = vmatpush.msra.mxu3 %v3718_v14 }
  0x97   : > { %4075 = vmatpush.msra.mxu3 %v3717_v15 }
  0x99   : > { %4076 = vmatpush.msra.mxu3 %v3716_v17 }
  0x9a   : > { %6068 = vmatmul.msk.f32.gmra.mxu0 %vm569_vm0, %v512_v13  ;;  %6117 = vmatmul.msk.f32.gmra.mxu1 %vm569_vm0, %v512_v13  ;;  %v527_v13 = vld [vmem:[%s6501_s15 + $0xb8] sm:$0xff] }
  0xa2   : > { %6069 = vmatmul.msk.f32.gmra.mxu0 %vm569_vm0, %v513_v16  ;;  %6118 = vmatmul.msk.f32.gmra.mxu1 %vm569_vm0, %v513_v16 }
  0xaa   : > { %6070 = vmatmul.msk.f32.gmra.mxu0 %vm569_vm0, %v514_v19  ;;  %6119 = vmatmul.msk.f32.gmra.mxu1 %vm569_vm0, %v514_v19  ;;  %v3715_v19 = vld [vmem:[%s10507_s3 + $0xd0] sm:$0xff] }
  0xab   : > { %4077 = vmatpush.msra.mxu3 %v3715_v19 }
  0xb0   : > { %v1969_v50 = vpop.permute.xlu2 %1968 }
  0xb1   : > { %2116 = vst.msk [vmem:[#allocation3] sm:$0xff] %vm2115_vm1, %v1969_v50 }
  0xb2   : > { %6071 = vmatmul.msk.f32.gmra.mxu0 %vm569_vm0, %v515_v21  ;;  %6120 = vmatmul.msk.f32.gmra.mxu1 %vm569_vm0, %v515_v21 }
  0xb8   : > { %v1971_v56 = vpop.permute.xlu2 %1970  ;;  %v3444_v57 = vld [vmem:[#allocation3] sm:$0xff] }
  0xb9   : > { %2117 = vst.msk [vmem:[#allocation3 + $0x28] sm:$0xff] %vm2115_vm1, %v1971_v56  ;;  %3924 = vmatmul.f32.vlgmr.msra.gmra.mxu2 %v3444_v57  ;;  %v532_v57 = vld [vmem:[%s6501_s15 + $0xe0] sm:$0xff] }
  0xba   : > { %6072 = vmatmul.msk.f32.gmra.mxu0 %vm569_vm0, %v516_v22  ;;  %6121 = vmatmul.msk.f32.gmra.mxu1 %vm569_vm0, %v516_v22  ;;  %v528_v22 = vld [vmem:[%s6501_s15 + $0xc0] sm:$0xff] }
  0xc0   : > { %v1973_v61 = vpop.permute.xlu2 %1972  ;;  %v3449_v62 = vld [vmem:[#allocation3 + $0x28] sm:$0xff] }
  0xc1   : > { %2118 = vst.msk [vmem:[#allocation3 + $0x50] sm:$0xff] %vm2115_vm1, %v1973_v61  ;;  %3927 = vmatmul.f32.gmra.mxu2 %v3449_v62  ;;  %v533_v62 = vld [vmem:[%s6501_s15 + $0xe8] sm:$0xff] }
  0xc2   : > { %6073 = vmatmul.msk.f32.gmra.mxu0 %vm569_vm0, %v517_v23  ;;  %6122 = vmatmul.msk.f32.gmra.mxu1 %vm569_vm0, %v517_v23  ;;  %v3714_v23 = vld [vmem:[%s10507_s3 + $0xc8] sm:$0xff] }
  0xc3   : > { %4078 = vmatpush.msra.mxu3 %v3714_v23  ;;  %v536_v23 = vld [vmem:[%s6501_s15 + $0x100] sm:$0xff] }
  0xc6   : > { %v1975_v2 = vpop.permute.xlu1 %1974 }
  0xc7   : > { %2119 = vst.msk [vmem:[#allocation3 + $0x78] sm:$0xff] %vm2115_vm1, %v1975_v2 }
  0xc8   : > { %v3454_v3 = vld [vmem:[#allocation3 + $0x50] sm:$0xff] }
  0xc9   : > { %3930 = vmatmul.f32.gmra.mxu2 %v3454_v3  ;;  %v534_v3 = vld [vmem:[%s6501_s15 + $0xf0] sm:$0xff] }
  0xca   : > { %6074 = vmatmul.msk.f32.gmra.mxu0 %vm569_vm0, %v518_v24  ;;  %6123 = vmatmul.msk.f32.gmra.mxu1 %vm569_vm0, %v518_v24  ;;  %v3713_v24 = vld [vmem:[%s10507_s3 + $0xc0] sm:$0xff] }
  0xcb   : > { %4079 = vmatpush.msra.mxu3 %v3713_v24 }
  0xcd   : > { %4080 = vmatpush.msra.mxu3 %v3712_v26 }
  0xce   : > { %v1977_v7 = vpop.permute.xlu1 %1976  ;;  %v3459_v10 = vld [vmem:[#allocation3 + $0x78] sm:$0xff] }
  0xcf   : > { %2120 = vst.msk [vmem:[#allocation3 + $0xa0] sm:$0xff] %vm2115_vm1, %v1977_v7 }
  0xd1   : > { %3933 = vmatmul.f32.gmra.mxu2 %v3459_v10  ;;  %v535_v10 = vld [vmem:[%s6501_s15 + $0xf8] sm:$0xff] }
  0xd2   : > { %6075 = vmatmul.msk.f32.gmra.mxu0 %vm569_vm0, %v519_v25  ;;  %6124 = vmatmul.msk.f32.gmra.mxu1 %vm569_vm0, %v519_v25  ;;  %v1981_v25 = vpop.permute.xlu0 %1980 }
  0xd3   : > { %2122 = vst.msk [vmem:[#allocation3 + $0xf0] sm:$0xff] %vm2115_vm1, %v1981_v25 }
  0xd6   : > { %v1979_v16 = vpop.permute.xlu1 %1978  ;;  %v3464_v18 = vld [vmem:[#allocation3 + $0xa0] sm:$0xff] }
  0xd7   : > { %v6604_v28 = vpop.f32.mrf.mxu0  ;;  %v6606_v29 = vpop.f32.mrf.mxu1  ;;  %2121 = vst.msk [vmem:[#allocation3 + $0xc8] sm:$0xff] %vm2115_vm1, %v1979_v16  ;;  %v6883_v16 = vld [vmem:[%s10506_s2] ss:$0 sm:$0xff] }
  0xd8   : > { %1094 = vrot.lane.b32.xlu0 %v6604_v28, %s6271_s16 }
  0xd9   : > { %3936 = vmatmul.f32.gmra.mxu2 %v3464_v18 }
  0xda   : > { %6076 = vmatmul.msk.f32.gmra.mxu0 %vm569_vm0, %v520_v30  ;;  %6125 = vmatmul.msk.f32.gmra.mxu1 %vm569_vm0, %v520_v30  ;;  %v3711_v30 = vld [vmem:[%s10507_s3 + $0xb0] sm:$0xff]  ;;  %v2363_v38 = vpop.permute.xlu0 %2362  ;;  %v3474_v40 = vld [vmem:[#allocation3 + $0xf0] sm:$0xff] }
  0xdb   : > { %4081 = vmatpush.msra.mxu3 %v3711_v30  ;;  %2509 = vst.msk [vmem:[#allocation3 + $0x8] sm:$0xff] %vm2115_vm1, %v2363_v38 }
  0xdd   : > { %4082 = vmatpush.msra.mxu3 %v3710_v34 }
  0xde   : > { %v3469_v27 = vld [vmem:[#allocation3 + $0xc8] sm:$0xff] }
  0xdf   : > { %v6625_v35 = vpop.f32.mrf.mxu0  ;;  %v6627_v36 = vpop.f32.mrf.mxu1 }
  0xe0   : > { %1339 = vrot.lane.b32.xlu0 %v6606_v29, %s6271_s16 }
  0xe1   : > { %3939 = vmatmul.f32.gmra.mxu2 %v3469_v27 }
  0xe2   : > { %6077 = vmatmul.msk.f32.gmra.mxu0 %vm569_vm0, %v521_v37  ;;  %6126 = vmatmul.msk.f32.gmra.mxu1 %vm569_vm0, %v521_v37  ;;  %v3709_v37 = vld [vmem:[%s10507_s3 + $0xa0] sm:$0xff]  ;;  %v3445_v49 = vld [vmem:[#allocation3 + $0x8] sm:$0xff] }
  0xe3   : > { %4083 = vmatpush.msra.mxu3 %v3709_v37  ;;  %v537_v37 = vld [vmem:[%s6501_s15 + $0x108] sm:$0xff] }
  0xe5   : > { %4084 = vmatpush.msra.mxu3 %v3708_v39 }
  0xe7   : > { %v6646_v42 = vpop.f32.mrf.mxu0  ;;  %v6648_v43 = vpop.f32.mrf.mxu1  ;;  %4085 = vmatpush.msra.mxu3 %v3707_v41 }
  0xe8   : > { %1096 = vrot.lane.b32.xlu0 %v6625_v35, %s6271_s16  ;;  %1098 = vrot.lane.b32.xlu1 %v6646_v42, %s6271_s16 }
  0xe9   : > { %3942 = vmatmul.f32.gmra.mxu2 %v3474_v40  ;;  %4086 = vmatpush.msra.mxu3 %v3706_v47 }
  0xea   : > { %6078 = vmatmul.msk.f32.gmra.mxu0 %vm569_vm0, %v522_v44  ;;  %6127 = vmatmul.msk.f32.gmra.mxu1 %vm569_vm0, %v522_v44 }
  0xeb   : > { %4087 = vmatpush.msra.mxu3 %v3705_v48 }
  0xec   : > { %4088 = vmatmul.f32.vlgmr.msra.gmra.mxu3 %v3445_v49 }
  0xef   : > { %v6671_v51 = vpop.f32.mrf.mxu0  ;;  %v6673_v52 = vpop.f32.mrf.mxu1 }
  0xf0   : > { %1345 = vrot.lane.b32.xlu2 %v6673_v52, %s6271_s16  ;;  %1341 = vrot.lane.b32.xlu0 %v6627_v36, %s6271_s16 }
  0xf1   : > { %1100 = vrot.lane.b32.xlu1 %v6671_v51, %s6271_s16 }
  0xf2   : > { %6079 = vmatmul.msk.f32.gmra.mxu0 %vm569_vm0, %v523_v53  ;;  %6128 = vmatmul.msk.f32.gmra.mxu1 %vm569_vm0, %v523_v53 }
  0xf7   : > { %v6691_v58 = vpop.f32.mrf.mxu0  ;;  %v6693_v59 = vpop.f32.mrf.mxu1 }
  0xf8   : > { %1343 = vrot.lane.b32.xlu0 %v6648_v43, %s6271_s16  ;;  %1102 = vrot.lane.b32.xlu2 %v6691_v58, %s6271_s16 }
  0xfa   : > { %6080 = vmatmul.msk.f32.gmra.mxu0 %vm569_vm0, %v524_v60  ;;  %6129 = vmatmul.msk.f32.gmra.mxu1 %vm569_vm0, %v524_v60 }
  0xff   : > { %v6703_v63 = vpop.f32.mrf.mxu0  ;;  %v6705_v0 = vpop.f32.mrf.mxu1 }
 0x100   : > { %1347 = vrot.lane.b32.xlu2 %v6693_v59, %s6271_s16 }
 0x102   : > { %6081 = vmatmul.msk.f32.gmra.mxu0 %vm569_vm0, %v525_v1  ;;  %6130 = vmatmul.msk.f32.gmra.mxu1 %vm569_vm0, %v525_v1 }
 0x107   : > { %v6713_v4 = vpop.f32.mrf.mxu0  ;;  %v6715_v5 = vpop.f32.mrf.mxu1 }
 0x108   : > { %1351 = vrot.lane.b32.xlu1 %v6715_v5, %s6271_s16  ;;  %1104 = vrot.lane.b32.xlu2 %v6703_v63, %s6271_s16 }
 0x109   : > { %1106 = vrot.lane.b32.xlu0 %v6713_v4, %s6271_s16 }
 0x10a   : > { %6082 = vmatmul.msk.f32.gmra.mxu0 %vm569_vm0, %v526_v6  ;;  %6131 = vmatmul.msk.f32.gmra.mxu1 %vm569_vm0, %v526_v6 }
 0x10f   : > { %v6733_v11 = vpop.f32.mrf.mxu0  ;;  %v6735_v12 = vpop.f32.mrf.mxu1 }
 0x110   : > { %1349 = vrot.lane.b32.xlu2 %v6705_v0, %s6271_s16  ;;  %1108 = vrot.lane.b32.xlu1 %v6733_v11, %s6271_s16 }
 0x112   : > { %6083 = vmatmul.msk.f32.gmra.mxu0 %vm569_vm0, %v527_v13  ;;  %6132 = vmatmul.msk.f32.gmra.mxu1 %vm569_vm0, %v527_v13 }
 0x117   : > { %v6757_v20 = vpop.f32.mrf.mxu0  ;;  %v6759_v21 = vpop.f32.mrf.mxu1 }
 0x118   : > { %1353 = vrot.lane.b32.xlu1 %v6735_v12, %s6271_s16  ;;  %1110 = vrot.lane.b32.xlu2 %v6757_v20, %s6271_s16 }
 0x11a   : > { %6084 = vmatmul.msk.f32.gmra.mxu0 %vm569_vm0, %v528_v22  ;;  %6133 = vmatmul.msk.f32.gmra.mxu1 %vm569_vm0, %v528_v22 }
 0x11f   : > { %v6781_v31 = vpop.f32.mrf.mxu0  ;;  %v6783_v32 = vpop.f32.mrf.mxu1 }
 0x120   : > { %1355 = vrot.lane.b32.xlu1 %v6759_v21, %s6271_s16  ;;  %1112 = vrot.lane.b32.xlu0 %v6781_v31, %s6271_s16 }
 0x122   : > { %6085 = vmatmul.msk.f32.gmra.mxu0 %vm569_vm0, %v529_v33  ;;  %6134 = vmatmul.msk.f32.gmra.mxu1 %vm569_vm0, %v529_v33 }
 0x127   : > { %v6805_v44 = vpop.f32.mrf.mxu0  ;;  %v6807_v45 = vpop.f32.mrf.mxu1 }
 0x128   : > { %1357 = vrot.lane.b32.xlu0 %v6783_v32, %s6271_s16  ;;  %1114 = vrot.lane.b32.xlu1 %v6805_v44, %s6271_s16 }
 0x12a   : > { %6086 = vmatmul.msk.f32.gmra.mxu0 %vm569_vm0, %v530_v46  ;;  %6135 = vmatmul.msk.f32.gmra.mxu1 %vm569_vm0, %v530_v46 }
 0x12f   : > { %v6822_v50 = vpop.f32.mrf.mxu0  ;;  %v6824_v53 = vpop.f32.mrf.mxu1 }
 0x130   : > { %1359 = vrot.lane.b32.xlu0 %v6807_v45, %s6271_s16  ;;  %1116 = vrot.lane.b32.xlu2 %v6822_v50, %s6271_s16 }
 0x132   : > { %6087 = vmatmul.msk.f32.gmra.mxu0 %vm569_vm0, %v531_v54  ;;  %6136 = vmatmul.msk.f32.gmra.mxu1 %vm569_vm0, %v531_v54 }
 0x137   : > { %v6833_v55 = vpop.f32.mrf.mxu0  ;;  %v6835_v56 = vpop.f32.mrf.mxu1 }
 0x138   : > { %1361 = vrot.lane.b32.xlu0 %v6824_v53, %s6271_s16  ;;  %1363 = vrot.lane.b32.xlu2 %v6835_v56, %s6271_s16 }
 0x13a   : > { %6088 = vmatmul.msk.f32.gmra.mxu0 %vm569_vm0, %v532_v57  ;;  %6137 = vmatmul.msk.f32.gmra.mxu1 %vm569_vm0, %v532_v57 }
 0x13f   : > { %v6844_v60 = vpop.f32.mrf.mxu0  ;;  %v6846_v61 = vpop.f32.mrf.mxu1 }
 0x140   : > { %1365 = vrot.lane.b32.xlu2 %v6846_v61, %s6271_s16  ;;  %1118 = vrot.lane.b32.xlu0 %v6833_v55, %s6271_s16 }
 0x141   : > { %1120 = vrot.lane.b32.xlu1 %v6844_v60, %s6271_s16 }
 0x142   : > { %6089 = vmatmul.msk.f32.gmra.mxu0 %vm569_vm0, %v533_v62  ;;  %6138 = vmatmul.msk.f32.gmra.mxu1 %vm569_vm0, %v533_v62 }
 0x147   : > { %v6857_v1 = vpop.f32.mrf.mxu0  ;;  %v6859_v2 = vpop.f32.mrf.mxu1 }
 0x148   : > { %1122 = vrot.lane.b32.xlu2 %v6857_v1, %s6271_s16 }
 0x14a   : > { %v1346_v6 = vpop.permute.xlu2 %1345  ;;  %v1095_v7 = vpop.permute.xlu0 %1094  ;;  %6090 = vmatmul.msk.f32.gmra.mxu0 %vm569_vm0, %v534_v3  ;;  %6139 = vmatmul.msk.f32.gmra.mxu1 %vm569_vm0, %v534_v3 }
 0x14b   : > { %v1241_v15 = vmax.f32 %v6604_v28, %v1095_v7  ;;  %v1489_v48 = vmax.f32 %v6673_v52, %v1346_v6 }
 0x14f   : > { %v6866_v8 = vpop.f32.mrf.mxu0  ;;  %v6868_v9 = vpop.f32.mrf.mxu1 }
 0x150   : > { %1369 = vrot.lane.b32.xlu1 %v6868_v9, %s6271_s16  ;;  %1367 = vrot.lane.b32.xlu2 %v6859_v2, %s6271_s16 }
 0x151   : > { %1124 = vrot.lane.b32.xlu0 %v6866_v8, %s6271_s16 }
 0x152   : > { %v1340_v13 = vpop.permute.xlu0 %1339  ;;  %v1103_v14 = vpop.permute.xlu2 %1102  ;;  %6091 = vmatmul.msk.f32.gmra.mxu0 %vm569_vm0, %v535_v10  ;;  %6140 = vmatmul.msk.f32.gmra.mxu1 %vm569_vm0, %v535_v10 }
 0x153   : > { %v1486_v17 = vmax.f32 %v6606_v29, %v1340_v13  ;;  %v1245_v26 = vmax.f32 %v6691_v58, %v1103_v14 }
 0x155   : > { %v1535_v18 = vmax.f32 %v1241_v15, %v1486_v17 }
 0x157   : > { %v1588_v19 = vadd.f32 %v6883_v16, %v1535_v18  ;;  %v6887_v22 = vpop.f32.mrf.mxu0  ;;  %v6897_v30 = vpop.f32.mrf.mxu1 }
 0x158   : > { %1126 = vrot.lane.b32.xlu1 %v6887_v22, %s6271_s16 }
 0x159   : > { %v1637_v24 = vmax.f32 %v1588_v19, 0.0 }
 0x15a   : > { %v1097_v25 = vpop.permute.xlu0 %1096  ;;  %v1099_v28 = vpop.permute.xlu1 %1098  ;;  %6092 = vmatmul.msk.f32.gmra.mxu0 %vm569_vm0, %v536_v23  ;;  %6141 = vmatmul.msk.f32.gmra.mxu1 %vm569_vm0, %v536_v23 }
 0x15b   : > { %1722 = vst.msk [vmem:[#allocation2 + $0x50] sm:$0xff] %vm569_vm0, %v1637_v24  ;;  %v1348_v29 = vpop.permute.xlu2 %1347 }
 0x15c   : > { %v1490_v27 = vmax.f32 %v6693_v59, %v1348_v29  ;;  %v1242_v59 = vmax.f32 %v6625_v35, %v1097_v25  ;;  %v539_v25 = vld [vmem:[%s6501_s15 + $0x118] sm:$0xff] }
 0x15e   : > { %v1539_v33 = vmax.f32 %v1245_v26, %v1490_v27 }
 0x15f   : > { %v6899_v34 = vpop.f32.mrf.mxu0  ;;  %v6923_v10 = vpop.f32.mrf.mxu1 }
 0x160   : > { %v1592_v38 = vadd.f32 %v6883_v16, %v1539_v33  ;;  %1371 = vrot.lane.b32.xlu1 %v6897_v30, %s6271_s16  ;;  %1128 = vrot.lane.b32.xlu2 %v6899_v34, %s6271_s16 }
 0x162   : > { %v1641_v39 = vmax.f32 %v1592_v38, 0.0  ;;  %v1342_v40 = vpop.permute.xlu0 %1341  ;;  %6093 = vmatmul.msk.f32.gmra.mxu0 %vm569_vm0, %v537_v37  ;;  %v1877_v58 = vld [vmem:[#allocation2 + $0x50] sm:$0xff]  ;;  %6142 = vmatmul.msk.f32.gmra.mxu1 %vm569_vm0, %v537_v37  ;;  %v540_v37 = vld [vmem:[%s6501_s15 + $0x120] sm:$0xff] }
 0x163   : > { %v1487_v41 = vmax.f32 %v6627_v36, %v1342_v40  ;;  %v1101_v46 = vpop.permute.xlu1 %1100  ;;  %v1105_v47 = vpop.permute.xlu2 %1104  ;;  %1982 = vrot.lane.b32.xlu0 %v1877_v58, %s6271_s16  ;;  %2607 = vst.msk [vmem:[#allocation3 + $0x10] sm:$0xff] %vm569_vm0, %v1877_v58  ;;  %v538_v36 = vld [vmem:[%s6501_s15 + $0x110] sm:$0xff] }
 0x164   : > { %1726 = vst.msk [vmem:[#allocation2 + $0x70] sm:$0xff] %vm569_vm0, %v1641_v39  ;;  %v1244_v49 = vmax.f32 %v6671_v51, %v1101_v46  ;;  %v1243_v51 = vmax.f32 %v6646_v42, %v1099_v28  ;;  %v1246_v17 = vmax.f32 %v6703_v63, %v1105_v47 }
 0x165   : > { %v1536_v54 = vmax.f32 %v1242_v59, %v1487_v41  ;;  %1828 = vst.msk [vmem:[#allocation3 + $0x140] sm:$0xff] %vm569_vm0, %v1877_v58 }
 0x166   : > { %v1538_v57 = vmax.f32 %v1244_v49, %v1489_v48 }
 0x167   : > { %v1589_v35 = vadd.f32 %v6883_v16, %v1536_v54  ;;  %v6918_v62 = vpop.f32.mrf.mxu0  ;;  %v6947_v28 = vpop.f32.mrf.mxu1 }
 0x168   : > { %v1591_v3 = vadd.f32 %v6883_v16, %v1538_v57  ;;  %2364 = vrot.lane.b32.xlu1 %v1877_v58, %s6271_s16  ;;  %v541_v57 = vld [vmem:[%s6501_s15 + $0x128] sm:$0xff] }
 0x169   : > { %v1638_v7 = vmax.f32 %v1589_v35, 0.0 }
 0x16a   : > { %v1640_v52 = vmax.f32 %v1591_v3, 0.0  ;;  %v1344_v6 = vpop.permute.xlu0 %1343  ;;  %6094 = vmatmul.msk.f32.gmra.mxu0 %vm569_vm0, %v538_v36  ;;  %6143 = vmatmul.msk.f32.gmra.mxu1 %vm569_vm0, %v538_v36 }
 0x16b   : > { %1723 = vst.msk [vmem:[#allocation2 + $0x58] sm:$0xff] %vm569_vm0, %v1638_v7  ;;  %v1488_v13 = vmax.f32 %v6648_v43, %v1344_v6  ;;  %v1350_v14 = vpop.permute.xlu2 %1349  ;;  %v6930_v15 = vld [vmem:[#allocation2 + $0x70] sm:$0xff] }
 0x16c   : > { %1725 = vst.msk [vmem:[#allocation2 + $0x68] sm:$0xff] %vm569_vm0, %v1640_v52  ;;  %v1491_v18 = vmax.f32 %v6705_v0, %v1350_v14  ;;  %v2176_v19 = vld [vmem:[#allocation2 + $0x70] sm:$0xff] }
 0x16d   : > { %v1537_v23 = vmax.f32 %v1243_v51, %v1488_v13  ;;  %2611 = vst.msk [vmem:[#allocation3 + $0xb0] sm:$0xff] %vm569_vm0, %v6930_v15  ;;  %v542_v6 = vld [vmem:[%s6501_s15 + $0x130] sm:$0xff] }
 0x16e   : > { %v1540_v24 = vmax.f32 %v1246_v17, %v1491_v18  ;;  %1832 = vst.msk [vmem:[#allocation3 + $0x1e0] sm:$0xff] %vm569_vm0, %v6930_v15 }
 0x16f   : > { %v1590_v42 = vadd.f32 %v6883_v16, %v1537_v23  ;;  %v6940_v43 = vpop.f32.mrf.mxu0  ;;  %2225 = vst.msk [vmem:[#allocation3 + $0x198] sm:$0xff] %vm569_vm0, %v2176_v19  ;;  %v6973_v46 = vpop.f32.mrf.mxu1 }
 0x170   : > { %v1593_v63 = vadd.f32 %v6883_v16, %v1540_v24  ;;  %1373 = vrot.lane.b32.xlu1 %v6923_v10, %s6271_s16 }
 0x171   : > { %v1639_v0 = vmax.f32 %v1590_v42, 0.0 }
 0x172   : > { %v1642_v29 = vmax.f32 %v1593_v63, 0.0  ;;  %6095 = vmatmul.msk.f32.gmra.mxu0 %vm569_vm0, %v539_v25  ;;  %v1878_v26 = vld [vmem:[#allocation2 + $0x58] sm:$0xff]  ;;  %6144 = vmatmul.msk.f32.gmra.mxu1 %vm569_vm0, %v539_v25 }
 0x173   : > { %1724 = vst.msk [vmem:[#allocation2 + $0x60] sm:$0xff] %vm569_vm0, %v1639_v0  ;;  %1984 = vrot.lane.b32.xlu0 %v1878_v26, %s6271_s16  ;;  %2366 = vrot.lane.b32.xlu2 %v1878_v26, %s6271_s16  ;;  %v6955_v27 = vld [vmem:[#allocation2 + $0x68] sm:$0xff]  ;;  %v2173_v33 = vld [vmem:[#allocation2 + $0x58] sm:$0xff] }
 0x174   : > { %1727 = vst.msk [vmem:[#allocation2 + $0x78] sm:$0xff] %vm569_vm0, %v1642_v29  ;;  %v2175_v38 = vld [vmem:[#allocation2 + $0x68] sm:$0xff] }
 0x175   : > { %1829 = vst.msk [vmem:[#allocation3 + $0x168] sm:$0xff] %vm569_vm0, %v1878_v26 }
 0x176   : > { %2608 = vst.msk [vmem:[#allocation3 + $0x38] sm:$0xff] %vm569_vm0, %v1878_v26 }
 0x177   : > { %1831 = vst.msk [vmem:[#allocation3 + $0x1b8] sm:$0xff] %vm569_vm0, %v6955_v27  ;;  %v6962_v39 = vpop.f32.mrf.mxu0  ;;  %v6999_v52 = vpop.f32.mrf.mxu1 }
 0x178   : > { %2610 = vst.msk [vmem:[#allocation3 + $0x88] sm:$0xff] %vm569_vm0, %v6955_v27 }
 0x179   : > { %2222 = vst.msk [vmem:[#allocation3 + $0x120] sm:$0xff] %vm569_vm0, %v2173_v33 }
 0x17a   : > { %v1352_v40 = vpop.permute.xlu1 %1351  ;;  %6096 = vmatmul.msk.f32.gmra.mxu0 %vm569_vm0, %v540_v37  ;;  %v2658_v58 = vld [vmem:[#allocation2 + $0x60] sm:$0xff]  ;;  %6145 = vmatmul.msk.f32.gmra.mxu1 %vm569_vm0, %v540_v37  ;;  %2224 = vst.msk [vmem:[#allocation3 + $0x170] sm:$0xff] %vm569_vm0, %v2175_v38 }
 0x17b   : > { %v1492_v59 = vmax.f32 %v6715_v5, %v1352_v40  ;;  %v1107_v41 = vpop.permute.xlu0 %1106  ;;  %2757 = vrot.lane.b32.xlu1 %v2658_v58, %s6271_s16  ;;  %2755 = vrot.lane.b32.xlu2 %v1878_v26, %s6271_s16  ;;  %v6975_v47 = vld [vmem:[#allocation2 + $0x78] sm:$0xff]  ;;  %1830 = vst.msk [vmem:[#allocation3 + $0x190] sm:$0xff] %vm569_vm0, %v2658_v58  ;;  %v2174_v48 = vld [vmem:[#allocation2 + $0x60] sm:$0xff] }
 0x17c   : > { %v1247_v49 = vmax.f32 %v6713_v4, %v1107_v41  ;;  %1130 = vrot.lane.b32.xlu0 %v6918_v62, %s6271_s16  ;;  %2609 = vst.msk [vmem:[#allocation3 + $0x60] sm:$0xff] %vm569_vm0, %v2658_v58  ;;  %v2563_v5 = vld [vmem:[#allocation2 + $0x78] sm:$0xff]  ;;  %v1111_v4 = vpop.permute.xlu2 %1110 }
 0x17d   : > { %1833 = vst.msk [vmem:[#allocation3 + $0x208] sm:$0xff] %vm569_vm0, %v6975_v47  ;;  %v1249_v0 = vmax.f32 %v6757_v20, %v1111_v4  ;;  %v544_v38 = vld [vmem:[%s6501_s15 + $0x140] sm:$0xff] }
 0x17e   : > { %v1541_v54 = vmax.f32 %v1247_v49, %v1492_v59  ;;  %2223 = vst.msk [vmem:[#allocation3 + $0x148] sm:$0xff] %vm569_vm0, %v2174_v48 }
 0x17f   : > { %2612 = vst.msk [vmem:[#allocation3 + $0xd8] sm:$0xff] %vm569_vm0, %v2563_v5  ;;  %v6989_v3 = vpop.f32.mrf.mxu0  ;;  %v7023_v24 = vpop.f32.mrf.mxu1 }
 0x180   : > { %v1594_v35 = vadd.f32 %v6883_v16, %v1541_v54  ;;  %2226 = vst.msk [vmem:[#allocation3 + $0x1c0] sm:$0xff] %vm569_vm0, %v2563_v5 }
 0x182   : > { %v1643_v36 = vmax.f32 %v1594_v35, 0.0  ;;  %v1109_v7 = vpop.permute.xlu1 %1108  ;;  %6097 = vmatmul.msk.f32.gmra.mxu0 %vm569_vm0, %v541_v57  ;;  %6146 = vmatmul.msk.f32.gmra.mxu1 %vm569_vm0, %v541_v57 }
 0x183   : > { %1986 = vrot.lane.b32.xlu2 %v2658_v58, %s6271_s16  ;;  %1132 = vrot.lane.b32.xlu1 %v6940_v43, %s6271_s16  ;;  %v1248_v14 = vmax.f32 %v6733_v11, %v1109_v7 }
 0x184   : > { %1728 = vst.msk [vmem:[#allocation2 + $0x80] sm:$0xff] %vm569_vm0, %v1643_v36  ;;  %1375 = vrot.lane.b32.xlu0 %v6947_v28, %s6271_s16 }
 0x187   : > { %v7014_v19 = vpop.f32.mrf.mxu0 }
 0x18a   : > { %v1354_v51 = vpop.permute.xlu1 %1353  ;;  %v7002_v13 = vpop.permute.xlu2 %1116  ;;  %6098 = vmatmul.msk.f32.gmra.mxu0 %vm569_vm0, %v542_v6  ;;  %6147 = vmatmul.msk.f32.gmra.mxu1 %vm569_vm0, %v542_v6 }
 0x18b   : > { %v1493_v17 = vmax.f32 %v6735_v12, %v1354_v51  ;;  %1988 = vrot.lane.b32.xlu2 %v6955_v27, %s6271_s16  ;;  %2370 = vrot.lane.b32.xlu1 %v6955_v27, %s6271_s16  ;;  %v7012_v18 = vld [vmem:[#allocation2 + $0x80] sm:$0xff]  ;;  %v543_v12 = vld [vmem:[%s6501_s15 + $0x138] sm:$0xff] }
 0x18c   : > { %2368 = vrot.lane.b32.xlu0 %v2658_v58, %s6271_s16  ;;  %2613 = vst.msk [vmem:[#allocation3 + $0x100] sm:$0xff] %vm569_vm0, %v7012_v18  ;;  %v7042_v58 = vpop.f32.mrf.mxu1 }
 0x18d   : > { %v1542_v23 = vmax.f32 %v1248_v14, %v1493_v17  ;;  %2227 = vst.msk [vmem:[#allocation3 + $0x1e8] sm:$0xff] %vm569_vm0, %v7012_v18  ;;  %v3736_v17 = vld [vmem:[%s10507_s3 + $0x178] sm:$0xff] }
 0x18e   : > { %4236 = vmatpush.msrb.mxu0 %v3736_v17 }
 0x18f   : > { %v1595_v11 = vadd.f32 %v6883_v16, %v1542_v23  ;;  %v7038_v37 = vpop.f32.mrf.mxu0 }
 0x191   : > { %v1644_v42 = vmax.f32 %v1595_v11, 0.0 }
 0x192   : > { %v1356_v25 = vpop.permute.xlu1 %1355  ;;  %v1113_v63 = vpop.permute.xlu0 %1112  ;;  %6099 = vmatmul.msk.f32.gmra.mxu0 %vm569_vm0, %v543_v12  ;;  %6148 = vmatmul.msk.f32.gmra.mxu1 %vm569_vm0, %v543_v12 }
 0x193   : > { %1729 = vst.msk [vmem:[#allocation2 + $0x98] sm:$0xff] %vm569_vm0, %v1644_v42  ;;  %v1494_v29 = vmax.f32 %v6759_v21, %v1356_v25  ;;  %v7030_v26 = vpop.permute.xlu2 %1363  ;;  %1990 = vrot.lane.b32.xlu2 %v6930_v15, %s6271_s16  ;;  %2759 = vrot.lane.b32.xlu1 %v6955_v27, %s6271_s16  ;;  %v1250_v27 = vmax.f32 %v6781_v31, %v1113_v63  ;;  %v3734_v42 = vld [vmem:[%s10507_s3 + $0x168] sm:$0xff]  ;;  %v3733_v63 = vld [vmem:[%s10507_s3 + $0x160] sm:$0xff] }
 0x194   : > { %1377 = vrot.lane.b32.xlu0 %v6973_v46, %s6271_s16  ;;  %v7082_v14 = vpop.f32.mrf.mxu1 }
 0x195   : > { %v1543_v33 = vmax.f32 %v1249_v0, %v1494_v29 }
 0x197   : > { %v1596_v20 = vadd.f32 %v6883_v16, %v1543_v33  ;;  %v7069_v54 = vpop.f32.mrf.mxu0 }
 0x199   : > { %v1645_v40 = vmax.f32 %v1596_v20, 0.0  ;;  %v1252_v20 = vmax.f32 %v6822_v50, %v7002_v13 }
 0x19a   : > { %v1358_v21 = vpop.permute.xlu0 %1357  ;;  %6100 = vmatmul.msk.f32.gmra.mxu0 %vm569_vm0, %v544_v38  ;;  %v7045_v59 = vld [vmem:[#allocation2 + $0x98] sm:$0xff]  ;;  %6149 = vmatmul.msk.f32.gmra.mxu1 %vm569_vm0, %v544_v38  ;;  %v1115_v57 = vpop.permute.xlu1 %1114 }
 0x19b   : > { %1730 = vst.msk [vmem:[#allocation2 + $0xa0] sm:$0xff] %vm569_vm0, %v1645_v40  ;;  %v1495_v41 = vmax.f32 %v6783_v32, %v1358_v21  ;;  %v7051_v48 = vpop.permute.xlu2 %1365  ;;  %1381 = vrot.lane.b32.xlu2 %v7023_v24, %s6271_s16  ;;  %1134 = vrot.lane.b32.xlu1 %v6962_v39, %s6271_s16  ;;  %v7057_v49 = vld [vmem:[#allocation2 + $0x98] sm:$0xff]  ;;  %v545_v32 = vld [vmem:[%s6501_s15 + $0x148] sm:$0xff]  ;;  %v1251_v7 = vmax.f32 %v6805_v44, %v1115_v57 }
 0x19c   : > { %1379 = vrot.lane.b32.xlu0 %v6999_v52, %s6271_s16  ;;  %3002 = vst.msk [vmem:[#allocation3 + $0x40] sm:$0xff] %vm569_vm0, %v7045_v59  ;;  %v7125_v21 = vpop.f32.mrf.mxu1  ;;  %v547_v57 = vld [vmem:[%s6501_s15 + $0x158] sm:$0xff] }
 0x19d   : > { %v1544_v5 = vmax.f32 %v1250_v27, %v1495_v41  ;;  %1835 = vst.msk [vmem:[#allocation3 + $0x258] sm:$0xff] %vm569_vm0, %v7045_v59  ;;  %v3732_v27 = vld [vmem:[%s10507_s3 + $0x158] sm:$0xff] }
 0x19e   : > { %2614 = vst.msk [vmem:[#allocation3 + $0x128] sm:$0xff] %vm569_vm0, %v7057_v49 }
 0x19f   : > { %v1597_v31 = vadd.f32 %v6883_v16, %v1544_v5  ;;  %v7111_v0 = vpop.f32.mrf.mxu0 }
 0x1a1   : > { %v1646_v35 = vmax.f32 %v1597_v31, 0.0  ;;  %v3731_v31 = vld [vmem:[%s10507_s3 + $0x150] sm:$0xff] }
 0x1a2   : > { %v1360_v4 = vpop.permute.xlu0 %1359  ;;  %6101 = vmatmul.msk.f32.gmra.mxu0 %vm569_vm0, %v545_v32  ;;  %v7072_v36 = vld [vmem:[#allocation2 + $0xa0] sm:$0xff]  ;;  %6150 = vmatmul.msk.f32.gmra.mxu1 %vm569_vm0, %v545_v32 }
 0x1a3   : > { %1731 = vst.msk [vmem:[#allocation2 + $0xa8] sm:$0xff] %vm569_vm0, %v1646_v35  ;;  %v1496_v6 = vmax.f32 %v6807_v45, %v1360_v4  ;;  %v1123_v51 = vpop.permute.xlu2 %1122  ;;  %1383 = vrot.lane.b32.xlu2 %v7042_v58, %s6271_s16  ;;  %2761 = vrot.lane.b32.xlu1 %v6930_v15, %s6271_s16  ;;  %v7087_v23 = vld [vmem:[#allocation2 + $0xa0] sm:$0xff]  ;;  %v3735_v45 = vld [vmem:[%s10507_s3 + $0x170] sm:$0xff] }
 0x1a4   : > { %2372 = vrot.lane.b32.xlu0 %v6930_v15, %s6271_s16  ;;  %3003 = vst.msk [vmem:[#allocation3 + $0x68] sm:$0xff] %vm569_vm0, %v7072_v36  ;;  %v3346_v11 = vld [vmem:[#allocation2 + $0xa0] sm:$0xff]  ;;  %4237 = vmatpush.msrb.mxu0 %v3735_v45  ;;  %v546_v15 = vld [vmem:[%s6501_s15 + $0x150] sm:$0xff]  ;;  %v1255_v50 = vmax.f32 %v6857_v1, %v1123_v51 }
 0x1a5   : > { %v1545_v44 = vmax.f32 %v1251_v7, %v1496_v6  ;;  %1836 = vst.msk [vmem:[#allocation3 + $0x280] sm:$0xff] %vm569_vm0, %v7072_v36  ;;  %v3730_v7 = vld [vmem:[%s10507_s3 + $0x148] sm:$0xff] }
 0x1a6   : > { %2615 = vst.msk [vmem:[#allocation3 + $0x150] sm:$0xff] %vm569_vm0, %v7087_v23  ;;  %4238 = vmatpush.msrb.mxu0 %v3734_v42 }
 0x1a7   : > { %v1598_v12 = vadd.f32 %v6883_v16, %v1545_v44  ;;  %2229 = vst.msk [vmem:[#allocation3 + $0x238] sm:$0xff] %vm569_vm0, %v7087_v23  ;;  %v1498_v44 = vmax.f32 %v6835_v56, %v7030_v26  ;;  %v1499_v56 = vmax.f32 %v6846_v61, %v7051_v48  ;;  %v7174_v26 = vpop.f32.mrf.mxu0 }
 0x1a8   : > { %3395 = vst.msk [vmem:[#allocation3 + $0x20] sm:$0xff] %vm569_vm0, %v3346_v11  ;;  %4239 = vmatpush.msrb.mxu0 %v3733_v63  ;;  %v1778_v63 = vld [vmem:[#allocation2 + $0x48] sm:$0xff] }
 0x1a9   : > { %v1647_v25 = vmax.f32 %v1598_v12, 0.0  ;;  %v3729_v12 = vld [vmem:[%s10507_s3 + $0x140] sm:$0xff]  ;;  %1827 = vst.msk [vmem:[#allocation3 + $0x118] sm:$0xff] %vm569_vm0, %v1778_v63 }
 0x1aa   : > { %v1362_v29 = vpop.permute.xlu0 %1361  ;;  %6102 = vmatmul.msk.f32.gmra.mxu0 %vm569_vm0, %v546_v15  ;;  %v7114_v33 = vld [vmem:[#allocation2 + $0xa8] sm:$0xff]  ;;  %6151 = vmatmul.msk.f32.gmra.mxu1 %vm569_vm0, %v546_v15  ;;  %v7170_v15 = vpop.f32.mrf.mxu1 }
 0x1ab   : > { %1732 = vst.msk [vmem:[#allocation2 + $0xb0] sm:$0xff] %vm569_vm0, %v1647_v25  ;;  %v1497_v38 = vmax.f32 %v6824_v53, %v1362_v29  ;;  %v1368_v40 = vpop.permute.xlu2 %1367  ;;  %1385 = vrot.lane.b32.xlu2 %v7082_v14, %s6271_s16  ;;  %1136 = vrot.lane.b32.xlu1 %v6989_v3, %s6271_s16  ;;  %v2168_v53 = vld [vmem:[#allocation2 + $0x20] sm:$0xff]  ;;  %v7136_v41 = vld [vmem:[#allocation2 + $0xa8] sm:$0xff]  ;;  %v3728_v25 = vld [vmem:[%s10507_s3 + $0x138] sm:$0xff] }
 0x1ac   : > { %v1500_v13 = vmax.f32 %v6859_v2, %v1368_v40  ;;  %2374 = vrot.lane.b32.xlu0 %v6975_v47, %s6271_s16  ;;  %3004 = vst.msk [vmem:[#allocation3 + $0x90] sm:$0xff] %vm569_vm0, %v7114_v33  ;;  %4240 = vmatpush.msrb.mxu0 %v3732_v27  ;;  %v3347_v2 = vld [vmem:[#allocation2 + $0xa8] sm:$0xff]  ;;  %v548_v29 = vld [vmem:[%s6501_s15 + $0x160] sm:$0xff]  ;;  %v3727_v40 = vld [vmem:[%s10507_s3 + $0x130] sm:$0xff] }
 0x1ad   : > { %v1546_v5 = vmax.f32 %v1252_v20, %v1497_v38  ;;  %2217 = vst.msk [vmem:[#allocation3 + $0x58] sm:$0xff] %vm569_vm0, %v2168_v53  ;;  %v3726_v53 = vld [vmem:[%s10507_s3 + $0x128] sm:$0xff] }
 0x1ae   : > { %v1549_v1 = vmax.f32 %v1255_v50, %v1500_v13  ;;  %1837 = vst.msk [vmem:[#allocation3 + $0x2a8] sm:$0xff] %vm569_vm0, %v7114_v33  ;;  %4241 = vmatpush.msrb.mxu0 %v3731_v31  ;;  %v1883_v50 = vld [vmem:[#allocation2 + $0x80] sm:$0xff]  ;;  %v2167_v13 = vld [vmem:[#allocation2 + $0x18] sm:$0xff] }
 0x1af   : > { %v1599_v32 = vadd.f32 %v6883_v16, %v1546_v5  ;;  %2616 = vst.msk [vmem:[#allocation3 + $0x178] sm:$0xff] %vm569_vm0, %v7136_v41 }
 0x1b0   : > { %v1602_v35 = vadd.f32 %v6883_v16, %v1549_v1  ;;  %2230 = vst.msk [vmem:[#allocation3 + $0x260] sm:$0xff] %vm569_vm0, %v7136_v41  ;;  %4242 = vmatpush.msrb.mxu0 %v3730_v7  ;;  %v3724_v7 = vld [vmem:[%s10507_s3 + $0x118] sm:$0xff] }
 0x1b1   : > { %v1648_v4 = vmax.f32 %v1599_v32, 0.0  ;;  %3396 = vst.msk [vmem:[#allocation3 + $0x48] sm:$0xff] %vm569_vm0, %v3347_v2  ;;  %v3725_v2 = vld [vmem:[%s10507_s3 + $0x120] sm:$0xff] }
 0x1b2   : > { %v1651_v6 = vmax.f32 %v1602_v35, 0.0  ;;  %v1119_v51 = vpop.permute.xlu0 %1118  ;;  %6103 = vmatmul.msk.f32.gmra.mxu0 %vm569_vm0, %v547_v57  ;;  %v7156_v17 = vld [vmem:[#allocation2 + $0xb0] sm:$0xff]  ;;  %6152 = vmatmul.msk.f32.gmra.mxu1 %vm569_vm0, %v547_v57  ;;  %v7210_v5 = vpop.f32.mrf.mxu1  ;;  %2216 = vst.msk [vmem:[#allocation3 + $0x30] sm:$0xff] %vm569_vm0, %v2167_v13  ;;  %v549_v35 = vld [vmem:[%s6501_s15 + $0x168] sm:$0xff] }
 0x1b3   : > { %1733 = vst.msk [vmem:[#allocation2 + $0xb8] sm:$0xff] %vm569_vm0, %v1648_v4  ;;  %v1253_v45 = vmax.f32 %v6833_v55, %v1119_v51  ;;  %v1121_v11 = vpop.permute.xlu1 %1120  ;;  %1992 = vrot.lane.b32.xlu1 %v6975_v47, %s6271_s16  ;;  %1142 = vrot.lane.b32.xlu2 %v7069_v54, %s6271_s16  ;;  %v7185_v61 = vld [vmem:[#allocation2 + $0xb0] sm:$0xff]  ;;  %v7225_v57 = vpop.f32.mrf.mxu0 }
 0x1b4   : > { %1736 = vst.msk [vmem:[#allocation2 + $0xe0] sm:$0xff] %vm569_vm0, %v1651_v6  ;;  %v1254_v55 = vmax.f32 %v6844_v60, %v1121_v11  ;;  %2763 = vrot.lane.b32.xlu0 %v6975_v47, %s6271_s16  ;;  %4243 = vmatpush.msrb.mxu0 %v3729_v12  ;;  %v3348_v47 = vld [vmem:[#allocation2 + $0xb0] sm:$0xff] }
 0x1b5   : > { %v1547_v42 = vmax.f32 %v1253_v45, %v1498_v44  ;;  %1838 = vst.msk [vmem:[#allocation3 + $0x2d0] sm:$0xff] %vm569_vm0, %v7156_v17  ;;  %v3723_v12 = vld [vmem:[%s10507_s3 + $0x110] sm:$0xff] }
 0x1b6   : > { %v1548_v48 = vmax.f32 %v1254_v55, %v1499_v56  ;;  %3005 = vst.msk [vmem:[#allocation3 + $0xb8] sm:$0xff] %vm569_vm0, %v7156_v17  ;;  %4244 = vmatpush.msrb.mxu0 %v3728_v25  ;;  %v3722_v25 = vld [vmem:[%s10507_s3 + $0x108] sm:$0xff] }
 0x1b7   : > { %v1600_v60 = vadd.f32 %v6883_v16, %v1547_v42  ;;  %2617 = vst.msk [vmem:[#allocation3 + $0x1a0] sm:$0xff] %vm569_vm0, %v7185_v61 }
 0x1b8   : > { %v1601_v20 = vadd.f32 %v6883_v16, %v1548_v48  ;;  %2231 = vst.msk [vmem:[#allocation3 + $0x288] sm:$0xff] %vm569_vm0, %v7185_v61  ;;  %4245 = vmatpush.msrb.mxu0 %v3727_v40 }
 0x1b9   : > { %v1649_v38 = vmax.f32 %v1600_v60, 0.0  ;;  %3397 = vst.msk [vmem:[#allocation3 + $0x70] sm:$0xff] %vm569_vm0, %v3348_v47 }
 0x1ba   : > { %v1650_v27 = vmax.f32 %v1601_v20, 0.0  ;;  %6104 = vmatmul.msk.f32.gmra.mxu0 %vm569_vm0, %v548_v29  ;;  %6153 = vmatmul.msk.f32.gmra.mxu1 %vm569_vm0, %v548_v29  ;;  %v7212_v31 = vld [vmem:[#allocation2 + $0xb8] sm:$0xff]  ;;  %v7257_v56 = vpop.f32.mrf.mxu1  ;;  %v7268_v42 = vpop.permute.xlu2 %1128  ;;  %v3721_v20 = vld [vmem:[%s10507_s3 + $0x100] sm:$0xff] }
 0x1bb   : > { %1734 = vst.msk [vmem:[#allocation2 + $0xc0] sm:$0xff] %vm569_vm0, %v1649_v38  ;;  %1994 = vrot.lane.b32.xlu1 %v1883_v50, %s6271_s16  ;;  %3151 = vrot.lane.b32.xlu2 %v7072_v36, %s6271_s16  ;;  %v7217_v1 = vld [vmem:[#allocation2 + $0xe0] sm:$0xff]  ;;  %v7223_v32 = vld [vmem:[#allocation2 + $0xb8] sm:$0xff]  ;;  %v7280_v60 = vpop.f32.mrf.mxu0 }
 0x1bc   : > { %1735 = vst.msk [vmem:[#allocation2 + $0xc8] sm:$0xff] %vm569_vm0, %v1650_v27  ;;  %1138 = vrot.lane.b32.xlu0 %v7014_v19, %s6271_s16  ;;  %4246 = vmatpush.msrb.mxu0 %v3726_v53  ;;  %v7232_v4 = vld [vmem:[#allocation2 + $0xe0] sm:$0xff]  ;;  %v3349_v47 = vld [vmem:[#allocation2 + $0xb8] sm:$0xff] }
 0x1bd   : > { %1839 = vst.msk [vmem:[#allocation3 + $0x2f8] sm:$0xff] %vm569_vm0, %v7212_v31  ;;  %v551_v53 = vld [vmem:[%s6501_s15 + $0x178] sm:$0xff] }
 0x1be   : > { %1842 = vst.msk [vmem:[#allocation3 + $0x370] sm:$0xff] %vm569_vm0, %v7217_v1  ;;  %4247 = vmatpush.msrb.mxu0 %v3725_v2 }
 0x1bf   : > { %3006 = vst.msk [vmem:[#allocation3 + $0xe0] sm:$0xff] %vm569_vm0, %v7223_v32 }
 0x1c0   : > { %2618 = vst.msk [vmem:[#allocation3 + $0x1c8] sm:$0xff] %vm569_vm0, %v7223_v32  ;;  %4248 = vmatpush.msrb.mxu0 %v3724_v7 }
 0x1c1   : > { %3009 = vst.msk [vmem:[#allocation3 + $0x158] sm:$0xff] %vm569_vm0, %v7232_v4 }
 0x1c2   : > { %v1370_v6 = vpop.permute.xlu1 %1369  ;;  %6105 = vmatmul.msk.f32.gmra.mxu0 %vm569_vm0, %v549_v35  ;;  %v7242_v51 = vld [vmem:[#allocation2 + $0xc0] sm:$0xff]  ;;  %6154 = vmatmul.msk.f32.gmra.mxu1 %vm569_vm0, %v549_v35  ;;  %2621 = vst.msk [vmem:[#allocation3 + $0x240] sm:$0xff] %vm569_vm0, %v7232_v4  ;;  %v7297_v50 = vpop.f32.mrf.mxu1 }
 0x1c3   : > { %v7245_v44 = vld [vmem:[#allocation2 + $0xc0] sm:$0xff]  ;;  %v1501_v45 = vmax.f32 %v6868_v9, %v1370_v6  ;;  %v1125_v11 = vpop.permute.xlu0 %1124  ;;  %1996 = vrot.lane.b32.xlu1 %v7045_v59, %s6271_s16  ;;  %1144 = vrot.lane.b32.xlu2 %v7111_v0, %s6271_s16  ;;  %1840 = vst.msk [vmem:[#allocation3 + $0x320] sm:$0xff] %vm569_vm0, %v7242_v51  ;;  %v7261_v55 = vld [vmem:[#allocation2 + $0xc8] sm:$0xff]  ;;  %v7307_v2 = vpop.f32.mrf.mxu0 }
 0x1c4   : > { %10553 = vst [vmem:[#allocation6_spill] sm:$0xff] %v7245_v44  ;;  %v1256_v9 = vmax.f32 %v6866_v8, %v1125_v11  ;;  %1140 = vrot.lane.b32.xlu0 %v7038_v37, %s6271_s16  ;;  %4249 = vmatpush.msrb.mxu0 %v3723_v12  ;;  %v550_v8 = vld [vmem:[%s6501_s15 + $0x170] sm:$0xff]  ;;  %v3350_v27 = vld [vmem:[#allocation2 + $0xc0] sm:$0xff] }
 0x1c5   : > { %3007 = vst.msk [vmem:[#allocation3 + $0x108] sm:$0xff] %vm569_vm0, %v7245_v44  ;;  %v2185_v48 = vld [vmem:[#allocation2 + $0xc8] sm:$0xff] }
 0x1c6   : > { %2619 = vst.msk [vmem:[#allocation3 + $0x1f0] sm:$0xff] %vm569_vm0, %v7245_v44  ;;  %v1550_v63 = vmax.f32 %v1256_v9, %v1501_v45  ;;  %4250 = vmatpush.msrb.mxu0 %v3722_v25 }
 0x1c7   : > { %2620 = vst.msk [vmem:[#allocation3 + $0x218] sm:$0xff] %vm569_vm0, %v7261_v55 }
 0x1c8   : > { %v1603_v29 = vadd.f32 %v6883_v16, %v1550_v63  ;;  %2232 = vst.msk [vmem:[#allocation3 + $0x2b0] sm:$0xff] %vm569_vm0, %v7223_v32  ;;  %4251 = vmatpush.msrb.mxu0 %v3721_v20  ;;  %v552_v63 = vld [vmem:[%s6501_s15 + $0x180] sm:$0xff] }
 0x1c9   : > { %2233 = vst.msk [vmem:[#allocation3 + $0x2d8] sm:$0xff] %vm569_vm0, %v7245_v44 }
 0x1ca   : > { %v1652_v38 = vmax.f32 %v1603_v29, 0.0  ;;  %v1127_v40 = vpop.permute.xlu1 %1126  ;;  %6106 = vmatmul.msk.f32.gmra.mxu0 %vm569_vm0, %v550_v8  ;;  %6155 = vmatmul.msk.f32.gmra.mxu1 %vm569_vm0, %v550_v8  ;;  %2234 = vst.msk [vmem:[#allocation3 + $0x300] sm:$0xff] %vm569_vm0, %v2185_v48  ;;  %v7323_v11 = vpop.f32.mrf.mxu1 }
 0x1cb   : > { %1387 = vrot.lane.b32.xlu1 %v7125_v21, %s6271_s16  ;;  %3153 = vrot.lane.b32.xlu2 %v7114_v33, %s6271_s16  ;;  %3398 = vst.msk [vmem:[#allocation3 + $0x98] sm:$0xff] %vm569_vm0, %v3349_v47  ;;  %v1257_v7 = vmax.f32 %v6887_v22, %v1127_v40  ;;  %v2170_v40 = vld [vmem:[#allocation2 + $0x30] sm:$0xff] }
 0x1cc   : > { %1737 = vst.msk [vmem:[#allocation2 + $0xe8] sm:$0xff] %vm569_vm0, %v1652_v38  ;;  %3149 = vrot.lane.b32.xlu0 %v7045_v59, %s6271_s16  ;;  %v2169_v38 = vld [vmem:[#allocation2 + $0x28] sm:$0xff] }
 0x1cd   : > { %v2367_v13 = vpop.permute.xlu2 %2366  ;;  %3399 = vst.msk [vmem:[#allocation3 + $0xc0] sm:$0xff] %vm569_vm0, %v3350_v27 }
 0x1ce   : > { %2511 = vst.msk [vmem:[#allocation3 + $0x58] sm:$0xff] %vm2115_vm1, %v2367_v13 }
 0x1cf   : > { %3400 = vst.msk [vmem:[#allocation3 + $0xe8] sm:$0xff] %vm569_vm0, %v2185_v48  ;;  %v7344_v48 = vpop.f32.mrf.mxu0 }
 0x1d0   : > { %2218 = vst.msk [vmem:[#allocation3 + $0x80] sm:$0xff] %vm569_vm0, %v2169_v38 }
 0x1d1   : > { %2219 = vst.msk [vmem:[#allocation3 + $0xa8] sm:$0xff] %vm569_vm0, %v2170_v40  ;;  %v3760_v40 = vld [vmem:[%s10507_s3 + $0x238] sm:$0xff] }
 0x1d2   : > { %v1372_v35 = vpop.permute.xlu1 %1371  ;;  %6107 = vmatmul.msk.f32.gmra.mxu0 %vm569_vm0, %v551_v53  ;;  %6156 = vmatmul.msk.f32.gmra.mxu1 %vm569_vm0, %v551_v53  ;;  %v7350_v20 = vpop.f32.mrf.mxu1 }
 0x1d3   : > { %v1502_v59 = vmax.f32 %v6897_v30, %v1372_v35  ;;  %1389 = vrot.lane.b32.xlu1 %v7170_v15, %s6271_s16  ;;  %3155 = vrot.lane.b32.xlu2 %v7156_v17, %s6271_s16  ;;  %v7317_v6 = vld [vmem:[#allocation2 + $0xe8] sm:$0xff] }
 0x1d4   : > { %v7319_v45 = vld [vmem:[#allocation2 + $0xe8] sm:$0xff]  ;;  %1998 = vrot.lane.b32.xlu0 %v7072_v36, %s6271_s16  ;;  %1843 = vst.msk [vmem:[#allocation3 + $0x398] sm:$0xff] %vm569_vm0, %v7317_v6  ;;  %4572 = vmatpush.msrb.mxu2 %v3760_v40 }
 0x1d5   : > { %v1551_v22 = vmax.f32 %v1257_v7, %v1502_v59  ;;  %v1983_v30 = vpop.permute.xlu0 %1982  ;;  %v2756_v12 = vpop.permute.xlu2 %2755  ;;  %3010 = vst.msk [vmem:[#allocation3 + $0x180] sm:$0xff] %vm569_vm0, %v7319_v45  ;;  %v2187_v9 = vld [vmem:[#allocation2 + $0xe8] sm:$0xff] }
 0x1d6   : > { %2123 = vst.msk [vmem:[#allocation3 + $0x118] sm:$0xff] %vm2115_vm1, %v1983_v30 }
 0x1d7   : > { %v1604_v25 = vadd.f32 %v6883_v16, %v1551_v22  ;;  %2902 = vst.msk [vmem:[#allocation3 + $0x10] sm:$0xff] %vm2115_vm1, %v2756_v12  ;;  %v7373_v30 = vpop.f32.mrf.mxu0 }
 0x1d8   : > { %2622 = vst.msk [vmem:[#allocation3 + $0x268] sm:$0xff] %vm569_vm0, %v7319_v45 }
 0x1d9   : > { %v1653_v36 = vmax.f32 %v1604_v25, 0.0  ;;  %2236 = vst.msk [vmem:[#allocation3 + $0x350] sm:$0xff] %vm569_vm0, %v2187_v9  ;;  %v1890_v25 = vld [vmem:[#allocation2 + $0xc8] sm:$0xff] }
 0x1da   : > { %v2365_v8 = vpop.permute.xlu1 %2364  ;;  %6108 = vmatmul.msk.f32.gmra.mxu0 %vm569_vm0, %v552_v63  ;;  %6157 = vmatmul.msk.f32.gmra.mxu1 %vm569_vm0, %v552_v63  ;;  %3402 = vst.msk [vmem:[#allocation3 + $0x138] sm:$0xff] %vm569_vm0, %v2187_v9  ;;  %v7376_v12 = vpop.f32.mrf.mxu1  ;;  %v3455_v63 = vld [vmem:[#allocation3 + $0x58] sm:$0xff] }
 0x1db   : > { %1738 = vst.msk [vmem:[#allocation2 + $0xf0] sm:$0xff] %vm569_vm0, %v1653_v36  ;;  %2004 = vrot.lane.b32.xlu2 %v7212_v31, %s6271_s16  ;;  %1146 = vrot.lane.b32.xlu1 %v7174_v26, %s6271_s16 }
 0x1dc   : > { %2510 = vst.msk [vmem:[#allocation3 + $0x30] sm:$0xff] %vm2115_vm1, %v2365_v8  ;;  %2000 = vrot.lane.b32.xlu0 %v7114_v33, %s6271_s16  ;;  %v1258_v33 = vmax.f32 %v6899_v34, %v7268_v42 }
 0x1dd   : > { %v1987_v29 = vpop.permute.xlu2 %1986  ;;  %v3479_v47 = vld [vmem:[#allocation3 + $0x118] sm:$0xff] }
 0x1de   : > { %2125 = vst.msk [vmem:[#allocation3 + $0x168] sm:$0xff] %vm2115_vm1, %v1987_v29  ;;  %3945 = vmatmul.f32.gmra.mxu2 %v3479_v47  ;;  %v3446_v27 = vld [vmem:[#allocation3 + $0x10] sm:$0xff] }
 0x1e2   : > { %v1374_v13 = vpop.permute.xlu1 %1373  ;;  %4252 = vmatmul.f32.vlgmr.msrb.gmra.mxu0 %v3446_v27  ;;  %v7354_v53 = vld [vmem:[#allocation2 + $0xf0] sm:$0xff]  ;;  %v7389_v38 = vpop.f32.mrf.mxu1  ;;  %v3752_v27 = vld [vmem:[%s10507_s3 + $0x1f8] sm:$0xff] }
 0x1e3   : > { %v7356_v35 = vld [vmem:[#allocation2 + $0xf0] sm:$0xff]  ;;  %v1503_v7 = vmax.f32 %v6923_v10, %v1374_v13  ;;  %v3450_v59 = vld [vmem:[#allocation3 + $0x30] sm:$0xff]  ;;  %2006 = vrot.lane.b32.xlu2 %v7242_v51, %s6271_s16  ;;  %1391 = vrot.lane.b32.xlu1 %v7210_v5, %s6271_s16  ;;  %1844 = vst.msk [vmem:[#allocation3 + $0x3c0] sm:$0xff] %vm569_vm0, %v7354_v53  ;;  %v7398_v13 = vpop.f32.mrf.mxu0 }
 0x1e4   : > { %10554 = vst [vmem:[#allocation7_spill] sm:$0xff] %v7356_v35  ;;  %4091 = vmatmul.f32.gmra.mxu3 %v3450_v59  ;;  %2002 = vrot.lane.b32.xlu0 %v7156_v17, %s6271_s16  ;;  %v2188_v22 = vld [vmem:[#allocation2 + $0xf0] sm:$0xff] }
 0x1e5   : > { %3011 = vst.msk [vmem:[#allocation3 + $0x1a8] sm:$0xff] %vm569_vm0, %v7356_v35  ;;  %v1552_v34 = vmax.f32 %v1258_v33, %v1503_v7  ;;  %v1985_v42 = vpop.permute.xlu0 %1984  ;;  %v1989_v10 = vpop.permute.xlu2 %1988  ;;  %4400 = vmatpush.msrb.mxu1 %v3752_v27 }
 0x1e6   : > { %2623 = vst.msk [vmem:[#allocation3 + $0x290] sm:$0xff] %vm569_vm0, %v7356_v35  ;;  %v3759_v35 = vld [vmem:[%s10507_s3 + $0x230] sm:$0xff] }
 0x1e7   : > { %2124 = vst.msk [vmem:[#allocation3 + $0x140] sm:$0xff] %vm2115_vm1, %v1985_v42  ;;  %v1605_v9 = vadd.f32 %v6883_v16, %v1552_v34  ;;  %4573 = vmatpush.msrb.mxu2 %v3759_v35 }
 0x1e8   : > { %2126 = vst.msk [vmem:[#allocation3 + $0x190] sm:$0xff] %vm2115_vm1, %v1989_v10  ;;  %v3489_v10 = vld [vmem:[#allocation3 + $0x168] sm:$0xff] }
 0x1e9   : > { %2237 = vst.msk [vmem:[#allocation3 + $0x378] sm:$0xff] %vm569_vm0, %v2188_v22  ;;  %v1654_v17 = vmax.f32 %v1605_v9, 0.0 }
 0x1ea   : > { %3403 = vst.msk [vmem:[#allocation3 + $0x160] sm:$0xff] %vm569_vm0, %v2188_v22  ;;  %v7418_v9 = vpop.f32.mrf.mxu1 }
 0x1eb   : > { %1739 = vst.msk [vmem:[#allocation2 + $0xf8] sm:$0xff] %vm569_vm0, %v1654_v17  ;;  %2008 = vrot.lane.b32.xlu2 %v1890_v25, %s6271_s16  ;;  %1148 = vrot.lane.b32.xlu1 %v7225_v57, %s6271_s16 }
 0x1ec   : > { %4094 = vmatmul.f32.gmra.mxu3 %v3455_v63  ;;  %1393 = vrot.lane.b32.xlu0 %v7257_v56, %s6271_s16  ;;  %v2171_v63 = vld [vmem:[#allocation2 + $0x38] sm:$0xff] }
 0x1ed   : > { %v2758_v36 = vpop.permute.xlu1 %2757  ;;  %v1991_v8 = vpop.permute.xlu2 %1990  ;;  %2220 = vst.msk [vmem:[#allocation3 + $0xd0] sm:$0xff] %vm569_vm0, %v2171_v63 }
 0x1ee   : > { %v3484_v29 = vld [vmem:[#allocation3 + $0x140] sm:$0xff]  ;;  %2903 = vst.msk [vmem:[#allocation3 + $0x38] sm:$0xff] %vm2115_vm1, %v2758_v36  ;;  %v1131_v47 = vpop.permute.xlu0 %1130 }
 0x1ef   : > { %3948 = vmatmul.f32.gmra.mxu2 %v3484_v29  ;;  %2127 = vst.msk [vmem:[#allocation3 + $0x1b8] sm:$0xff] %vm2115_vm1, %v1991_v8  ;;  %v1259_v17 = vmax.f32 %v6918_v62, %v1131_v47  ;;  %v7425_v8 = vpop.f32.mrf.mxu0  ;;  %v2172_v62 = vld [vmem:[#allocation2 + $0x40] sm:$0xff]  ;;  %v3494_v27 = vld [vmem:[#allocation3 + $0x190] sm:$0xff] }
 0x1f0   : > { %2221 = vst.msk [vmem:[#allocation3 + $0xf8] sm:$0xff] %vm569_vm0, %v2172_v62 }
 0x1f2   : > { %v7400_v33 = vld [vmem:[#allocation2 + $0xf8] sm:$0xff] }
 0x1f3   : > { %v7402_v7 = vld [vmem:[#allocation2 + $0xf8] sm:$0xff]  ;;  %3157 = vrot.lane.b32.xlu1 %v7212_v31, %s6271_s16  ;;  %1154 = vrot.lane.b32.xlu2 %v7344_v48, %s6271_s16  ;;  %1845 = vst.msk [vmem:[#allocation3 + $0x3e8] sm:$0xff] %vm569_vm0, %v7400_v33 }
 0x1f4   : > { %10555 = vst [vmem:[#allocation8_spill] sm:$0xff] %v7402_v7  ;;  %v2189_v59 = vld [vmem:[#allocation2 + $0xf8] sm:$0xff]  ;;  %1150 = vrot.lane.b32.xlu0 %v7280_v60, %s6271_s16 }
 0x1f5   : > { %3012 = vst.msk [vmem:[#allocation3 + $0x1d0] sm:$0xff] %vm569_vm0, %v7402_v7  ;;  %v7414_v34 = vpop.permute.xlu2 %1381  ;;  %v1133_v42 = vpop.permute.xlu1 %1132  ;;  %v3451_v22 = vld [vmem:[#allocation3 + $0x38] sm:$0xff] }
 0x1f6   : > { %2624 = vst.msk [vmem:[#allocation3 + $0x2b8] sm:$0xff] %vm569_vm0, %v7402_v7  ;;  %v1376_v31 = vpop.permute.xlu0 %1375  ;;  %4255 = vmatmul.f32.gmra.mxu0 %v3451_v22 }
 0x1f7   : > { %3951 = vmatmul.f32.gmra.mxu2 %v3489_v10  ;;  %2238 = vst.msk [vmem:[#allocation3 + $0x3a0] sm:$0xff] %vm569_vm0, %v2189_v59  ;;  %v1504_v25 = vmax.f32 %v6947_v28, %v1376_v31  ;;  %v3499_v31 = vld [vmem:[#allocation3 + $0x1b8] sm:$0xff] }
 0x1f8   : > { %3404 = vst.msk [vmem:[#allocation3 + $0x188] sm:$0xff] %vm569_vm0, %v2189_v59 }
 0x1f9   : > { %v1553_v36 = vmax.f32 %v1259_v17, %v1504_v25 }
 0x1fb   : > { %v1606_v29 = vadd.f32 %v6883_v16, %v1553_v36  ;;  %2010 = vrot.lane.b32.xlu1 %v7217_v1, %s6271_s16  ;;  %1399 = vrot.lane.b32.xlu2 %v7350_v20, %s6271_s16  ;;  %v7438_v16 = vpop.f32.mrf.mxu1  ;;  %v7446_v1 = vpop.f32.mrf.mxu0  ;;  %v1260_v36 = vmax.f32 %v6940_v43, %v1133_v42  ;;  %v7477_v43 = vld [vmem:[%s10506_s2] ss:$0 sm:$0xff] }
 0x1fc   : > { %1395 = vrot.lane.b32.xlu0 %v7297_v50, %s6271_s16  ;;  %v3749_v42 = vld [vmem:[%s10507_s3 + $0x1e0] sm:$0xff] }
 0x1fd   : > { %v1655_v28 = vmax.f32 %v1606_v29, 0.0  ;;  %v7434_v47 = vpop.permute.xlu2 %1383  ;;  %v2371_v40 = vpop.permute.xlu1 %2370 }
 0x1fe   : > { %v2369_v59 = vpop.permute.xlu0 %2368  ;;  %2513 = vst.msk [vmem:[#allocation3 + $0xa8] sm:$0xff] %vm2115_vm1, %v2371_v40 }
 0x1ff   : > { %3954 = vmatmul.f32.gmra.mxu2 %v3494_v27  ;;  %1740 = vst.msk [vmem:[#allocation2 + $0x100] sm:$0xff] %vm569_vm0, %v1655_v28 }
 0x200   : > { %2512 = vst.msk [vmem:[#allocation3 + $0x80] sm:$0xff] %vm2115_vm1, %v2369_v59  ;;  %v3750_v59 = vld [vmem:[%s10507_s3 + $0x1e8] sm:$0xff] }
 0x203   : > { %2012 = vrot.lane.b32.xlu1 %v7317_v6, %s6271_s16  ;;  %1156 = vrot.lane.b32.xlu2 %v7373_v30, %s6271_s16  ;;  %v3751_v6 = vld [vmem:[%s10507_s3 + $0x1f0] sm:$0xff]  ;;  %v7464_v40 = vpop.f32.mrf.mxu1 }
 0x204   : > { %1152 = vrot.lane.b32.xlu0 %v7307_v2, %s6271_s16  ;;  %4401 = vmatpush.msrb.mxu1 %v3751_v6 }
 0x205   : > { %v7450_v10 = vpop.permute.xlu2 %1385  ;;  %v2760_v22 = vpop.permute.xlu1 %2759 }
 0x206   : > { %v1378_v17 = vpop.permute.xlu0 %1377  ;;  %2904 = vst.msk [vmem:[#allocation3 + $0x60] sm:$0xff] %vm2115_vm1, %v2760_v22  ;;  %v7453_v25 = vld [vmem:[#allocation2 + $0x100] sm:$0xff]  ;;  %4402 = vmatpush.msrb.mxu1 %v3750_v59 }
 0x207   : > { %3957 = vmatmul.f32.gmra.mxu2 %v3499_v31  ;;  %v7458_v63 = vld [vmem:[#allocation2 + $0x100] sm:$0xff]  ;;  %v1505_v29 = vmax.f32 %v6973_v46, %v1378_v17  ;;  %v3460_v62 = vld [vmem:[#allocation3 + $0x80] sm:$0xff]  ;;  %1846 = vst.msk [vmem:[#allocation3 + $0x410] sm:$0xff] %vm569_vm0, %v7453_v25 }
 0x208   : > { %10556 = vst [vmem:[#allocation9_spill] sm:$0xff] %v7458_v63  ;;  %v2190_v28 = vld [vmem:[#allocation2 + $0x100] sm:$0xff]  ;;  %4097 = vmatmul.f32.gmra.mxu3 %v3460_v62  ;;  %4403 = vmatpush.msrb.mxu1 %v3749_v42 }
 0x209   : > { %3013 = vst.msk [vmem:[#allocation3 + $0x1f8] sm:$0xff] %vm569_vm0, %v7458_v63  ;;  %v1554_v27 = vmax.f32 %v1260_v36, %v1505_v29  ;;  %v7492_v36 = vpop.f32.mrf.mxu0 }
 0x20a   : > { %2625 = vst.msk [vmem:[#allocation3 + $0x2e0] sm:$0xff] %vm569_vm0, %v7458_v63 }
 0x20b   : > { %2239 = vst.msk [vmem:[#allocation3 + $0x3c8] sm:$0xff] %vm569_vm0, %v2190_v28  ;;  %v1607_v46 = vadd.f32 %v7477_v43, %v1554_v27  ;;  %1401 = vrot.lane.b32.xlu2 %v7376_v12, %s6271_s16  ;;  %1158 = vrot.lane.b32.xlu1 %v7398_v13, %s6271_s16  ;;  %v3465_v27 = vld [vmem:[#allocation3 + $0xa8] sm:$0xff]  ;;  %v7497_v63 = vpop.f32.mrf.mxu1 }
 0x20c   : > { %3405 = vst.msk [vmem:[#allocation3 + $0x1b0] sm:$0xff] %vm569_vm0, %v2190_v28  ;;  %1397 = vrot.lane.b32.xlu0 %v7323_v11, %s6271_s16 }
 0x20d   : > { %v1656_v22 = vmax.f32 %v1607_v46, 0.0  ;;  %v1135_v31 = vpop.permute.xlu1 %1134  ;;  %v7490_v17 = vpop.permute.xlu2 %1142  ;;  %v3456_v6 = vld [vmem:[#allocation3 + $0x60] sm:$0xff] }
 0x20e   : > { %v1380_v29 = vpop.permute.xlu0 %1379  ;;  %v1261_v62 = vmax.f32 %v6962_v39, %v1135_v31  ;;  %4258 = vmatmul.f32.gmra.mxu0 %v3456_v6  ;;  %v3748_v39 = vld [vmem:[%s10507_s3 + $0x1d8] sm:$0xff]  ;;  %v3747_v31 = vld [vmem:[%s10507_s3 + $0x1d0] sm:$0xff] }
 0x20f   : > { %1741 = vst.msk [vmem:[#allocation2 + $0x108] sm:$0xff] %vm569_vm0, %v1656_v22  ;;  %v1506_v28 = vmax.f32 %v6999_v52, %v1380_v29  ;;  %4404 = vmatpush.msrb.mxu1 %v3748_v39  ;;  %v7520_v29 = vld [vmem:[#allocation2 + $0x90] sm:$0xff] }
 0x210   : > { %4100 = vmatmul.f32.gmra.mxu3 %v3465_v27  ;;  %1834 = vst.msk [vmem:[#allocation3 + $0x230] sm:$0xff] %vm569_vm0, %v7520_v29 }
 0x211   : > { %v1555_v59 = vmax.f32 %v1261_v62, %v1506_v28  ;;  %4405 = vmatpush.msrb.mxu1 %v3747_v31  ;;  %v7522_v62 = vpop.f32.mrf.mxu0  ;;  %3001 = vst.msk [vmem:[#allocation3 + $0x18] sm:$0xff] %vm569_vm0, %v7520_v29  ;;  %v1507_v31 = vmax.f32 %v7023_v24, %v7414_v34  ;;  %v3741_v34 = vld [vmem:[%s10507_s3 + $0x1a0] sm:$0xff] }
 0x213   : > { %v1608_v46 = vadd.f32 %v7477_v43, %v1555_v59  ;;  %1403 = vrot.lane.b32.xlu2 %v7389_v38, %s6271_s16  ;;  %2014 = vrot.lane.b32.xlu1 %v7354_v53, %s6271_s16  ;;  %v3746_v53 = vld [vmem:[%s10507_s3 + $0x1c8] sm:$0xff]  ;;  %v3744_v59 = vld [vmem:[%s10507_s3 + $0x1b8] sm:$0xff] }
 0x214   : > { %2016 = vrot.lane.b32.xlu0 %v7400_v33, %s6271_s16  ;;  %v3745_v33 = vld [vmem:[%s10507_s3 + $0x1c0] sm:$0xff]  ;;  %4406 = vmatpush.msrb.mxu1 %v3746_v53 }
 0x215   : > { %v1657_v52 = vmax.f32 %v1608_v46, 0.0  ;;  %v2762_v42 = vpop.permute.xlu1 %2761  ;;  %v3152_v22 = vpop.permute.xlu2 %3151 }
 0x216   : > { %v2373_v6 = vpop.permute.xlu0 %2372  ;;  %2905 = vst.msk [vmem:[#allocation3 + $0x88] sm:$0xff] %vm2115_vm1, %v2762_v42  ;;  %v7526_v28 = vld [vmem:[#allocation2 + $0x108] sm:$0xff]  ;;  %4407 = vmatpush.msrb.mxu1 %v3745_v33  ;;  %v7543_v46 = vpop.f32.mrf.mxu1 }
 0x217   : > { %1742 = vst.msk [vmem:[#allocation2 + $0x110] sm:$0xff] %vm569_vm0, %v1657_v52  ;;  %v7530_v27 = vld [vmem:[#allocation2 + $0x108] sm:$0xff] }
 0x218   : > { %2514 = vst.msk [vmem:[#allocation3 + $0xd0] sm:$0xff] %vm2115_vm1, %v2373_v6  ;;  %4408 = vmatpush.msrb.mxu1 %v3744_v59  ;;  %v2191_v59 = vld [vmem:[#allocation2 + $0x108] sm:$0xff] }
 0x219   : > { %3297 = vst.msk [vmem:[#allocation3 + $0x40] sm:$0xff] %vm2115_vm1, %v3152_v22  ;;  %v3743_v22 = vld [vmem:[%s10507_s3 + $0x1b0] sm:$0xff] }
 0x21a   : > { %1847 = vst.msk [vmem:[#allocation3 + $0x438] sm:$0xff] %vm569_vm0, %v7526_v28  ;;  %4409 = vmatpush.msrb.mxu1 %v3743_v22 }
 0x21b   : > { %1160 = vrot.lane.b32.xlu1 %v7425_v8, %s6271_s16  ;;  %1166 = vrot.lane.b32.xlu2 %v7522_v62, %s6271_s16  ;;  %3014 = vst.msk [vmem:[#allocation3 + $0x220] sm:$0xff] %vm569_vm0, %v7530_v27 }
 0x21c   : > { %1162 = vrot.lane.b32.xlu0 %v7446_v1, %s6271_s16  ;;  %2626 = vst.msk [vmem:[#allocation3 + $0x308] sm:$0xff] %vm569_vm0, %v7530_v27 }
 0x21d   : > { %v1137_v39 = vpop.permute.xlu1 %1136  ;;  %v7547_v52 = vpop.permute.xlu2 %1144  ;;  %v3461_v42 = vld [vmem:[#allocation3 + $0x88] sm:$0xff]  ;;  %2240 = vst.msk [vmem:[#allocation3 + $0x3f0] sm:$0xff] %vm569_vm0, %v2191_v59 }
 0x21e   : > { %v2375_v6 = vpop.permute.xlu0 %2374  ;;  %v1262_v53 = vmax.f32 %v6989_v3, %v1137_v39  ;;  %4261 = vmatmul.f32.gmra.mxu0 %v3461_v42  ;;  %v7557_v33 = vld [vmem:[#allocation2 + $0x110] sm:$0xff]  ;;  %v3742_v3 = vld [vmem:[%s10507_s3 + $0x1a8] sm:$0xff]  ;;  %v7574_v39 = vpop.f32.mrf.mxu0  ;;  %3406 = vst.msk [vmem:[#allocation3 + $0x1d8] sm:$0xff] %vm569_vm0, %v2191_v59 }
 0x21f   : > { %10557 = vst [vmem:[#allocation10_spill] sm:$0xff] %v7557_v33  ;;  %v2192_v7 = vld [vmem:[#allocation2 + $0x110] sm:$0xff]  ;;  %v3470_v44 = vld [vmem:[#allocation3 + $0xd0] sm:$0xff]  ;;  %4410 = vmatpush.msrb.mxu1 %v3742_v3 }
 0x220   : > { %2515 = vst.msk [vmem:[#allocation3 + $0xf8] sm:$0xff] %vm2115_vm1, %v2375_v6  ;;  %v1556_v24 = vmax.f32 %v1262_v53, %v1507_v31  ;;  %4103 = vmatmul.f32.gmra.mxu3 %v3470_v44  ;;  %v1897_v22 = vld [vmem:[#allocation2 + $0x110] sm:$0xff]  ;;  %v3740_v44 = vld [vmem:[%s10507_s3 + $0x198] sm:$0xff] }
 0x221   : > { %2627 = vst.msk [vmem:[#allocation3 + $0x330] sm:$0xff] %vm569_vm0, %v7557_v33  ;;  %4411 = vmatpush.msrb.mxu1 %v3741_v34  ;;  %v3739_v53 = vld [vmem:[%s10507_s3 + $0x190] sm:$0xff] }
 0x222   : > { %v1609_v42 = vadd.f32 %v7477_v43, %v1556_v24  ;;  %2241 = vst.msk [vmem:[#allocation3 + $0x418] sm:$0xff] %vm569_vm0, %v2192_v7 }
 0x223   : > { %1405 = vrot.lane.b32.xlu1 %v7418_v9, %s6271_s16  ;;  %2022 = vrot.lane.b32.xlu2 %v1897_v22, %s6271_s16  ;;  %3407 = vst.msk [vmem:[#allocation3 + $0x200] sm:$0xff] %vm569_vm0, %v2192_v7  ;;  %v7592_v22 = vpop.f32.mrf.mxu1  ;;  %v3737_v7 = vld [vmem:[%s10507_s3 + $0x180] sm:$0xff] }
 0x224   : > { %v1658_v35 = vmax.f32 %v1609_v42, 0.0  ;;  %2018 = vrot.lane.b32.xlu0 %v7453_v25, %s6271_s16  ;;  %4412 = vmatpush.msrb.mxu1 %v3740_v44  ;;  %v3738_v25 = vld [vmem:[%s10507_s3 + $0x188] sm:$0xff] }
 0x225   : > { %v1993_v31 = vpop.permute.xlu1 %1992  ;;  %v3154_v6 = vpop.permute.xlu2 %3153 }
 0x226   : > { %1743 = vst.msk [vmem:[#allocation2 + $0x128] sm:$0xff] %vm569_vm0, %v1658_v35  ;;  %v2764_v3 = vpop.permute.xlu0 %2763  ;;  %4413 = vmatpush.msrb.mxu1 %v3739_v53  ;;  %v7607_v59 = vpop.f32.mrf.mxu0  ;;  %v1508_v53 = vmax.f32 %v7042_v58, %v7434_v47 }
 0x227   : > { %v3475_v24 = vld [vmem:[#allocation3 + $0xf8] sm:$0xff]  ;;  %2906 = vst.msk [vmem:[#allocation3 + $0xb0] sm:$0xff] %vm2115_vm1, %v2764_v3 }
 0x228   : > { %2128 = vst.msk [vmem:[#allocation3 + $0x1e0] sm:$0xff] %vm2115_vm1, %v1993_v31  ;;  %4106 = vmatmul.f32.gmra.mxu3 %v3475_v24  ;;  %4414 = vmatpush.msrb.mxu1 %v3738_v25 }
 0x229   : > { %3298 = vst.msk [vmem:[#allocation3 + $0x68] sm:$0xff] %vm2115_vm1, %v3154_v6 }
 0x22a   : > { %4415 = vmatpush.msrb.mxu1 %v3737_v7 }
 0x22b   : > { %1407 = vrot.lane.b32.xlu1 %v7438_v16, %s6271_s16  ;;  %1168 = vrot.lane.b32.xlu2 %v7574_v39, %s6271_s16  ;;  %v7618_v25 = vpop.f32.mrf.mxu1 }
 0x22c   : > { %1164 = vrot.lane.b32.xlu0 %v7492_v36, %s6271_s16 }
 0x22d   : > { %v1995_v34 = vpop.permute.xlu1 %1994  ;;  %v3156_v42 = vpop.permute.xlu2 %3155  ;;  %v1898_v44 = vld [vmem:[#allocation2 + $0x128] sm:$0xff] }
 0x22e   : > { %2129 = vst.msk [vmem:[#allocation3 + $0x208] sm:$0xff] %vm2115_vm1, %v1995_v34  ;;  %v1139_v35 = vpop.permute.xlu0 %1138  ;;  %v3466_v31 = vld [vmem:[#allocation3 + $0xb0] sm:$0xff]  ;;  %v7612_v6 = vld [vmem:[#allocation2 + $0x128] sm:$0xff] }
 0x22f   : > { %10558 = vst [vmem:[#allocation11_spill] sm:$0xff] %v7612_v6  ;;  %v1263_v3 = vmax.f32 %v7014_v19, %v1139_v35  ;;  %v3504_v24 = vld [vmem:[#allocation3 + $0x1e0] sm:$0xff]  ;;  %4264 = vmatmul.f32.gmra.mxu0 %v3466_v31  ;;  %v7631_v35 = vpop.f32.mrf.mxu0 }
 0x230   : > { %3299 = vst.msk [vmem:[#allocation3 + $0x90] sm:$0xff] %vm2115_vm1, %v3156_v42  ;;  %3960 = vmatmul.f32.gmra.mxu2 %v3504_v24 }
 0x231   : > { %1849 = vst.msk [vmem:[#allocation3 + $0x488] sm:$0xff] %vm569_vm0, %v1898_v44  ;;  %v1557_v7 = vmax.f32 %v1263_v3, %v1508_v53  ;;  %v1509_v53 = vmax.f32 %v7082_v14, %v7450_v10 }
 0x232   : > { %3016 = vst.msk [vmem:[#allocation3 + $0x270] sm:$0xff] %vm569_vm0, %v7612_v6 }
 0x233   : > { %2628 = vst.msk [vmem:[#allocation3 + $0x358] sm:$0xff] %vm569_vm0, %v7612_v6  ;;  %v1610_v58 = vadd.f32 %v7477_v43, %v1557_v7  ;;  %1409 = vrot.lane.b32.xlu1 %v7464_v40, %s6271_s16  ;;  %2024 = vrot.lane.b32.xlu2 %v1898_v44, %s6271_s16  ;;  %v7639_v44 = vpop.f32.mrf.mxu1 }
 0x234   : > { %2020 = vrot.lane.b32.xlu0 %v7526_v28, %s6271_s16 }
 0x235   : > { %v1659_v19 = vmax.f32 %v1610_v58, 0.0  ;;  %v1997_v47 = vpop.permute.xlu1 %1996  ;;  %v2005_v34 = vpop.permute.xlu2 %2004  ;;  %v3509_v42 = vld [vmem:[#allocation3 + $0x208] sm:$0xff] }
 0x236   : > { %2130 = vst.msk [vmem:[#allocation3 + $0x230] sm:$0xff] %vm2115_vm1, %v1997_v47  ;;  %v1141_v31 = vpop.permute.xlu0 %1140 }
 0x237   : > { %1744 = vst.msk [vmem:[#allocation2 + $0x130] sm:$0xff] %vm569_vm0, %v1659_v19  ;;  %v1264_v3 = vmax.f32 %v7038_v37, %v1141_v31  ;;  %v1265_v37 = vmax.f32 %v7069_v54, %v7490_v17  ;;  %v7654_v31 = vpop.f32.mrf.mxu0 }
 0x238   : > { %2134 = vst.msk [vmem:[#allocation3 + $0x2d0] sm:$0xff] %vm2115_vm1, %v2005_v34  ;;  %3963 = vmatmul.f32.gmra.mxu2 %v3509_v42 }
 0x239   : > { %v1558_v28 = vmax.f32 %v1264_v3, %v1509_v53 }
 0x23b   : > { %v1611_v24 = vadd.f32 %v7477_v43, %v1558_v28  ;;  %1170 = vrot.lane.b32.xlu1 %v7607_v59, %s6271_s16  ;;  %v7669_v28 = vpop.f32.mrf.mxu1 }
 0x23c   : > { %1411 = vrot.lane.b32.xlu0 %v7497_v63, %s6271_s16 }
 0x23d   : > { %v1660_v7 = vmax.f32 %v1611_v24, 0.0  ;;  %v1388_v14 = vpop.permute.xlu1 %1387  ;;  %v2007_v10 = vpop.permute.xlu2 %2006  ;;  %v3514_v58 = vld [vmem:[#allocation3 + $0x230] sm:$0xff] }
 0x23e   : > { %v1510_v19 = vmax.f32 %v7125_v21, %v1388_v14  ;;  %v3150_v47 = vpop.permute.xlu0 %3149  ;;  %2135 = vst.msk [vmem:[#allocation3 + $0x2f8] sm:$0xff] %vm2115_vm1, %v2007_v10  ;;  %v1899_v34 = vld [vmem:[#allocation2 + $0x130] sm:$0xff]  ;;  %v7658_v21 = vpop.f32.mrf.mxu2  ;;  %v1266_v14 = vmax.f32 %v7111_v0, %v7547_v52 }
 0x23f   : > { %1745 = vst.msk [vmem:[#allocation2 + $0x138] sm:$0xff] %vm569_vm0, %v1660_v7  ;;  %2026 = vrot.lane.b32.xlu2 %v1899_v34, %s6271_s16  ;;  %v7652_v42 = vld [vmem:[#allocation2 + $0x130] sm:$0xff]  ;;  %v7684_v52 = vpop.f32.mrf.mxu0 }
 0x240   : > { %10559 = vst [vmem:[#allocation12_spill] sm:$0xff] %v7652_v42  ;;  %v1559_v53 = vmax.f32 %v1265_v37, %v1510_v19  ;;  %3966 = vmatmul.f32.gmra.mxu2 %v3514_v58  ;;  %v2194_v54 = vld [vmem:[#allocation2 + $0x130] sm:$0xff] }
 0x241   : > { %3296 = vst.msk [vmem:[#allocation3 + $0x18] sm:$0xff] %vm2115_vm1, %v3150_v47 }
 0x242   : > { %1850 = vst.msk [vmem:[#allocation3 + $0x4b0] sm:$0xff] %vm569_vm0, %v1899_v34  ;;  %v1612_v17 = vadd.f32 %v7477_v43, %v1559_v53 }
 0x243   : > { %10560 = vst [vmem:[#allocation13_spill] sm:$0xff] %v7658_v21  ;;  %1172 = vrot.lane.b32.xlu1 %v7631_v35, %s6271_s16 }
 0x244   : > { %3017 = vst.msk [vmem:[#allocation3 + $0x298] sm:$0xff] %vm569_vm0, %v7652_v42  ;;  %v1661_v3 = vmax.f32 %v1612_v17, 0.0  ;;  %1413 = vrot.lane.b32.xlu0 %v7543_v46, %s6271_s16 }
 0x245   : > { %2629 = vst.msk [vmem:[#allocation3 + $0x380] sm:$0xff] %vm569_vm0, %v7652_v42  ;;  %v1390_v24 = vpop.permute.xlu1 %1389  ;;  %v2009_v7 = vpop.permute.xlu2 %2008 }
 0x246   : > { %2243 = vst.msk [vmem:[#allocation3 + $0x468] sm:$0xff] %vm569_vm0, %v2194_v54  ;;  %v1511_v10 = vmax.f32 %v7170_v15, %v1390_v24  ;;  %v1999_v58 = vpop.permute.xlu0 %1998  ;;  %v1900_v37 = vld [vmem:[#allocation2 + $0x138] sm:$0xff]  ;;  %v7692_v53 = vpop.f32.mrf.mxu2 }
 0x247   : > { %3409 = vst.msk [vmem:[#allocation3 + $0x250] sm:$0xff] %vm569_vm0, %v2194_v54  ;;  %1417 = vrot.lane.b32.xlu2 %v7618_v25, %s6271_s16  ;;  %v7680_v47 = vld [vmem:[#allocation2 + $0x138] sm:$0xff] }
 0x248   : > { %1746 = vst.msk [vmem:[#allocation2 + $0x140] sm:$0xff] %vm569_vm0, %v1661_v3  ;;  %v3447_v19 = vld [vmem:[#allocation3 + $0x18] sm:$0xff]  ;;  %v1560_v34 = vmax.f32 %v1266_v14, %v1511_v10  ;;  %v2195_v0 = vld [vmem:[#allocation2 + $0x138] sm:$0xff]  ;;  %v7699_v10 = vpop.f32.mrf.mxu1 }
 0x249   : > { %2131 = vst.msk [vmem:[#allocation3 + $0x258] sm:$0xff] %vm2115_vm1, %v1999_v58  ;;  %4416 = vmatmul.f32.vlgmr.msrb.gmra.mxu1 %v3447_v19  ;;  %v3758_v58 = vld [vmem:[%s10507_s3 + $0x228] sm:$0xff] }
 0x24a   : > { %10561 = vst [vmem:[#allocation14_spill] sm:$0xff] %v7680_v47  ;;  %v1613_v15 = vadd.f32 %v7477_v43, %v1560_v34  ;;  %v3452_v19 = vld [vmem:[#allocation3 + $0x40] sm:$0xff]  ;;  %4574 = vmatpush.msrb.mxu2 %v3758_v58 }
 0x24b   : > { %2136 = vst.msk [vmem:[#allocation3 + $0x320] sm:$0xff] %vm2115_vm1, %v2009_v7  ;;  %2028 = vrot.lane.b32.xlu1 %v1900_v37, %s6271_s16 }
 0x24c   : > { %1851 = vst.msk [vmem:[#allocation3 + $0x4d8] sm:$0xff] %vm569_vm0, %v1900_v37  ;;  %v1662_v54 = vmax.f32 %v1613_v15, 0.0  ;;  %1415 = vrot.lane.b32.xlu0 %v7592_v22, %s6271_s16  ;;  %v7704_v37 = vld [vmem:[#allocation2 + $0xd8] sm:$0xff]  ;;  %v7719_v15 = vpop.f32.mrf.mxu0 }
 0x24d   : > { %3018 = vst.msk [vmem:[#allocation3 + $0x2c0] sm:$0xff] %vm569_vm0, %v7680_v47  ;;  %v1147_v17 = vpop.permute.xlu1 %1146  ;;  %v1155_v3 = vpop.permute.xlu2 %1154 }
 0x24e   : > { %2630 = vst.msk [vmem:[#allocation3 + $0x3a8] sm:$0xff] %vm569_vm0, %v7680_v47  ;;  %v2001_v7 = vpop.permute.xlu0 %2000 }
 0x24f   : > { %10562 = vst [vmem:[#allocation15_spill] sm:$0xff] %v7692_v53  ;;  %v1901_v24 = vld [vmem:[#allocation2 + $0x140] sm:$0xff]  ;;  %1419 = vrot.lane.b32.xlu2 %v7639_v44, %s6271_s16  ;;  %v1271_v53 = vmax.f32 %v7344_v48, %v1155_v3 }
 0x250   : > { %2244 = vst.msk [vmem:[#allocation3 + $0x490] sm:$0xff] %vm569_vm0, %v2195_v0  ;;  %v3519_v14 = vld [vmem:[#allocation3 + $0x258] sm:$0xff]  ;;  %v7738_v48 = vpop.f32.mrf.mxu1 }
 0x251   : > { %3410 = vst.msk [vmem:[#allocation3 + $0x278] sm:$0xff] %vm569_vm0, %v2195_v0  ;;  %3969 = vmatmul.f32.gmra.mxu2 %v3519_v14  ;;  %4419 = vmatmul.f32.gmra.mxu1 %v3452_v19  ;;  %v7711_v34 = vld [vmem:[#allocation2 + $0x140] sm:$0xff]  ;;  %v7728_v19 = vpop.f32.mrf.mxu2 }
 0x252   : > { %1747 = vst.msk [vmem:[#allocation2 + $0x148] sm:$0xff] %vm569_vm0, %v1662_v54  ;;  %v2196_v0 = vld [vmem:[#allocation2 + $0x140] sm:$0xff] }
 0x253   : > { %2132 = vst.msk [vmem:[#allocation3 + $0x280] sm:$0xff] %vm2115_vm1, %v2001_v7  ;;  %2030 = vrot.lane.b32.xlu1 %v1901_v24, %s6271_s16 }
 0x254   : > { %1841 = vst.msk [vmem:[#allocation3 + $0x348] sm:$0xff] %vm569_vm0, %v7704_v37  ;;  %1174 = vrot.lane.b32.xlu0 %v7654_v31, %s6271_s16 }
 0x255   : > { %10563 = vst [vmem:[#allocation16_spill] sm:$0xff] %v7711_v34  ;;  %v1392_v54 = vpop.permute.xlu1 %1391  ;;  %v1400_v7 = vpop.permute.xlu2 %1399 }
 0x256   : > { %1852 = vst.msk [vmem:[#allocation3 + $0x500] sm:$0xff] %vm569_vm0, %v1901_v24  ;;  %v1267_v24 = vmax.f32 %v7174_v26, %v1147_v17  ;;  %v2003_v21 = vpop.permute.xlu0 %2002  ;;  %v1512_v47 = vmax.f32 %v7210_v5, %v1392_v54  ;;  %v1516_v42 = vmax.f32 %v7350_v20, %v1400_v7 }
 0x257   : > { %3008 = vst.msk [vmem:[#allocation3 + $0x130] sm:$0xff] %vm569_vm0, %v7704_v37  ;;  %1421 = vrot.lane.b32.xlu2 %v7669_v28, %s6271_s16 }
 0x258   : > { %3019 = vst.msk [vmem:[#allocation3 + $0x2e8] sm:$0xff] %vm569_vm0, %v7711_v34  ;;  %v1561_v33 = vmax.f32 %v1267_v24, %v1512_v47  ;;  %v1565_v26 = vmax.f32 %v1271_v53, %v1516_v42  ;;  %v7752_v53 = vpop.f32.mrf.mxu0 }
 0x259   : > { %2631 = vst.msk [vmem:[#allocation3 + $0x3d0] sm:$0xff] %vm569_vm0, %v7711_v34  ;;  %v1902_v14 = vld [vmem:[#allocation2 + $0x148] sm:$0xff]  ;;  %v3457_v34 = vld [vmem:[#allocation3 + $0x68] sm:$0xff]  ;;  %v7760_v54 = vpop.f32.mrf.mxu2 }
 0x25a   : > { %v7725_v58 = vld [vmem:[#allocation2 + $0x148] sm:$0xff]  ;;  %2245 = vst.msk [vmem:[#allocation3 + $0x4b8] sm:$0xff] %vm569_vm0, %v2196_v0  ;;  %4422 = vmatmul.f32.gmra.mxu1 %v3457_v34  ;;  %v1614_v5 = vadd.f32 %v7477_v43, %v1561_v33  ;;  %v1618_v20 = vadd.f32 %v7477_v43, %v1565_v26 }
 0x25b   : > { %10564 = vst [vmem:[#allocation17_spill] sm:$0xff] %v7725_v58  ;;  %v3524_v6 = vld [vmem:[#allocation3 + $0x280] sm:$0xff]  ;;  %2032 = vrot.lane.b32.xlu1 %v1902_v14, %s6271_s16 }
 0x25c   : > { %10565 = vst [vmem:[#allocation18_spill] sm:$0xff] %v7728_v19  ;;  %3972 = vmatmul.f32.gmra.mxu2 %v3524_v6  ;;  %v2197_v19 = vld [vmem:[#allocation2 + $0x148] sm:$0xff]  ;;  %v1663_v6 = vmax.f32 %v1614_v5, 0.0  ;;  %v1667_v42 = vmax.f32 %v1618_v20, 0.0  ;;  %1176 = vrot.lane.b32.xlu0 %v7684_v52, %s6271_s16 }
 0x25d   : > { %1853 = vst.msk [vmem:[#allocation3 + $0x528] sm:$0xff] %vm569_vm0, %v1902_v14  ;;  %v1157_v47 = vpop.permute.xlu2 %1156  ;;  %v7762_v14 = vpop.f32.mrf.mxu1 }
 0x25e   : > { %2133 = vst.msk [vmem:[#allocation3 + $0x2a8] sm:$0xff] %vm2115_vm1, %v2003_v21  ;;  %v1149_v21 = vpop.permute.xlu1 %1148  ;;  %v1394_v33 = vpop.permute.xlu0 %1393  ;;  %v1272_v5 = vmax.f32 %v7373_v30, %v1157_v47 }
 0x25f   : > { %3020 = vst.msk [vmem:[#allocation3 + $0x310] sm:$0xff] %vm569_vm0, %v7725_v58  ;;  %v1268_v17 = vmax.f32 %v7225_v57, %v1149_v21  ;;  %v1513_v34 = vmax.f32 %v7257_v56, %v1394_v33  ;;  %1178 = vrot.lane.b32.xlu2 %v7719_v15, %s6271_s16 }
 0x260   : > { %2632 = vst.msk [vmem:[#allocation3 + $0x3f8] sm:$0xff] %vm569_vm0, %v7725_v58 }
 0x261   : > { %2246 = vst.msk [vmem:[#allocation3 + $0x4e0] sm:$0xff] %vm569_vm0, %v2197_v19  ;;  %v1562_v7 = vmax.f32 %v1268_v17, %v1513_v34  ;;  %v7778_v17 = vpop.f32.mrf.mxu0 }
 0x262   : > { %3411 = vst.msk [vmem:[#allocation3 + $0x2a0] sm:$0xff] %vm569_vm0, %v2196_v0  ;;  %v3462_v0 = vld [vmem:[#allocation3 + $0x90] sm:$0xff] }
 0x263   : > { %3412 = vst.msk [vmem:[#allocation3 + $0x2c8] sm:$0xff] %vm569_vm0, %v2197_v19  ;;  %4425 = vmatmul.f32.gmra.mxu1 %v3462_v0  ;;  %v1615_v19 = vadd.f32 %v7477_v43, %v1562_v7  ;;  %1425 = vrot.lane.b32.xlu1 %v7738_v48, %s6271_s16 }
 0x264   : > { %1748 = vst.msk [vmem:[#allocation2 + $0x150] sm:$0xff] %vm569_vm0, %v1663_v6 }
 0x265   : > { %v3529_v3 = vld [vmem:[#allocation3 + $0x2a8] sm:$0xff]  ;;  %1752 = vst.msk [vmem:[#allocation2 + $0x180] sm:$0xff] %vm569_vm0, %v1667_v42  ;;  %v1664_v57 = vmax.f32 %v1615_v19, 0.0  ;;  %v1402_v26 = vpop.permute.xlu2 %1401  ;;  %v3534_v42 = vld [vmem:[#allocation3 + $0x2d0] sm:$0xff]  ;;  %v7793_v19 = vpop.f32.mrf.mxu1 }
 0x266   : > { %3975 = vmatmul.f32.gmra.mxu2 %v3529_v3  ;;  %10566 = vst [vmem:[#allocation19_spill] sm:$0xff] %v7760_v54  ;;  %v3158_v24 = vpop.permute.xlu1 %3157  ;;  %v1151_v20 = vpop.permute.xlu0 %1150  ;;  %v1517_v6 = vmax.f32 %v7376_v12, %v1402_v26  ;;  %v7805_v54 = vld [vmem:[#allocation2 + $0x120] sm:$0xff] }
 0x267   : > { %3300 = vst.msk [vmem:[#allocation3 + $0xb8] sm:$0xff] %vm2115_vm1, %v3158_v24  ;;  %1423 = vrot.lane.b32.xlu2 %v7699_v10, %s6271_s16  ;;  %v7785_v3 = vpop.f32.mrf.mxu2 }
 0x268   : > { %1749 = vst.msk [vmem:[#allocation2 + $0x158] sm:$0xff] %vm569_vm0, %v1664_v57  ;;  %v1566_v30 = vmax.f32 %v1272_v5, %v1517_v6  ;;  %v3539_v5 = vld [vmem:[#allocation3 + $0x2f8] sm:$0xff] }
 0x269   : > { %10569 = vst [vmem:[#allocation22_spill] sm:$0xff] %v7785_v3 }
 0x26a   : > { %v1619_v34 = vadd.f32 %v7477_v43, %v1566_v30  ;;  %v1269_v30 = vmax.f32 %v7280_v60, %v1151_v20  ;;  %1848 = vst.msk [vmem:[#allocation3 + $0x460] sm:$0xff] %vm569_vm0, %v7805_v54 }
 0x26b   : > { %v1903_v56 = vld [vmem:[#allocation2 + $0x150] sm:$0xff]  ;;  %1182 = vrot.lane.b32.xlu1 %v7778_v17, %s6271_s16 }
 0x26c   : > { %2034 = vrot.lane.b32.xlu0 %v1903_v56, %s6271_s16  ;;  %v7771_v21 = vld [vmem:[#allocation2 + $0x180] sm:$0xff]  ;;  %v7776_v33 = vld [vmem:[#allocation2 + $0x150] sm:$0xff]  ;;  %1854 = vst.msk [vmem:[#allocation3 + $0x550] sm:$0xff] %vm569_vm0, %v1903_v56  ;;  %v1668_v7 = vmax.f32 %v1619_v34, 0.0 }
 0x26d   : > { %10567 = vst [vmem:[#allocation20_spill] sm:$0xff] %v7776_v33  ;;  %v2584_v47 = vld [vmem:[#allocation2 + $0x150] sm:$0xff]  ;;  %v7783_v12 = vld [vmem:[#allocation2 + $0x180] sm:$0xff]  ;;  %v7797_v24 = vpop.permute.xlu2 %1403 }
 0x26e   : > { %3978 = vmatmul.f32.gmra.mxu2 %v3534_v42  ;;  %1858 = vst.msk [vmem:[#allocation3 + $0x5f0] sm:$0xff] %vm569_vm0, %v7771_v21  ;;  %v2588_v0 = vld [vmem:[#allocation2 + $0x180] sm:$0xff]  ;;  %v2011_v57 = vpop.permute.xlu1 %2010  ;;  %v1396_v56 = vpop.permute.xlu0 %1395 }
 0x26f   : > { %10568 = vst [vmem:[#allocation21_spill] sm:$0xff] %v7783_v12  ;;  %v3467_v26 = vld [vmem:[#allocation3 + $0xb8] sm:$0xff]  ;;  %v1904_v6 = vld [vmem:[#allocation2 + $0x158] sm:$0xff]  ;;  %v1514_v34 = vmax.f32 %v7297_v50, %v1396_v56  ;;  %1180 = vrot.lane.b32.xlu2 %v7752_v53, %s6271_s16  ;;  %v7819_v50 = vpop.f32.mrf.mxu2 }
 0x270   : > { %3021 = vst.msk [vmem:[#allocation3 + $0x338] sm:$0xff] %vm569_vm0, %v7776_v33  ;;  %4428 = vmatmul.f32.gmra.mxu1 %v3467_v26  ;;  %v2585_v42 = vld [vmem:[#allocation2 + $0x158] sm:$0xff]  ;;  %v7812_v26 = vpop.f32.mrf.mxu0 }
 0x271   : > { %2633 = vst.msk [vmem:[#allocation3 + $0x420] sm:$0xff] %vm569_vm0, %v2584_v47 }
 0x272   : > { %3025 = vst.msk [vmem:[#allocation3 + $0x3d8] sm:$0xff] %vm569_vm0, %v7783_v12  ;;  %v3757_v12 = vld [vmem:[%s10507_s3 + $0x220] sm:$0xff] }
 0x273   : > { %2637 = vst.msk [vmem:[#allocation3 + $0x4c0] sm:$0xff] %vm569_vm0, %v2588_v0  ;;  %1184 = vrot.lane.b32.xlu1 %v7812_v26, %s6271_s16  ;;  %4575 = vmatpush.msrb.mxu2 %v3757_v12 }
 0x274   : > { %1753 = vst.msk [vmem:[#allocation2 + $0x188] sm:$0xff] %vm569_vm0, %v1668_v7  ;;  %2036 = vrot.lane.b32.xlu0 %v1904_v6, %s6271_s16  ;;  %v1563_v7 = vmax.f32 %v1269_v30, %v1514_v34  ;;  %v3544_v30 = vld [vmem:[#allocation3 + $0x320] sm:$0xff]  ;;  %v7828_v34 = vpop.f32.mrf.mxu1 }
 0x275   : > { %2137 = vst.msk [vmem:[#allocation3 + $0x348] sm:$0xff] %vm2115_vm1, %v2011_v57  ;;  %v7822_v56 = vpop.permute.xlu2 %1166 }
 0x276   : > { %3981 = vmatmul.f32.gmra.mxu2 %v3539_v5  ;;  %2634 = vst.msk [vmem:[#allocation3 + $0x448] sm:$0xff] %vm569_vm0, %v2585_v42  ;;  %v1616_v60 = vadd.f32 %v7477_v43, %v1563_v7  ;;  %v2013_v57 = vpop.permute.xlu1 %2012  ;;  %v1153_v6 = vpop.permute.xlu0 %1152 }
 0x277   : > { %2247 = vst.msk [vmem:[#allocation3 + $0x508] sm:$0xff] %vm569_vm0, %v2584_v47  ;;  %1427 = vrot.lane.b32.xlu2 %v7762_v14, %s6271_s16  ;;  %v1270_v58 = vmax.f32 %v7307_v2, %v1153_v6 }
 0x278   : > { %2248 = vst.msk [vmem:[#allocation3 + $0x530] sm:$0xff] %vm569_vm0, %v2585_v42  ;;  %v1665_v20 = vmax.f32 %v1616_v60, 0.0 }
 0x279   : > { %10570 = vst [vmem:[#allocation23_spill] sm:$0xff] %v7819_v50 }
 0x27a   : > { %3413 = vst.msk [vmem:[#allocation3 + $0x2f0] sm:$0xff] %vm569_vm0, %v2584_v47 }
 0x27b   : > { %v7824_v5 = vld [vmem:[#allocation2 + $0x188] sm:$0xff]  ;;  %3414 = vst.msk [vmem:[#allocation3 + $0x318] sm:$0xff] %vm569_vm0, %v2585_v42  ;;  %1429 = vrot.lane.b32.xlu1 %v7793_v19, %s6271_s16 }
 0x27c   : > { %2138 = vst.msk [vmem:[#allocation3 + $0x370] sm:$0xff] %vm2115_vm1, %v2013_v57  ;;  %v7830_v7 = vld [vmem:[#allocation2 + $0x188] sm:$0xff]  ;;  %v7845_v57 = vpop.f32.mrf.mxu0 }
 0x27d   : > { %10571 = vst [vmem:[#allocation24_spill] sm:$0xff] %v7830_v7  ;;  %v2589_v47 = vld [vmem:[#allocation2 + $0x188] sm:$0xff]  ;;  %v2023_v60 = vpop.permute.xlu2 %2022 }
 0x27e   : > { %1750 = vst.msk [vmem:[#allocation2 + $0x170] sm:$0xff] %vm569_vm0, %v1665_v20  ;;  %3984 = vmatmul.f32.gmra.mxu2 %v3544_v30  ;;  %v1159_v42 = vpop.permute.xlu1 %1158  ;;  %v3549_v20 = vld [vmem:[#allocation3 + $0x348] sm:$0xff]  ;;  %v1518_v30 = vmax.f32 %v7389_v38, %v7797_v24  ;;  %v1398_v50 = vpop.permute.xlu0 %1397 }
 0x27f   : > { %1859 = vst.msk [vmem:[#allocation3 + $0x618] sm:$0xff] %vm569_vm0, %v7824_v5  ;;  %v1273_v3 = vmax.f32 %v7398_v13, %v1159_v42  ;;  %v7860_v13 = vpop.f32.mrf.mxu2  ;;  %v7862_v42 = vpop.f32.mrf.mxu1 }
 0x280   : > { %3026 = vst.msk [vmem:[#allocation3 + $0x400] sm:$0xff] %vm569_vm0, %v7830_v7 }
 0x281   : > { %2638 = vst.msk [vmem:[#allocation3 + $0x4e8] sm:$0xff] %vm569_vm0, %v2589_v47  ;;  %v1567_v24 = vmax.f32 %v1273_v3, %v1518_v30  ;;  %v7886_v30 = vld [vmem:[#allocation2 + $0x88] sm:$0xff] }
 0x282   : > { %2251 = vst.msk [vmem:[#allocation3 + $0x5a8] sm:$0xff] %vm569_vm0, %v2588_v0 }
 0x283   : > { %2252 = vst.msk [vmem:[#allocation3 + $0x5d0] sm:$0xff] %vm569_vm0, %v2589_v47  ;;  %v1620_v2 = vadd.f32 %v7477_v43, %v1567_v24  ;;  %1433 = vrot.lane.b32.xlu1 %v7862_v42, %s6271_s16 }
 0x284   : > { %3417 = vst.msk [vmem:[#allocation3 + $0x390] sm:$0xff] %vm569_vm0, %v2588_v0  ;;  %v1515_v0 = vmax.f32 %v7323_v11, %v1398_v50 }
 0x285   : > { %2143 = vst.msk [vmem:[#allocation3 + $0x438] sm:$0xff] %vm2115_vm1, %v2023_v60  ;;  %v1905_v7 = vld [vmem:[#allocation2 + $0x170] sm:$0xff]  ;;  %v1669_v50 = vmax.f32 %v1620_v2, 0.0 }
 0x286   : > { %v7854_v33 = vld [vmem:[#allocation2 + $0x170] sm:$0xff]  ;;  %3987 = vmatmul.f32.gmra.mxu2 %v3549_v20  ;;  %2038 = vrot.lane.b32.xlu0 %v1905_v7, %s6271_s16  ;;  %1856 = vst.msk [vmem:[#allocation3 + $0x5a0] sm:$0xff] %vm569_vm0, %v1905_v7  ;;  %v1564_v60 = vmax.f32 %v1270_v58, %v1515_v0  ;;  %v2015_v6 = vpop.permute.xlu1 %2014  ;;  %v7872_v7 = vpop.permute.xlu2 %1168  ;;  %v3554_v58 = vld [vmem:[#allocation3 + $0x370] sm:$0xff] }
 0x287   : > { %v2586_v38 = vld [vmem:[#allocation2 + $0x170] sm:$0xff]  ;;  %10572 = vst [vmem:[#allocation25_spill] sm:$0xff] %v7860_v13  ;;  %v2017_v12 = vpop.permute.xlu0 %2016  ;;  %v7880_v20 = vpop.f32.mrf.mxu2 }
 0x288   : > { %3023 = vst.msk [vmem:[#allocation3 + $0x388] sm:$0xff] %vm569_vm0, %v7854_v33  ;;  %v1617_v11 = vadd.f32 %v7477_v43, %v1564_v60 }
 0x289   : > { %2635 = vst.msk [vmem:[#allocation3 + $0x470] sm:$0xff] %vm569_vm0, %v2586_v38 }
 0x28a   : > { %3418 = vst.msk [vmem:[#allocation3 + $0x3b8] sm:$0xff] %vm569_vm0, %v2589_v47  ;;  %v1666_v3 = vmax.f32 %v1617_v11, 0.0  ;;  %v7878_v47 = vpop.f32.mrf.mxu0 }
 0x28b   : > { %1754 = vst.msk [vmem:[#allocation2 + $0x190] sm:$0xff] %vm569_vm0, %v1669_v50  ;;  %3159 = vrot.lane.b32.xlu1 %v7242_v51, %s6271_s16 }
 0x28c   : > { %1751 = vst.msk [vmem:[#allocation2 + $0x178] sm:$0xff] %vm569_vm0, %v1666_v3 }
 0x28d   : > { %10573 = vst [vmem:[#allocation26_spill] sm:$0xff] %v7880_v20 }
 0x28e   : > { %3990 = vmatmul.f32.gmra.mxu2 %v3554_v58  ;;  %1186 = vrot.lane.b32.xlu0 %v7845_v57, %s6271_s16  ;;  %2140 = vst.msk [vmem:[#allocation3 + $0x3c0] sm:$0xff] %vm2115_vm1, %v2017_v12  ;;  %v1161_v0 = vpop.permute.xlu1 %1160  ;;  %v2025_v38 = vpop.permute.xlu2 %2024 }
 0x28f   : > { %2139 = vst.msk [vmem:[#allocation3 + $0x398] sm:$0xff] %vm2115_vm1, %v2015_v6  ;;  %v1163_v60 = vpop.permute.xlu0 %1162  ;;  %v7901_v51 = vpop.f32.mrf.mxu2 }
 0x290   : > { %2228 = vst.msk [vmem:[#allocation3 + $0x210] sm:$0xff] %vm569_vm0, %v7886_v30 }
 0x291   : > { %2144 = vst.msk [vmem:[#allocation3 + $0x460] sm:$0xff] %vm2115_vm1, %v2025_v38 }
 0x292   : > { %v1909_v24 = vld [vmem:[#allocation2 + $0x190] sm:$0xff]  ;;  %10575 = vst [vmem:[#allocation28_spill] sm:$0xff] %v7901_v51  ;;  %v7908_v12 = vpop.f32.mrf.mxu0 }
 0x293   : > { %v7891_v2 = vld [vmem:[#allocation2 + $0x178] sm:$0xff]  ;;  %1860 = vst.msk [vmem:[#allocation3 + $0x640] sm:$0xff] %vm569_vm0, %v1909_v24  ;;  %v7904_v3 = vld [vmem:[#allocation2 + $0x190] sm:$0xff]  ;;  %1190 = vrot.lane.b32.xlu1 %v7908_v12, %s6271_s16 }
 0x294   : > { %v7893_v11 = vld [vmem:[#allocation2 + $0x178] sm:$0xff]  ;;  %2040 = vrot.lane.b32.xlu2 %v7891_v2, %s6271_s16  ;;  %1857 = vst.msk [vmem:[#allocation3 + $0x5c8] sm:$0xff] %vm569_vm0, %v7891_v2  ;;  %v2590_v6 = vld [vmem:[#allocation2 + $0x190] sm:$0xff] }
 0x295   : > { %10574 = vst [vmem:[#allocation27_spill] sm:$0xff] %v7893_v11  ;;  %v2201_v58 = vld [vmem:[#allocation2 + $0x178] sm:$0xff] }
 0x296   : > { %1431 = vrot.lane.b32.xlu0 %v7828_v34, %s6271_s16  ;;  %v3559_v50 = vld [vmem:[#allocation3 + $0x398] sm:$0xff]  ;;  %10576 = vst [vmem:[#allocation29_spill] sm:$0xff] %v7904_v3  ;;  %v1406_v38 = vpop.permute.xlu1 %1405 }
 0x297   : > { %3993 = vmatmul.f32.gmra.mxu2 %v3559_v50  ;;  %3024 = vst.msk [vmem:[#allocation3 + $0x3b0] sm:$0xff] %vm569_vm0, %v7893_v11  ;;  %v1274_v50 = vmax.f32 %v7425_v8, %v1161_v0  ;;  %v1519_v51 = vmax.f32 %v7418_v9, %v1406_v38  ;;  %v2019_v20 = vpop.permute.xlu0 %2018  ;;  %v7928_v9 = vpop.f32.mrf.mxu2  ;;  %v1275_v0 = vmax.f32 %v7446_v1, %v1163_v60 }
 0x298   : > { %2636 = vst.msk [vmem:[#allocation3 + $0x498] sm:$0xff] %vm569_vm0, %v7893_v11  ;;  %v3564_v11 = vld [vmem:[#allocation3 + $0x3c0] sm:$0xff] }
 0x299   : > { %3027 = vst.msk [vmem:[#allocation3 + $0x428] sm:$0xff] %vm569_vm0, %v7904_v3  ;;  %v1568_v13 = vmax.f32 %v1274_v50, %v1519_v51  ;;  %v2027_v3 = vpop.permute.xlu2 %2026 }
 0x29a   : > { %2639 = vst.msk [vmem:[#allocation3 + $0x510] sm:$0xff] %vm569_vm0, %v2590_v6 }
 0x29b   : > { %2250 = vst.msk [vmem:[#allocation3 + $0x580] sm:$0xff] %vm569_vm0, %v2201_v58  ;;  %v1621_v8 = vadd.f32 %v7477_v43, %v1568_v13  ;;  %2046 = vrot.lane.b32.xlu1 %v1909_v24, %s6271_s16 }
 0x29c   : > { %3416 = vst.msk [vmem:[#allocation3 + $0x368] sm:$0xff] %vm569_vm0, %v2201_v58  ;;  %2042 = vrot.lane.b32.xlu2 %v7771_v21, %s6271_s16 }
 0x29d   : > { %2141 = vst.msk [vmem:[#allocation3 + $0x3e8] sm:$0xff] %vm2115_vm1, %v2019_v20  ;;  %v1670_v21 = vmax.f32 %v1621_v8, 0.0 }
 0x29e   : > { %1188 = vrot.lane.b32.xlu0 %v7878_v47, %s6271_s16  ;;  %2253 = vst.msk [vmem:[#allocation3 + $0x5f8] sm:$0xff] %vm569_vm0, %v2590_v6  ;;  %v1408_v20 = vpop.permute.xlu1 %1407 }
 0x29f   : > { %3996 = vmatmul.f32.gmra.mxu2 %v3564_v11  ;;  %3419 = vst.msk [vmem:[#allocation3 + $0x3e0] sm:$0xff] %vm569_vm0, %v2590_v6  ;;  %v1520_v51 = vmax.f32 %v7438_v16, %v1408_v20  ;;  %v1165_v11 = vpop.permute.xlu0 %1164  ;;  %v7943_v6 = vpop.f32.mrf.mxu2 }
 0x2a0   : > { %2145 = vst.msk [vmem:[#allocation3 + $0x488] sm:$0xff] %vm2115_vm1, %v2027_v3  ;;  %v1276_v16 = vmax.f32 %v7492_v36, %v1165_v11 }
 0x2a1   : > { %1755 = vst.msk [vmem:[#allocation2 + $0x198] sm:$0xff] %vm569_vm0, %v1670_v21  ;;  %v1569_v13 = vmax.f32 %v1275_v0, %v1520_v51  ;;  %v7940_v3 = vpop.permute.xlu2 %1417 }
 0x2a3   : > { %v1622_v24 = vadd.f32 %v7477_v43, %v1569_v13 }
 0x2a4   : > { %v3569_v58 = vld [vmem:[#allocation3 + $0x3e8] sm:$0xff]  ;;  %2044 = vrot.lane.b32.xlu2 %v7824_v5, %s6271_s16 }
 0x2a5   : > { %v1671_v1 = vmax.f32 %v1622_v24, 0.0  ;;  %v1277_v24 = vmax.f32 %v7522_v62, %v7822_v56 }
 0x2a6   : > { %2765 = vrot.lane.b32.xlu0 %v7012_v18, %s6271_s16  ;;  %v1410_v60 = vpop.permute.xlu1 %1409 }
 0x2a7   : > { %3999 = vmatmul.f32.gmra.mxu2 %v3569_v58  ;;  %1756 = vst.msk [vmem:[#allocation2 + $0x1a0] sm:$0xff] %vm569_vm0, %v1671_v1  ;;  %v1521_v5 = vmax.f32 %v7464_v40, %v1410_v60  ;;  %v2021_v50 = vpop.permute.xlu0 %2020  ;;  %v7969_v11 = vpop.f32.mrf.mxu2  ;;  %v3756_v60 = vld [vmem:[%s10507_s3 + $0x218] sm:$0xff] }
 0x2a8   : > { %v1910_v38 = vld [vmem:[#allocation2 + $0x198] sm:$0xff]  ;;  %2142 = vst.msk [vmem:[#allocation3 + $0x410] sm:$0xff] %vm2115_vm1, %v2021_v50  ;;  %4576 = vmatpush.msrb.mxu2 %v3756_v60  ;;  %v1525_v50 = vmax.f32 %v7618_v25, %v7940_v3  ;;  %v3584_v60 = vld [vmem:[#allocation3 + $0x460] sm:$0xff] }
 0x2a9   : > { %2048 = vrot.lane.b32.xlu1 %v1910_v38, %s6271_s16  ;;  %v7949_v18 = vld [vmem:[#allocation2 + $0x198] sm:$0xff]  ;;  %v1570_v21 = vmax.f32 %v1276_v16, %v1521_v5  ;;  %1861 = vst.msk [vmem:[#allocation3 + $0x668] sm:$0xff] %vm569_vm0, %v1910_v38  ;;  %v7957_v36 = vpop.permute.xlu2 %1419 }
 0x2aa   : > { %v2591_v8 = vld [vmem:[#allocation2 + $0x198] sm:$0xff]  ;;  %3028 = vst.msk [vmem:[#allocation3 + $0x450] sm:$0xff] %vm569_vm0, %v7949_v18 }
 0x2ab   : > { %v1623_v40 = vadd.f32 %v7477_v43, %v1570_v21  ;;  %2640 = vst.msk [vmem:[#allocation3 + $0x538] sm:$0xff] %vm569_vm0, %v2591_v8 }
 0x2ac   : > { %2376 = vrot.lane.b32.xlu2 %v7520_v29, %s6271_s16  ;;  %2254 = vst.msk [vmem:[#allocation3 + $0x620] sm:$0xff] %vm569_vm0, %v2591_v8  ;;  %v7965_v29 = vpop.f32.mrf.mxu1 }
 0x2ad   : > { %v1672_v20 = vmax.f32 %v1623_v40, 0.0  ;;  %3420 = vst.msk [vmem:[#allocation3 + $0x408] sm:$0xff] %vm569_vm0, %v2591_v8 }
 0x2ae   : > { %2767 = vrot.lane.b32.xlu0 %v7886_v30, %s6271_s16  ;;  %v7967_v30 = vpop.permute.xlu1 %1170  ;;  %v1911_v0 = vld [vmem:[#allocation2 + $0x1a0] sm:$0xff] }
 0x2af   : > { %v2592_v51 = vld [vmem:[#allocation2 + $0x1a0] sm:$0xff]  ;;  %1757 = vst.msk [vmem:[#allocation2 + $0x1b8] sm:$0xff] %vm569_vm0, %v1672_v20  ;;  %v1412_v58 = vpop.permute.xlu0 %1411  ;;  %v3574_v13 = vld [vmem:[#allocation3 + $0x410] sm:$0xff] }
 0x2b0   : > { %v1522_v1 = vmax.f32 %v7497_v63, %v1412_v58  ;;  %4002 = vmatmul.f32.gmra.mxu2 %v3574_v13  ;;  %2641 = vst.msk [vmem:[#allocation3 + $0x560] sm:$0xff] %vm569_vm0, %v2592_v51  ;;  %v3579_v20 = vld [vmem:[#allocation3 + $0x438] sm:$0xff] }
 0x2b1   : > { %2050 = vrot.lane.b32.xlu1 %v1911_v0, %s6271_s16  ;;  %2255 = vst.msk [vmem:[#allocation3 + $0x648] sm:$0xff] %vm569_vm0, %v2592_v51  ;;  %v7985_v62 = vpop.permute.xlu2 %1421  ;;  %v1278_v0 = vmax.f32 %v7574_v39, %v7872_v7  ;;  %v8013_v39 = vld [vmem:[%s10506_s2] ss:$0 sm:$0xff] }
 0x2b2   : > { %v1571_v38 = vmax.f32 %v1277_v24, %v1522_v1  ;;  %3421 = vst.msk [vmem:[#allocation3 + $0x430] sm:$0xff] %vm569_vm0, %v2592_v51 }
 0x2b3   : > { %v7993_v8 = vpop.f32.mrf.mxu2 }
 0x2b4   : > { %2378 = vrot.lane.b32.xlu2 %v7057_v49, %s6271_s16  ;;  %v1624_v63 = vadd.f32 %v7477_v43, %v1571_v38 }
 0x2b6   : > { %1435 = vrot.lane.b32.xlu0 %v7965_v29, %s6271_s16  ;;  %v1673_v49 = vmax.f32 %v1624_v63, 0.0  ;;  %v1173_v56 = vpop.permute.xlu1 %1172  ;;  %v1912_v16 = vld [vmem:[#allocation2 + $0x1b8] sm:$0xff]  ;;  %v1279_v63 = vmax.f32 %v7607_v59, %v7967_v30 }
 0x2b7   : > { %v7989_v5 = vld [vmem:[#allocation2 + $0x1b8] sm:$0xff]  ;;  %v1414_v21 = vpop.permute.xlu0 %1413  ;;  %v1280_v40 = vmax.f32 %v7631_v35, %v1173_v56  ;;  %1863 = vst.msk [vmem:[#allocation3 + $0x6b8] sm:$0xff] %vm569_vm0, %v1912_v16 }
 0x2b8   : > { %v2593_v43 = vld [vmem:[#allocation2 + $0x1b8] sm:$0xff]  ;;  %1758 = vst.msk [vmem:[#allocation2 + $0x1c0] sm:$0xff] %vm569_vm0, %v1673_v49  ;;  %v1523_v51 = vmax.f32 %v7543_v46, %v1414_v21  ;;  %4005 = vmatmul.f32.gmra.mxu2 %v3579_v20 }
 0x2b9   : > { %3161 = vrot.lane.b32.xlu1 %v7261_v55, %s6271_s16  ;;  %v1574_v25 = vmax.f32 %v1280_v40, %v1525_v50  ;;  %3030 = vst.msk [vmem:[#allocation3 + $0x4a0] sm:$0xff] %vm569_vm0, %v7989_v5  ;;  %v1179_v3 = vpop.permute.xlu2 %1178 }
 0x2ba   : > { %v1572_v35 = vmax.f32 %v1278_v0, %v1523_v51  ;;  %2642 = vst.msk [vmem:[#allocation3 + $0x588] sm:$0xff] %vm569_vm0, %v2593_v43  ;;  %v1283_v59 = vmax.f32 %v7719_v15, %v1179_v3 }
 0x2bb   : > { %v1627_v46 = vadd.f32 %v8013_v39, %v1574_v25  ;;  %v8028_v50 = vpop.f32.mrf.mxu2 }
 0x2bc   : > { %2769 = vrot.lane.b32.xlu2 %v7087_v23, %s6271_s16  ;;  %v1625_v7 = vadd.f32 %v8013_v39, %v1572_v35  ;;  %10577 = vst [vmem:[#allocation30_spill] sm:$0xff] %v8028_v50  ;;  %v1526_v35 = vmax.f32 %v7639_v44, %v7957_v36  ;;  %v2200_v50 = vld [vmem:[#allocation2 + $0x160] sm:$0xff] }
 0x2bd   : > { %v1676_v58 = vmax.f32 %v1627_v46, 0.0  ;;  %2249 = vst.msk [vmem:[#allocation3 + $0x558] sm:$0xff] %vm569_vm0, %v2200_v50 }
 0x2be   : > { %3163 = vrot.lane.b32.xlu0 %v7232_v4, %s6271_s16  ;;  %v1674_v13 = vmax.f32 %v1625_v7, 0.0  ;;  %v2029_v24 = vpop.permute.xlu1 %2028  ;;  %3415 = vst.msk [vmem:[#allocation3 + $0x340] sm:$0xff] %vm569_vm0, %v2200_v50 }
 0x2bf   : > { %1761 = vst.msk [vmem:[#allocation2 + $0x1d8] sm:$0xff] %vm569_vm0, %v1676_v58  ;;  %v1416_v1 = vpop.permute.xlu0 %1415  ;;  %v1913_v38 = vld [vmem:[#allocation2 + $0x1c0] sm:$0xff] }
 0x2c0   : > { %1759 = vst.msk [vmem:[#allocation2 + $0x1c8] sm:$0xff] %vm569_vm0, %v1674_v13  ;;  %v1524_v49 = vmax.f32 %v7592_v22, %v1416_v1  ;;  %4008 = vmatmul.f32.gmra.mxu2 %v3584_v60  ;;  %v8026_v56 = vld [vmem:[#allocation2 + $0x1c0] sm:$0xff] }
 0x2c1   : > { %2380 = vrot.lane.b32.xlu1 %v7087_v23, %s6271_s16  ;;  %2146 = vst.msk [vmem:[#allocation3 + $0x4b0] sm:$0xff] %vm2115_vm1, %v2029_v24  ;;  %v2594_v23 = vld [vmem:[#allocation2 + $0x1c0] sm:$0xff]  ;;  %v1424_v40 = vpop.permute.xlu2 %1423 }
 0x2c2   : > { %v1573_v21 = vmax.f32 %v1279_v63, %v1524_v49  ;;  %1864 = vst.msk [vmem:[#allocation3 + $0x6e0] sm:$0xff] %vm569_vm0, %v1913_v38  ;;  %v1528_v22 = vmax.f32 %v7699_v10, %v1424_v40  ;;  %v3589_v10 = vld [vmem:[#allocation3 + $0x488] sm:$0xff]  ;;  %v1527_v49 = vmax.f32 %v7669_v28, %v7985_v62 }
 0x2c3   : > { %3031 = vst.msk [vmem:[#allocation3 + $0x4c8] sm:$0xff] %vm569_vm0, %v8026_v56 }
 0x2c4   : > { %2771 = vrot.lane.b32.xlu2 %v7136_v41, %s6271_s16  ;;  %v1626_v30 = vadd.f32 %v8013_v39, %v1573_v21  ;;  %2643 = vst.msk [vmem:[#allocation3 + $0x5b0] sm:$0xff] %vm569_vm0, %v2594_v23  ;;  %v1577_v20 = vmax.f32 %v1283_v59, %v1528_v22 }
 0x2c5   : > { %2257 = vst.msk [vmem:[#allocation3 + $0x698] sm:$0xff] %vm569_vm0, %v2594_v23 }
 0x2c6   : > { %2052 = vrot.lane.b32.xlu0 %v1912_v16, %s6271_s16  ;;  %v1675_v16 = vmax.f32 %v1626_v30, 0.0  ;;  %v2031_v43 = vpop.permute.xlu1 %2030  ;;  %3423 = vst.msk [vmem:[#allocation3 + $0x480] sm:$0xff] %vm569_vm0, %v2594_v23  ;;  %v1630_v0 = vadd.f32 %v8013_v39, %v1577_v20  ;;  %v8045_v25 = vld [vmem:[#allocation2 + $0x1d8] sm:$0xff]  ;;  %v8098_v30 = vld [vmem:[#allocation2 + $0x168] sm:$0xff] }
 0x2c7   : > { %2147 = vst.msk [vmem:[#allocation3 + $0x4d8] sm:$0xff] %vm2115_vm1, %v2031_v43  ;;  %v1175_v15 = vpop.permute.xlu0 %1174  ;;  %v1914_v51 = vld [vmem:[#allocation2 + $0x1c8] sm:$0xff]  ;;  %v8059_v44 = vld [vmem:[#allocation2 + $0x1d8] sm:$0xff] }
 0x2c8   : > { %1760 = vst.msk [vmem:[#allocation2 + $0x1d0] sm:$0xff] %vm569_vm0, %v1675_v16  ;;  %v1281_v3 = vmax.f32 %v7654_v31, %v1175_v15  ;;  %4011 = vmatmul.f32.gmra.mxu2 %v3589_v10  ;;  %v1679_v46 = vmax.f32 %v1630_v0, 0.0  ;;  %v8062_v31 = vpop.f32.mrf.mxu2  ;;  %v8064_v36 = vld [vmem:[#allocation2 + $0x1c8] sm:$0xff]  ;;  %v3594_v60 = vld [vmem:[#allocation3 + $0x4b0] sm:$0xff] }
 0x2c9   : > { %2382 = vrot.lane.b32.xlu1 %v7136_v41, %s6271_s16  ;;  %1865 = vst.msk [vmem:[#allocation3 + $0x708] sm:$0xff] %vm569_vm0, %v1914_v51  ;;  %v8055_v41 = vld [vmem:[#allocation2 + $0x1c8] sm:$0xff] }
 0x2ca   : > { %v1575_v7 = vmax.f32 %v1281_v3, %v1526_v35  ;;  %1867 = vst.msk [vmem:[#allocation3 + $0x758] sm:$0xff] %vm569_vm0, %v8045_v25 }
 0x2cb   : > { %1764 = vst.msk [vmem:[#allocation2 + $0x200] sm:$0xff] %vm569_vm0, %v1679_v46 }
 0x2cc   : > { %2773 = vrot.lane.b32.xlu2 %v7185_v61, %s6271_s16  ;;  %10578 = vst [vmem:[#allocation31_spill] sm:$0xff] %v8062_v31  ;;  %v1628_v58 = vadd.f32 %v8013_v39, %v1575_v7 }
 0x2cd   : > { %3032 = vst.msk [vmem:[#allocation3 + $0x4f0] sm:$0xff] %vm569_vm0, %v8055_v41 }
 0x2ce   : > { %2054 = vrot.lane.b32.xlu0 %v1913_v38, %s6271_s16  ;;  %3034 = vst.msk [vmem:[#allocation3 + $0x540] sm:$0xff] %vm569_vm0, %v8059_v44  ;;  %v1677_v13 = vmax.f32 %v1628_v58, 0.0  ;;  %v2033_v24 = vpop.permute.xlu1 %2032  ;;  %v3599_v43 = vld [vmem:[#allocation3 + $0x4d8] sm:$0xff] }
 0x2cf   : > { %2644 = vst.msk [vmem:[#allocation3 + $0x5d8] sm:$0xff] %vm569_vm0, %v8064_v36  ;;  %v1177_v1 = vpop.permute.xlu0 %1176  ;;  %v1915_v38 = vld [vmem:[#allocation2 + $0x1d0] sm:$0xff] }
 0x2d0   : > { %2148 = vst.msk [vmem:[#allocation3 + $0x500] sm:$0xff] %vm2115_vm1, %v2033_v24  ;;  %v8076_v63 = vld [vmem:[#allocation2 + $0x1d0] sm:$0xff]  ;;  %v1282_v23 = vmax.f32 %v7684_v52, %v1177_v1  ;;  %4014 = vmatmul.f32.gmra.mxu2 %v3594_v60 }
 0x2d1   : > { %2384 = vrot.lane.b32.xlu1 %v7185_v61, %s6271_s16  ;;  %1762 = vst.msk [vmem:[#allocation2 + $0x1e0] sm:$0xff] %vm569_vm0, %v1677_v13  ;;  %v8084_v21 = vld [vmem:[#allocation2 + $0x1d0] sm:$0xff]  ;;  %v1181_v61 = vpop.permute.xlu2 %1180 }
 0x2d2   : > { %1866 = vst.msk [vmem:[#allocation3 + $0x730] sm:$0xff] %vm569_vm0, %v1915_v38  ;;  %v1576_v40 = vmax.f32 %v1282_v23, %v1527_v49  ;;  %v2988_v28 = vld [vmem:[#allocation2 + $0x200] sm:$0xff]  ;;  %v1284_v20 = vmax.f32 %v7752_v53, %v1181_v61  ;;  %v8129_v24 = vld [vmem:[#allocation2 + $0xd0] sm:$0xff] }
 0x2d3   : > { %3033 = vst.msk [vmem:[#allocation3 + $0x518] sm:$0xff] %vm569_vm0, %v8076_v63 }
 0x2d4   : > { %2775 = vrot.lane.b32.xlu2 %v7223_v32, %s6271_s16  ;;  %v8090_v62 = vpop.f32.mrf.mxu2  ;;  %2645 = vst.msk [vmem:[#allocation3 + $0x600] sm:$0xff] %vm569_vm0, %v8084_v21  ;;  %v1629_v52 = vadd.f32 %v8013_v39, %v1576_v40 }
 0x2d5   : > { %2646 = vst.msk [vmem:[#allocation3 + $0x628] sm:$0xff] %vm569_vm0, %v8059_v44 }
 0x2d6   : > { %2056 = vrot.lane.b32.xlu0 %v1914_v51, %s6271_s16  ;;  %3037 = vst.msk [vmem:[#allocation3 + $0x5b8] sm:$0xff] %vm569_vm0, %v2988_v28  ;;  %v1678_v59 = vmax.f32 %v1629_v52, 0.0  ;;  %v1426_v22 = vpop.permute.xlu1 %1425  ;;  %v3755_v51 = vld [vmem:[%s10507_s3 + $0x210] sm:$0xff] }
 0x2d7   : > { %2649 = vst.msk [vmem:[#allocation3 + $0x6a0] sm:$0xff] %vm569_vm0, %v2988_v28  ;;  %v1529_v16 = vmax.f32 %v7738_v48, %v1426_v22  ;;  %4577 = vmatpush.msrb.mxu2 %v3755_v51  ;;  %v3604_v13 = vld [vmem:[#allocation3 + $0x500] sm:$0xff] }
 0x2d8   : > { %v1917_v0 = vld [vmem:[#allocation2 + $0x1e0] sm:$0xff]  ;;  %1855 = vst.msk [vmem:[#allocation3 + $0x578] sm:$0xff] %vm569_vm0, %v8098_v30  ;;  %4017 = vmatmul.f32.gmra.mxu2 %v3599_v43  ;;  %v10580_v28 = vld [vmem:[#allocation6_spill] sm:$0xff] }
 0x2d9   : > { %2386 = vrot.lane.b32.xlu1 %v7223_v32, %s6271_s16  ;;  %1763 = vst.msk [vmem:[#allocation2 + $0x1e8] sm:$0xff] %vm569_vm0, %v1678_v59  ;;  %v2986_v15 = vld [vmem:[#allocation2 + $0x1e0] sm:$0xff]  ;;  %v1578_v10 = vmax.f32 %v1284_v20, %v1529_v16  ;;  %v1428_v35 = vpop.permute.xlu2 %1427 }
 0x2da   : > { %1868 = vst.msk [vmem:[#allocation3 + $0x780] sm:$0xff] %vm569_vm0, %v1917_v0  ;;  %v1530_v7 = vmax.f32 %v7762_v14, %v1428_v35  ;;  %v10579_v14 = vld [vmem:[#allocation7_spill] sm:$0xff] }
 0x2db   : > { %v1631_v32 = vadd.f32 %v8013_v39, %v1578_v10  ;;  %3035 = vst.msk [vmem:[#allocation3 + $0x568] sm:$0xff] %vm569_vm0, %v2986_v15 }
 0x2dc   : > { %2058 = vrot.lane.b32.xlu2 %v1915_v38, %s6271_s16  ;;  %2647 = vst.msk [vmem:[#allocation3 + $0x650] sm:$0xff] %vm569_vm0, %v2986_v15 }
 0x2dd   : > { %v1680_v3 = vmax.f32 %v1631_v32, 0.0  ;;  %2258 = vst.msk [vmem:[#allocation3 + $0x6c0] sm:$0xff] %vm569_vm0, %v8064_v36 }
 0x2de   : > { %3165 = vrot.lane.b32.xlu0 %v7319_v45, %s6271_s16  ;;  %v2035_v53 = vpop.permute.xlu0 %2034  ;;  %v1183_v46 = vpop.permute.xlu1 %1182  ;;  %2259 = vst.msk [vmem:[#allocation3 + $0x6e8] sm:$0xff] %vm569_vm0, %v8084_v21 }
 0x2df   : > { %2149 = vst.msk [vmem:[#allocation3 + $0x528] sm:$0xff] %vm2115_vm1, %v2035_v53  ;;  %v8114_v48 = vpop.f32.mrf.mxu2  ;;  %v1285_v58 = vmax.f32 %v7778_v17, %v1183_v46 }
 0x2e0   : > { %1765 = vst.msk [vmem:[#allocation2 + $0x208] sm:$0xff] %vm569_vm0, %v1680_v3  ;;  %4020 = vmatmul.f32.gmra.mxu2 %v3604_v13  ;;  %v2599_v1 = vld [vmem:[#allocation2 + $0x1e8] sm:$0xff] }
 0x2e1   : > { %2062 = vrot.lane.b32.xlu1 %v1917_v0, %s6271_s16  ;;  %2235 = vst.msk [vmem:[#allocation3 + $0x328] sm:$0xff] %vm569_vm0, %v8129_v24  ;;  %v1579_v60 = vmax.f32 %v1285_v58, %v1530_v7  ;;  %v1918_v0 = vld [vmem:[#allocation2 + $0x1e8] sm:$0xff] }
 0x2e2   : > { %2648 = vst.msk [vmem:[#allocation3 + $0x678] sm:$0xff] %vm569_vm0, %v2599_v1 }
 0x2e3   : > { %2260 = vst.msk [vmem:[#allocation3 + $0x710] sm:$0xff] %vm569_vm0, %v8059_v44  ;;  %v1632_v38 = vadd.f32 %v8013_v39, %v1579_v60 }
 0x2e4   : > { %2060 = vrot.lane.b32.xlu2 %v8045_v25, %s6271_s16  ;;  %3424 = vst.msk [vmem:[#allocation3 + $0x4a8] sm:$0xff] %vm569_vm0, %v8064_v36  ;;  %v10581_v36 = vld [vmem:[#allocation8_spill] sm:$0xff] }
 0x2e5   : > { %v1681_v25 = vmax.f32 %v1632_v38, 0.0  ;;  %2261 = vst.msk [vmem:[#allocation3 + $0x738] sm:$0xff] %vm569_vm0, %v2986_v15 }
 0x2e6   : > { %3167 = vrot.lane.b32.xlu0 %v10579_v14, %s6271_s16  ;;  %v2037_v17 = vpop.permute.xlu0 %2036  ;;  %v1185_v23 = vpop.permute.xlu1 %1184  ;;  %3425 = vst.msk [vmem:[#allocation3 + $0x4d0] sm:$0xff] %vm569_vm0, %v8084_v21  ;;  %v3609_v40 = vld [vmem:[#allocation3 + $0x528] sm:$0xff] }
 0x2e7   : > { %2150 = vst.msk [vmem:[#allocation3 + $0x550] sm:$0xff] %vm2115_vm1, %v2037_v17  ;;  %v2989_v61 = vld [vmem:[#allocation2 + $0x208] sm:$0xff]  ;;  %v1286_v20 = vmax.f32 %v7812_v26, %v1185_v23 }
 0x2e8   : > { %1766 = vst.msk [vmem:[#allocation2 + $0x210] sm:$0xff] %vm569_vm0, %v1681_v25  ;;  %4023 = vmatmul.f32.gmra.mxu2 %v3609_v40  ;;  %v10586_v40 = vld [vmem:[#allocation11_spill] sm:$0xff] }
 0x2e9   : > { %v8142_v49 = vpop.f32.mrf.mxu2  ;;  %2388 = vrot.lane.b32.xlu1 %v10580_v28, %s6271_s16  ;;  %3038 = vst.msk [vmem:[#allocation3 + $0x5e0] sm:$0xff] %vm569_vm0, %v2989_v61 }
 0x2ea   : > { %2650 = vst.msk [vmem:[#allocation3 + $0x6c8] sm:$0xff] %vm569_vm0, %v2989_v61 }
 0x2eb   : > { %2262 = vst.msk [vmem:[#allocation3 + $0x760] sm:$0xff] %vm569_vm0, %v2599_v1 }
 0x2ec   : > { %2777 = vrot.lane.b32.xlu2 %v10580_v28, %s6271_s16  ;;  %3426 = vst.msk [vmem:[#allocation3 + $0x4f8] sm:$0xff] %vm569_vm0, %v8059_v44 }
 0x2ed   : > { %3427 = vst.msk [vmem:[#allocation3 + $0x520] sm:$0xff] %vm569_vm0, %v2986_v15  ;;  %v10582_v15 = vld [vmem:[#allocation9_spill] sm:$0xff] }
 0x2ee   : > { %3169 = vrot.lane.b32.xlu0 %v10581_v36, %s6271_s16  ;;  %v2041_v52 = vpop.permute.xlu2 %2040  ;;  %v1430_v59 = vpop.permute.xlu1 %1429  ;;  %3428 = vst.msk [vmem:[#allocation3 + $0x548] sm:$0xff] %vm569_vm0, %v2599_v1  ;;  %v3614_v43 = vld [vmem:[#allocation3 + $0x550] sm:$0xff] }
 0x2ef   : > { %2152 = vst.msk [vmem:[#allocation3 + $0x5a0] sm:$0xff] %vm2115_vm1, %v2041_v52  ;;  %v2990_v22 = vld [vmem:[#allocation2 + $0x210] sm:$0xff]  ;;  %v1531_v16 = vmax.f32 %v7793_v19, %v1430_v59 }
 0x2f0   : > { %3039 = vst.msk [vmem:[#allocation3 + $0x608] sm:$0xff] %vm569_vm0, %v2990_v22  ;;  %4026 = vmatmul.f32.gmra.mxu2 %v3614_v43  ;;  %v3754_v43 = vld [vmem:[%s10507_s3 + $0x208] sm:$0xff] }
 0x2f1   : > { %v8160_v21 = vpop.f32.mrf.mxu2  ;;  %2390 = vrot.lane.b32.xlu1 %v7704_v37, %s6271_s16  ;;  %2651 = vst.msk [vmem:[#allocation3 + $0x6f0] sm:$0xff] %vm569_vm0, %v2990_v22  ;;  %v1580_v44 = vmax.f32 %v1286_v20, %v1531_v16  ;;  %4578 = vmatpush.msrb.mxu2 %v3754_v43 }
 0x2f2   : > { %3430 = vst.msk [vmem:[#allocation3 + $0x598] sm:$0xff] %vm569_vm0, %v2989_v61 }
 0x2f3   : > { %3431 = vst.msk [vmem:[#allocation3 + $0x5c0] sm:$0xff] %vm569_vm0, %v2990_v22  ;;  %v1633_v10 = vadd.f32 %v8013_v39, %v1580_v44 }
 0x2f4   : > { %2064 = vrot.lane.b32.xlu2 %v1918_v0, %s6271_s16 }
 0x2f5   : > { %v1682_v53 = vmax.f32 %v1633_v10, 0.0 }
 0x2f6   : > { %3171 = vrot.lane.b32.xlu0 %v10582_v15, %s6271_s16  ;;  %v2043_v19 = vpop.permute.xlu2 %2042  ;;  %v1434_v32 = vpop.permute.xlu1 %1433  ;;  %v3624_v1 = vld [vmem:[#allocation3 + $0x5a0] sm:$0xff] }
 0x2f7   : > { %2153 = vst.msk [vmem:[#allocation3 + $0x5c8] sm:$0xff] %vm2115_vm1, %v2043_v19  ;;  %v1533_v22 = vmax.f32 %v7862_v42, %v1434_v32  ;;  %v8234_v32 = vld [vmem:[#allocation2 + $0x1b0] sm:$0xff] }
 0x2f8   : > { %v2039_v26 = vpop.permute.xlu0 %2038  ;;  %1767 = vst.msk [vmem:[#allocation2 + $0x218] sm:$0xff] %vm569_vm0, %v1682_v53 }
 0x2f9   : > { %2151 = vst.msk [vmem:[#allocation3 + $0x578] sm:$0xff] %vm2115_vm1, %v2039_v26  ;;  %v8179_v37 = vpop.f32.mrf.mxu2  ;;  %2392 = vrot.lane.b32.xlu1 %v7232_v4, %s6271_s16  ;;  %v10585_v4 = vld [vmem:[#allocation10_spill] sm:$0xff] }
 0x2fa   : > { %10583 = vst [vmem:[#allocation7_spill] sm:$0xff] %v8179_v37 }
 0x2fb   : > { %1862 = vst.msk [vmem:[#allocation3 + $0x690] sm:$0xff] %vm569_vm0, %v8234_v32 }
 0x2fc   : > { %2779 = vrot.lane.b32.xlu2 %v7261_v55, %s6271_s16 }
 0x2fe   : > { %3173 = vrot.lane.b32.xlu0 %v7530_v27, %s6271_s16  ;;  %v2045_v51 = vpop.permute.xlu2 %2044  ;;  %v3160_v7 = vpop.permute.xlu1 %3159  ;;  %v3629_v52 = vld [vmem:[#allocation3 + $0x5c8] sm:$0xff] }
 0x2ff   : > { %2154 = vst.msk [vmem:[#allocation3 + $0x5f0] sm:$0xff] %vm2115_vm1, %v2045_v51  ;;  %v2991_v58 = vld [vmem:[#allocation2 + $0x218] sm:$0xff] }
 0x300   : > { %v1187_v35 = vpop.permute.xlu0 %1186  ;;  %v3619_v3 = vld [vmem:[#allocation3 + $0x578] sm:$0xff]  ;;  %3301 = vst.msk [vmem:[#allocation3 + $0xe0] sm:$0xff] %vm2115_vm1, %v3160_v7 }
 0x301   : > { %v8190_v46 = vpop.f32.mrf.mxu2  ;;  %4029 = vmatmul.f32.gmra.mxu2 %v3619_v3  ;;  %2394 = vrot.lane.b32.xlu1 %v7319_v45, %s6271_s16  ;;  %3040 = vst.msk [vmem:[#allocation3 + $0x630] sm:$0xff] %vm569_vm0, %v2991_v58  ;;  %v1287_v60 = vmax.f32 %v7845_v57, %v1187_v35  ;;  %v10590_v35 = vld [vmem:[#allocation14_spill] sm:$0xff] }
 0x302   : > { %10584 = vst [vmem:[#allocation6_spill] sm:$0xff] %v8190_v46  ;;  %v2698_v46 = vld [vmem:[#allocation2 + $0x1f0] sm:$0xff] }
 0x303   : > { %2652 = vst.msk [vmem:[#allocation3 + $0x718] sm:$0xff] %vm569_vm0, %v2991_v58 }
 0x304   : > { %2781 = vrot.lane.b32.xlu2 %v8129_v24, %s6271_s16  ;;  %3432 = vst.msk [vmem:[#allocation3 + $0x5e8] sm:$0xff] %vm569_vm0, %v2991_v58 }
 0x306   : > { %3175 = vrot.lane.b32.xlu0 %v10585_v4, %s6271_s16  ;;  %v2377_v55 = vpop.permute.xlu2 %2376  ;;  %v8207_v25 = vpop.permute.xlu1 %1190  ;;  %v3634_v10 = vld [vmem:[#allocation3 + $0x5f0] sm:$0xff] }
 0x307   : > { %2516 = vst.msk [vmem:[#allocation3 + $0x120] sm:$0xff] %vm2115_vm1, %v2377_v55  ;;  %v3472_v23 = vld [vmem:[#allocation3 + $0xe0] sm:$0xff] }
 0x308   : > { %v1432_v13 = vpop.permute.xlu0 %1431  ;;  %4431 = vmatmul.f32.gmra.mxu1 %v3472_v23 }
 0x309   : > { %v1532_v17 = vmax.f32 %v7828_v34, %v1432_v13  ;;  %v8205_v38 = vpop.f32.mrf.mxu2  ;;  %4032 = vmatmul.f32.gmra.mxu2 %v3624_v1  ;;  %2396 = vrot.lane.b32.xlu1 %v10579_v14, %s6271_s16 }
 0x30b   : > { %v1581_v24 = vmax.f32 %v1287_v60, %v1532_v17  ;;  %v10592_v60 = vld [vmem:[#allocation16_spill] sm:$0xff] }
 0x30c   : > { %2783 = vrot.lane.b32.xlu2 %v7319_v45, %s6271_s16 }
 0x30d   : > { %v1634_v61 = vadd.f32 %v8013_v39, %v1581_v24 }
 0x30e   : > { %3177 = vrot.lane.b32.xlu0 %v10586_v40, %s6271_s16  ;;  %v2379_v34 = vpop.permute.xlu2 %2378  ;;  %v3480_v59 = vld [vmem:[#allocation3 + $0x120] sm:$0xff]  ;;  %v2047_v0 = vpop.permute.xlu1 %2046 }
 0x30f   : > { %v1683_v57 = vmax.f32 %v1634_v61, 0.0  ;;  %4109 = vmatmul.f32.gmra.mxu3 %v3480_v59  ;;  %2517 = vst.msk [vmem:[#allocation3 + $0x148] sm:$0xff] %vm2115_vm1, %v2379_v34  ;;  %v1289_v34 = vmax.f32 %v7908_v12, %v8207_v25  ;;  %v10593_v59 = vld [vmem:[#allocation17_spill] sm:$0xff] }
 0x310   : > { %v1189_v28 = vpop.permute.xlu0 %1188  ;;  %2155 = vst.msk [vmem:[#allocation3 + $0x618] sm:$0xff] %vm2115_vm1, %v2047_v0 }
 0x311   : > { %1768 = vst.msk [vmem:[#allocation2 + $0x220] sm:$0xff] %vm569_vm0, %v1683_v57  ;;  %v1288_v20 = vmax.f32 %v7878_v47, %v1189_v28  ;;  %4035 = vmatmul.f32.gmra.mxu2 %v3629_v52  ;;  %v8220_v45 = vpop.f32.mrf.mxu2  ;;  %2398 = vrot.lane.b32.xlu1 %v10581_v36, %s6271_s16  ;;  %v10588_v47 = vld [vmem:[#allocation12_spill] sm:$0xff] }
 0x312   : > { %10587 = vst [vmem:[#allocation8_spill] sm:$0xff] %v8220_v45 }
 0x313   : > { %v1582_v16 = vmax.f32 %v1288_v20, %v1533_v22 }
 0x314   : > { %2785 = vrot.lane.b32.xlu2 %v10579_v14, %s6271_s16 }
 0x315   : > { %v1635_v44 = vadd.f32 %v8013_v39, %v1582_v16 }
 0x316   : > { %3179 = vrot.lane.b32.xlu0 %v10588_v47, %s6271_s16  ;;  %v2770_v26 = vpop.permute.xlu2 %2769  ;;  %v3485_v53 = vld [vmem:[#allocation3 + $0x148] sm:$0xff] }
 0x317   : > { %v1684_v42 = vmax.f32 %v1635_v44, 0.0  ;;  %2909 = vst.msk [vmem:[#allocation3 + $0x128] sm:$0xff] %vm2115_vm1, %v2770_v26  ;;  %4112 = vmatmul.f32.gmra.mxu3 %v3485_v53  ;;  %v3639_v55 = vld [vmem:[#allocation3 + $0x618] sm:$0xff]  ;;  %v2677_v26 = vld [vmem:[#allocation2 + $0x118] sm:$0xff] }
 0x318   : > { %v2766_v19 = vpop.permute.xlu0 %2765  ;;  %v2992_v51 = vld [vmem:[#allocation2 + $0x220] sm:$0xff] }
 0x319   : > { %1769 = vst.msk [vmem:[#allocation2 + $0x228] sm:$0xff] %vm569_vm0, %v1684_v42  ;;  %4038 = vmatmul.f32.gmra.mxu2 %v3634_v10  ;;  %2400 = vrot.lane.b32.xlu1 %v10582_v15, %s6271_s16 }
 0x31a   : > { %2907 = vst.msk [vmem:[#allocation3 + $0xd8] sm:$0xff] %vm2115_vm1, %v2766_v19  ;;  %v8240_v14 = vpop.f32.mrf.mxu2  ;;  %v8298_v19 = vld [vmem:[#allocation2 + $0x158] sm:$0xff] }
 0x31b   : > { %10589 = vst [vmem:[#allocation9_spill] sm:$0xff] %v8240_v14  ;;  %v2049_v3 = vpop.permute.xlu1 %2048  ;;  %v2980_v14 = vld [vmem:[#allocation2 + $0x1b0] sm:$0xff] }
 0x31c   : > { %3041 = vst.msk [vmem:[#allocation3 + $0x658] sm:$0xff] %vm569_vm0, %v2992_v51  ;;  %2787 = vrot.lane.b32.xlu2 %v10581_v36, %s6271_s16 }
 0x31d   : > { %2653 = vst.msk [vmem:[#allocation3 + $0x740] sm:$0xff] %vm569_vm0, %v2992_v51 }
 0x31e   : > { %3181 = vrot.lane.b32.xlu0 %v10590_v35, %s6271_s16  ;;  %3433 = vst.msk [vmem:[#allocation3 + $0x610] sm:$0xff] %vm569_vm0, %v2992_v51  ;;  %v2772_v7 = vpop.permute.xlu2 %2771 }
 0x31f   : > { %2156 = vst.msk [vmem:[#allocation3 + $0x640] sm:$0xff] %vm2115_vm1, %v2049_v3 }
 0x320   : > { %v2768_v58 = vpop.permute.xlu0 %2767  ;;  %v2993_v13 = vld [vmem:[#allocation2 + $0x228] sm:$0xff]  ;;  %2910 = vst.msk [vmem:[#allocation3 + $0x150] sm:$0xff] %vm2115_vm1, %v2772_v7 }
 0x321   : > { %4041 = vmatmul.f32.gmra.mxu2 %v3639_v55  ;;  %2908 = vst.msk [vmem:[#allocation3 + $0x100] sm:$0xff] %vm2115_vm1, %v2768_v58  ;;  %v3471_v36 = vld [vmem:[#allocation3 + $0xd8] sm:$0xff]  ;;  %2402 = vrot.lane.b32.xlu1 %v7530_v27, %s6271_s16 }
 0x322   : > { %4267 = vmatmul.f32.gmra.mxu0 %v3471_v36  ;;  %3042 = vst.msk [vmem:[#allocation3 + $0x680] sm:$0xff] %vm569_vm0, %v2993_v13  ;;  %v8261_v1 = vpop.f32.mrf.mxu2 }
 0x323   : > { %2654 = vst.msk [vmem:[#allocation3 + $0x768] sm:$0xff] %vm569_vm0, %v2993_v13  ;;  %v2051_v17 = vpop.permute.xlu1 %2050 }
 0x324   : > { %3434 = vst.msk [vmem:[#allocation3 + $0x638] sm:$0xff] %vm569_vm0, %v2993_v13  ;;  %2789 = vrot.lane.b32.xlu2 %v10582_v15, %s6271_s16 }
 0x325   : > { %10591 = vst [vmem:[#allocation10_spill] sm:$0xff] %v8261_v1 }
 0x326   : > { %3183 = vrot.lane.b32.xlu0 %v10592_v60, %s6271_s16  ;;  %v3644_v24 = vld [vmem:[#allocation3 + $0x640] sm:$0xff]  ;;  %v2774_v23 = vpop.permute.xlu2 %2773  ;;  %2157 = vst.msk [vmem:[#allocation3 + $0x668] sm:$0xff] %vm2115_vm1, %v2051_v17 }
 0x327   : > { %2911 = vst.msk [vmem:[#allocation3 + $0x178] sm:$0xff] %vm2115_vm1, %v2774_v23 }
 0x328   : > { %v1436_v61 = vpop.permute.xlu0 %1435  ;;  %v3476_v57 = vld [vmem:[#allocation3 + $0x100] sm:$0xff]  ;;  %3029 = vst.msk [vmem:[#allocation3 + $0x478] sm:$0xff] %vm569_vm0, %v2980_v14 }
 0x329   : > { %4044 = vmatmul.f32.gmra.mxu2 %v3644_v24  ;;  %v1534_v15 = vmax.f32 %v7965_v29, %v1436_v61  ;;  %2404 = vrot.lane.b32.xlu1 %v7805_v54, %s6271_s16  ;;  %v3481_v54 = vld [vmem:[#allocation3 + $0x128] sm:$0xff]  ;;  %v3753_v24 = vld [vmem:[%s10507_s3 + $0x200] sm:$0xff] }
 0x32a   : > { %4270 = vmatmul.f32.gmra.mxu0 %v3476_v57  ;;  %v8278_v12 = vpop.f32.mrf.mxu2  ;;  %4579 = vmatpush.msrb.mxu2 %v3753_v24 }
 0x32b   : > { %v1583_v28 = vmax.f32 %v1289_v34, %v1534_v15  ;;  %v3162_v22 = vpop.permute.xlu1 %3161  ;;  %10594 = vst [vmem:[#allocation11_spill] sm:$0xff] %v8278_v12 }
 0x32c   : > { %2791 = vrot.lane.b32.xlu2 %v7530_v27, %s6271_s16  ;;  %3302 = vst.msk [vmem:[#allocation3 + $0x108] sm:$0xff] %vm2115_vm1, %v3162_v22  ;;  %v10595_v27 = vld [vmem:[#allocation20_spill] sm:$0xff] }
 0x32d   : > { %v1636_v52 = vadd.f32 %v8013_v39, %v1583_v28  ;;  %v3649_v20 = vld [vmem:[#allocation3 + $0x668] sm:$0xff] }
 0x32e   : > { %3185 = vrot.lane.b32.xlu0 %v10593_v59, %s6271_s16  ;;  %v2776_v43 = vpop.permute.xlu2 %2775  ;;  %v3491_v13 = vld [vmem:[#allocation3 + $0x178] sm:$0xff] }
 0x32f   : > { %v1685_v16 = vmax.f32 %v1636_v52, 0.0  ;;  %2912 = vst.msk [vmem:[#allocation3 + $0x1a0] sm:$0xff] %vm2115_vm1, %v2776_v43 }
 0x330   : > { %v3164_v29 = vpop.permute.xlu0 %3163 }
 0x331   : > { %4047 = vmatmul.f32.gmra.mxu2 %v3649_v20  ;;  %1770 = vst.msk [vmem:[#allocation2 + $0x230] sm:$0xff] %vm569_vm0, %v1685_v16  ;;  %2406 = vrot.lane.b32.xlu1 %v10586_v40, %s6271_s16  ;;  %v3486_v40 = vld [vmem:[#allocation3 + $0x150] sm:$0xff] }
 0x332   : > { %3303 = vst.msk [vmem:[#allocation3 + $0x130] sm:$0xff] %vm2115_vm1, %v3164_v29  ;;  %4273 = vmatmul.f32.gmra.mxu0 %v3481_v54 }
 0x333   : > { %v2381_v39 = vpop.permute.xlu1 %2380  ;;  %v3477_v25 = vld [vmem:[#allocation3 + $0x108] sm:$0xff]  ;;  %v8291_v42 = vpop.f32.mrf.mxu2 }
 0x334   : > { %2793 = vrot.lane.b32.xlu2 %v10585_v4, %s6271_s16  ;;  %2518 = vst.msk [vmem:[#allocation3 + $0x170] sm:$0xff] %vm2115_vm1, %v2381_v39  ;;  %4434 = vmatmul.f32.gmra.mxu1 %v3477_v25 }
 0x335   : > { %10596 = vst [vmem:[#allocation12_spill] sm:$0xff] %v8291_v42 }
 0x336   : > { %3187 = vrot.lane.b32.xlu0 %v10595_v27, %s6271_s16  ;;  %v2059_v0 = vpop.permute.xlu2 %2058  ;;  %v3496_v34 = vld [vmem:[#allocation3 + $0x1a0] sm:$0xff] }
 0x337   : > { %2161 = vst.msk [vmem:[#allocation3 + $0x708] sm:$0xff] %vm2115_vm1, %v2059_v0 }
 0x338   : > { %v2053_v44 = vpop.permute.xlu0 %2052  ;;  %v2606_v4 = vld [vmem:[#allocation2 + $0x230] sm:$0xff] }
 0x339   : > { %2158 = vst.msk [vmem:[#allocation3 + $0x690] sm:$0xff] %vm2115_vm1, %v2053_v44  ;;  %2408 = vrot.lane.b32.xlu1 %v10588_v47, %s6271_s16  ;;  %v3482_v51 = vld [vmem:[#allocation3 + $0x130] sm:$0xff] }
 0x33a   : > { %4276 = vmatmul.f32.gmra.mxu0 %v3486_v40  ;;  %2655 = vst.msk [vmem:[#allocation3 + $0x790] sm:$0xff] %vm569_vm0, %v2606_v4 }
 0x33b   : > { %3435 = vst.msk [vmem:[#allocation3 + $0x660] sm:$0xff] %vm569_vm0, %v2606_v4  ;;  %v2383_v10 = vpop.permute.xlu1 %2382  ;;  %v3490_v53 = vld [vmem:[#allocation3 + $0x170] sm:$0xff]  ;;  %v8305_v58 = vpop.f32.mrf.mxu2 }
 0x33c   : > { %2795 = vrot.lane.b32.xlu2 %v2677_v26, %s6271_s16  ;;  %2519 = vst.msk [vmem:[#allocation3 + $0x198] sm:$0xff] %vm2115_vm1, %v2383_v10  ;;  %4115 = vmatmul.f32.gmra.mxu3 %v3490_v53 }
 0x33d   : > { %4437 = vmatmul.f32.gmra.mxu1 %v3482_v51  ;;  %10597 = vst [vmem:[#allocation14_spill] sm:$0xff] %v8305_v58  ;;  %v3503_v58 = vld [vmem:[#allocation3 + $0x1d8] sm:$0xff] }
 0x33e   : > { %3189 = vrot.lane.b32.xlu0 %v8298_v19, %s6271_s16  ;;  %v2061_v3 = vpop.permute.xlu2 %2060  ;;  %v3669_v0 = vld [vmem:[#allocation3 + $0x708] sm:$0xff] }
 0x33f   : > { %2162 = vst.msk [vmem:[#allocation3 + $0x730] sm:$0xff] %vm2115_vm1, %v2061_v3 }
 0x340   : > { %v2055_v7 = vpop.permute.xlu0 %2054  ;;  %v3654_v55 = vld [vmem:[#allocation3 + $0x690] sm:$0xff] }
 0x341   : > { %2159 = vst.msk [vmem:[#allocation3 + $0x6b8] sm:$0xff] %vm2115_vm1, %v2055_v7  ;;  %4050 = vmatmul.f32.gmra.mxu2 %v3654_v55  ;;  %2410 = vrot.lane.b32.xlu1 %v10590_v35, %s6271_s16  ;;  %v2966_v7 = vld [vmem:[#allocation2 + $0x120] sm:$0xff] }
 0x342   : > { %4279 = vmatmul.f32.gmra.mxu0 %v3491_v13  ;;  %3015 = vst.msk [vmem:[#allocation3 + $0x248] sm:$0xff] %vm569_vm0, %v2966_v7 }
 0x343   : > { %v2385_v36 = vpop.permute.xlu1 %2384  ;;  %v3495_v17 = vld [vmem:[#allocation3 + $0x198] sm:$0xff]  ;;  %v8319_v57 = vpop.f32.mrf.mxu2 }
 0x344   : > { %2797 = vrot.lane.b32.xlu2 %v10588_v47, %s6271_s16  ;;  %2520 = vst.msk [vmem:[#allocation3 + $0x1c0] sm:$0xff] %vm2115_vm1, %v2385_v36  ;;  %4118 = vmatmul.f32.gmra.mxu3 %v3495_v17 }
 0x345   : > { %10598 = vst [vmem:[#allocation16_spill] sm:$0xff] %v8319_v57 }
 0x346   : > { %3191 = vrot.lane.b32.xlu0 %v7854_v33, %s6271_s16  ;;  %v2778_v23 = vpop.permute.xlu2 %2777  ;;  %v3674_v51 = vld [vmem:[#allocation3 + $0x730] sm:$0xff] }
 0x347   : > { %2913 = vst.msk [vmem:[#allocation3 + $0x1c8] sm:$0xff] %vm2115_vm1, %v2778_v23 }
 0x348   : > { %v2057_v61 = vpop.permute.xlu0 %2056  ;;  %v3659_v47 = vld [vmem:[#allocation3 + $0x6b8] sm:$0xff] }
 0x349   : > { %2160 = vst.msk [vmem:[#allocation3 + $0x6e0] sm:$0xff] %vm2115_vm1, %v2057_v61  ;;  %4053 = vmatmul.f32.gmra.mxu2 %v3659_v47  ;;  %2412 = vrot.lane.b32.xlu1 %v10592_v60, %s6271_s16 }
 0x34a   : > { %4282 = vmatmul.f32.gmra.mxu0 %v3496_v34 }
 0x34b   : > { %v2387_v15 = vpop.permute.xlu1 %2386  ;;  %v3500_v28 = vld [vmem:[#allocation3 + $0x1c0] sm:$0xff]  ;;  %v8330_v16 = vpop.f32.mrf.mxu2 }
 0x34c   : > { %2799 = vrot.lane.b32.xlu2 %v10590_v35, %s6271_s16  ;;  %2521 = vst.msk [vmem:[#allocation3 + $0x1e8] sm:$0xff] %vm2115_vm1, %v2387_v15  ;;  %4121 = vmatmul.f32.gmra.mxu3 %v3500_v28 }
 0x34d   : > { %10599 = vst [vmem:[#allocation17_spill] sm:$0xff] %v8330_v16 }
 0x34e   : > { %3193 = vrot.lane.b32.xlu0 %v7891_v2, %s6271_s16  ;;  %v2065_v52 = vpop.permute.xlu2 %2064  ;;  %v3501_v22 = vld [vmem:[#allocation3 + $0x1c8] sm:$0xff]  ;;  %v10600_v2 = vld [vmem:[#allocation21_spill] sm:$0xff] }
 0x34f   : > { %2164 = vst.msk [vmem:[#allocation3 + $0x780] sm:$0xff] %vm2115_vm1, %v2065_v52 }
 0x350   : > { %v3166_v20 = vpop.permute.xlu0 %3165  ;;  %v3664_v43 = vld [vmem:[#allocation3 + $0x6e0] sm:$0xff] }
 0x351   : > { %3304 = vst.msk [vmem:[#allocation3 + $0x158] sm:$0xff] %vm2115_vm1, %v3166_v20  ;;  %4056 = vmatmul.f32.gmra.mxu2 %v3664_v43  ;;  %2414 = vrot.lane.b32.xlu1 %v10593_v59, %s6271_s16  ;;  %v8378_v20 = vpop.f32.mrf.mxu3  ;;  %v10607_v43 = vld [vmem:[#allocation27_spill] sm:$0xff] }
 0x352   : > { %4285 = vmatmul.f32.gmra.mxu0 %v3501_v22 }
 0x353   : > { %v2063_v35 = vpop.permute.xlu1 %2062  ;;  %v3505_v29 = vld [vmem:[#allocation3 + $0x1e8] sm:$0xff]  ;;  %v8341_v25 = vpop.f32.mrf.mxu2 }
 0x354   : > { %2801 = vrot.lane.b32.xlu2 %v10592_v60, %s6271_s16  ;;  %2163 = vst.msk [vmem:[#allocation3 + $0x758] sm:$0xff] %vm2115_vm1, %v2063_v35  ;;  %4124 = vmatmul.f32.gmra.mxu3 %v3505_v29  ;;  %v10602_v60 = vld [vmem:[#allocation24_spill] sm:$0xff]  ;;  %v8383_v35 = vld [vmem:[#allocation2 + $0x1a0] sm:$0xff]  ;;  %v8385_v29 = vpop.f32.mrf.mxu0 }
 0x355   : > { %10601 = vst [vmem:[#allocation20_spill] sm:$0xff] %v8341_v25  ;;  %v3498_v25 = vld [vmem:[#allocation3 + $0x1b0] sm:$0xff] }
 0x356   : > { %3195 = vrot.lane.b32.xlu0 %v10600_v2, %s6271_s16  ;;  %v2780_v54 = vpop.permute.xlu2 %2779  ;;  %v3684_v52 = vld [vmem:[#allocation3 + $0x780] sm:$0xff] }
 0x357   : > { %2914 = vst.msk [vmem:[#allocation3 + $0x1f0] sm:$0xff] %vm2115_vm1, %v2780_v54 }
 0x358   : > { %v3168_v39 = vpop.permute.xlu0 %3167  ;;  %v3487_v44 = vld [vmem:[#allocation3 + $0x158] sm:$0xff] }
 0x359   : > { %3305 = vst.msk [vmem:[#allocation3 + $0x180] sm:$0xff] %vm2115_vm1, %v3168_v39  ;;  %4059 = vmatmul.f32.gmra.mxu2 %v3669_v0  ;;  %4440 = vmatmul.f32.gmra.mxu1 %v3487_v44 }
 0x35a   : > { %2416 = vrot.lane.b32.xlu1 %v10595_v27, %s6271_s16 }
 0x35b   : > { %v2389_v40 = vpop.permute.xlu1 %2388  ;;  %v8352_v53 = vpop.f32.mrf.mxu2  ;;  %v3679_v61 = vld [vmem:[#allocation3 + $0x758] sm:$0xff] }
 0x35c   : > { %2803 = vrot.lane.b32.xlu2 %v10593_v59, %s6271_s16  ;;  %2522 = vst.msk [vmem:[#allocation3 + $0x210] sm:$0xff] %vm2115_vm1, %v2389_v40  ;;  %v10604_v59 = vld [vmem:[#allocation29_spill] sm:$0xff] }
 0x35d   : > { %10603 = vst [vmem:[#allocation21_spill] sm:$0xff] %v8352_v53 }
 0x35e   : > { %3197 = vrot.lane.b32.xlu0 %v10602_v60, %s6271_s16  ;;  %v2782_v26 = vpop.permute.xlu2 %2781  ;;  %v3506_v4 = vld [vmem:[#allocation3 + $0x1f0] sm:$0xff] }
 0x35f   : > { %2915 = vst.msk [vmem:[#allocation3 + $0x218] sm:$0xff] %vm2115_vm1, %v2782_v26  ;;  %4288 = vmatmul.f32.gmra.mxu0 %v3506_v4  ;;  %v3448_v4 = vld [vmem:[#allocation3 + $0x20] sm:$0xff] }
 0x360   : > { %v3170_v10 = vpop.permute.xlu0 %3169  ;;  %v3492_v3 = vld [vmem:[#allocation3 + $0x180] sm:$0xff] }
 0x361   : > { %3306 = vst.msk [vmem:[#allocation3 + $0x1a8] sm:$0xff] %vm2115_vm1, %v3170_v10  ;;  %4062 = vmatmul.f32.gmra.mxu2 %v3674_v51  ;;  %4443 = vmatmul.f32.gmra.mxu1 %v3492_v3  ;;  %v8393_v10 = vpop.f32.mrf.mxu3  ;;  %v8401_v3 = vpop.f32.mrf.mxu0 }
 0x362   : > { %2418 = vrot.lane.b32.xlu1 %v8098_v30, %s6271_s16 }
 0x363   : > { %v2391_v55 = vpop.permute.xlu1 %2390  ;;  %v3510_v13 = vld [vmem:[#allocation3 + $0x210] sm:$0xff]  ;;  %v8364_v23 = vpop.f32.mrf.mxu2 }
 0x364   : > { %2805 = vrot.lane.b32.xlu2 %v10595_v27, %s6271_s16  ;;  %2523 = vst.msk [vmem:[#allocation3 + $0x238] sm:$0xff] %vm2115_vm1, %v2391_v55  ;;  %4127 = vmatmul.f32.gmra.mxu3 %v3510_v13 }
 0x365   : > { %10605 = vst [vmem:[#allocation24_spill] sm:$0xff] %v8364_v23 }
 0x366   : > { %3199 = vrot.lane.b32.xlu0 %v10604_v59, %s6271_s16  ;;  %v2784_v36 = vpop.permute.xlu2 %2783  ;;  %v3511_v17 = vld [vmem:[#allocation3 + $0x218] sm:$0xff] }
 0x367   : > { %2916 = vst.msk [vmem:[#allocation3 + $0x240] sm:$0xff] %vm2115_vm1, %v2784_v36  ;;  %4291 = vmatmul.f32.gmra.mxu0 %v3511_v17 }
 0x368   : > { %v3172_v24 = vpop.permute.xlu0 %3171  ;;  %v3497_v30 = vld [vmem:[#allocation3 + $0x1a8] sm:$0xff] }
 0x369   : > { %3307 = vst.msk [vmem:[#allocation3 + $0x1d0] sm:$0xff] %vm2115_vm1, %v3172_v24  ;;  %4065 = vmatmul.f32.gmra.mxu2 %v3679_v61  ;;  %4446 = vmatmul.f32.gmra.mxu1 %v3497_v30  ;;  %v3453_v61 = vld [vmem:[#allocation3 + $0x48] sm:$0xff] }
 0x36a   : > { %2420 = vrot.lane.b32.xlu1 %v7854_v33, %s6271_s16 }
 0x36b   : > { %v2393_v27 = vpop.permute.xlu1 %2392  ;;  %v3515_v47 = vld [vmem:[#allocation3 + $0x238] sm:$0xff]  ;;  %v8376_v33 = vpop.f32.mrf.mxu2 }
 0x36c   : > { %2807 = vrot.lane.b32.xlu2 %v8298_v19, %s6271_s16  ;;  %2524 = vst.msk [vmem:[#allocation3 + $0x260] sm:$0xff] %vm2115_vm1, %v2393_v27  ;;  %4130 = vmatmul.f32.gmra.mxu3 %v3515_v47  ;;  %v2684_v19 = vld [vmem:[#allocation2 + $0x160] sm:$0xff]  ;;  %v8413_v27 = vpop.f32.mrf.mxu3  ;;  %v8417_v47 = vpop.f32.mrf.mxu0 }
 0x36d   : > { %10606 = vst [vmem:[#allocation29_spill] sm:$0xff] %v8376_v33  ;;  %v3493_v33 = vld [vmem:[#allocation3 + $0x188] sm:$0xff] }
 0x36e   : > { %3201 = vrot.lane.b32.xlu0 %v7949_v18, %s6271_s16  ;;  %v2786_v34 = vpop.permute.xlu2 %2785  ;;  %v3516_v15 = vld [vmem:[#allocation3 + $0x240] sm:$0xff] }
 0x36f   : > { %2917 = vst.msk [vmem:[#allocation3 + $0x268] sm:$0xff] %vm2115_vm1, %v2786_v34  ;;  %4294 = vmatmul.f32.gmra.mxu0 %v3516_v15 }
 0x370   : > { %v3174_v28 = vpop.permute.xlu0 %3173  ;;  %v3502_v22 = vld [vmem:[#allocation3 + $0x1d0] sm:$0xff] }
 0x371   : > { %3308 = vst.msk [vmem:[#allocation3 + $0x1f8] sm:$0xff] %vm2115_vm1, %v3174_v28  ;;  %4068 = vmatmul.f32.gmra.mxu2 %v3684_v52  ;;  %4449 = vmatmul.f32.gmra.mxu1 %v3502_v22 }
 0x372   : > { %2422 = vrot.lane.b32.xlu1 %v10607_v43, %s6271_s16 }
 0x373   : > { %v2395_v54 = vpop.permute.xlu1 %2394  ;;  %v3520_v39 = vld [vmem:[#allocation3 + $0x260] sm:$0xff]  ;;  %v8395_v51 = vpop.f32.mrf.mxu2 }
 0x374   : > { %2809 = vrot.lane.b32.xlu2 %v2684_v19, %s6271_s16  ;;  %2525 = vst.msk [vmem:[#allocation3 + $0x288] sm:$0xff] %vm2115_vm1, %v2395_v54  ;;  %4133 = vmatmul.f32.gmra.mxu3 %v3520_v39  ;;  %v8430_v39 = vpop.f32.mrf.mxu3 }
 0x375   : > { %10608 = vst [vmem:[#allocation27_spill] sm:$0xff] %v8395_v51 }
 0x376   : > { %3203 = vrot.lane.b32.xlu0 %v8383_v35, %s6271_s16  ;;  %v2788_v0 = vpop.permute.xlu2 %2787  ;;  %v3521_v44 = vld [vmem:[#allocation3 + $0x268] sm:$0xff] }
 0x377   : > { %2918 = vst.msk [vmem:[#allocation3 + $0x290] sm:$0xff] %vm2115_vm1, %v2788_v0  ;;  %4297 = vmatmul.f32.gmra.mxu0 %v3521_v44  ;;  %v8432_v0 = vpop.f32.mrf.mxu1  ;;  %v8436_v44 = vpop.f32.mrf.mxu0 }
 0x378   : > { %v3176_v40 = vpop.permute.xlu0 %3175  ;;  %v3507_v26 = vld [vmem:[#allocation3 + $0x1f8] sm:$0xff] }
 0x379   : > { %3309 = vst.msk [vmem:[#allocation3 + $0x220] sm:$0xff] %vm2115_vm1, %v3176_v40  ;;  %4452 = vmatmul.f32.gmra.mxu1 %v3507_v26  ;;  %6158 = vmatmul.msk.f32.vlgmr.msrb.gmra.mxu2 %vm569_vm0, %v3448_v4 }
 0x37a   : > { %2424 = vrot.lane.b32.xlu1 %v10600_v2, %s6271_s16 }
 0x37b   : > { %v2397_v7 = vpop.permute.xlu1 %2396  ;;  %v3525_v55 = vld [vmem:[#allocation3 + $0x288] sm:$0xff] }
 0x37c   : > { %2811 = vrot.lane.b32.xlu2 %v10607_v43, %s6271_s16  ;;  %2526 = vst.msk [vmem:[#allocation3 + $0x2b0] sm:$0xff] %vm2115_vm1, %v2397_v7  ;;  %4136 = vmatmul.f32.gmra.mxu3 %v3525_v55  ;;  %v3458_v43 = vld [vmem:[#allocation3 + $0x70] sm:$0xff] }
 0x37e   : > { %3205 = vrot.lane.b32.xlu0 %v7989_v5, %s6271_s16  ;;  %v2790_v13 = vpop.permute.xlu2 %2789  ;;  %v3526_v36 = vld [vmem:[#allocation3 + $0x290] sm:$0xff] }
 0x37f   : > { %2919 = vst.msk [vmem:[#allocation3 + $0x2b8] sm:$0xff] %vm2115_vm1, %v2790_v13  ;;  %4300 = vmatmul.f32.gmra.mxu0 %v3526_v36  ;;  %v3463_v36 = vld [vmem:[#allocation3 + $0x98] sm:$0xff] }
 0x380   : > { %v3178_v17 = vpop.permute.xlu0 %3177  ;;  %v3512_v24 = vld [vmem:[#allocation3 + $0x220] sm:$0xff] }
 0x381   : > { %3310 = vst.msk [vmem:[#allocation3 + $0x248] sm:$0xff] %vm2115_vm1, %v3178_v17  ;;  %4455 = vmatmul.f32.gmra.mxu1 %v3512_v24  ;;  %6159 = vmatmul.msk.f32.gmra.mxu2 %vm569_vm0, %v3453_v61  ;;  %v8450_v17 = vpop.f32.mrf.mxu0 }
 0x382   : > { %2426 = vrot.lane.b32.xlu1 %v10602_v60, %s6271_s16 }
 0x383   : > { %v2399_v34 = vpop.permute.xlu1 %2398  ;;  %v3530_v15 = vld [vmem:[#allocation3 + $0x2b0] sm:$0xff] }
 0x384   : > { %v8409_v30 = vpop.f32.mrf.mxu2  ;;  %2813 = vrot.lane.b32.xlu2 %v10600_v2, %s6271_s16  ;;  %2527 = vst.msk [vmem:[#allocation3 + $0x2d8] sm:$0xff] %vm2115_vm1, %v2399_v34  ;;  %4139 = vmatmul.f32.gmra.mxu3 %v3530_v15  ;;  %v3352_v2 = vld [vmem:[#allocation2 + $0xd0] sm:$0xff]  ;;  %v8454_v34 = vpop.f32.mrf.mxu1 }
 0x385   : > { %10609 = vst [vmem:[#allocation32_spill] sm:$0xff] %v8409_v30 }
 0x386   : > { %3207 = vrot.lane.b32.xlu0 %v8026_v56, %s6271_s16  ;;  %v2792_v28 = vpop.permute.xlu2 %2791  ;;  %v3531_v52 = vld [vmem:[#allocation3 + $0x2b8] sm:$0xff]  ;;  %3401 = vst.msk [vmem:[#allocation3 + $0x110] sm:$0xff] %vm569_vm0, %v3352_v2  ;;  %v8467_v2 = vld [vmem:[#allocation2 + $0x1d8] sm:$0xff] }
 0x387   : > { %2920 = vst.msk [vmem:[#allocation3 + $0x2e0] sm:$0xff] %vm2115_vm1, %v2792_v28  ;;  %4303 = vmatmul.f32.gmra.mxu0 %v3531_v52  ;;  %v8457_v52 = vpop.f32.mrf.mxu3 }
 0x388   : > { %v3180_v22 = vpop.permute.xlu0 %3179  ;;  %v3517_v19 = vld [vmem:[#allocation3 + $0x248] sm:$0xff] }
 0x389   : > { %3311 = vst.msk [vmem:[#allocation3 + $0x270] sm:$0xff] %vm2115_vm1, %v3180_v22  ;;  %4458 = vmatmul.f32.gmra.mxu1 %v3517_v19  ;;  %6160 = vmatmul.msk.f32.gmra.mxu2 %vm569_vm0, %v3458_v43  ;;  %v3468_v19 = vld [vmem:[#allocation3 + $0xc0] sm:$0xff] }
 0x38a   : > { %2428 = vrot.lane.b32.xlu1 %v10604_v59, %s6271_s16  ;;  %v2973_v43 = vld [vmem:[#allocation2 + $0x168] sm:$0xff] }
 0x38b   : > { %v2401_v40 = vpop.permute.xlu1 %2400  ;;  %v3535_v26 = vld [vmem:[#allocation3 + $0x2d8] sm:$0xff]  ;;  %3022 = vst.msk [vmem:[#allocation3 + $0x360] sm:$0xff] %vm569_vm0, %v2973_v43 }
 0x38c   : > { %v8426_v54 = vpop.f32.mrf.mxu2  ;;  %2815 = vrot.lane.b32.xlu2 %v10602_v60, %s6271_s16  ;;  %2528 = vst.msk [vmem:[#allocation3 + $0x300] sm:$0xff] %vm2115_vm1, %v2401_v40  ;;  %4142 = vmatmul.f32.gmra.mxu3 %v3535_v26 }
 0x38d   : > { %10610 = vst [vmem:[#allocation33_spill] sm:$0xff] %v8426_v54 }
 0x38e   : > { %3209 = vrot.lane.b32.xlu0 %v8055_v41, %s6271_s16  ;;  %v2794_v4 = vpop.permute.xlu2 %2793  ;;  %v3536_v7 = vld [vmem:[#allocation3 + $0x2e0] sm:$0xff] }
 0x38f   : > { %2921 = vst.msk [vmem:[#allocation3 + $0x308] sm:$0xff] %vm2115_vm1, %v2794_v4  ;;  %4306 = vmatmul.f32.gmra.mxu0 %v3536_v7 }
 0x390   : > { %v3182_v55 = vpop.permute.xlu0 %3181  ;;  %v3522_v13 = vld [vmem:[#allocation3 + $0x270] sm:$0xff] }
 0x391   : > { %3312 = vst.msk [vmem:[#allocation3 + $0x298] sm:$0xff] %vm2115_vm1, %v3182_v55  ;;  %4461 = vmatmul.f32.gmra.mxu1 %v3522_v13  ;;  %6161 = vmatmul.msk.f32.gmra.mxu2 %vm569_vm0, %v3463_v36 }
 0x392   : > { %2430 = vrot.lane.b32.xlu1 %v7949_v18, %s6271_s16 }
 0x393   : > { %v2403_v24 = vpop.permute.xlu1 %2402  ;;  %v3540_v61 = vld [vmem:[#allocation3 + $0x300] sm:$0xff] }
 0x394   : > { %v8444_v60 = vpop.f32.mrf.mxu2  ;;  %2817 = vrot.lane.b32.xlu2 %v10604_v59, %s6271_s16  ;;  %2529 = vst.msk [vmem:[#allocation3 + $0x328] sm:$0xff] %vm2115_vm1, %v2403_v24  ;;  %4145 = vmatmul.f32.gmra.mxu3 %v3540_v61  ;;  %v3473_v24 = vld [vmem:[#allocation3 + $0xe8] sm:$0xff]  ;;  %v8479_v61 = vpop.f32.mrf.mxu1 }
 0x395   : > { %10611 = vst [vmem:[#allocation34_spill] sm:$0xff] %v8444_v60  ;;  %v8538_v60 = vld [vmem:[#allocation2 + $0x1f8] sm:$0xff] }
 0x396   : > { %3211 = vrot.lane.b32.xlu0 %v8076_v63, %s6271_s16  ;;  %v2796_v15 = vpop.permute.xlu2 %2795  ;;  %v3541_v28 = vld [vmem:[#allocation3 + $0x308] sm:$0xff]  ;;  %3036 = vst.msk [vmem:[#allocation3 + $0x590] sm:$0xff] %vm569_vm0, %v8538_v60 }
 0x397   : > { %2922 = vst.msk [vmem:[#allocation3 + $0x330] sm:$0xff] %vm2115_vm1, %v2796_v15  ;;  %4309 = vmatmul.f32.gmra.mxu0 %v3541_v28  ;;  %v8487_v15 = vld [vmem:[#allocation2 + $0x1e0] sm:$0xff] }
 0x398   : > { %v3184_v22 = vpop.permute.xlu0 %3183  ;;  %v3527_v59 = vld [vmem:[#allocation3 + $0x298] sm:$0xff] }
 0x399   : > { %3313 = vst.msk [vmem:[#allocation3 + $0x2c0] sm:$0xff] %vm2115_vm1, %v3184_v22  ;;  %4464 = vmatmul.f32.gmra.mxu1 %v3527_v59  ;;  %6162 = vmatmul.msk.f32.gmra.mxu2 %vm569_vm0, %v3468_v19  ;;  %v3478_v59 = vld [vmem:[#allocation3 + $0x110] sm:$0xff] }
 0x39a   : > { %2432 = vrot.lane.b32.xlu1 %v8234_v32, %s6271_s16  ;;  %v8476_v32 = vpop.f32.mrf.mxu3 }
 0x39b   : > { %v2405_v26 = vpop.permute.xlu1 %2404  ;;  %v3545_v4 = vld [vmem:[#allocation3 + $0x328] sm:$0xff] }
 0x39c   : > { %2819 = vrot.lane.b32.xlu2 %v7949_v18, %s6271_s16  ;;  %v8469_v40 = vpop.f32.mrf.mxu2  ;;  %2530 = vst.msk [vmem:[#allocation3 + $0x350] sm:$0xff] %vm2115_vm1, %v2405_v26  ;;  %4148 = vmatmul.f32.gmra.mxu3 %v3545_v4 }
 0x39d   : > { %10612 = vst [vmem:[#allocation35_spill] sm:$0xff] %v8469_v40 }
 0x39e   : > { %3213 = vrot.lane.b32.xlu0 %v8467_v2, %s6271_s16  ;;  %v2798_v55 = vpop.permute.xlu2 %2797  ;;  %v3546_v13 = vld [vmem:[#allocation3 + $0x330] sm:$0xff] }
 0x39f   : > { %v8473_v7 = vpop.f32.mrf.mxu0  ;;  %2923 = vst.msk [vmem:[#allocation3 + $0x358] sm:$0xff] %vm2115_vm1, %v2798_v55  ;;  %4312 = vmatmul.f32.gmra.mxu0 %v3546_v13  ;;  %v2691_v13 = vld [vmem:[#allocation2 + $0x1a8] sm:$0xff] }
 0x3a0   : > { %v3186_v18 = vpop.permute.xlu0 %3185  ;;  %v3532_v36 = vld [vmem:[#allocation3 + $0x2c0] sm:$0xff] }
 0x3a1   : > { %3314 = vst.msk [vmem:[#allocation3 + $0x2e8] sm:$0xff] %vm2115_vm1, %v3186_v18  ;;  %4467 = vmatmul.f32.gmra.mxu1 %v3532_v36  ;;  %6163 = vmatmul.msk.f32.gmra.mxu2 %vm569_vm0, %v3473_v24  ;;  %v8501_v18 = vpop.f32.mrf.mxu1  ;;  %v8506_v36 = vld [vmem:[#allocation2 + $0x1e8] sm:$0xff] }
 0x3a2   : > { %2434 = vrot.lane.b32.xlu1 %v7989_v5, %s6271_s16  ;;  %v8499_v55 = vpop.f32.mrf.mxu3 }
 0x3a3   : > { %v2407_v28 = vpop.permute.xlu1 %2406  ;;  %v3550_v22 = vld [vmem:[#allocation3 + $0x350] sm:$0xff] }
 0x3a4   : > { %2821 = vrot.lane.b32.xlu2 %v8383_v35, %s6271_s16  ;;  %2531 = vst.msk [vmem:[#allocation3 + $0x378] sm:$0xff] %vm2115_vm1, %v2407_v28  ;;  %4151 = vmatmul.f32.gmra.mxu3 %v3550_v22  ;;  %v8494_v4 = vpop.f32.mrf.mxu2 }
 0x3a5   : > { %10613 = vst [vmem:[#allocation36_spill] sm:$0xff] %v8494_v4 }
 0x3a6   : > { %3215 = vrot.lane.b32.xlu0 %v8487_v15, %s6271_s16  ;;  %v2800_v43 = vpop.permute.xlu2 %2799  ;;  %v3551_v26 = vld [vmem:[#allocation3 + $0x358] sm:$0xff] }
 0x3a7   : > { %v8491_v19 = vpop.f32.mrf.mxu0  ;;  %2924 = vst.msk [vmem:[#allocation3 + $0x380] sm:$0xff] %vm2115_vm1, %v2800_v43  ;;  %4315 = vmatmul.f32.gmra.mxu0 %v3551_v26 }
 0x3a8   : > { %v3188_v5 = vpop.permute.xlu0 %3187  ;;  %v3537_v35 = vld [vmem:[#allocation3 + $0x2e8] sm:$0xff] }
 0x3a9   : > { %3315 = vst.msk [vmem:[#allocation3 + $0x310] sm:$0xff] %vm2115_vm1, %v3188_v5  ;;  %4470 = vmatmul.f32.gmra.mxu1 %v3537_v35  ;;  %6164 = vmatmul.msk.f32.gmra.mxu2 %vm569_vm0, %v3478_v59  ;;  %v3483_v35 = vld [vmem:[#allocation3 + $0x138] sm:$0xff] }
 0x3aa   : > { %2436 = vrot.lane.b32.xlu1 %v8026_v56, %s6271_s16  ;;  %v8516_v40 = vpop.f32.mrf.mxu3 }
 0x3ab   : > { %v2409_v24 = vpop.permute.xlu1 %2408  ;;  %v3555_v28 = vld [vmem:[#allocation3 + $0x378] sm:$0xff] }
 0x3ac   : > { %2823 = vrot.lane.b32.xlu2 %v2691_v13, %s6271_s16  ;;  %2532 = vst.msk [vmem:[#allocation3 + $0x3a0] sm:$0xff] %vm2115_vm1, %v2409_v24  ;;  %4154 = vmatmul.f32.gmra.mxu3 %v3555_v28  ;;  %v2193_v13 = vld [vmem:[#allocation2 + $0x118] sm:$0xff]  ;;  %v8518_v4 = vpop.f32.mrf.mxu2  ;;  %v8521_v24 = vpop.f32.mrf.mxu1  ;;  %v8528_v28 = vld [vmem:[#allocation2 + $0x200] sm:$0xff] }
 0x3ad   : > { %10614 = vst [vmem:[#allocation37_spill] sm:$0xff] %v8518_v4  ;;  %v3508_v4 = vld [vmem:[#allocation3 + $0x200] sm:$0xff] }
 0x3ae   : > { %3217 = vrot.lane.b32.xlu0 %v8506_v36, %s6271_s16  ;;  %v2802_v59 = vpop.permute.xlu2 %2801  ;;  %v3556_v43 = vld [vmem:[#allocation3 + $0x380] sm:$0xff]  ;;  %2242 = vst.msk [vmem:[#allocation3 + $0x440] sm:$0xff] %vm569_vm0, %v2193_v13 }
 0x3af   : > { %v8510_v22 = vpop.f32.mrf.mxu0  ;;  %2925 = vst.msk [vmem:[#allocation3 + $0x3a8] sm:$0xff] %vm2115_vm1, %v2802_v59  ;;  %4318 = vmatmul.f32.gmra.mxu0 %v3556_v43 }
 0x3b0   : > { %v3190_v26 = vpop.permute.xlu0 %3189  ;;  %v3542_v5 = vld [vmem:[#allocation3 + $0x310] sm:$0xff]  ;;  %3408 = vst.msk [vmem:[#allocation3 + $0x228] sm:$0xff] %vm569_vm0, %v2193_v13 }
 0x3b1   : > { %3316 = vst.msk [vmem:[#allocation3 + $0x338] sm:$0xff] %vm2115_vm1, %v3190_v26  ;;  %4473 = vmatmul.f32.gmra.mxu1 %v3542_v5  ;;  %6165 = vmatmul.msk.f32.gmra.mxu2 %vm569_vm0, %v3483_v35 }
 0x3b2   : > { %2438 = vrot.lane.b32.xlu1 %v8055_v41, %s6271_s16 }
 0x3b3   : > { %v2411_v59 = vpop.permute.xlu1 %2410  ;;  %v3560_v43 = vld [vmem:[#allocation3 + $0x3a0] sm:$0xff] }
 0x3b4   : > { %2825 = vrot.lane.b32.xlu2 %v8026_v56, %s6271_s16  ;;  %2533 = vst.msk [vmem:[#allocation3 + $0x3c8] sm:$0xff] %vm2115_vm1, %v2411_v59  ;;  %4157 = vmatmul.f32.gmra.mxu3 %v3560_v43  ;;  %v3488_v56 = vld [vmem:[#allocation3 + $0x160] sm:$0xff]  ;;  %v8542_v30 = vpop.f32.mrf.mxu1  ;;  %v8544_v59 = vpop.f32.mrf.mxu3 }
 0x3b5   : > { %v8546_v43 = vpop.f32.mrf.mxu2 }
 0x3b6   : > { %3219 = vrot.lane.b32.xlu0 %v8528_v28, %s6271_s16  ;;  %v2804_v5 = vpop.permute.xlu2 %2803  ;;  %v3561_v35 = vld [vmem:[#allocation3 + $0x3a8] sm:$0xff]  ;;  %10615 = vst [vmem:[#allocation38_spill] sm:$0xff] %v8546_v43 }
 0x3b7   : > { %v8532_v26 = vpop.f32.mrf.mxu0  ;;  %2926 = vst.msk [vmem:[#allocation3 + $0x3d0] sm:$0xff] %vm2115_vm1, %v2804_v5  ;;  %4321 = vmatmul.f32.gmra.mxu0 %v3561_v35 }
 0x3b8   : > { %v3192_v13 = vpop.permute.xlu0 %3191  ;;  %v3547_v54 = vld [vmem:[#allocation3 + $0x338] sm:$0xff] }
 0x3b9   : > { %3317 = vst.msk [vmem:[#allocation3 + $0x360] sm:$0xff] %vm2115_vm1, %v3192_v13  ;;  %4476 = vmatmul.f32.gmra.mxu1 %v3547_v54  ;;  %6166 = vmatmul.msk.f32.gmra.mxu2 %vm569_vm0, %v3488_v56  ;;  %v8552_v54 = vld [vmem:[#allocation2 + $0x208] sm:$0xff] }
 0x3ba   : > { %2440 = vrot.lane.b32.xlu1 %v8076_v63, %s6271_s16 }
 0x3bb   : > { %v2413_v5 = vpop.permute.xlu1 %2412  ;;  %v3565_v35 = vld [vmem:[#allocation3 + $0x3c8] sm:$0xff] }
 0x3bc   : > { %2827 = vrot.lane.b32.xlu2 %v8055_v41, %s6271_s16  ;;  %2534 = vst.msk [vmem:[#allocation3 + $0x3f0] sm:$0xff] %vm2115_vm1, %v2413_v5  ;;  %4160 = vmatmul.f32.gmra.mxu3 %v3565_v35  ;;  %v8562_v41 = vpop.f32.mrf.mxu1  ;;  %v8572_v35 = vld [vmem:[#allocation2 + $0x210] sm:$0xff] }
 0x3be   : > { %3221 = vrot.lane.b32.xlu0 %v8552_v54, %s6271_s16  ;;  %v2806_v13 = vpop.permute.xlu2 %2805  ;;  %v3566_v56 = vld [vmem:[#allocation3 + $0x3d0] sm:$0xff] }
 0x3bf   : > { %2927 = vst.msk [vmem:[#allocation3 + $0x3f8] sm:$0xff] %vm2115_vm1, %v2806_v13  ;;  %4324 = vmatmul.f32.gmra.mxu0 %v3566_v56  ;;  %v8558_v23 = vpop.f32.mrf.mxu0  ;;  %v8566_v5 = vpop.f32.mrf.mxu3 }
 0x3c0   : > { %v3194_v43 = vpop.permute.xlu0 %3193  ;;  %v3552_v51 = vld [vmem:[#allocation3 + $0x360] sm:$0xff] }
 0x3c1   : > { %3318 = vst.msk [vmem:[#allocation3 + $0x388] sm:$0xff] %vm2115_vm1, %v3194_v43  ;;  %4479 = vmatmul.f32.gmra.mxu1 %v3552_v51  ;;  %6167 = vmatmul.msk.f32.gmra.mxu2 %vm569_vm0, %v3493_v33 }
 0x3c2   : > { %2442 = vrot.lane.b32.xlu1 %v8467_v2, %s6271_s16 }
 0x3c3   : > { %v2415_v51 = vpop.permute.xlu1 %2414  ;;  %v3570_v43 = vld [vmem:[#allocation3 + $0x3f0] sm:$0xff] }
 0x3c4   : > { %v8564_v53 = vpop.f32.mrf.mxu2  ;;  %2829 = vrot.lane.b32.xlu2 %v8076_v63, %s6271_s16  ;;  %2535 = vst.msk [vmem:[#allocation3 + $0x418] sm:$0xff] %vm2115_vm1, %v2415_v51  ;;  %4163 = vmatmul.f32.gmra.mxu3 %v3570_v43  ;;  %v8586_v51 = vpop.f32.mrf.mxu1  ;;  %v8590_v43 = vld [vmem:[#allocation2 + $0x218] sm:$0xff] }
 0x3c5   : > { %10616 = vst [vmem:[#allocation39_spill] sm:$0xff] %v8564_v53 }
 0x3c6   : > { %3223 = vrot.lane.b32.xlu0 %v8572_v35, %s6271_s16  ;;  %v2808_v33 = vpop.permute.xlu2 %2807  ;;  %v3571_v13 = vld [vmem:[#allocation3 + $0x3f8] sm:$0xff] }
 0x3c7   : > { %2928 = vst.msk [vmem:[#allocation3 + $0x420] sm:$0xff] %vm2115_vm1, %v2808_v33  ;;  %4327 = vmatmul.f32.gmra.mxu0 %v3571_v13  ;;  %v8580_v63 = vpop.f32.mrf.mxu0  ;;  %v8592_v33 = vld [vmem:[#allocation2 + $0x248] sm:$0xff]  ;;  %v8594_v13 = vpop.f32.mrf.mxu3 }
 0x3c8   : > { %v3196_v56 = vpop.permute.xlu0 %3195  ;;  %v3557_v53 = vld [vmem:[#allocation3 + $0x388] sm:$0xff]  ;;  %3044 = vst.msk [vmem:[#allocation3 + $0x6d0] sm:$0xff] %vm569_vm0, %v8592_v33 }
 0x3c9   : > { %3319 = vst.msk [vmem:[#allocation3 + $0x3b0] sm:$0xff] %vm2115_vm1, %v3196_v56  ;;  %4482 = vmatmul.f32.gmra.mxu1 %v3557_v53  ;;  %6168 = vmatmul.msk.f32.gmra.mxu2 %vm569_vm0, %v3498_v25 }
 0x3ca   : > { %2444 = vrot.lane.b32.xlu1 %v8487_v15, %s6271_s16 }
 0x3cb   : > { %v3575_v53 = vld [vmem:[#allocation3 + $0x418] sm:$0xff] }
 0x3cc   : > { %v8582_v16 = vpop.f32.mrf.mxu2  ;;  %2831 = vrot.lane.b32.xlu2 %v8467_v2, %s6271_s16  ;;  %v2417_v25 = vpop.permute.xlu1 %2416  ;;  %4166 = vmatmul.f32.gmra.mxu3 %v3575_v53  ;;  %v8615_v53 = vld [vmem:[#allocation2 + $0x250] sm:$0xff] }
 0x3cd   : > { %10617 = vst [vmem:[#allocation40_spill] sm:$0xff] %v8582_v16 }
 0x3ce   : > { %3225 = vrot.lane.b32.xlu0 %v8590_v43, %s6271_s16  ;;  %v2810_v56 = vpop.permute.xlu2 %2809  ;;  %2536 = vst.msk [vmem:[#allocation3 + $0x440] sm:$0xff] %vm2115_vm1, %v2417_v25  ;;  %v3576_v16 = vld [vmem:[#allocation3 + $0x420] sm:$0xff] }
 0x3cf   : > { %2929 = vst.msk [vmem:[#allocation3 + $0x448] sm:$0xff] %vm2115_vm1, %v2810_v56  ;;  %4330 = vmatmul.f32.gmra.mxu0 %v3576_v16  ;;  %v8609_v25 = vpop.f32.mrf.mxu0  ;;  %v8613_v16 = vld [vmem:[#allocation2 + $0x220] sm:$0xff] }
 0x3d0   : > { %v3198_v2 = vpop.permute.xlu0 %3197  ;;  %v3562_v57 = vld [vmem:[#allocation3 + $0x3b0] sm:$0xff]  ;;  %3045 = vst.msk [vmem:[#allocation3 + $0x6f8] sm:$0xff] %vm569_vm0, %v8615_v53 }
 0x3d1   : > { %3320 = vst.msk [vmem:[#allocation3 + $0x3d8] sm:$0xff] %vm2115_vm1, %v3198_v2  ;;  %4485 = vmatmul.f32.gmra.mxu1 %v3562_v57  ;;  %6169 = vmatmul.msk.f32.gmra.mxu2 %vm569_vm0, %v3503_v58 }
 0x3d2   : > { %2446 = vrot.lane.b32.xlu1 %v8538_v60, %s6271_s16 }
 0x3d4   : > { %v8605_v42 = vpop.f32.mrf.mxu2  ;;  %2833 = vrot.lane.b32.xlu2 %v8487_v15, %s6271_s16  ;;  %v2419_v14 = vpop.permute.xlu1 %2418 }
 0x3d5   : > { %10618 = vst [vmem:[#allocation41_spill] sm:$0xff] %v8605_v42  ;;  %v3580_v57 = vld [vmem:[#allocation3 + $0x440] sm:$0xff]  ;;  %v8624_v15 = vpop.f32.mrf.mxu3 }
 0x3d6   : > { %3227 = vrot.lane.b32.xlu0 %v8613_v16, %s6271_s16  ;;  %v8619_v58 = vpop.f32.mrf.mxu1  ;;  %v2812_v60 = vpop.permute.xlu2 %2811  ;;  %2537 = vst.msk [vmem:[#allocation3 + $0x468] sm:$0xff] %vm2115_vm1, %v2419_v14  ;;  %4169 = vmatmul.f32.gmra.mxu3 %v3580_v57  ;;  %v3581_v56 = vld [vmem:[#allocation3 + $0x448] sm:$0xff]  ;;  %v8635_v14 = vld [vmem:[#allocation2 + $0x228] sm:$0xff] }
 0x3d7   : > { %2930 = vst.msk [vmem:[#allocation3 + $0x470] sm:$0xff] %vm2115_vm1, %v2812_v60  ;;  %4333 = vmatmul.f32.gmra.mxu0 %v3581_v56  ;;  %v8639_v60 = vld [vmem:[#allocation2 + $0x258] sm:$0xff] }
 0x3d8   : > { %v3200_v2 = vpop.permute.xlu0 %3199  ;;  %v3567_v42 = vld [vmem:[#allocation3 + $0x3d8] sm:$0xff]  ;;  %3046 = vst.msk [vmem:[#allocation3 + $0x720] sm:$0xff] %vm569_vm0, %v8639_v60 }
 0x3d9   : > { %3321 = vst.msk [vmem:[#allocation3 + $0x400] sm:$0xff] %vm2115_vm1, %v3200_v2  ;;  %4488 = vmatmul.f32.gmra.mxu1 %v3567_v42  ;;  %6170 = vmatmul.msk.f32.gmra.mxu2 %vm569_vm0, %v3508_v4  ;;  %v3513_v2 = vld [vmem:[#allocation3 + $0x228] sm:$0xff] }
 0x3da   : > { %2448 = vrot.lane.b32.xlu1 %v8528_v28, %s6271_s16 }
 0x3dc   : > { %v8629_v12 = vpop.f32.mrf.mxu2  ;;  %2835 = vrot.lane.b32.xlu2 %v8506_v36, %s6271_s16  ;;  %v8637_v57 = vpop.f32.mrf.mxu0 }
 0x3dd   : > { %10619 = vst [vmem:[#allocation42_spill] sm:$0xff] %v8629_v12  ;;  %v2421_v4 = vpop.permute.xlu1 %2420  ;;  %v3585_v56 = vld [vmem:[#allocation3 + $0x468] sm:$0xff]  ;;  %v8651_v45 = vpop.f32.mrf.mxu3 }
 0x3de   : > { %10620 = vst [vmem:[#allocation43_spill] sm:$0xff] %v8637_v57  ;;  %3229 = vrot.lane.b32.xlu0 %v8635_v14, %s6271_s16  ;;  %v8643_v42 = vpop.f32.mrf.mxu1  ;;  %v2814_v28 = vpop.permute.xlu2 %2813  ;;  %4172 = vmatmul.f32.gmra.mxu3 %v3585_v56  ;;  %v3586_v36 = vld [vmem:[#allocation3 + $0x470] sm:$0xff] }
 0x3df   : > { %2538 = vst.msk [vmem:[#allocation3 + $0x490] sm:$0xff] %vm2115_vm1, %v2421_v4  ;;  %4336 = vmatmul.f32.gmra.mxu0 %v3586_v36  ;;  %v8658_v4 = vld [vmem:[#allocation2 + $0x230] sm:$0xff] }
 0x3e0   : > { %2931 = vst.msk [vmem:[#allocation3 + $0x498] sm:$0xff] %vm2115_vm1, %v2814_v28  ;;  %v3202_v12 = vpop.permute.xlu0 %3201  ;;  %v3572_v1 = vld [vmem:[#allocation3 + $0x400] sm:$0xff]  ;;  %v8662_v28 = vld [vmem:[#allocation2 + $0x260] sm:$0xff] }
 0x3e1   : > { %3322 = vst.msk [vmem:[#allocation3 + $0x428] sm:$0xff] %vm2115_vm1, %v3202_v12  ;;  %4491 = vmatmul.f32.gmra.mxu1 %v3572_v1  ;;  %6171 = vmatmul.msk.f32.gmra.mxu2 %vm569_vm0, %v3513_v2 }
 0x3e2   : > { %10621 = vst [vmem:[#allocation44_spill] sm:$0xff] %v8651_v45  ;;  %2450 = vrot.lane.b32.xlu1 %v8552_v54, %s6271_s16 }
 0x3e3   : > { %3047 = vst.msk [vmem:[#allocation3 + $0x748] sm:$0xff] %vm569_vm0, %v8662_v28 }
 0x3e4   : > { %v8653_v37 = vpop.f32.mrf.mxu2  ;;  %2837 = vrot.lane.b32.xlu2 %v2698_v46, %s6271_s16  ;;  %v8660_v56 = vpop.f32.mrf.mxu0 }
 0x3e5   : > { %10622 = vst [vmem:[#allocation45_spill] sm:$0xff] %v8653_v37  ;;  %v2423_v12 = vpop.permute.xlu1 %2422 }
 0x3e6   : > { %10623 = vst [vmem:[#allocation46_spill] sm:$0xff] %v8660_v56  ;;  %3231 = vrot.lane.b32.xlu0 %v8658_v4, %s6271_s16  ;;  %v8666_v1 = vpop.f32.mrf.mxu1  ;;  %v3590_v2 = vld [vmem:[#allocation3 + $0x490] sm:$0xff]  ;;  %v2816_v36 = vpop.permute.xlu2 %2815 }
 0x3e7   : > { %2539 = vst.msk [vmem:[#allocation3 + $0x4b8] sm:$0xff] %vm2115_vm1, %v2423_v12  ;;  %4175 = vmatmul.f32.gmra.mxu3 %v3590_v2  ;;  %v3591_v46 = vld [vmem:[#allocation3 + $0x498] sm:$0xff]  ;;  %v3518_v56 = vld [vmem:[#allocation3 + $0x250] sm:$0xff]  ;;  %v8674_v57 = vpop.f32.mrf.mxu3 }
 0x3e8   : > { %2932 = vst.msk [vmem:[#allocation3 + $0x4c0] sm:$0xff] %vm2115_vm1, %v2816_v36  ;;  %v3204_v37 = vpop.permute.xlu0 %3203  ;;  %4339 = vmatmul.f32.gmra.mxu0 %v3591_v46  ;;  %v3577_v31 = vld [vmem:[#allocation3 + $0x428] sm:$0xff] }
 0x3e9   : > { %3323 = vst.msk [vmem:[#allocation3 + $0x450] sm:$0xff] %vm2115_vm1, %v3204_v37  ;;  %4494 = vmatmul.f32.gmra.mxu1 %v3577_v31  ;;  %6172 = vmatmul.msk.f32.gmra.mxu2 %vm569_vm0, %v3518_v56  ;;  %v8686_v31 = vld [vmem:[#allocation2 + $0x268] sm:$0xff] }
 0x3ea   : > { %10624 = vst [vmem:[#allocation47_spill] sm:$0xff] %v8674_v57  ;;  %2452 = vrot.lane.b32.xlu1 %v8572_v35, %s6271_s16 }
 0x3eb   : > { %3048 = vst.msk [vmem:[#allocation3 + $0x770] sm:$0xff] %vm569_vm0, %v8686_v31 }
 0x3ec   : > { %v8678_v12 = vpop.f32.mrf.mxu2  ;;  %2839 = vrot.lane.b32.xlu2 %v8552_v54, %s6271_s16  ;;  %v8684_v2 = vpop.f32.mrf.mxu0 }
 0x3ed   : > { %10625 = vst [vmem:[#allocation48_spill] sm:$0xff] %v8678_v12  ;;  %v2425_v56 = vpop.permute.xlu1 %2424 }
 0x3ee   : > { %10626 = vst [vmem:[#allocation49_spill] sm:$0xff] %v8684_v2  ;;  %3233 = vrot.lane.b32.xlu0 %v8592_v33, %s6271_s16  ;;  %v8690_v37 = vpop.f32.mrf.mxu1  ;;  %v3595_v36 = vld [vmem:[#allocation3 + $0x4b8] sm:$0xff]  ;;  %v2818_v50 = vpop.permute.xlu2 %2817 }
 0x3ef   : > { %2540 = vst.msk [vmem:[#allocation3 + $0x4e0] sm:$0xff] %vm2115_vm1, %v2425_v56  ;;  %4178 = vmatmul.f32.gmra.mxu3 %v3595_v36  ;;  %v3596_v46 = vld [vmem:[#allocation3 + $0x4c0] sm:$0xff]  ;;  %v3523_v2 = vld [vmem:[#allocation3 + $0x278] sm:$0xff]  ;;  %v8698_v33 = vpop.f32.mrf.mxu3  ;;  %v8706_v36 = vld [vmem:[#allocation2 + $0x270] sm:$0xff] }
 0x3f0   : > { %2933 = vst.msk [vmem:[#allocation3 + $0x4e8] sm:$0xff] %vm2115_vm1, %v2818_v50  ;;  %v3206_v54 = vpop.permute.xlu0 %3205  ;;  %4342 = vmatmul.f32.gmra.mxu0 %v3596_v46  ;;  %v3582_v12 = vld [vmem:[#allocation3 + $0x450] sm:$0xff] }
 0x3f1   : > { %3324 = vst.msk [vmem:[#allocation3 + $0x478] sm:$0xff] %vm2115_vm1, %v3206_v54  ;;  %4497 = vmatmul.f32.gmra.mxu1 %v3582_v12  ;;  %6173 = vmatmul.msk.f32.gmra.mxu2 %vm569_vm0, %v3523_v2 }
 0x3f2   : > { %10627 = vst [vmem:[#allocation50_spill] sm:$0xff] %v8698_v33  ;;  %2454 = vrot.lane.b32.xlu1 %v8590_v43, %s6271_s16  ;;  %v3528_v33 = vld [vmem:[#allocation3 + $0x2a0] sm:$0xff] }
 0x3f3   : > { %3049 = vst.msk [vmem:[#allocation3 + $0x798] sm:$0xff] %vm569_vm0, %v8706_v36 }
 0x3f4   : > { %v8700_v57 = vpop.f32.mrf.mxu2  ;;  %2841 = vrot.lane.b32.xlu2 %v8572_v35, %s6271_s16  ;;  %v4298_v56 = vpop.f32.mrf.mxu0 }
 0x3f5   : > { %10628 = vst [vmem:[#allocation51_spill] sm:$0xff] %v8700_v57  ;;  %v2427_v12 = vpop.permute.xlu1 %2426 }
 0x3f6   : > { %3235 = vrot.lane.b32.xlu0 %v8615_v53, %s6271_s16  ;;  %v8710_v50 = vpop.f32.mrf.mxu1  ;;  %v3600_v2 = vld [vmem:[#allocation3 + $0x4e0] sm:$0xff]  ;;  %v2820_v46 = vpop.permute.xlu2 %2819  ;;  %2541 = vst.msk [vmem:[#allocation3 + $0x508] sm:$0xff] %vm2115_vm1, %v2427_v12 }
 0x3f7   : > { %10629 = vst [vmem:[#allocation52_spill] sm:$0xff] %v8710_v50  ;;  %4181 = vmatmul.f32.gmra.mxu3 %v3600_v2  ;;  %v3601_v54 = vld [vmem:[#allocation3 + $0x4e8] sm:$0xff]  ;;  %v4134_v53 = vpop.f32.mrf.mxu3 }
 0x3f8   : > { %2934 = vst.msk [vmem:[#allocation3 + $0x510] sm:$0xff] %vm2115_vm1, %v2820_v46  ;;  %v3208_v35 = vpop.permute.xlu0 %3207  ;;  %4345 = vmatmul.f32.gmra.mxu0 %v3601_v54  ;;  %v3587_v57 = vld [vmem:[#allocation3 + $0x478] sm:$0xff]  ;;  %v4135_v50 = vadd.f32 %v4134_v53, %v8090_v62  ;;  %v3533_v53 = vld [vmem:[#allocation3 + $0x2c8] sm:$0xff] }
 0x3f9   : > { %3325 = vst.msk [vmem:[#allocation3 + $0x4a0] sm:$0xff] %vm2115_vm1, %v3208_v35  ;;  %4500 = vmatmul.f32.gmra.mxu1 %v3587_v57  ;;  %6174 = vmatmul.msk.f32.gmra.mxu2 %vm569_vm0, %v3528_v33 }
 0x3fa   : > { %2456 = vrot.lane.b32.xlu1 %v8613_v16, %s6271_s16  ;;  %v8725_v2 = vadd.f32 %v4298_v56, %v4135_v50 }
 0x3fc   : > { %v8719_v45 = vpop.f32.mrf.mxu2  ;;  %2843 = vrot.lane.b32.xlu2 %v8590_v43, %s6271_s16  ;;  %v4301_v12 = vpop.f32.mrf.mxu0 }
 0x3fd   : > { %v2429_v33 = vpop.permute.xlu1 %2428  ;;  %v3605_v46 = vld [vmem:[#allocation3 + $0x508] sm:$0xff] }
 0x3fe   : > { %3237 = vrot.lane.b32.xlu0 %v8639_v60, %s6271_s16  ;;  %v8729_v57 = vpop.f32.mrf.mxu1  ;;  %v2822_v54 = vpop.permute.xlu2 %2821  ;;  %2542 = vst.msk [vmem:[#allocation3 + $0x530] sm:$0xff] %vm2115_vm1, %v2429_v33 }
 0x3ff   : > { %4184 = vmatmul.f32.gmra.mxu3 %v3605_v46  ;;  %v3606_v62 = vld [vmem:[#allocation3 + $0x510] sm:$0xff]  ;;  %2935 = vst.msk [vmem:[#allocation3 + $0x538] sm:$0xff] %vm2115_vm1, %v2822_v54  ;;  %v4137_v60 = vpop.f32.mrf.mxu3 }
 0x400   : > { %v3210_v35 = vpop.permute.xlu0 %3209  ;;  %4348 = vmatmul.f32.gmra.mxu0 %v3606_v62  ;;  %v3592_v43 = vld [vmem:[#allocation3 + $0x4a0] sm:$0xff]  ;;  %v4138_v56 = vadd.f32 %v4137_v60, %v8114_v48 }
 0x401   : > { %3326 = vst.msk [vmem:[#allocation3 + $0x4c8] sm:$0xff] %vm2115_vm1, %v3210_v35  ;;  %4503 = vmatmul.f32.gmra.mxu1 %v3592_v43  ;;  %6175 = vmatmul.msk.f32.gmra.mxu2 %vm569_vm0, %v3533_v53  ;;  %v3538_v53 = vld [vmem:[#allocation3 + $0x2f0] sm:$0xff] }
 0x402   : > { %2849 = vrot.lane.b32.xlu1 %v8658_v4, %s6271_s16  ;;  %v8742_v46 = vadd.f32 %v4301_v12, %v4138_v56  ;;  %v10630_v56 = vld [vmem:[#allocation18_spill] sm:$0xff] }
 0x404   : > { %v8736_v50 = vpop.f32.mrf.mxu2  ;;  %2845 = vrot.lane.b32.xlu2 %v8613_v16, %s6271_s16  ;;  %v4304_v33 = vpop.f32.mrf.mxu0 }
 0x405   : > { %v2431_v62 = vpop.permute.xlu1 %2430  ;;  %v3610_v35 = vld [vmem:[#allocation3 + $0x530] sm:$0xff] }
 0x406   : > { %3239 = vrot.lane.b32.xlu0 %v8662_v28, %s6271_s16  ;;  %v8746_v54 = vpop.f32.mrf.mxu1  ;;  %v2824_v43 = vpop.permute.xlu2 %2823  ;;  %2543 = vst.msk [vmem:[#allocation3 + $0x558] sm:$0xff] %vm2115_vm1, %v2431_v62  ;;  %v3611_v48 = vld [vmem:[#allocation3 + $0x538] sm:$0xff]  ;;  %v2705_v28 = vld [vmem:[#allocation2 + $0x238] sm:$0xff]  ;;  %v4096_v62 = vadd.f32 %v8413_v27, %v10630_v56 }
 0x407   : > { %4187 = vmatmul.f32.gmra.mxu3 %v3610_v35  ;;  %2936 = vst.msk [vmem:[#allocation3 + $0x560] sm:$0xff] %vm2115_vm1, %v2824_v43  ;;  %v4140_v12 = vpop.f32.mrf.mxu3 }
 0x408   : > { %v3212_v4 = vpop.permute.xlu0 %3211  ;;  %4351 = vmatmul.f32.gmra.mxu0 %v3611_v48  ;;  %v3597_v16 = vld [vmem:[#allocation3 + $0x4c8] sm:$0xff]  ;;  %v4141_v60 = vadd.f32 %v4140_v12, %v8142_v49 }
 0x409   : > { %3327 = vst.msk [vmem:[#allocation3 + $0x4f0] sm:$0xff] %vm2115_vm1, %v3212_v4  ;;  %4506 = vmatmul.f32.gmra.mxu1 %v3597_v16  ;;  %6176 = vmatmul.msk.f32.gmra.mxu2 %vm569_vm0, %v3538_v53  ;;  %v4260_v4 = vadd.f32 %v8417_v47, %v4096_v62  ;;  %v3543_v47 = vld [vmem:[#allocation3 + $0x318] sm:$0xff] }
 0x40a   : > { %2851 = vrot.lane.b32.xlu1 %v2705_v28, %s6271_s16  ;;  %v8758_v48 = vadd.f32 %v4304_v33, %v4141_v60 }
 0x40b   : > { %v4424_v28 = vadd.f32 %v8479_v61, %v4260_v4  ;;  %v10631_v61 = vld [vmem:[#allocation13_spill] sm:$0xff] }
 0x40c   : > { %v4587_v35 = vpop.f32.mrf.mxu2  ;;  %2847 = vrot.lane.b32.xlu2 %v8635_v14, %s6271_s16  ;;  %v4307_v43 = vpop.f32.mrf.mxu0  ;;  %v4090_v4 = vadd.f32 %v8378_v20, %v10631_v61 }
 0x40d   : > { %v2433_v49 = vpop.permute.xlu1 %2432  ;;  %v3615_v53 = vld [vmem:[#allocation3 + $0x558] sm:$0xff] }
 0x40e   : > { %3241 = vrot.lane.b32.xlu0 %v8686_v31, %s6271_s16  ;;  %v8763_v16 = vpop.f32.mrf.mxu1  ;;  %v2826_v12 = vpop.permute.xlu2 %2825  ;;  %2544 = vst.msk [vmem:[#allocation3 + $0x580] sm:$0xff] %vm2115_vm1, %v2433_v49  ;;  %v3616_v27 = vld [vmem:[#allocation3 + $0x560] sm:$0xff]  ;;  %v8770_v31 = vadd.f32 %v4587_v35, %v4424_v28 }
 0x40f   : > { %4190 = vmatmul.f32.gmra.mxu3 %v3615_v53  ;;  %2937 = vst.msk [vmem:[#allocation3 + $0x588] sm:$0xff] %vm2115_vm1, %v2826_v12  ;;  %v4143_v56 = vpop.f32.mrf.mxu3  ;;  %v3548_v28 = vld [vmem:[#allocation3 + $0x340] sm:$0xff] }
 0x410   : > { %v3214_v33 = vpop.permute.xlu0 %3213  ;;  %4354 = vmatmul.f32.gmra.mxu0 %v3616_v27  ;;  %v3602_v60 = vld [vmem:[#allocation3 + $0x4f0] sm:$0xff]  ;;  %v4144_v62 = vadd.f32 %v4143_v56, %v8160_v21 }
 0x411   : > { %3328 = vst.msk [vmem:[#allocation3 + $0x518] sm:$0xff] %vm2115_vm1, %v3214_v33  ;;  %4509 = vmatmul.f32.gmra.mxu1 %v3602_v60  ;;  %6177 = vmatmul.msk.f32.gmra.mxu2 %vm569_vm0, %v3543_v47  ;;  %v4254_v33 = vadd.f32 %v8385_v29, %v4090_v4  ;;  %v10632_v60 = vld [vmem:[#allocation22_spill] sm:$0xff]  ;;  %v3099_v4 = vld [vmem:[#allocation2 + $0x278] sm:$0xff] }
 0x412   : > { %4781 = vrot.lane.b32.xlu1 %v8770_v31, %s6272_s19  ;;  %v8781_v12 = vadd.f32 %v4307_v43, %v4144_v62  ;;  %v4102_v20 = vadd.f32 %v8457_v52, %v10632_v60 }
 0x413   : > { %v4418_v62 = vadd.f32 %v8432_v0, %v4254_v33 }
 0x414   : > { %v4590_v49 = vpop.f32.mrf.mxu2  ;;  %3243 = vrot.lane.b32.xlu2 %v8706_v36, %s6271_s16  ;;  %v8779_v53 = vpop.f32.mrf.mxu0  ;;  %v4266_v56 = vadd.f32 %v8450_v17, %v4102_v20 }
 0x415   : > { %v2435_v21 = vpop.permute.xlu1 %2434  ;;  %v3620_v27 = vld [vmem:[#allocation3 + $0x580] sm:$0xff]  ;;  %v8800_v61 = vadd.f32 %v8719_v45, %v4418_v62 }
 0x416   : > { %2458 = vrot.lane.b32.xlu0 %v8635_v14, %s6271_s16  ;;  %v8785_v35 = vpop.f32.mrf.mxu1  ;;  %v2828_v47 = vpop.permute.xlu2 %2827  ;;  %2545 = vst.msk [vmem:[#allocation3 + $0x5a8] sm:$0xff] %vm2115_vm1, %v2435_v21  ;;  %v3621_v36 = vld [vmem:[#allocation3 + $0x588] sm:$0xff]  ;;  %v4430_v52 = vadd.f32 %v8521_v24, %v4266_v56 }
 0x417   : > { %4193 = vmatmul.f32.gmra.mxu3 %v3620_v27  ;;  %2938 = vst.msk [vmem:[#allocation3 + $0x5b0] sm:$0xff] %vm2115_vm1, %v2828_v47  ;;  %v8796_v29 = vpop.f32.mrf.mxu3  ;;  %v10633_v27 = vld [vmem:[#allocation19_spill] sm:$0xff] }
 0x418   : > { %v3216_v43 = vpop.permute.xlu0 %3215  ;;  %4357 = vmatmul.f32.gmra.mxu0 %v3621_v36  ;;  %v3607_v14 = vld [vmem:[#allocation3 + $0x518] sm:$0xff]  ;;  %v4099_v60 = vadd.f32 %v8430_v39, %v10633_v27  ;;  %v3553_v56 = vld [vmem:[#allocation3 + $0x368] sm:$0xff] }
 0x419   : > { %3329 = vst.msk [vmem:[#allocation3 + $0x540] sm:$0xff] %vm2115_vm1, %v3216_v43  ;;  %4512 = vmatmul.f32.gmra.mxu1 %v3607_v14  ;;  %6178 = vmatmul.msk.f32.gmra.mxu2 %vm569_vm0, %v3548_v28  ;;  %v10634_v28 = vld [vmem:[#allocation15_spill] sm:$0xff] }
 0x41a   : > { %v4093_v33 = vadd.f32 %v8393_v10, %v10634_v28  ;;  %v4263_v47 = vadd.f32 %v8436_v44, %v4099_v60  ;;  %v2207_v44 = vld [vmem:[#allocation2 + $0x1a8] sm:$0xff] }
 0x41b   : > { %2256 = vst.msk [vmem:[#allocation3 + $0x670] sm:$0xff] %vm569_vm0, %v2207_v44 }
 0x41c   : > { %v4593_v21 = vpop.f32.mrf.mxu2  ;;  %v8806_v0 = vpop.f32.mrf.mxu0  ;;  %4777 = vrot.lane.b32.xlu2 %v8800_v61, %s6272_s19  ;;  %v4257_v43 = vadd.f32 %v8401_v3, %v4093_v33  ;;  %v4427_v62 = vadd.f32 %v8501_v18, %v4263_v47  ;;  %3422 = vst.msk [vmem:[#allocation3 + $0x458] sm:$0xff] %vm569_vm0, %v2207_v44 }
 0x41d   : > { %v8804_v17 = vadd.f32 %v4593_v21, %v4430_v52  ;;  %v2437_v45 = vpop.permute.xlu1 %2436  ;;  %v3625_v20 = vld [vmem:[#allocation3 + $0x5a8] sm:$0xff] }
 0x41e   : > { %3245 = vrot.lane.b32.xlu0 %v3099_v4, %s6271_s16  ;;  %v8813_v24 = vpop.f32.mrf.mxu1  ;;  %v2830_v39 = vpop.permute.xlu2 %2829  ;;  %2546 = vst.msk [vmem:[#allocation3 + $0x5d0] sm:$0xff] %vm2115_vm1, %v2437_v45  ;;  %v3626_v36 = vld [vmem:[#allocation3 + $0x5b0] sm:$0xff]  ;;  %v4421_v52 = vadd.f32 %v8454_v34, %v4257_v43  ;;  %v8828_v3 = vadd.f32 %v4590_v49, %v4427_v62  ;;  %v10635_v21 = vld [vmem:[#allocation23_spill] sm:$0xff] }
 0x41f   : > { %4785 = vrot.lane.b32.xlu1 %v8804_v17, %s6272_s19  ;;  %4196 = vmatmul.f32.gmra.mxu3 %v3625_v20  ;;  %2939 = vst.msk [vmem:[#allocation3 + $0x5d8] sm:$0xff] %vm2115_vm1, %v2830_v39  ;;  %v8825_v4 = vpop.f32.mrf.mxu3  ;;  %v4105_v27 = vadd.f32 %v8476_v32, %v10635_v21  ;;  %v10636_v20 = vld [vmem:[#allocation25_spill] sm:$0xff] }
 0x420   : > { %v3218_v10 = vpop.permute.xlu0 %3217  ;;  %4360 = vmatmul.f32.gmra.mxu0 %v3626_v36  ;;  %v3612_v14 = vld [vmem:[#allocation3 + $0x540] sm:$0xff]  ;;  %v8834_v18 = vadd.f32 %v8736_v50, %v4421_v52  ;;  %v4108_v32 = vadd.f32 %v8499_v55, %v10636_v20  ;;  %v3558_v36 = vld [vmem:[#allocation3 + $0x390] sm:$0xff]  ;;  %v3563_v20 = vld [vmem:[#allocation3 + $0x3b8] sm:$0xff] }
 0x421   : > { %3330 = vst.msk [vmem:[#allocation3 + $0x568] sm:$0xff] %vm2115_vm1, %v3218_v10  ;;  %4515 = vmatmul.f32.gmra.mxu1 %v3612_v14  ;;  %6179 = vmatmul.msk.f32.gmra.mxu2 %vm569_vm0, %v3553_v56  ;;  %v4269_v34 = vadd.f32 %v8473_v7, %v4105_v27 }
 0x422   : > { %v4272_v43 = vadd.f32 %v8491_v19, %v4108_v32 }
 0x423   : > { %v4433_v55 = vadd.f32 %v8542_v30, %v4269_v34 }
 0x424   : > { %v4596_v60 = vpop.f32.mrf.mxu2  ;;  %v4316_v28 = vpop.f32.mrf.mxu0  ;;  %4783 = vrot.lane.b32.xlu2 %v8828_v3, %s6272_s19  ;;  %v4436_v14 = vadd.f32 %v8562_v41, %v4272_v43 }
 0x425   : > { %v2439_v49 = vpop.permute.xlu1 %2438  ;;  %v3630_v45 = vld [vmem:[#allocation3 + $0x5d0] sm:$0xff]  ;;  %v8853_v62 = vadd.f32 %v4596_v60, %v4433_v55 }
 0x426   : > { %v8839_v33 = vpop.f32.mrf.mxu1  ;;  %4779 = vrot.lane.b32.xlu0 %v8834_v18, %s6272_s19  ;;  %v2832_v47 = vpop.permute.xlu2 %2831  ;;  %2547 = vst.msk [vmem:[#allocation3 + $0x5f8] sm:$0xff] %vm2115_vm1, %v2439_v49  ;;  %v3631_v50 = vld [vmem:[#allocation3 + $0x5d8] sm:$0xff]  ;;  %v10637_v49 = vld [vmem:[#allocation26_spill] sm:$0xff] }
 0x427   : > { %4199 = vmatmul.f32.gmra.mxu3 %v3630_v45  ;;  %2940 = vst.msk [vmem:[#allocation3 + $0x600] sm:$0xff] %vm2115_vm1, %v2832_v47  ;;  %v4152_v10 = vpop.f32.mrf.mxu3  ;;  %v4111_v41 = vadd.f32 %v8516_v40, %v10637_v49 }
 0x428   : > { %v3220_v39 = vpop.permute.xlu0 %3219  ;;  %4363 = vmatmul.f32.gmra.mxu0 %v3631_v50  ;;  %v3617_v7 = vld [vmem:[#allocation3 + $0x568] sm:$0xff]  ;;  %v4153_v56 = vadd.f32 %v4152_v10, %v8205_v38  ;;  %v10638_v10 = vld [vmem:[#allocation28_spill] sm:$0xff] }
 0x429   : > { %3331 = vst.msk [vmem:[#allocation3 + $0x590] sm:$0xff] %vm2115_vm1, %v3220_v39  ;;  %4518 = vmatmul.f32.gmra.mxu1 %v3617_v7  ;;  %6180 = vmatmul.msk.f32.gmra.mxu2 %vm569_vm0, %v3558_v36  ;;  %v4275_v32 = vadd.f32 %v8510_v22, %v4111_v41  ;;  %v4114_v22 = vadd.f32 %v8544_v59, %v10638_v10 }
 0x42a   : > { %v8859_v19 = vadd.f32 %v4316_v28, %v4153_v56 }
 0x42b   : > { %v4439_v47 = vadd.f32 %v8586_v51, %v4275_v32 }
 0x42c   : > { %v4599_v44 = vpop.f32.mrf.mxu2  ;;  %v8857_v21 = vpop.f32.mrf.mxu0 }
 0x42d   : > { %v8855_v52 = vadd.f32 %v4599_v44, %v4436_v14  ;;  %v2441_v30 = vpop.permute.xlu1 %2440  ;;  %v3635_v34 = vld [vmem:[#allocation3 + $0x5f8] sm:$0xff] }
 0x42e   : > { %v8861_v27 = vpop.f32.mrf.mxu1  ;;  %4787 = vrot.lane.b32.xlu0 %v8853_v62, %s6272_s19  ;;  %v2834_v38 = vpop.permute.xlu2 %2833  ;;  %2548 = vst.msk [vmem:[#allocation3 + $0x620] sm:$0xff] %vm2115_vm1, %v2441_v30  ;;  %v3636_v60 = vld [vmem:[#allocation3 + $0x600] sm:$0xff] }
 0x42f   : > { %4789 = vrot.lane.b32.xlu1 %v8855_v52, %s6272_s19  ;;  %4202 = vmatmul.f32.gmra.mxu3 %v3635_v34  ;;  %2941 = vst.msk [vmem:[#allocation3 + $0x628] sm:$0xff] %vm2115_vm1, %v2834_v38  ;;  %v8874_v40 = vpop.f32.mrf.mxu3  ;;  %v3568_v30 = vld [vmem:[#allocation3 + $0x3e0] sm:$0xff]  ;;  %v4278_v34 = vadd.f32 %v8532_v26, %v4114_v22  ;;  %v4117_v38 = vadd.f32 %v8566_v5, %v7928_v9  ;;  %v3573_v5 = vld [vmem:[#allocation3 + $0x408] sm:$0xff] }
 0x430   : > { %v3222_v28 = vpop.permute.xlu0 %3221  ;;  %4366 = vmatmul.f32.gmra.mxu0 %v3636_v60  ;;  %v3622_v45 = vld [vmem:[#allocation3 + $0x590] sm:$0xff] }
 0x431   : > { %3332 = vst.msk [vmem:[#allocation3 + $0x5b8] sm:$0xff] %vm2115_vm1, %v3222_v28  ;;  %4521 = vmatmul.f32.gmra.mxu1 %v3622_v45  ;;  %6181 = vmatmul.msk.f32.gmra.mxu2 %vm569_vm0, %v3563_v20  ;;  %v4442_v49 = vadd.f32 %v8619_v58, %v4278_v34 }
 0x434   : > { %v4602_v50 = vpop.f32.mrf.mxu2  ;;  %v8879_v7 = vpop.f32.mrf.mxu0 }
 0x435   : > { %v8877_v39 = vadd.f32 %v4602_v50, %v4439_v47  ;;  %v2443_v43 = vpop.permute.xlu1 %2442  ;;  %v3640_v55 = vld [vmem:[#allocation3 + $0x620] sm:$0xff]  ;;  %v2994_v50 = vld [vmem:[#allocation2 + $0x240] sm:$0xff] }
 0x436   : > { %v8881_v36 = vpop.f32.mrf.mxu1  ;;  %v2836_v14 = vpop.permute.xlu2 %2835  ;;  %2549 = vst.msk [vmem:[#allocation3 + $0x648] sm:$0xff] %vm2115_vm1, %v2443_v43  ;;  %v3641_v51 = vld [vmem:[#allocation3 + $0x628] sm:$0xff]  ;;  %v4281_v43 = vadd.f32 %v8558_v23, %v4117_v38 }
 0x437   : > { %4791 = vrot.lane.b32.xlu2 %v8877_v39, %s6272_s19  ;;  %4205 = vmatmul.f32.gmra.mxu3 %v3640_v55  ;;  %2942 = vst.msk [vmem:[#allocation3 + $0x650] sm:$0xff] %vm2115_vm1, %v2836_v14  ;;  %v8892_v59 = vpop.f32.mrf.mxu3  ;;  %v4120_v14 = vadd.f32 %v8594_v13, %v7943_v6  ;;  %v3578_v13 = vld [vmem:[#allocation3 + $0x430] sm:$0xff] }
 0x438   : > { %v3224_v56 = vpop.permute.xlu0 %3223  ;;  %4369 = vmatmul.f32.gmra.mxu0 %v3641_v51  ;;  %v3627_v44 = vld [vmem:[#allocation3 + $0x5b8] sm:$0xff]  ;;  %3043 = vst.msk [vmem:[#allocation3 + $0x6a8] sm:$0xff] %vm569_vm0, %v2994_v50  ;;  %v4445_v10 = vadd.f32 %v8643_v42, %v4281_v43 }
 0x439   : > { %3333 = vst.msk [vmem:[#allocation3 + $0x5e0] sm:$0xff] %vm2115_vm1, %v3224_v56  ;;  %4524 = vmatmul.f32.gmra.mxu1 %v3627_v44  ;;  %6182 = vmatmul.msk.f32.gmra.mxu2 %vm569_vm0, %v3568_v30  ;;  %v3583_v50 = vld [vmem:[#allocation3 + $0x458] sm:$0xff] }
 0x43c   : > { %v4605_v41 = vpop.f32.mrf.mxu2  ;;  %v8899_v28 = vpop.f32.mrf.mxu0 }
 0x43d   : > { %v8897_v60 = vadd.f32 %v4605_v41, %v4442_v49  ;;  %v2445_v26 = vpop.permute.xlu1 %2444  ;;  %v3645_v20 = vld [vmem:[#allocation3 + $0x648] sm:$0xff]  ;;  %v4284_v41 = vadd.f32 %v8580_v63, %v4120_v14 }
 0x43e   : > { %v8901_v45 = vpop.f32.mrf.mxu1  ;;  %v2838_v32 = vpop.permute.xlu2 %2837  ;;  %2550 = vst.msk [vmem:[#allocation3 + $0x670] sm:$0xff] %vm2115_vm1, %v2445_v26  ;;  %v3646_v58 = vld [vmem:[#allocation3 + $0x650] sm:$0xff] }
 0x43f   : > { %4793 = vrot.lane.b32.xlu2 %v8897_v60, %s6272_s19  ;;  %4208 = vmatmul.f32.gmra.mxu3 %v3645_v20  ;;  %2943 = vst.msk [vmem:[#allocation3 + $0x678] sm:$0xff] %vm2115_vm1, %v2838_v32  ;;  %v8910_v55 = vpop.f32.mrf.mxu3  ;;  %v4448_v26 = vadd.f32 %v8666_v1, %v4284_v41  ;;  %v4123_v32 = vadd.f32 %v8624_v15, %v7969_v11 }
 0x440   : > { %v3226_v47 = vpop.permute.xlu0 %3225  ;;  %4372 = vmatmul.f32.gmra.mxu0 %v3646_v58  ;;  %v3632_v9 = vld [vmem:[#allocation3 + $0x5e0] sm:$0xff] }
 0x441   : > { %3334 = vst.msk [vmem:[#allocation3 + $0x608] sm:$0xff] %vm2115_vm1, %v3226_v47  ;;  %4527 = vmatmul.f32.gmra.mxu1 %v3632_v9  ;;  %6183 = vmatmul.msk.f32.gmra.mxu2 %vm569_vm0, %v3573_v5 }
 0x444   : > { %v4608_v22 = vpop.f32.mrf.mxu2  ;;  %v8918_v56 = vpop.f32.mrf.mxu0 }
 0x445   : > { %v8916_v51 = vadd.f32 %v4608_v22, %v4445_v10  ;;  %v2447_v44 = vpop.permute.xlu1 %2446  ;;  %v3650_v30 = vld [vmem:[#allocation3 + $0x670] sm:$0xff]  ;;  %v4287_v10 = vadd.f32 %v8609_v25, %v4123_v32  ;;  %v10640_v32 = vld [vmem:[#allocation43_spill] sm:$0xff] }
 0x446   : > { %v8920_v23 = vpop.f32.mrf.mxu1  ;;  %v2840_v34 = vpop.permute.xlu2 %2839  ;;  %2551 = vst.msk [vmem:[#allocation3 + $0x698] sm:$0xff] %vm2115_vm1, %v2447_v44  ;;  %v3651_v42 = vld [vmem:[#allocation3 + $0x678] sm:$0xff] }
 0x447   : > { %4795 = vrot.lane.b32.xlu1 %v8916_v51, %s6272_s19  ;;  %4211 = vmatmul.f32.gmra.mxu3 %v3650_v30  ;;  %2944 = vst.msk [vmem:[#allocation3 + $0x6a0] sm:$0xff] %vm2115_vm1, %v2840_v34  ;;  %v8929_v38 = vpop.f32.mrf.mxu3  ;;  %v4451_v14 = vadd.f32 %v8690_v37, %v4287_v10  ;;  %v10639_v30 = vld [vmem:[#allocation44_spill] sm:$0xff] }
 0x448   : > { %v3228_v49 = vpop.permute.xlu0 %3227  ;;  %4375 = vmatmul.f32.gmra.mxu0 %v3651_v42  ;;  %v3637_v6 = vld [vmem:[#allocation3 + $0x608] sm:$0xff]  ;;  %v4126_v34 = vadd.f32 %v10639_v30, %v7993_v8 }
 0x449   : > { %3335 = vst.msk [vmem:[#allocation3 + $0x630] sm:$0xff] %vm2115_vm1, %v3228_v49  ;;  %4530 = vmatmul.f32.gmra.mxu1 %v3637_v6  ;;  %6184 = vmatmul.msk.f32.gmra.mxu2 %vm569_vm0, %v3578_v13 }
 0x44c   : > { %v4611_v20 = vpop.f32.mrf.mxu2  ;;  %v8936_v47 = vpop.f32.mrf.mxu0 }
 0x44d   : > { %v8934_v58 = vadd.f32 %v4611_v20, %v4448_v26  ;;  %v2449_v63 = vpop.permute.xlu1 %2448  ;;  %v3655_v5 = vld [vmem:[#allocation3 + $0x698] sm:$0xff]  ;;  %v3588_v20 = vld [vmem:[#allocation3 + $0x480] sm:$0xff] }
 0x44e   : > { %v8938_v9 = vpop.f32.mrf.mxu1  ;;  %v2842_v43 = vpop.permute.xlu2 %2841  ;;  %2552 = vst.msk [vmem:[#allocation3 + $0x6c0] sm:$0xff] %vm2115_vm1, %v2449_v63  ;;  %v3656_v1 = vld [vmem:[#allocation3 + $0x6a0] sm:$0xff]  ;;  %v4290_v63 = vadd.f32 %v10640_v32, %v4126_v34 }
 0x44f   : > { %4797 = vrot.lane.b32.xlu2 %v8934_v58, %s6272_s19  ;;  %4214 = vmatmul.f32.gmra.mxu3 %v3655_v5  ;;  %2945 = vst.msk [vmem:[#allocation3 + $0x6c8] sm:$0xff] %vm2115_vm1, %v2842_v43  ;;  %v8947_v22 = vpop.f32.mrf.mxu3 }
 0x450   : > { %v3230_v11 = vpop.permute.xlu0 %3229  ;;  %4378 = vmatmul.f32.gmra.mxu0 %v3656_v1  ;;  %v3642_v15 = vld [vmem:[#allocation3 + $0x630] sm:$0xff] }
 0x451   : > { %3336 = vst.msk [vmem:[#allocation3 + $0x658] sm:$0xff] %vm2115_vm1, %v3230_v11  ;;  %4533 = vmatmul.f32.gmra.mxu1 %v3642_v15  ;;  %6185 = vmatmul.msk.f32.gmra.mxu2 %vm569_vm0, %v3583_v50  ;;  %v10641_v50 = vld [vmem:[#allocation52_spill] sm:$0xff]  ;;  %v10642_v11 = vld [vmem:[#allocation30_spill] sm:$0xff]  ;;  %v10643_v15 = vld [vmem:[#allocation47_spill] sm:$0xff] }
 0x452   : > { %v4454_v43 = vadd.f32 %v10641_v50, %v4290_v63  ;;  %v4129_v10 = vadd.f32 %v10643_v15, %v10642_v11  ;;  %v10646_v11 = vld [vmem:[#allocation50_spill] sm:$0xff] }
 0x454   : > { %v4614_v44 = vpop.f32.mrf.mxu2  ;;  %v8954_v49 = vpop.f32.mrf.mxu0 }
 0x455   : > { %v8952_v42 = vadd.f32 %v4614_v44, %v4451_v14  ;;  %v2451_v25 = vpop.permute.xlu1 %2450  ;;  %v3660_v13 = vld [vmem:[#allocation3 + $0x6c0] sm:$0xff] }
 0x456   : > { %v8956_v6 = vpop.f32.mrf.mxu1  ;;  %v2844_v41 = vpop.permute.xlu2 %2843  ;;  %2553 = vst.msk [vmem:[#allocation3 + $0x6e8] sm:$0xff] %vm2115_vm1, %v2451_v25  ;;  %v3661_v37 = vld [vmem:[#allocation3 + $0x6c8] sm:$0xff] }
 0x457   : > { %4799 = vrot.lane.b32.xlu0 %v8952_v42, %s6272_s19  ;;  %4217 = vmatmul.f32.gmra.mxu3 %v3660_v13  ;;  %2946 = vst.msk [vmem:[#allocation3 + $0x6f0] sm:$0xff] %vm2115_vm1, %v2844_v41 }
 0x458   : > { %v3232_v26 = vpop.permute.xlu0 %3231  ;;  %4381 = vmatmul.f32.gmra.mxu0 %v3661_v37  ;;  %v3647_v8 = vld [vmem:[#allocation3 + $0x658] sm:$0xff] }
 0x459   : > { %3337 = vst.msk [vmem:[#allocation3 + $0x680] sm:$0xff] %vm2115_vm1, %v3232_v26  ;;  %4536 = vmatmul.f32.gmra.mxu1 %v3647_v8  ;;  %6186 = vmatmul.msk.f32.gmra.mxu2 %vm569_vm0, %v3588_v20  ;;  %v8965_v5 = vpop.f32.mrf.mxu3  ;;  %v3593_v8 = vld [vmem:[#allocation3 + $0x4a8] sm:$0xff]  ;;  %v10644_v20 = vld [vmem:[#allocation46_spill] sm:$0xff] }
 0x45a   : > { %v4293_v32 = vadd.f32 %v10644_v20, %v4129_v10  ;;  %v3598_v20 = vld [vmem:[#allocation3 + $0x4d0] sm:$0xff] }
 0x45c   : > { %v4617_v1 = vpop.f32.mrf.mxu2  ;;  %v8972_v44 = vpop.f32.mrf.mxu0  ;;  %v4457_v50 = vadd.f32 %v8729_v57, %v4293_v32  ;;  %v2214_v32 = vld [vmem:[#allocation2 + $0x1f0] sm:$0xff] }
 0x45d   : > { %v8970_v14 = vadd.f32 %v4617_v1, %v4454_v43  ;;  %v2453_v34 = vpop.permute.xlu1 %2452  ;;  %v3665_v25 = vld [vmem:[#allocation3 + $0x6e8] sm:$0xff]  ;;  %2263 = vst.msk [vmem:[#allocation3 + $0x788] sm:$0xff] %vm569_vm0, %v2214_v32 }
 0x45e   : > { %v8974_v30 = vpop.f32.mrf.mxu1  ;;  %v2846_v13 = vpop.permute.xlu2 %2845  ;;  %2554 = vst.msk [vmem:[#allocation3 + $0x710] sm:$0xff] %vm2115_vm1, %v2453_v34  ;;  %v3666_v41 = vld [vmem:[#allocation3 + $0x6f0] sm:$0xff]  ;;  %v10645_v1 = vld [vmem:[#allocation31_spill] sm:$0xff] }
 0x45f   : > { %4801 = vrot.lane.b32.xlu0 %v8970_v14, %s6272_s19  ;;  %4220 = vmatmul.f32.gmra.mxu3 %v3665_v25  ;;  %2947 = vst.msk [vmem:[#allocation3 + $0x718] sm:$0xff] %vm2115_vm1, %v2846_v13  ;;  %v4132_v15 = vadd.f32 %v10646_v11, %v10645_v1 }
 0x460   : > { %v3234_v37 = vpop.permute.xlu0 %3233  ;;  %4384 = vmatmul.f32.gmra.mxu0 %v3666_v41  ;;  %v3652_v26 = vld [vmem:[#allocation3 + $0x680] sm:$0xff]  ;;  %3429 = vst.msk [vmem:[#allocation3 + $0x570] sm:$0xff] %vm569_vm0, %v2214_v32 }
 0x461   : > { %3338 = vst.msk [vmem:[#allocation3 + $0x6a8] sm:$0xff] %vm2115_vm1, %v3234_v37  ;;  %4539 = vmatmul.f32.gmra.mxu1 %v3652_v26  ;;  %6187 = vmatmul.msk.f32.gmra.mxu2 %vm569_vm0, %v3593_v8  ;;  %v8983_v63 = vpop.f32.mrf.mxu3 }
 0x464   : > { %v4620_v43 = vpop.f32.mrf.mxu2 }
 0x465   : > { %v8988_v34 = vadd.f32 %v4620_v43, %v4457_v50  ;;  %v8990_v25 = vpop.f32.mrf.mxu0  ;;  %v2455_v10 = vpop.permute.xlu1 %2454  ;;  %v3670_v41 = vld [vmem:[#allocation3 + $0x710] sm:$0xff]  ;;  %v10648_v50 = vld [vmem:[#allocation49_spill] sm:$0xff] }
 0x466   : > { %10647 = vst [vmem:[#allocation18_spill] sm:$0xff] %v8990_v25  ;;  %v8992_v13 = vpop.f32.mrf.mxu1  ;;  %v2848_v37 = vpop.permute.xlu2 %2847  ;;  %v3671_v57 = vld [vmem:[#allocation3 + $0x718] sm:$0xff]  ;;  %v4296_v43 = vadd.f32 %v10648_v50, %v4132_v15 }
 0x467   : > { %4803 = vrot.lane.b32.xlu1 %v8988_v34, %s6272_s19  ;;  %2555 = vst.msk [vmem:[#allocation3 + $0x738] sm:$0xff] %vm2115_vm1, %v2455_v10  ;;  %4223 = vmatmul.f32.gmra.mxu3 %v3670_v41  ;;  %v3603_v50 = vld [vmem:[#allocation3 + $0x4f8] sm:$0xff] }
 0x468   : > { %2948 = vst.msk [vmem:[#allocation3 + $0x740] sm:$0xff] %vm2115_vm1, %v2848_v37  ;;  %v3236_v26 = vpop.permute.xlu0 %3235  ;;  %4387 = vmatmul.f32.gmra.mxu0 %v3671_v57  ;;  %v3657_v8 = vld [vmem:[#allocation3 + $0x6a8] sm:$0xff]  ;;  %v4460_v11 = vadd.f32 %v8746_v54, %v4296_v43 }
 0x469   : > { %3339 = vst.msk [vmem:[#allocation3 + $0x6d0] sm:$0xff] %vm2115_vm1, %v3236_v26  ;;  %4542 = vmatmul.f32.gmra.mxu1 %v3657_v8  ;;  %6188 = vmatmul.msk.f32.gmra.mxu2 %vm569_vm0, %v3598_v20 }
 0x46a   : > { %v9001_v1 = vpop.f32.mrf.mxu3 }
 0x46c   : > { %v4623_v10 = vpop.f32.mrf.mxu2 }
 0x46d   : > { %v9006_v41 = vadd.f32 %v4623_v10, %v4460_v11  ;;  %v9008_v37 = vpop.f32.mrf.mxu0  ;;  %v2457_v15 = vpop.permute.xlu1 %2456 }
 0x46e   : > { %10649 = vst [vmem:[#allocation13_spill] sm:$0xff] %v9008_v37  ;;  %v9010_v57 = vpop.f32.mrf.mxu1  ;;  %v3675_v26 = vld [vmem:[#allocation3 + $0x738] sm:$0xff]  ;;  %v3244_v8 = vpop.permute.xlu2 %3243 }
 0x46f   : > { %4805 = vrot.lane.b32.xlu2 %v9006_v41, %s6272_s19  ;;  %2556 = vst.msk [vmem:[#allocation3 + $0x760] sm:$0xff] %vm2115_vm1, %v2457_v15  ;;  %4226 = vmatmul.f32.gmra.mxu3 %v3675_v26  ;;  %v3676_v20 = vld [vmem:[#allocation3 + $0x740] sm:$0xff] }
 0x470   : > { %3343 = vst.msk [vmem:[#allocation3 + $0x770] sm:$0xff] %vm2115_vm1, %v3244_v8  ;;  %v3238_v54 = vpop.permute.xlu0 %3237  ;;  %4390 = vmatmul.f32.gmra.mxu0 %v3676_v20  ;;  %v3662_v32 = vld [vmem:[#allocation3 + $0x6d0] sm:$0xff] }
 0x471   : > { %3340 = vst.msk [vmem:[#allocation3 + $0x6f8] sm:$0xff] %vm2115_vm1, %v3238_v54  ;;  %4545 = vmatmul.f32.gmra.mxu1 %v3662_v32  ;;  %6189 = vmatmul.msk.f32.gmra.mxu2 %vm569_vm0, %v3603_v50  ;;  %v3608_v32 = vld [vmem:[#allocation3 + $0x520] sm:$0xff] }
 0x472   : > { %v9018_v43 = vpop.f32.mrf.mxu3 }
 0x473   : > { %10650 = vst [vmem:[#allocation22_spill] sm:$0xff] %v9018_v43 }
 0x474   : > { %v4626_v11 = vpop.f32.mrf.mxu2 }
 0x475   : > { %v9020_v10 = vpop.f32.mrf.mxu0  ;;  %v2850_v15 = vpop.permute.xlu1 %2849 }
 0x476   : > { %10651 = vst [vmem:[#allocation19_spill] sm:$0xff] %v9020_v10  ;;  %v9022_v37 = vpop.f32.mrf.mxu1  ;;  %v3680_v26 = vld [vmem:[#allocation3 + $0x760] sm:$0xff]  ;;  %v4778_v8 = vpop.permute.xlu2 %4777 }
 0x477   : > { %2949 = vst.msk [vmem:[#allocation3 + $0x768] sm:$0xff] %vm2115_vm1, %v2850_v15  ;;  %4229 = vmatmul.f32.gmra.mxu3 %v3680_v26  ;;  %v9026_v25 = vmax.f32 %v8800_v61, %v4778_v8  ;;  %v4463_v61 = vadd.f32 %v8763_v16, %v8725_v2 }
 0x478   : > { %v3240_v20 = vpop.permute.xlu0 %3239  ;;  %v3667_v54 = vld [vmem:[#allocation3 + $0x6f8] sm:$0xff] }
 0x479   : > { %10652 = vst [vmem:[#allocation15_spill] sm:$0xff] %v9026_v25  ;;  %4548 = vmatmul.f32.gmra.mxu1 %v3667_v54  ;;  %6190 = vmatmul.msk.f32.gmra.mxu2 %vm569_vm0, %v3608_v32 }
 0x47a   : > { %3341 = vst.msk [vmem:[#allocation3 + $0x720] sm:$0xff] %vm2115_vm1, %v3240_v20  ;;  %5022 = vrot.lane.b32.xlu1 %v9026_v25, %s6271_s16  ;;  %v9032_v50 = vpop.f32.mrf.mxu3  ;;  %v9043_v20 = vadd.f32 %v4626_v11, %v4463_v61  ;;  %v3613_v25 = vld [vmem:[#allocation3 + $0x548] sm:$0xff]  ;;  %v3618_v11 = vld [vmem:[#allocation3 + $0x570] sm:$0xff] }
 0x47b   : > { %10653 = vst [vmem:[#allocation23_spill] sm:$0xff] %v9032_v50 }
 0x47c   : > { %v9034_v10 = vpop.f32.mrf.mxu2  ;;  %10655 = vst [vmem:[#allocation26_spill] sm:$0xff] %v9043_v20 }
 0x47d   : > { %v9036_v15 = vpop.f32.mrf.mxu0  ;;  %v2852_v8 = vpop.permute.xlu1 %2851 }
 0x47e   : > { %10654 = vst [vmem:[#allocation25_spill] sm:$0xff] %v9036_v15  ;;  %v9040_v26 = vpop.f32.mrf.mxu1  ;;  %v3681_v43 = vld [vmem:[#allocation3 + $0x768] sm:$0xff] }
 0x47f   : > { %2950 = vst.msk [vmem:[#allocation3 + $0x790] sm:$0xff] %vm2115_vm1, %v2852_v8  ;;  %4393 = vmatmul.f32.gmra.mxu0 %v3681_v43 }
 0x480   : > { %v3242_v54 = vpop.permute.xlu0 %3241 }
 0x481   : > { %v3672_v32 = vld [vmem:[#allocation3 + $0x720] sm:$0xff]  ;;  %3342 = vst.msk [vmem:[#allocation3 + $0x748] sm:$0xff] %vm2115_vm1, %v3242_v54  ;;  %6191 = vmatmul.msk.f32.gmra.mxu2 %vm569_vm0, %v3613_v25 }
 0x482   : > { %4551 = vmatmul.f32.gmra.mxu1 %v3672_v32  ;;  %4807 = vrot.lane.b32.xlu1 %v9043_v20, %s6272_s19  ;;  %v9049_v2 = vpop.f32.mrf.mxu3 }
 0x483   : > { %10656 = vst [vmem:[#allocation28_spill] sm:$0xff] %v9049_v2  ;;  %v10661_v2 = vld [vmem:[#allocation7_spill] sm:$0xff] }
 0x484   : > { %v4632_v16 = vpop.f32.mrf.mxu2  ;;  %v4147_v20 = vadd.f32 %v8796_v29, %v10661_v2 }
 0x485   : > { %v9051_v15 = vpop.f32.mrf.mxu0  ;;  %v4782_v43 = vpop.permute.xlu1 %4781 }
 0x486   : > { %10657 = vst [vmem:[#allocation44_spill] sm:$0xff] %v9051_v15  ;;  %v9053_v8 = vpop.f32.mrf.mxu1  ;;  %v3686_v61 = vld [vmem:[#allocation3 + $0x790] sm:$0xff]  ;;  %v9056_v50 = vmax.f32 %v8770_v31, %v4782_v43  ;;  %v4469_v43 = vadd.f32 %v8813_v24, %v8758_v48  ;;  %v4784_v24 = vpop.permute.xlu2 %4783 }
 0x487   : > { %10658 = vst [vmem:[#allocation43_spill] sm:$0xff] %v9053_v8  ;;  %4396 = vmatmul.f32.gmra.mxu0 %v3686_v61 }
 0x488   : > { %10659 = vst [vmem:[#allocation52_spill] sm:$0xff] %v9056_v50  ;;  %v2459_v54 = vpop.permute.xlu0 %2458  ;;  %v3677_v32 = vld [vmem:[#allocation3 + $0x748] sm:$0xff]  ;;  %5026 = vrot.lane.b32.xlu2 %v9056_v50, %s6271_s16  ;;  %v4311_v50 = vadd.f32 %v8779_v53, %v4147_v20 }
 0x489   : > { %2557 = vst.msk [vmem:[#allocation3 + $0x788] sm:$0xff] %vm2115_vm1, %v2459_v54  ;;  %6192 = vmatmul.msk.f32.gmra.mxu2 %vm569_vm0, %v3618_v11  ;;  %v3682_v54 = vld [vmem:[#allocation3 + $0x770] sm:$0xff] }
 0x48a   : > { %4554 = vmatmul.f32.gmra.mxu1 %v3677_v32  ;;  %v9062_v25 = vpop.f32.mrf.mxu3  ;;  %v9074_v32 = vadd.f32 %v4632_v16, %v4469_v43  ;;  %v4475_v29 = vadd.f32 %v8861_v27, %v4311_v50  ;;  %v10663_v16 = vld [vmem:[#allocation6_spill] sm:$0xff] }
 0x48b   : > { %10660 = vst [vmem:[#allocation30_spill] sm:$0xff] %v9062_v25  ;;  %v3623_v25 = vld [vmem:[#allocation3 + $0x598] sm:$0xff]  ;;  %v4150_v43 = vadd.f32 %v8825_v4, %v10663_v16  ;;  %v3628_v50 = vld [vmem:[#allocation3 + $0x5c0] sm:$0xff] }
 0x48c   : > { %v9064_v15 = vpop.f32.mrf.mxu2 }
 0x48d   : > { %v9068_v31 = vpop.f32.mrf.mxu0 }
 0x48e   : > { %10662 = vst [vmem:[#allocation47_spill] sm:$0xff] %v9068_v31  ;;  %v9072_v61 = vpop.f32.mrf.mxu1 }
 0x490   : > { %v3246_v11 = vpop.permute.xlu0 %3245  ;;  %v3685_v8 = vld [vmem:[#allocation3 + $0x788] sm:$0xff]  ;;  %4811 = vrot.lane.b32.xlu2 %v9074_v32, %s6272_s19 }
 0x491   : > { %3344 = vst.msk [vmem:[#allocation3 + $0x798] sm:$0xff] %vm2115_vm1, %v3246_v11  ;;  %4232 = vmatmul.f32.gmra.mxu3 %v3685_v8  ;;  %6193 = vmatmul.msk.f32.gmra.mxu2 %vm569_vm0, %v3623_v25  ;;  %v4314_v11 = vadd.f32 %v8806_v0, %v4150_v43  ;;  %v3387_v43 = vld [vmem:[#allocation2 + $0x238] sm:$0xff] }
 0x492   : > { %4557 = vmatmul.f32.gmra.mxu1 %v3682_v54  ;;  %v9081_v48 = vpop.f32.mrf.mxu3  ;;  %3436 = vst.msk [vmem:[#allocation3 + $0x688] sm:$0xff] %vm569_vm0, %v3387_v43  ;;  %v3388_v43 = vld [vmem:[#allocation2 + $0x250] sm:$0xff] }
 0x493   : > { %3437 = vst.msk [vmem:[#allocation3 + $0x6b0] sm:$0xff] %vm569_vm0, %v3388_v43 }
 0x494   : > { %v4638_v2 = vpop.f32.mrf.mxu2 }
 0x495   : > { %v9086_v53 = vadd.f32 %v4638_v2, %v4475_v29  ;;  %v9088_v20 = vpop.f32.mrf.mxu0  ;;  %v4478_v29 = vadd.f32 %v8881_v36, %v4314_v11  ;;  %v4792_v2 = vpop.permute.xlu2 %4791  ;;  %v3633_v11 = vld [vmem:[#allocation3 + $0x5e8] sm:$0xff] }
 0x496   : > { %10664 = vst [vmem:[#allocation46_spill] sm:$0xff] %v9088_v20  ;;  %v9090_v8 = vpop.f32.mrf.mxu1 }
 0x497   : > { %4815 = vrot.lane.b32.xlu1 %v9086_v53, %s6272_s19 }
 0x498   : > { %v4780_v25 = vpop.permute.xlu0 %4779  ;;  %v3687_v54 = vld [vmem:[#allocation3 + $0x798] sm:$0xff] }
 0x499   : > { %v9096_v27 = vmax.f32 %v8834_v18, %v4780_v25  ;;  %6194 = vmatmul.msk.f32.gmra.mxu2 %vm569_vm0, %v3628_v50  ;;  %v4466_v18 = vadd.f32 %v8785_v35, %v8742_v46  ;;  %v10666_v35 = vld [vmem:[#allocation8_spill] sm:$0xff] }
 0x49a   : > { %4560 = vmatmul.f32.gmra.mxu1 %v3687_v54  ;;  %v9099_v4 = vpop.f32.mrf.mxu3 }
 0x49b   : > { %5024 = vrot.lane.b32.xlu0 %v9096_v27, %s6271_s16  ;;  %v9116_v36 = vadd.f32 %v9034_v10, %v4466_v18  ;;  %v4156_v10 = vadd.f32 %v8874_v40, %v10666_v35  ;;  %v4786_v40 = vpop.permute.xlu1 %4785 }
 0x49c   : > { %v4641_v16 = vpop.f32.mrf.mxu2 }
 0x49d   : > { %v9104_v20 = vadd.f32 %v4641_v16, %v4478_v29  ;;  %v9106_v31 = vpop.f32.mrf.mxu0  ;;  %v9133_v29 = vmax.f32 %v8877_v39, %v4792_v2  ;;  %v4794_v16 = vpop.permute.xlu2 %4793  ;;  %v3638_v2 = vld [vmem:[#allocation3 + $0x610] sm:$0xff] }
 0x49e   : > { %10665 = vst [vmem:[#allocation31_spill] sm:$0xff] %v9106_v31  ;;  %v9108_v0 = vpop.f32.mrf.mxu1  ;;  %v9147_v39 = vmax.f32 %v8897_v60, %v4794_v16 }
 0x49f   : > { %4817 = vrot.lane.b32.xlu1 %v9104_v20, %s6272_s19  ;;  %10667 = vst [vmem:[#allocation50_spill] sm:$0xff] %v9133_v29 }
 0x4a0   : > { %v4788_v25 = vpop.permute.xlu0 %4787 }
 0x4a1   : > { %v9119_v54 = vmax.f32 %v8853_v62, %v4788_v25  ;;  %6195 = vmatmul.msk.f32.gmra.mxu2 %vm569_vm0, %v3633_v11  ;;  %v4320_v25 = vadd.f32 %v8857_v21, %v4156_v10  ;;  %v9144_v11 = vmax.f32 %v8828_v3, %v4784_v24  ;;  %v4472_v10 = vadd.f32 %v8839_v33, %v8781_v12  ;;  %v10670_v12 = vld [vmem:[#allocation10_spill] sm:$0xff] }
 0x4a2   : > { %v9122_v50 = vpop.f32.mrf.mxu3  ;;  %v4162_v33 = vadd.f32 %v8910_v55, %v10670_v12 }
 0x4a3   : > { %4809 = vrot.lane.b32.xlu0 %v9116_v36, %s6272_s19  ;;  %5032 = vrot.lane.b32.xlu2 %v9119_v54, %s6271_s16  ;;  %v4484_v31 = vadd.f32 %v8920_v23, %v4320_v25  ;;  %v3389_v23 = vld [vmem:[#allocation2 + $0x258] sm:$0xff]  ;;  %v9169_v16 = vadd.f32 %v9064_v15, %v4472_v10  ;;  %v4790_v43 = vpop.permute.xlu1 %4789  ;;  %v3643_v25 = vld [vmem:[#allocation3 + $0x638] sm:$0xff] }
 0x4a4   : > { %v9128_v46 = vpop.f32.mrf.mxu2  ;;  %3438 = vst.msk [vmem:[#allocation3 + $0x6d8] sm:$0xff] %vm569_vm0, %v3389_v23  ;;  %v3390_v15 = vld [vmem:[#allocation2 + $0x260] sm:$0xff]  ;;  %v4326_v10 = vadd.f32 %v8899_v28, %v4162_v33  ;;  %v3391_v33 = vld [vmem:[#allocation2 + $0x268] sm:$0xff] }
 0x4a5   : > { %v9135_v62 = vpop.f32.mrf.mxu0  ;;  %3439 = vst.msk [vmem:[#allocation3 + $0x700] sm:$0xff] %vm569_vm0, %v3390_v15 }
 0x4a6   : > { %v9137_v18 = vpop.f32.mrf.mxu1  ;;  %v4490_v12 = vadd.f32 %v8956_v6, %v4326_v10  ;;  %v3653_v6 = vld [vmem:[#allocation3 + $0x688] sm:$0xff]  ;;  %3440 = vst.msk [vmem:[#allocation3 + $0x728] sm:$0xff] %vm569_vm0, %v3391_v33 }
 0x4a7   : > { %5036 = vrot.lane.b32.xlu1 %v9133_v29, %s6271_s16 }
 0x4a9   : > { %6196 = vmatmul.msk.f32.gmra.mxu2 %vm569_vm0, %v3638_v2 }
 0x4aa   : > { %v9150_v35 = vpop.f32.mrf.mxu3 }
 0x4ab   : > { %5028 = vrot.lane.b32.xlu0 %v9144_v11, %s6271_s16  ;;  %5038 = vrot.lane.b32.xlu2 %v9147_v39, %s6271_s16 }
 0x4ac   : > { %v4647_v21 = vpop.f32.mrf.mxu2 }
 0x4ad   : > { %v9157_v3 = vadd.f32 %v4647_v21, %v4484_v31  ;;  %v9159_v24 = vpop.f32.mrf.mxu0 }
 0x4ae   : > { %10668 = vst [vmem:[#allocation49_spill] sm:$0xff] %v9159_v24  ;;  %v9161_v60 = vpop.f32.mrf.mxu1  ;;  %v3648_v24 = vld [vmem:[#allocation3 + $0x660] sm:$0xff] }
 0x4af   : > { %4821 = vrot.lane.b32.xlu1 %v9157_v3, %s6272_s19 }
 0x4b1   : > { %6197 = vmatmul.msk.f32.gmra.mxu2 %vm569_vm0, %v3643_v25  ;;  %v9187_v25 = vmax.f32 %v8804_v17, %v4786_v40  ;;  %v10674_v17 = vld [vmem:[#allocation11_spill] sm:$0xff] }
 0x4b2   : > { %v9172_v31 = vpop.f32.mrf.mxu3  ;;  %v4165_v28 = vadd.f32 %v8929_v38, %v10674_v17  ;;  %v9214_v38 = vmax.f32 %v8855_v52, %v4790_v43 }
 0x4b3   : > { %10669 = vst [vmem:[#allocation7_spill] sm:$0xff] %v9172_v31  ;;  %4813 = vrot.lane.b32.xlu0 %v9169_v16, %s6272_s19 }
 0x4b4   : > { %v9176_v2 = vpop.f32.mrf.mxu2  ;;  %v4329_v10 = vadd.f32 %v8918_v56, %v4165_v28 }
 0x4b5   : > { %v9180_v21 = vpop.f32.mrf.mxu0 }
 0x4b6   : > { %10671 = vst [vmem:[#allocation6_spill] sm:$0xff] %v9180_v21  ;;  %v9182_v23 = vpop.f32.mrf.mxu1  ;;  %v4493_v17 = vadd.f32 %v8974_v30, %v4329_v10  ;;  %v4481_v30 = vadd.f32 %v8901_v45, %v8859_v19 }
 0x4b8   : > { %v9242_v10 = vadd.f32 %v9128_v46, %v4481_v30 }
 0x4b9   : > { %v4796_v31 = vpop.permute.xlu1 %4795  ;;  %6198 = vmatmul.msk.f32.gmra.mxu2 %vm569_vm0, %v3648_v24 }
 0x4ba   : > { %v9191_v29 = vmax.f32 %v8916_v51, %v4796_v31  ;;  %v9193_v55 = vpop.f32.mrf.mxu3  ;;  %v5545_v51 = vld [vmem:[%s10509_s5 + $0x78] sm:$0xff] }
 0x4bb   : > { %10673 = vst [vmem:[#allocation10_spill] sm:$0xff] %v9193_v55  ;;  %5030 = vrot.lane.b32.xlu0 %v9187_v25, %s6271_s16  ;;  %5733 = vmatpush.msrb.mxu3 %v5545_v51  ;;  %v10675_v51 = vld [vmem:[#allocation37_spill] sm:$0xff]  ;;  %v10676_v55 = vld [vmem:[#allocation12_spill] sm:$0xff] }
 0x4bc   : > { %10672 = vst [vmem:[#allocation8_spill] sm:$0xff] %v9191_v29  ;;  %v4653_v15 = vpop.f32.mrf.mxu2  ;;  %5040 = vrot.lane.b32.xlu2 %v9191_v29, %s6271_s16  ;;  %v4168_v33 = vadd.f32 %v8947_v22, %v10676_v55  ;;  %v3658_v22 = vld [vmem:[#allocation3 + $0x6b0] sm:$0xff]  ;;  %v10678_v55 = vld [vmem:[#allocation9_spill] sm:$0xff] }
 0x4bd   : > { %v9202_v40 = vadd.f32 %v4653_v15, %v4490_v12  ;;  %v4373_v24 = vpop.f32.mrf.mxu0  ;;  %v4798_v12 = vpop.permute.xlu2 %4797 }
 0x4be   : > { %v9207_v31 = vpop.f32.mrf.mxu1  ;;  %v9224_v56 = vmax.f32 %v8934_v58, %v4798_v12  ;;  %v4159_v58 = vadd.f32 %v8892_v59, %v10678_v55 }
 0x4bf   : > { %4825 = vrot.lane.b32.xlu1 %v9202_v40, %s6272_s19 }
 0x4c0   : > { %v4323_v59 = vadd.f32 %v8879_v7, %v4159_v58  ;;  %v3663_v7 = vld [vmem:[#allocation3 + $0x6d8] sm:$0xff] }
 0x4c1   : > { %6199 = vmatmul.msk.f32.gmra.mxu2 %vm569_vm0, %v3653_v6 }
 0x4c2   : > { %v4209_v15 = vpop.f32.mrf.mxu3 }
 0x4c3   : > { %5034 = vrot.lane.b32.xlu0 %v9214_v38, %s6271_s16  ;;  %v4210_v29 = vadd.f32 %v4209_v15, %v10675_v51 }
 0x4c4   : > { %v4656_v21 = vpop.f32.mrf.mxu2 }
 0x4c5   : > { %v9226_v52 = vadd.f32 %v4656_v21, %v4493_v17  ;;  %v9228_v43 = vpop.f32.mrf.mxu0  ;;  %v4374_v28 = vadd.f32 %v4373_v24, %v4210_v29  ;;  %v4332_v21 = vadd.f32 %v8936_v47, %v4168_v33  ;;  %v3392_v24 = vld [vmem:[#allocation2 + $0x270] sm:$0xff]  ;;  %v10680_v47 = vld [vmem:[#allocation14_spill] sm:$0xff]  ;;  %v4487_v33 = vadd.f32 %v8938_v9, %v4323_v59 }
 0x4c6   : > { %10677 = vst [vmem:[#allocation11_spill] sm:$0xff] %v9228_v43  ;;  %v9230_v6 = vpop.f32.mrf.mxu1  ;;  %v4171_v46 = vadd.f32 %v8965_v5, %v10680_v47 }
 0x4c7   : > { %4827 = vrot.lane.b32.xlu2 %v9226_v52, %s6272_s19  ;;  %5042 = vrot.lane.b32.xlu1 %v9224_v56, %s6271_s16  ;;  %3441 = vst.msk [vmem:[#allocation3 + $0x750] sm:$0xff] %vm569_vm0, %v3392_v24  ;;  %v4496_v45 = vadd.f32 %v8992_v13, %v4332_v21  ;;  %v3393_v13 = vld [vmem:[#allocation2 + $0x278] sm:$0xff] }
 0x4c8   : > { %v4335_v5 = vadd.f32 %v8954_v49, %v4171_v46  ;;  %3442 = vst.msk [vmem:[#allocation3 + $0x778] sm:$0xff] %vm569_vm0, %v3393_v13 }
 0x4c9   : > { %v4800_v29 = vpop.permute.xlu0 %4799  ;;  %6200 = vmatmul.msk.f32.gmra.mxu2 %vm569_vm0, %v3658_v22 }
 0x4ca   : > { %v9245_v19 = vpop.f32.mrf.mxu3  ;;  %v9255_v15 = vmax.f32 %v8952_v42, %v4800_v29  ;;  %v9270_v42 = vadd.f32 %v9176_v2, %v4487_v33  ;;  %v4499_v9 = vadd.f32 %v9010_v57, %v4335_v5  ;;  %v4806_v2 = vpop.permute.xlu2 %4805  ;;  %v3668_v57 = vld [vmem:[#allocation3 + $0x700] sm:$0xff]  ;;  %v10681_v33 = vld [vmem:[#allocation16_spill] sm:$0xff]  ;;  %v10682_v5 = vld [vmem:[#allocation17_spill] sm:$0xff] }
 0x4cb   : > { %10679 = vst [vmem:[#allocation37_spill] sm:$0xff] %v9245_v19  ;;  %4819 = vrot.lane.b32.xlu0 %v9242_v10, %s6272_s19  ;;  %v4177_v13 = vadd.f32 %v9001_v1, %v10682_v5  ;;  %v10687_v5 = vld [vmem:[#allocation22_spill] sm:$0xff] }
 0x4cc   : > { %v4659_v12 = vpop.f32.mrf.mxu2 }
 0x4cd   : > { %v9257_v17 = vadd.f32 %v4659_v12, %v4496_v45  ;;  %v9262_v30 = vpop.f32.mrf.mxu0  ;;  %v5544_v45 = vld [vmem:[%s10509_s5 + $0x70] sm:$0xff]  ;;  %v3394_v12 = vld [vmem:[#allocation2 + $0x280] sm:$0xff] }
 0x4ce   : > { %v9259_v51 = vpop.f32.mrf.mxu1  ;;  %5734 = vmatpush.msrb.mxu3 %v5544_v45  ;;  %3443 = vst.msk [vmem:[#allocation3 + $0x7a0] sm:$0xff] %vm569_vm0, %v3394_v12  ;;  %v10685_v45 = vld [vmem:[#allocation41_spill] sm:$0xff] }
 0x4cf   : > { %5044 = vrot.lane.b32.xlu2 %v9255_v15, %s6271_s16  ;;  %4829 = vrot.lane.b32.xlu1 %v9257_v17, %s6272_s19 }
 0x4d1   : > { %6201 = vmatmul.msk.f32.gmra.mxu2 %vm569_vm0, %v3663_v7  ;;  %v4802_v22 = vpop.permute.xlu0 %4801  ;;  %v4174_v7 = vadd.f32 %v8983_v63, %v10681_v33  ;;  %v10686_v33 = vld [vmem:[#allocation20_spill] sm:$0xff] }
 0x4d2   : > { %v9273_v55 = vpop.f32.mrf.mxu3  ;;  %v9280_v21 = vmax.f32 %v8970_v14, %v4802_v22  ;;  %v9295_v14 = vmax.f32 %v9006_v41, %v4806_v2  ;;  %v10684_v2 = vld [vmem:[#allocation18_spill] sm:$0xff] }
 0x4d3   : > { %4823 = vrot.lane.b32.xlu0 %v9270_v42, %s6272_s19 }
 0x4d4   : > { %v4662_v58 = vpop.f32.mrf.mxu2 }
 0x4d5   : > { %v9282_v49 = vadd.f32 %v4662_v58, %v4499_v9  ;;  %v3673_v9 = vld [vmem:[#allocation3 + $0x728] sm:$0xff]  ;;  %v4338_v58 = vadd.f32 %v8972_v44, %v4174_v7 }
 0x4d6   : > { %v4537_v29 = vpop.f32.mrf.mxu1 }
 0x4d7   : > { %v9284_v24 = vadd.f32 %v4537_v29, %v4374_v28  ;;  %4831 = vrot.lane.b32.xlu2 %v9282_v49, %s6272_s19  ;;  %5046 = vrot.lane.b32.xlu1 %v9280_v21, %s6271_s16  ;;  %v9297_v28 = vpop.f32.mrf.mxu0  ;;  %v4341_v29 = vadd.f32 %v10684_v2, %v4177_v13  ;;  %v4502_v63 = vadd.f32 %v9022_v37, %v4338_v58  ;;  %v3678_v37 = vld [vmem:[#allocation3 + $0x750] sm:$0xff] }
 0x4d9   : > { %6202 = vmatmul.msk.f32.gmra.mxu2 %vm569_vm0, %v3668_v57  ;;  %v4804_v59 = vpop.permute.xlu1 %4803  ;;  %v4505_v1 = vadd.f32 %v9040_v26, %v4341_v29  ;;  %v10689_v26 = vld [vmem:[#allocation13_spill] sm:$0xff] }
 0x4da   : > { %v9300_v47 = vpop.f32.mrf.mxu3  ;;  %v9309_v41 = vmax.f32 %v8988_v34, %v4804_v59 }
 0x4db   : > { %5050 = vrot.lane.b32.xlu0 %v9295_v14, %s6271_s16 }
 0x4dc   : > { %v4665_v46 = vpop.f32.mrf.mxu2 }
 0x4dd   : > { %v9323_v43 = vadd.f32 %v4665_v46, %v4502_v63 }
 0x4de   : > { %v9311_v22 = vpop.f32.mrf.mxu1 }
 0x4df   : > { %10683 = vst [vmem:[#allocation12_spill] sm:$0xff] %v9311_v22  ;;  %5048 = vrot.lane.b32.xlu2 %v9309_v41, %s6271_s16  ;;  %v4385_v12 = vpop.f32.mrf.mxu0  ;;  %v4180_v22 = vadd.f32 %v10687_v5, %v10686_v33 }
 0x4e0   : > { %10688 = vst [vmem:[#allocation9_spill] sm:$0xff] %v9323_v43 }
 0x4e1   : > { %6203 = vmatmul.msk.f32.gmra.mxu2 %vm569_vm0, %v3673_v9  ;;  %v4344_v13 = vadd.f32 %v10689_v26, %v4180_v22  ;;  %v10690_v9 = vld [vmem:[#allocation43_spill] sm:$0xff]  ;;  %v10693_v26 = vld [vmem:[#allocation21_spill] sm:$0xff] }
 0x4e2   : > { %v4221_v57 = vpop.f32.mrf.mxu3  ;;  %v5027_v46 = vpop.permute.xlu2 %5026 }
 0x4e3   : > { %v4222_v34 = vadd.f32 %v4221_v57, %v10685_v45  ;;  %v4508_v58 = vadd.f32 %v10690_v9, %v4344_v13  ;;  %v9339_v57 = vld [vmem:[%s10508_s4] ss:$0 sm:$0xff]  ;;  %v10694_v13 = vld [vmem:[#allocation23_spill] sm:$0xff] }
 0x4e4   : > { %v4668_v59 = vpop.f32.mrf.mxu2  ;;  %v4183_v9 = vadd.f32 %v10694_v13, %v10693_v26 }
 0x4e5   : > { %v9325_v19 = vadd.f32 %v4668_v59, %v4505_v1  ;;  %v4386_v44 = vadd.f32 %v4385_v12, %v4222_v34  ;;  %v10692_v1 = vld [vmem:[#allocation15_spill] sm:$0xff]  ;;  %v3683_v12 = vld [vmem:[#allocation3 + $0x778] sm:$0xff]  ;;  %v5543_v59 = vld [vmem:[%s10509_s5 + $0x68] sm:$0xff] }
 0x4e6   : > { %v9327_v7 = vpop.f32.mrf.mxu1  ;;  %5735 = vmatpush.msrb.mxu3 %v5543_v59 }
 0x4e7   : > { %4833 = vrot.lane.b32.xlu2 %v9323_v43, %s6272_s19  ;;  %4835 = vrot.lane.b32.xlu1 %v9325_v19, %s6272_s19  ;;  %v10698_v43 = vld [vmem:[#allocation52_spill] sm:$0xff] }
 0x4e9   : > { %6204 = vmatmul.msk.f32.gmra.mxu2 %vm569_vm0, %v3678_v37 }
 0x4ec   : > { %v4671_v2 = vpop.f32.mrf.mxu2  ;;  %v5023_v29 = vpop.permute.xlu1 %5022 }
 0x4ed   : > { %v9341_v63 = vadd.f32 %v4671_v2, %v4508_v58  ;;  %v5169_v45 = vmax.f32 %v10692_v1, %v5023_v29  ;;  %v4812_v58 = vpop.permute.xlu2 %4811  ;;  %v10695_v2 = vld [vmem:[#allocation26_spill] sm:$0xff] }
 0x4ee   : > { %v9344_v34 = vpop.f32.mrf.mxu1 }
 0x4ef   : > { %10691 = vst [vmem:[#allocation14_spill] sm:$0xff] %v9341_v63  ;;  %v5222_v22 = vadd.f32 %v9339_v57, %v5169_v45  ;;  %4837 = vrot.lane.b32.xlu2 %v9341_v63, %s6272_s19 }
 0x4f1   : > { %6205 = vmatmul.msk.f32.gmra.mxu2 %vm569_vm0, %v3683_v12  ;;  %v5271_v33 = vmax.f32 %v5222_v22, 0.0  ;;  %v3688_v12 = vld [vmem:[#allocation3 + $0x7a0] sm:$0xff]  ;;  %v10697_v22 = vld [vmem:[#allocation19_spill] sm:$0xff] }
 0x4f2   : > { %v4347_v59 = vadd.f32 %v10697_v22, %v4183_v9 }
 0x4f3   : > { %5321 = vst.msk [vmem:[#allocation4] sm:$0xff] %vm5320_vm2, %v5271_v33 }
 0x4f4   : > { %v4674_v5 = vpop.f32.mrf.mxu2  ;;  %v4808_v37 = vpop.permute.xlu1 %4807  ;;  %v4511_v26 = vadd.f32 %v9072_v61, %v4347_v59  ;;  %v5542_v61 = vld [vmem:[%s10509_s5 + $0x60] sm:$0xff] }
 0x4f5   : > { %v9356_v29 = vmax.f32 %v10695_v2, %v4808_v37  ;;  %v5171_v37 = vmax.f32 %v10698_v43, %v5027_v46  ;;  %5736 = vmatpush.msrb.mxu3 %v5542_v61  ;;  %v10702_v61 = vld [vmem:[#allocation25_spill] sm:$0xff] }
 0x4f6   : > { %v4549_v1 = vpop.f32.mrf.mxu1  ;;  %v9367_v2 = vadd.f32 %v4674_v5, %v4511_v26 }
 0x4f7   : > { %10696 = vst [vmem:[#allocation16_spill] sm:$0xff] %v9356_v29  ;;  %v9358_v45 = vadd.f32 %v4549_v1, %v4386_v44  ;;  %5052 = vrot.lane.b32.xlu1 %v9356_v29, %s6271_s16  ;;  %v5224_v44 = vadd.f32 %v9339_v57, %v5171_v37 }
 0x4f8   : > { %10699 = vst [vmem:[#allocation17_spill] sm:$0xff] %v9367_v2 }
 0x4f9   : > { %6206 = vmatmul.msk.f32.gmra.mxu2 %vm569_vm0, %v3688_v12  ;;  %v5273_v33 = vmax.f32 %v5224_v44, 0.0 }
 0x4fc   : > { %v4677_v13 = vpop.f32.mrf.mxu2 }
 0x4fd   : > { %v9369_v63 = vpop.permute.xlu2 %5032 }
 0x4ff   : > { %4839 = vrot.lane.b32.xlu1 %v9367_v2, %s6272_s19 }
 0x504   : > { %v4680_v1 = vpop.f32.mrf.mxu2 }
 0x505   : > { %v5039_v29 = vpop.permute.xlu2 %5038 }
 0x506   : > { %v5177_v9 = vmax.f32 %v9147_v39, %v5039_v29  ;;  %v10700_v39 = vld [vmem:[#allocation24_spill] sm:$0xff] }
 0x507   : > { %5329 = vrot.lane.b32.xlu1 %v5273_v33, %s6271_s16  ;;  %v10701_v29 = vld [vmem:[#allocation28_spill] sm:$0xff] }
 0x508   : > { %v5230_v43 = vadd.f32 %v9339_v57, %v5177_v9  ;;  %v4186_v37 = vadd.f32 %v10701_v29, %v10700_v39  ;;  %v10704_v39 = vld [vmem:[#allocation29_spill] sm:$0xff]  ;;  %v10705_v29 = vld [vmem:[#allocation30_spill] sm:$0xff] }
 0x509   : > { %v4816_v5 = vpop.permute.xlu1 %4815 }
 0x50a   : > { %v5279_v46 = vmax.f32 %v5230_v43, 0.0  ;;  %v4350_v43 = vadd.f32 %v10702_v61, %v4186_v37  ;;  %v9406_v37 = vmax.f32 %v9074_v32, %v4812_v58 }
 0x50c   : > { %v4683_v12 = vpop.f32.mrf.mxu2  ;;  %5356 = vst.msk [vmem:[#allocation4 + $0x10] sm:$0xff] %vm5320_vm2, %v5279_v46 }
 0x50d   : > { %v5025_v22 = vpop.permute.xlu0 %5024 }
 0x50e   : > { %v5170_v59 = vmax.f32 %v9096_v27, %v5025_v22  ;;  %v4514_v27 = vadd.f32 %v9090_v8, %v4350_v43  ;;  %v5541_v8 = vld [vmem:[%s10509_s5 + $0x58] sm:$0xff] }
 0x50f   : > { %5737 = vmatpush.msrb.mxu3 %v5541_v8 }
 0x510   : > { %v5223_v26 = vadd.f32 %v9339_v57, %v5170_v59  ;;  %v9397_v22 = vadd.f32 %v4677_v13, %v4514_v27  ;;  %v10706_v13 = vld [vmem:[#allocation44_spill] sm:$0xff] }
 0x511   : > { %v9385_v2 = vpop.permute.xlu1 %4817 }
 0x512   : > { %v5272_v44 = vmax.f32 %v5223_v26, 0.0  ;;  %10703 = vst [vmem:[#allocation18_spill] sm:$0xff] %v9397_v22 }
 0x514   : > { %5323 = vrot.lane.b32.xlu2 %v5272_v44, %s6273_s12  ;;  %v9388_v33 = vpop.f32.mrf.mxu2  ;;  %v4189_v44 = vadd.f32 %v10705_v29, %v10704_v39 }
 0x515   : > { %v4810_v9 = vpop.permute.xlu0 %4809 }
 0x516   : > { %v9392_v46 = vmax.f32 %v9116_v36, %v4810_v9  ;;  %v4353_v9 = vadd.f32 %v10706_v13, %v4189_v44  ;;  %v9428_v8 = vpop.permute.xlu2 %5040 }
 0x518   : > { %5054 = vrot.lane.b32.xlu0 %v9392_v46, %s6271_s16  ;;  %v4517_v61 = vadd.f32 %v9108_v0, %v4353_v9  ;;  %v10708_v0 = vld [vmem:[#allocation27_spill] sm:$0xff] }
 0x519   : > { %v9411_v36 = vpop.permute.xlu1 %5036 }
 0x51a   : > { %v9417_v39 = vadd.f32 %v4680_v1, %v4517_v61  ;;  %v4192_v1 = vadd.f32 %v9081_v48, %v10708_v0 }
 0x51c   : > { %4841 = vrot.lane.b32.xlu2 %v9397_v22, %s6272_s19  ;;  %v9401_v59 = vpop.f32.mrf.mxu2  ;;  %10707 = vst [vmem:[#allocation41_spill] sm:$0xff] %v9417_v39 }
 0x51d   : > { %v5029_v26 = vpop.permute.xlu0 %5028 }
 0x51e   : > { %v5172_v32 = vmax.f32 %v9144_v11, %v5029_v26  ;;  %v9437_v26 = vmax.f32 %v9086_v53, %v4816_v5  ;;  %v10710_v5 = vld [vmem:[#allocation32_spill] sm:$0xff] }
 0x520   : > { %5056 = vrot.lane.b32.xlu0 %v9406_v37, %s6271_s16  ;;  %v5225_v44 = vadd.f32 %v9339_v57, %v5172_v32  ;;  %v10709_v32 = vld [vmem:[#allocation47_spill] sm:$0xff] }
 0x521   : > { %v4822_v29 = vpop.permute.xlu1 %4821  ;;  %v4356_v0 = vadd.f32 %v10709_v32, %v4192_v1  ;;  %v4828_v53 = vpop.permute.xlu2 %4827  ;;  %v5540_v1 = vld [vmem:[%s10509_s5 + $0x50] sm:$0xff] }
 0x522   : > { %v5274_v9 = vmax.f32 %v5225_v44, 0.0  ;;  %v4195_v44 = vadd.f32 %v9099_v4, %v10710_v5  ;;  %5738 = vmatpush.msrb.mxu3 %v5540_v1 }
 0x524   : > { %v4692_v43 = vpop.f32.mrf.mxu2 }
 0x525   : > { %v4814_v27 = vpop.permute.xlu0 %4813 }
 0x526   : > { %v9421_v58 = vmax.f32 %v9169_v16, %v4814_v27  ;;  %v5174_v16 = vmax.f32 %v9119_v54, %v9369_v63  ;;  %v4520_v54 = vadd.f32 %v9137_v18, %v4356_v0  ;;  %v9469_v0 = vmax.f32 %v9104_v20, %v9385_v2 }
 0x527   : > { %v9487_v2 = vmax.f32 %v9157_v3, %v4822_v29  ;;  %v10714_v3 = vld [vmem:[#allocation31_spill] sm:$0xff] }
 0x528   : > { %5058 = vrot.lane.b32.xlu2 %v9421_v58, %s6271_s16  ;;  %4843 = vrot.lane.b32.xlu0 %v9417_v39, %s6272_s19  ;;  %v5227_v22 = vadd.f32 %v9339_v57, %v5174_v16  ;;  %v10711_v16 = vld [vmem:[#allocation46_spill] sm:$0xff] }
 0x529   : > { %v4359_v4 = vadd.f32 %v10711_v16, %v4195_v44  ;;  %v10713_v44 = vld [vmem:[#allocation33_spill] sm:$0xff] }
 0x52c   : > { %v9432_v13 = vpop.f32.mrf.mxu2 }
 0x52d   : > { %v5031_v11 = vpop.permute.xlu0 %5030 }
 0x52e   : > { %v5173_v61 = vmax.f32 %v9187_v25, %v5031_v11  ;;  %v5276_v11 = vmax.f32 %v5227_v22, 0.0 }
 0x530   : > { %v5226_v27 = vadd.f32 %v9339_v57, %v5173_v61  ;;  %5335 = vrot.lane.b32.xlu2 %v5274_v9, %s6272_s19  ;;  %5060 = vrot.lane.b32.xlu0 %v9437_v26, %s6271_s16  ;;  %v9452_v9 = vadd.f32 %v4683_v12, %v4520_v54  ;;  %v4523_v12 = vadd.f32 %v9161_v60, %v4359_v4  ;;  %v10715_v4 = vld [vmem:[#allocation36_spill] sm:$0xff] }
 0x531   : > { %v4826_v48 = vpop.permute.xlu1 %4825 }
 0x532   : > { %v5275_v39 = vmax.f32 %v5226_v27, 0.0  ;;  %v10712_v27 = vld [vmem:[#allocation34_spill] sm:$0xff]  ;;  %v9472_v54 = vadd.f32 %v9388_v33, %v4523_v12  ;;  %v9507_v29 = vmax.f32 %v9202_v40, %v4826_v48 }
 0x533   : > { %v4201_v32 = vadd.f32 %v9150_v35, %v10712_v27  ;;  %v10717_v27 = vld [vmem:[#allocation50_spill] sm:$0xff] }
 0x534   : > { %5340 = vst.msk [vmem:[#allocation4 + $0x8] sm:$0xff] %vm5320_vm2, %v5275_v39  ;;  %v9448_v63 = vpop.f32.mrf.mxu2 }
 0x535   : > { %v5035_v25 = vpop.permute.xlu0 %5034  ;;  %v4365_v20 = vadd.f32 %v9135_v62, %v4201_v32  ;;  %v5176_v32 = vmax.f32 %v10717_v27, %v9411_v36  ;;  %v10718_v36 = vld [vmem:[#allocation6_spill] sm:$0xff] }
 0x536   : > { %v5175_v61 = vmax.f32 %v9214_v38, %v5035_v25  ;;  %v9474_v25 = vpop.permute.xlu2 %5044 }
 0x537   : > { %v4529_v33 = vadd.f32 %v9207_v31, %v4365_v20 }
 0x538   : > { %v5228_v18 = vadd.f32 %v9339_v57, %v5175_v61  ;;  %4845 = vrot.lane.b32.xlu2 %v9452_v9, %s6272_s19  ;;  %5342 = vrot.lane.b32.xlu0 %v5276_v11, %s6273_s12  ;;  %v4198_v11 = vadd.f32 %v9122_v50, %v10713_v44 }
 0x539   : > { %v5043_v39 = vpop.permute.xlu1 %5042  ;;  %v9496_v61 = vadd.f32 %v4692_v43, %v4529_v33 }
 0x53a   : > { %v5277_v22 = vmax.f32 %v5228_v18, 0.0  ;;  %v4362_v31 = vadd.f32 %v10714_v3, %v4198_v11  ;;  %v10719_v11 = vld [vmem:[#allocation35_spill] sm:$0xff] }
 0x53c   : > { %5347 = vrot.lane.b32.xlu1 %v5277_v22, %s6271_s16  ;;  %v4701_v38 = vpop.f32.mrf.mxu2  ;;  %v4526_v16 = vadd.f32 %v9182_v23, %v4362_v31  ;;  %v10716_v22 = vld [vmem:[#allocation10_spill] sm:$0xff] }
 0x53d   : > { %v9477_v5 = vadd.f32 %v4701_v38, %v9284_v24  ;;  %v4820_v60 = vpop.permute.xlu0 %4819  ;;  %v4207_v12 = vadd.f32 %v10716_v22, %v10715_v4  ;;  %v5539_v23 = vld [vmem:[%s10509_s5 + $0x48] sm:$0xff]  ;;  %v10723_v22 = vld [vmem:[#allocation8_spill] sm:$0xff] }
 0x53e   : > { %v9499_v1 = vmax.f32 %v9242_v10, %v4820_v60  ;;  %v4832_v18 = vpop.permute.xlu2 %4831  ;;  %v9519_v40 = vadd.f32 %v9401_v59, %v4526_v16  ;;  %5739 = vmatpush.msrb.mxu3 %v5539_v23  ;;  %v5229_v60 = vadd.f32 %v9339_v57, %v5176_v32  ;;  %v9571_v32 = vpop.f32.mrf.mxu3 }
 0x53f   : > { %v4371_v59 = vadd.f32 %v10718_v36, %v4207_v12  ;;  %v5178_v12 = vmax.f32 %v10723_v22, %v9428_v8 }
 0x540   : > { %5062 = vrot.lane.b32.xlu2 %v9469_v0, %s6271_s16  ;;  %4847 = vrot.lane.b32.xlu0 %v9472_v54, %s6272_s19  ;;  %v5278_v31 = vmax.f32 %v5229_v60, 0.0 }
 0x541   : > { %v9483_v35 = vpop.permute.xlu1 %4829  ;;  %v4535_v33 = vadd.f32 %v9259_v51, %v4371_v59 }
 0x544   : > { %5066 = vrot.lane.b32.xlu1 %v9487_v2, %s6271_s16  ;;  %v9492_v24 = vpop.f32.mrf.mxu2 }
 0x545   : > { %v4824_v43 = vpop.permute.xlu0 %4823 }
 0x546   : > { %v5049_v20 = vpop.permute.xlu2 %5048 }
 0x548   : > { %4851 = vrot.lane.b32.xlu2 %v9496_v61, %s6272_s19  ;;  %5064 = vrot.lane.b32.xlu0 %v9499_v1, %s6271_s16 }
 0x549   : > { %v5047_v62 = vpop.permute.xlu1 %5046 }
 0x54a   : > { %v5181_v50 = vmax.f32 %v9280_v21, %v5047_v62  ;;  %v9522_v21 = vmax.f32 %v9270_v42, %v4824_v43  ;;  %v9535_v42 = vmax.f32 %v9226_v52, %v4828_v53  ;;  %v10720_v62 = vld [vmem:[#allocation7_spill] sm:$0xff]  ;;  %v5179_v43 = vmax.f32 %v9224_v56, %v5043_v39  ;;  %v10721_v52 = vld [vmem:[#allocation49_spill] sm:$0xff] }
 0x54b   : > { %v4204_v3 = vadd.f32 %v10720_v62, %v10719_v11  ;;  %v9551_v53 = vmax.f32 %v9282_v49, %v4832_v18  ;;  %v10722_v56 = vld [vmem:[#allocation39_spill] sm:$0xff] }
 0x54c   : > { %v5234_v10 = vadd.f32 %v9339_v57, %v5181_v50  ;;  %5070 = vrot.lane.b32.xlu1 %v9507_v29, %s6271_s16  ;;  %v4707_v38 = vpop.f32.mrf.mxu2  ;;  %v9543_v50 = vadd.f32 %v9448_v63, %v4535_v33  ;;  %v5232_v16 = vadd.f32 %v9339_v57, %v5179_v43  ;;  %v4216_v39 = vadd.f32 %v9273_v55, %v10722_v56  ;;  %v5538_v55 = vld [vmem:[%s10509_s5 + $0x40] sm:$0xff]  ;;  %v9587_v33 = vpop.f32.mrf.mxu1 }
 0x54d   : > { %v4368_v51 = vadd.f32 %v10721_v52, %v4204_v3  ;;  %5740 = vmatpush.msrb.mxu3 %v5538_v55  ;;  %v5051_v59 = vpop.permute.xlu0 %5050 }
 0x54e   : > { %v5283_v48 = vmax.f32 %v5234_v10, 0.0  ;;  %v5182_v10 = vmax.f32 %v9309_v41, %v5049_v20  ;;  %v9556_v63 = vpop.permute.xlu2 %4833  ;;  %v5281_v18 = vmax.f32 %v5232_v16, 0.0  ;;  %v4380_v23 = vadd.f32 %v9262_v30, %v4216_v39  ;;  %v9585_v20 = vpop.f32.mrf.mxu0  ;;  %v5534_v16 = vld [vmem:[%s10509_s5 + $0x20] sm:$0xff] }
 0x54f   : > { %v4532_v4 = vadd.f32 %v9230_v6, %v4368_v51  ;;  %v5183_v30 = vmax.f32 %v9295_v14, %v5051_v59 }
 0x550   : > { %5068 = vrot.lane.b32.xlu2 %v9522_v21, %s6271_s16  ;;  %4849 = vrot.lane.b32.xlu0 %v9519_v40, %s6272_s19  ;;  %5372 = vst.msk [vmem:[#allocation4 + $0x18] sm:$0xff] %vm5320_vm2, %v5283_v48  ;;  %v5235_v41 = vadd.f32 %v9339_v57, %v5182_v10  ;;  %v4544_v60 = vadd.f32 %v9327_v7, %v4380_v23  ;;  %v5537_v7 = vld [vmem:[%s10509_s5 + $0x38] sm:$0xff]  ;;  %v10727_v23 = vld [vmem:[#allocation37_spill] sm:$0xff] }
 0x551   : > { %v9565_v49 = vadd.f32 %v9432_v13, %v4532_v4  ;;  %v10724_v13 = vld [vmem:[#allocation40_spill] sm:$0xff]  ;;  %5741 = vmatpush.msrb.mxu3 %v5537_v7  ;;  %v5236_v14 = vadd.f32 %v9339_v57, %v5183_v30  ;;  %v5180_v10 = vmax.f32 %v9255_v15, %v9474_v25 }
 0x552   : > { %v4219_v48 = vadd.f32 %v9300_v47, %v10724_v13  ;;  %v5284_v36 = vmax.f32 %v5235_v41, 0.0  ;;  %v5533_v15 = vld [vmem:[%s10509_s5 + $0x18] sm:$0xff]  ;;  %v5531_v13 = vld [vmem:[%s10509_s5 + $0x8] sm:$0xff] }
 0x553   : > { %v5285_v4 = vmax.f32 %v5236_v14, 0.0  ;;  %v5233_v25 = vadd.f32 %v9339_v57, %v5180_v10 }
 0x554   : > { %5072 = vrot.lane.b32.xlu1 %v9535_v42, %s6271_s16  ;;  %v4710_v44 = vpop.f32.mrf.mxu2  ;;  %v4383_v11 = vadd.f32 %v9297_v28, %v4219_v48  ;;  %v5536_v28 = vld [vmem:[%s10509_s5 + $0x30] sm:$0xff]  ;;  %v4555_v22 = vpop.f32.mrf.mxu1  ;;  %v10726_v48 = vld [vmem:[#allocation38_spill] sm:$0xff] }
 0x555   : > { %5742 = vmatpush.msrb.mxu3 %v5536_v28  ;;  %v10730_v28 = vld [vmem:[#allocation11_spill] sm:$0xff] }
 0x556   : > { %v4838_v3 = vpop.permute.xlu2 %4837  ;;  %v4547_v43 = vadd.f32 %v9344_v34, %v4383_v11  ;;  %v5535_v34 = vld [vmem:[%s10509_s5 + $0x28] sm:$0xff]  ;;  %v4391_v39 = vpop.f32.mrf.mxu0 }
 0x557   : > { %5743 = vmatpush.msrb.mxu3 %v5535_v34 }
 0x558   : > { %4855 = vrot.lane.b32.xlu2 %v9543_v50, %s6272_s19  ;;  %5352 = vrot.lane.b32.xlu0 %v5278_v31, %s6272_s19  ;;  %v9590_v31 = vadd.f32 %v4707_v38, %v4544_v60  ;;  %v4227_v38 = vpop.f32.mrf.mxu3  ;;  %v9606_v51 = vadd.f32 %v4710_v44, %v4547_v43  ;;  %v9620_v44 = vmax.f32 %v9257_v17, %v9483_v35  ;;  %v5532_v17 = vld [vmem:[%s10509_s5 + $0x10] sm:$0xff]  ;;  %v5282_v60 = vmax.f32 %v5233_v25, 0.0  ;;  %v10733_v25 = vld [vmem:[#allocation42_spill] sm:$0xff] }
 0x559   : > { %v4836_v8 = vpop.permute.xlu1 %4835  ;;  %5744 = vmatpush.msrb.mxu3 %v5534_v16 }
 0x55a   : > { %v9636_v35 = vmax.f32 %v9325_v19, %v4836_v8  ;;  %v10729_v19 = vld [vmem:[#allocation14_spill] sm:$0xff] }
 0x55b   : > { %5745 = vmatpush.msrb.mxu3 %v5533_v15  ;;  %v9648_v8 = vmax.f32 %v10729_v19, %v4838_v3  ;;  %v5555_v19 = vld [vmem:[%s10509_s5 + $0xc8] sm:$0xff] }
 0x55c   : > { %5076 = vrot.lane.b32.xlu1 %v9551_v53, %s6271_s16  ;;  %v4713_v27 = vpop.f32.mrf.mxu2  ;;  %v4558_v7 = vpop.f32.mrf.mxu1 }
 0x55d   : > { %v9569_v6 = vadd.f32 %v4713_v27, %v9358_v45  ;;  %v5231_v45 = vadd.f32 %v9339_v57, %v5178_v12  ;;  %5746 = vmatpush.msrb.mxu3 %v5532_v17 }
 0x55e   : > { %v4394_v30 = vpop.f32.mrf.mxu0 }
 0x55f   : > { %v5280_v62 = vmax.f32 %v5231_v45, 0.0  ;;  %v4213_v45 = vadd.f32 %v10727_v23, %v10726_v48  ;;  %5747 = vmatpush.msrb.mxu3 %v5531_v13  ;;  %v5561_v48 = vld [vmem:[%s10509_s5 + $0xf8] sm:$0xff] }
 0x560   : > { %5363 = vrot.lane.b32.xlu2 %v5281_v18, %s6271_s16  ;;  %4853 = vrot.lane.b32.xlu0 %v9565_v49, %s6272_s19  ;;  %v10725_v18 = vld [vmem:[#allocation16_spill] sm:$0xff]  ;;  %v4230_v55 = vpop.f32.mrf.mxu3 }
 0x561   : > { %v4377_v3 = vadd.f32 %v10730_v28, %v4213_v45 }
 0x564   : > { %5374 = vrot.lane.b32.xlu1 %v5284_v36, %s6273_s12  ;;  %v9593_v47 = vpop.f32.mrf.mxu2  ;;  %v10728_v36 = vld [vmem:[#allocation48_spill] sm:$0xff] }
 0x565   : > { %v4231_v59 = vadd.f32 %v4230_v55, %v10728_v36 }
 0x567   : > { %v4395_v34 = vadd.f32 %v4394_v30, %v4231_v59 }
 0x568   : > { %4861 = vrot.lane.b32.xlu2 %v9590_v31, %s6272_s19  ;;  %5358 = vrot.lane.b32.xlu0 %v5280_v62, %s6273_s12  ;;  %v5530_v62 = vld [vmem:[%s10509_s5] sm:$0xff] }
 0x569   : > { %v5053_v52 = vpop.permute.xlu1 %5052  ;;  %5748 = vmatpush.msrb.mxu3 %v5530_v62  ;;  %v4559_v17 = vadd.f32 %v4558_v7, %v4395_v34  ;;  %v10734_v62 = vld [vmem:[#allocation17_spill] sm:$0xff]  ;;  %v5551_v34 = vld [vmem:[%s10509_s5 + $0xa8] sm:$0xff] }
 0x56a   : > { %v5184_v41 = vmax.f32 %v10725_v18, %v5053_v52  ;;  %v10731_v52 = vld [vmem:[#allocation45_spill] sm:$0xff]  ;;  %v4225_v18 = vadd.f32 %v9571_v32, %v10733_v25  ;;  %v5560_v32 = vld [vmem:[%s10509_s5 + $0xf0] sm:$0xff] }
 0x56b   : > { %v4228_v14 = vadd.f32 %v4227_v38, %v10731_v52  ;;  %5753 = vmatpush.msra.mxu3 %v5561_v48  ;;  %v5548_v48 = vld [vmem:[%s10509_s5 + $0x90] sm:$0xff] }
 0x56c   : > { %4863 = vrot.lane.b32.xlu1 %v9606_v51, %s6272_s19  ;;  %v4719_v12 = vpop.f32.mrf.mxu2  ;;  %v5237_v11 = vadd.f32 %v9339_v57, %v5184_v41 }
 0x56d   : > { %v4392_v41 = vadd.f32 %v4391_v39, %v4228_v14  ;;  %5754 = vmatpush.msra.mxu3 %v5560_v32  ;;  %v5547_v32 = vld [vmem:[%s10509_s5 + $0x88] sm:$0xff] }
 0x56e   : > { %v5324_v56 = vpop.permute.xlu2 %5323  ;;  %v5286_v16 = vmax.f32 %v5237_v11, 0.0 }
 0x56f   : > { %5327 = vst.msk [vmem:[#allocation4] sm:$0xff] %vm5326_vm3, %v5324_v56  ;;  %v10732_v56 = vld [vmem:[#allocation12_spill] sm:$0xff]  ;;  %v4556_v13 = vadd.f32 %v4555_v22, %v4392_v41  ;;  %v5559_v22 = vld [vmem:[%s10509_s5 + $0xe8] sm:$0xff] }
 0x570   : > { %5379 = vrot.lane.b32.xlu2 %v5285_v4, %s6271_s16  ;;  %5074 = vrot.lane.b32.xlu0 %v9620_v44, %s6271_s16  ;;  %v4541_v15 = vadd.f32 %v10732_v56, %v4377_v3 }
 0x571   : > { %v9626_v27 = vpop.permute.xlu1 %4839  ;;  %v9682_v39 = vadd.f32 %v4719_v12, %v4556_v13  ;;  %5755 = vmatpush.msra.mxu3 %v5559_v22  ;;  %v5557_v12 = vld [vmem:[%s10509_s5 + $0xd8] sm:$0xff]  ;;  %v5546_v22 = vld [vmem:[%s10509_s5 + $0x80] sm:$0xff] }
 0x572   : > { %v9667_v55 = vadd.f32 %v9492_v24, %v4541_v15  ;;  %v4389_v24 = vadd.f32 %v9585_v20, %v4225_v18  ;;  %v5558_v20 = vld [vmem:[%s10509_s5 + $0xe0] sm:$0xff]  ;;  %v9712_v30 = vmax.f32 %v10734_v62, %v9626_v27  ;;  %v5552_v27 = vld [vmem:[%s10509_s5 + $0xb0] sm:$0xff]  ;;  %v5549_v15 = vld [vmem:[%s10509_s5 + $0x98] sm:$0xff] }
 0x573   : > { %5756 = vmatpush.msra.mxu3 %v5558_v20  ;;  %v10735_v18 = vld [vmem:[#allocation41_spill] sm:$0xff] }
 0x574   : > { %5080 = vrot.lane.b32.xlu1 %v9636_v35, %s6271_s16  ;;  %v4722_v4 = vpop.f32.mrf.mxu2  ;;  %v4553_v45 = vadd.f32 %v9587_v33, %v4389_v24  ;;  %v5556_v33 = vld [vmem:[%s10509_s5 + $0xd0] sm:$0xff] }
 0x575   : > { %v9669_v38 = vadd.f32 %v4722_v4, %v4559_v17  ;;  %5757 = vmatpush.msra.mxu3 %v5557_v12  ;;  %v5550_v4 = vld [vmem:[%s10509_s5 + $0xa0] sm:$0xff] }
 0x576   : > { %v9659_v10 = vpop.permute.xlu2 %4841  ;;  %v9691_v36 = vadd.f32 %v9593_v47, %v4553_v45  ;;  %v5577_v45 = vld [vmem:[%s10509_s5 + $0x178] sm:$0xff] }
 0x577   : > { %5758 = vmatpush.msra.mxu3 %v5556_v33 }
 0x578   : > { %5368 = vrot.lane.b32.xlu0 %v5282_v60, %s6272_s19  ;;  %5082 = vrot.lane.b32.xlu2 %v9648_v8, %s6271_s16 }
 0x579   : > { %v5330_v43 = vpop.permute.xlu1 %5329  ;;  %5759 = vmatpush.msra.mxu3 %v5555_v19 }
 0x57a   : > { %5333 = vst.msk [vmem:[#allocation4] sm:$0xff] %vm5332_vm4, %v5330_v43  ;;  %v5554_v43 = vld [vmem:[%s10509_s5 + $0xc0] sm:$0xff] }
 0x57b   : > { %5760 = vmatpush.msra.mxu3 %v5554_v43  ;;  %v5571_v43 = vld [vmem:[%s10509_s5 + $0x148] sm:$0xff] }
 0x57c   : > { %5384 = vrot.lane.b32.xlu1 %v5286_v16, %s6272_s19 }
 0x580   : > { %4859 = vrot.lane.b32.xlu0 %v9667_v55, %s6272_s19  ;;  %4871 = vrot.lane.b32.xlu2 %v9669_v38, %s6272_s19 }
 0x582   : > { %v5059_v23 = vpop.permute.xlu2 %5058 }
 0x583   : > { %v5187_v25 = vmax.f32 %v9421_v58, %v5059_v23 }
 0x584   : > { %4869 = vrot.lane.b32.xlu1 %v9682_v39, %s6272_s19 }
 0x585   : > { %v5240_v58 = vadd.f32 %v9339_v57, %v5187_v25 }
 0x587   : > { %v5289_v12 = vmax.f32 %v5240_v58, 0.0 }
 0x588   : > { %4867 = vrot.lane.b32.xlu0 %v9691_v36, %s6272_s19 }
 0x58a   : > { %v5055_v47 = vpop.permute.xlu0 %5054  ;;  %v5336_v59 = vpop.permute.xlu2 %5335 }
 0x58b   : > { %v5185_v60 = vmax.f32 %v9392_v46, %v5055_v47  ;;  %5339 = vst.msk [vmem:[#allocation4] sm:$0xff] %vm5338_vm5, %v5336_v59  ;;  %v5553_v46 = vld [vmem:[%s10509_s5 + $0xb8] sm:$0xff]  ;;  %v5576_v59 = vld [vmem:[%s10509_s5 + $0x170] sm:$0xff] }
 0x58c   : > { %5761 = vmatpush.msra.mxu3 %v5553_v46 }
 0x58d   : > { %v5238_v11 = vadd.f32 %v9339_v57, %v5185_v60  ;;  %v5575_v60 = vld [vmem:[%s10509_s5 + $0x168] sm:$0xff] }
 0x58e   : > { %5762 = vmatpush.msra.mxu3 %v5552_v27 }
 0x58f   : > { %v5287_v7 = vmax.f32 %v5238_v11, 0.0  ;;  %v5573_v11 = vld [vmem:[%s10509_s5 + $0x158] sm:$0xff] }
 0x590   : > { %5084 = vrot.lane.b32.xlu0 %v9712_v30, %s6271_s16  ;;  %5763 = vmatpush.msra.mxu3 %v5551_v34  ;;  %v5568_v34 = vld [vmem:[%s10509_s5 + $0x130] sm:$0xff] }
 0x591   : > { %5388 = vst.msk [vmem:[#allocation4 + $0x20] sm:$0xff] %vm5320_vm2, %v5287_v7  ;;  %v5572_v7 = vld [vmem:[%s10509_s5 + $0x150] sm:$0xff] }
 0x592   : > { %v5057_v28 = vpop.permute.xlu0 %5056  ;;  %v4846_v3 = vpop.permute.xlu2 %4845  ;;  %v5517_v52 = vld [vmem:[#allocation4] sm:$0xff]  ;;  %5764 = vmatpush.msra.mxu3 %v5550_v4 }
 0x593   : > { %v5186_v14 = vmax.f32 %v9406_v37, %v5057_v28  ;;  %5749 = vmatmul.f32.vlgmr.msrb.gmra.mxu3 %v5517_v52  ;;  %v9754_v23 = vmax.f32 %v9452_v9, %v4846_v3  ;;  %v5570_v28 = vld [vmem:[%s10509_s5 + $0x140] sm:$0xff]  ;;  %v5569_v3 = vld [vmem:[%s10509_s5 + $0x138] sm:$0xff] }
 0x594   : > { %5765 = vmatpush.msra.mxu3 %v5549_v15 }
 0x595   : > { %v5239_v16 = vadd.f32 %v9339_v57, %v5186_v14 }
 0x596   : > { %5766 = vmatpush.msra.mxu3 %v5548_v48 }
 0x597   : > { %v5288_v56 = vmax.f32 %v5239_v16, 0.0  ;;  %v5567_v16 = vld [vmem:[%s10509_s5 + $0x128] sm:$0xff] }
 0x598   : > { %5767 = vmatpush.msra.mxu3 %v5547_v32  ;;  %v5563_v32 = vld [vmem:[%s10509_s5 + $0x108] sm:$0xff] }
 0x599   : > { %5390 = vrot.lane.b32.xlu1 %v5288_v56, %s6273_s12 }
 0x59a   : > { %v4844_v37 = vpop.permute.xlu0 %4843  ;;  %v5063_v17 = vpop.permute.xlu2 %5062  ;;  %5768 = vmatpush.msra.mxu3 %v5546_v22 }
 0x59b   : > { %v9740_v41 = vmax.f32 %v10735_v18, %v4844_v37  ;;  %v5189_v13 = vmax.f32 %v9469_v0, %v5063_v17  ;;  %v5565_v17 = vld [vmem:[%s10509_s5 + $0x118] sm:$0xff] }
 0x59c   : > { %5773 = vmatpush.msrb.mxu3 %v5577_v45 }
 0x59d   : > { %v5242_v24 = vadd.f32 %v9339_v57, %v5189_v13  ;;  %5088 = vrot.lane.b32.xlu0 %v9740_v41, %s6271_s16 }
 0x59e   : > { %5774 = vmatpush.msrb.mxu3 %v5576_v59 }
 0x59f   : > { %v5291_v0 = vmax.f32 %v5242_v24, 0.0 }
 0x5a0   : > { %5775 = vmatpush.msrb.mxu3 %v5575_v60 }
 0x5a1   : > { %5404 = vst.msk [vmem:[#allocation4 + $0x28] sm:$0xff] %vm5320_vm2, %v5291_v0  ;;  %5090 = vrot.lane.b32.xlu1 %v9754_v23, %s6271_s16 }
 0x5a2   : > { %v5061_v20 = vpop.permute.xlu0 %5060  ;;  %v9767_v47 = vpop.permute.xlu2 %4851 }
 0x5a3   : > { %v5188_v9 = vmax.f32 %v9437_v26, %v5061_v20  ;;  %v5574_v26 = vld [vmem:[%s10509_s5 + $0x160] sm:$0xff] }
 0x5a4   : > { %5776 = vmatpush.msrb.mxu3 %v5574_v26 }
 0x5a5   : > { %v5241_v33 = vadd.f32 %v9339_v57, %v5188_v9  ;;  %5395 = vrot.lane.b32.xlu0 %v5289_v12, %s6271_s16 }
 0x5a6   : > { %5777 = vmatpush.msrb.mxu3 %v5573_v11 }
 0x5a7   : > { %v5290_v19 = vmax.f32 %v5241_v33, 0.0  ;;  %v9843_v33 = vmax.f32 %v9496_v61, %v9767_v47  ;;  %v5593_v61 = vld [vmem:[%s10509_s5 + $0x1f8] sm:$0xff] }
 0x5a8   : > { %5778 = vmatpush.msrb.mxu3 %v5572_v7 }
 0x5a9   : > { %5400 = vrot.lane.b32.xlu1 %v5290_v19, %s6272_s19 }
 0x5aa   : > { %v5343_v62 = vpop.permute.xlu0 %5342  ;;  %v9790_v27 = vpop.permute.xlu2 %5068  ;;  %5779 = vmatpush.msrb.mxu3 %v5571_v43  ;;  %v5592_v43 = vld [vmem:[%s10509_s5 + $0x1f0] sm:$0xff] }
 0x5ab   : > { %5345 = vst.msk [vmem:[#allocation4 + $0x8] sm:$0xff] %vm5326_vm3, %v5343_v62 }
 0x5ac   : > { %5780 = vmatpush.msrb.mxu3 %v5570_v28 }
 0x5ae   : > { %v5348_v46 = vpop.permute.xlu1 %5347  ;;  %5781 = vmatpush.msrb.mxu3 %v5569_v3 }
 0x5af   : > { %5350 = vst.msk [vmem:[#allocation4 + $0x8] sm:$0xff] %vm5332_vm4, %v5348_v46  ;;  %v5591_v46 = vld [vmem:[%s10509_s5 + $0x1e8] sm:$0xff] }
 0x5b0   : > { %5782 = vmatpush.msrb.mxu3 %v5568_v34 }
 0x5b2   : > { %v4848_v52 = vpop.permute.xlu0 %4847  ;;  %5783 = vmatpush.msrb.mxu3 %v5567_v16  ;;  %v4856_v15 = vpop.permute.xlu2 %4855 }
 0x5b3   : > { %v9800_v14 = vmax.f32 %v9472_v54, %v4848_v52  ;;  %v5566_v54 = vld [vmem:[%s10509_s5 + $0x120] sm:$0xff]  ;;  %v9836_v20 = vmax.f32 %v9543_v50, %v4856_v15 }
 0x5b4   : > { %5784 = vmatpush.msrb.mxu3 %v5566_v54  ;;  %v5590_v52 = vld [vmem:[%s10509_s5 + $0x1e0] sm:$0xff] }
 0x5b5   : > { %5092 = vrot.lane.b32.xlu2 %v9800_v14, %s6271_s16 }
 0x5b6   : > { %v5067_v4 = vpop.permute.xlu1 %5066  ;;  %5785 = vmatpush.msrb.mxu3 %v5565_v17  ;;  %v5585_v17 = vld [vmem:[%s10509_s5 + $0x1b8] sm:$0xff] }
 0x5b7   : > { %v5191_v56 = vmax.f32 %v9487_v2, %v5067_v4  ;;  %v5564_v2 = vld [vmem:[%s10509_s5 + $0x110] sm:$0xff] }
 0x5b8   : > { %5786 = vmatpush.msrb.mxu3 %v5564_v2  ;;  %v5588_v4 = vld [vmem:[%s10509_s5 + $0x1d0] sm:$0xff] }
 0x5b9   : > { %v5244_v37 = vadd.f32 %v9339_v57, %v5191_v56  ;;  %v5587_v56 = vld [vmem:[%s10509_s5 + $0x1c8] sm:$0xff]  ;;  %v5584_v2 = vld [vmem:[%s10509_s5 + $0x1b0] sm:$0xff] }
 0x5ba   : > { %v5065_v25 = vpop.permute.xlu0 %5064  ;;  %5787 = vmatpush.msrb.mxu3 %v5563_v32  ;;  %v5364_v12 = vpop.permute.xlu2 %5363 }
 0x5bb   : > { %v5293_v18 = vmax.f32 %v5244_v37, 0.0  ;;  %v5190_v13 = vmax.f32 %v9499_v1, %v5065_v25  ;;  %v5562_v1 = vld [vmem:[%s10509_s5 + $0x100] sm:$0xff] }
 0x5bc   : > { %5788 = vmatpush.msrb.mxu3 %v5562_v1  ;;  %v5586_v37 = vld [vmem:[%s10509_s5 + $0x1c0] sm:$0xff]  ;;  %v5580_v1 = vld [vmem:[%s10509_s5 + $0x190] sm:$0xff] }
 0x5bd   : > { %v5243_v48 = vadd.f32 %v9339_v57, %v5190_v13  ;;  %5411 = vrot.lane.b32.xlu1 %v5293_v18, %s6271_s16  ;;  %v10736_v18 = vld [vmem:[#allocation9_spill] sm:$0xff] }
 0x5be   : > { %v5071_v24 = vpop.permute.xlu1 %5070  ;;  %v9901_v13 = vmax.f32 %v10736_v18, %v9556_v63  ;;  %v5581_v63 = vld [vmem:[%s10509_s5 + $0x198] sm:$0xff]  ;;  %v5596_v18 = vld [vmem:[%s10509_s5 + $0x210] sm:$0xff] }
 0x5bf   : > { %v5292_v58 = vmax.f32 %v5243_v48, 0.0  ;;  %v5193_v0 = vmax.f32 %v9507_v29, %v5071_v24  ;;  %v5583_v48 = vld [vmem:[%s10509_s5 + $0x1a8] sm:$0xff]  ;;  %v5582_v24 = vld [vmem:[%s10509_s5 + $0x1a0] sm:$0xff] }
 0x5c1   : > { %v5246_v22 = vadd.f32 %v9339_v57, %v5193_v0  ;;  %5406 = vrot.lane.b32.xlu2 %v5292_v58, %s6273_s12 }
 0x5c2   : > { %v9833_v45 = vpop.permute.xlu0 %4849  ;;  %v4862_v19 = vpop.permute.xlu2 %4861 }
 0x5c3   : > { %v5295_v9 = vmax.f32 %v5246_v22, 0.0  ;;  %v5579_v22 = vld [vmem:[%s10509_s5 + $0x188] sm:$0xff] }
 0x5c5   : > { %5420 = vst.msk [vmem:[#allocation4 + $0x30] sm:$0xff] %vm5320_vm2, %v5295_v9  ;;  %5100 = vrot.lane.b32.xlu1 %v9836_v20, %s6271_s16 }
 0x5c6   : > { %v5073_v29 = vpop.permute.xlu1 %5072 }
 0x5c7   : > { %v5194_v59 = vmax.f32 %v9535_v42, %v5073_v29  ;;  %v5192_v42 = vmax.f32 %v9522_v21, %v9790_v27  ;;  %v5609_v29 = vld [vmem:[%s10509_s5 + $0x278] sm:$0xff] }
 0x5c9   : > { %5096 = vrot.lane.b32.xlu2 %v9843_v33, %s6271_s16  ;;  %v5247_v50 = vadd.f32 %v9339_v57, %v5194_v59  ;;  %v5245_v21 = vadd.f32 %v9339_v57, %v5192_v42 }
 0x5ca   : > { %v5353_v60 = vpop.permute.xlu0 %5352  ;;  %v5380_v27 = vpop.permute.xlu2 %5379 }
 0x5cb   : > { %5355 = vst.msk [vmem:[#allocation4 + $0x8] sm:$0xff] %vm5338_vm5, %v5353_v60  ;;  %v5296_v11 = vmax.f32 %v5247_v50, 0.0  ;;  %v5294_v16 = vmax.f32 %v5245_v21, 0.0 }
 0x5ce   : > { %v5077_v26 = vpop.permute.xlu1 %5076 }
 0x5cf   : > { %v5196_v3 = vmax.f32 %v9551_v53, %v5077_v26 }
 0x5d1   : > { %5422 = vrot.lane.b32.xlu2 %v5296_v11, %s6273_s12  ;;  %v5249_v53 = vadd.f32 %v9339_v57, %v5196_v3  ;;  %v5608_v11 = vld [vmem:[%s10509_s5 + $0x270] sm:$0xff]  ;;  %v5602_v3 = vld [vmem:[%s10509_s5 + $0x240] sm:$0xff] }
 0x5d2   : > { %v4854_v47 = vpop.permute.xlu0 %4853  ;;  %v5518_v62 = vld [vmem:[#allocation4 + $0x8] sm:$0xff] }
 0x5d3   : > { %v9857_v7 = vmax.f32 %v9565_v49, %v4854_v47  ;;  %5769 = vmatmul.f32.vlgmr.msra.gmra.mxu3 %v5518_v62  ;;  %v9869_v49 = vmax.f32 %v9590_v31, %v4862_v19  ;;  %v5589_v31 = vld [vmem:[%s10509_s5 + $0x1d8] sm:$0xff]  ;;  %v5298_v15 = vmax.f32 %v5249_v53, 0.0  ;;  %v5083_v47 = vpop.permute.xlu2 %5082 }
 0x5d4   : > { %5793 = vmatpush.msra.mxu3 %v5593_v61  ;;  %v5607_v61 = vld [vmem:[%s10509_s5 + $0x268] sm:$0xff]  ;;  %v5605_v62 = vld [vmem:[%s10509_s5 + $0x258] sm:$0xff] }
 0x5d5   : > { %5098 = vrot.lane.b32.xlu0 %v9857_v7, %s6271_s16 }
 0x5d6   : > { %v5375_v28 = vpop.permute.xlu1 %5374  ;;  %5794 = vmatpush.msra.mxu3 %v5592_v43 }
 0x5d7   : > { %5377 = vst.msk [vmem:[#allocation4 + $0x18] sm:$0xff] %vm5326_vm3, %v5375_v28 }
 0x5d8   : > { %5382 = vst.msk [vmem:[#allocation4 + $0x18] sm:$0xff] %vm5332_vm4, %v5380_v27  ;;  %5795 = vmatpush.msra.mxu3 %v5591_v46  ;;  %v5199_v46 = vmax.f32 %v9648_v8, %v5083_v47  ;;  %v5603_v27 = vld [vmem:[%s10509_s5 + $0x248] sm:$0xff]  ;;  %v4561_v47 = vpop.f32.mrf.mxu1 }
 0x5d9   : > { %5106 = vrot.lane.b32.xlu2 %v9869_v49, %s6271_s16 }
 0x5da   : > { %v5359_v34 = vpop.permute.xlu0 %5358  ;;  %5796 = vmatpush.msra.mxu3 %v5590_v52  ;;  %v5601_v52 = vld [vmem:[%s10509_s5 + $0x238] sm:$0xff] }
 0x5db   : > { %5361 = vst.msk [vmem:[#allocation4 + $0x10] sm:$0xff] %vm5326_vm3, %v5359_v34 }
 0x5dc   : > { %5366 = vst.msk [vmem:[#allocation4 + $0x10] sm:$0xff] %vm5332_vm4, %v5364_v12  ;;  %5797 = vmatpush.msra.mxu3 %v5589_v31 }
 0x5dd   : > { %5416 = vrot.lane.b32.xlu0 %v5294_v16, %s6272_s19 }
 0x5de   : > { %v4864_v54 = vpop.permute.xlu1 %4863  ;;  %5798 = vmatpush.msra.mxu3 %v5588_v4 }
 0x5df   : > { %v9957_v28 = vmax.f32 %v9606_v51, %v4864_v54  ;;  %v9971_v51 = vld [vmem:[%s10508_s4] ss:$0 sm:$0xff] }
 0x5e0   : > { %5799 = vmatpush.msra.mxu3 %v5587_v56  ;;  %v5252_v8 = vadd.f32 %v9971_v51, %v5199_v46  ;;  %v5600_v56 = vld [vmem:[%s10509_s5 + $0x230] sm:$0xff] }
 0x5e1   : > { %5432 = vrot.lane.b32.xlu2 %v5298_v15, %s6272_s19  ;;  %v5599_v15 = vld [vmem:[%s10509_s5 + $0x228] sm:$0xff] }
 0x5e2   : > { %v5075_v25 = vpop.permute.xlu0 %5074  ;;  %5800 = vmatpush.msra.mxu3 %v5586_v37  ;;  %v5301_v34 = vmax.f32 %v5252_v8, 0.0  ;;  %v5597_v37 = vld [vmem:[%s10509_s5 + $0x218] sm:$0xff]  ;;  %v5619_v8 = vld [vmem:[%s10509_s5 + $0x2c8] sm:$0xff] }
 0x5e3   : > { %v5195_v50 = vmax.f32 %v9620_v44, %v5075_v25 }
 0x5e4   : > { %5801 = vmatpush.msra.mxu3 %v5585_v17  ;;  %v4872_v17 = vpop.permute.xlu2 %4871 }
 0x5e5   : > { %5078 = vrot.lane.b32.xlu0 %v9901_v13, %s6271_s16  ;;  %v5248_v44 = vadd.f32 %v9339_v57, %v5195_v50  ;;  %v5623_v50 = vld [vmem:[%s10509_s5 + $0x2e8] sm:$0xff] }
 0x5e6   : > { %v5081_v32 = vpop.permute.xlu1 %5080  ;;  %5802 = vmatpush.msra.mxu3 %v5584_v2  ;;  %v5595_v2 = vld [vmem:[%s10509_s5 + $0x208] sm:$0xff] }
 0x5e7   : > { %v5198_v0 = vmax.f32 %v9636_v35, %v5081_v32  ;;  %v5578_v35 = vld [vmem:[%s10509_s5 + $0x180] sm:$0xff]  ;;  %v5297_v21 = vmax.f32 %v5248_v44, 0.0  ;;  %v10737_v32 = vld [vmem:[#allocation18_spill] sm:$0xff] }
 0x5e8   : > { %5803 = vmatpush.msra.mxu3 %v5583_v48  ;;  %v4233_v48 = vpop.f32.mrf.mxu3 }
 0x5e9   : > { %v5251_v9 = vadd.f32 %v9339_v57, %v5198_v0  ;;  %v5604_v57 = vld [vmem:[%s10509_s5 + $0x250] sm:$0xff] }
 0x5ea   : > { %v5369_v58 = vpop.permute.xlu0 %5368  ;;  %5804 = vmatpush.msra.mxu3 %v5582_v24  ;;  %v10012_v24 = vmax.f32 %v10737_v32, %v9659_v10  ;;  %v5639_v32 = vld [vmem:[%s10509_s5 + $0x368] sm:$0xff] }
 0x5eb   : > { %5371 = vst.msk [vmem:[#allocation4 + $0x10] sm:$0xff] %vm5338_vm5, %v5369_v58  ;;  %v5300_v19 = vmax.f32 %v5251_v9, 0.0  ;;  %v5594_v58 = vld [vmem:[%s10509_s5 + $0x200] sm:$0xff]  ;;  %v4397_v9 = vpop.f32.mrf.mxu0 }
 0x5ec   : > { %5805 = vmatpush.msra.mxu3 %v5581_v63 }
 0x5ed   : > { %4857 = vrot.lane.b32.xlu0 %v9477_v5, %s6272_s19 }
 0x5ee   : > { %v5385_v12 = vpop.permute.xlu1 %5384  ;;  %5806 = vmatpush.msra.mxu3 %v5580_v1  ;;  %v5625_v1 = vld [vmem:[%s10509_s5 + $0x2f8] sm:$0xff] }
 0x5ef   : > { %5387 = vst.msk [vmem:[#allocation4 + $0x18] sm:$0xff] %vm5338_vm5, %v5385_v12 }
 0x5f0   : > { %5807 = vmatpush.msra.mxu3 %v5579_v22  ;;  %v10738_v22 = vld [vmem:[#allocation51_spill] sm:$0xff] }
 0x5f1   : > { %v4234_v12 = vadd.f32 %v4233_v48, %v10738_v22  ;;  %v5640_v48 = vld [vmem:[%s10509_s5 + $0x370] sm:$0xff] }
 0x5f2   : > { %v4860_v59 = vpop.permute.xlu0 %4859  ;;  %v5519_v60 = vld [vmem:[#allocation4 + $0x10] sm:$0xff]  ;;  %5808 = vmatpush.msra.mxu3 %v5578_v35  ;;  %v5624_v35 = vld [vmem:[%s10509_s5 + $0x2f0] sm:$0xff] }
 0x5f3   : > { %v9937_v26 = vmax.f32 %v9667_v55, %v4860_v59  ;;  %5789 = vmatmul.f32.vlgmr.msrb.gmra.mxu3 %v5519_v60  ;;  %v5606_v55 = vld [vmem:[%s10509_s5 + $0x260] sm:$0xff]  ;;  %v5636_v22 = vld [vmem:[%s10509_s5 + $0x350] sm:$0xff] }
 0x5f4   : > { %5813 = vmatpush.msrb.mxu3 %v5609_v29 }
 0x5f5   : > { %5438 = vrot.lane.b32.xlu0 %v5300_v19, %s6273_s12  ;;  %5104 = vrot.lane.b32.xlu1 %v9937_v26, %s6271_s16  ;;  %v4398_v19 = vadd.f32 %v4397_v9, %v4234_v12  ;;  %v5635_v9 = vld [vmem:[%s10509_s5 + $0x348] sm:$0xff] }
 0x5f6   : > { %5814 = vmatpush.msrb.mxu3 %v5608_v11  ;;  %v5520_v43 = vld [vmem:[#allocation4 + $0x18] sm:$0xff]  ;;  %v4870_v16 = vpop.permute.xlu1 %4869  ;;  %v10041_v11 = vmax.f32 %v9669_v38, %v4872_v17  ;;  %v5620_v38 = vld [vmem:[%s10509_s5 + $0x2d0] sm:$0xff] }
 0x5f7   : > { %v5611_v17 = vld [vmem:[%s10509_s5 + $0x288] sm:$0xff] }
 0x5f8   : > { %5815 = vmatpush.msrb.mxu3 %v5607_v61 }
 0x5fa   : > { %v4868_v42 = vpop.permute.xlu0 %4867  ;;  %5816 = vmatpush.msrb.mxu3 %v5606_v55  ;;  %v5621_v55 = vld [vmem:[%s10509_s5 + $0x2d8] sm:$0xff] }
 0x5fb   : > { %5809 = vmatmul.f32.vlgmr.msra.gmra.mxu3 %v5520_v43  ;;  %v9981_v53 = vmax.f32 %v9691_v36, %v4868_v42  ;;  %v4562_v42 = vadd.f32 %v4561_v47, %v4398_v19  ;;  %v5629_v19 = vld [vmem:[%s10509_s5 + $0x318] sm:$0xff] }
 0x5fc   : > { %5817 = vmatpush.msrb.mxu3 %v5605_v62  ;;  %v4725_v62 = vpop.f32.mrf.mxu2 }
 0x5fd   : > { %5108 = vrot.lane.b32.xlu0 %v9957_v28, %s6271_s16  ;;  %5427 = vrot.lane.b32.xlu1 %v5297_v21, %s6271_s16 }
 0x5fe   : > { %5818 = vmatpush.msrb.mxu3 %v5604_v57 }
 0x600   : > { %5819 = vmatpush.msrb.mxu3 %v5603_v27  ;;  %v10059_v27 = vadd.f32 %v4725_v62, %v4562_v42  ;;  %v5626_v62 = vld [vmem:[%s10509_s5 + $0x300] sm:$0xff] }
 0x602   : > { %v5085_v31 = vpop.permute.xlu0 %5084  ;;  %5820 = vmatpush.msrb.mxu3 %v5602_v3  ;;  %v5617_v3 = vld [vmem:[%s10509_s5 + $0x2b8] sm:$0xff] }
 0x603   : > { %v5200_v4 = vmax.f32 %v9712_v30, %v5085_v31  ;;  %v5598_v30 = vld [vmem:[%s10509_s5 + $0x220] sm:$0xff] }
 0x604   : > { %5821 = vmatpush.msrb.mxu3 %v5601_v52  ;;  %v5616_v52 = vld [vmem:[%s10509_s5 + $0x2b0] sm:$0xff] }
 0x605   : > { %v5253_v54 = vadd.f32 %v9971_v51, %v5200_v4  ;;  %5112 = vrot.lane.b32.xlu0 %v9981_v53, %s6271_s16  ;;  %5443 = vrot.lane.b32.xlu1 %v5301_v34, %s6271_s16 }
 0x606   : > { %5822 = vmatpush.msrb.mxu3 %v5600_v56  ;;  %v5615_v56 = vld [vmem:[%s10509_s5 + $0x2a8] sm:$0xff] }
 0x607   : > { %v5302_v36 = vmax.f32 %v5253_v54, 0.0 }
 0x608   : > { %5823 = vmatpush.msrb.mxu3 %v5599_v15  ;;  %v5614_v15 = vld [vmem:[%s10509_s5 + $0x2a0] sm:$0xff] }
 0x609   : > { %5448 = vrot.lane.b32.xlu2 %v5302_v36, %s6272_s19 }
 0x60a   : > { %5824 = vmatpush.msrb.mxu3 %v5598_v30  ;;  %v5612_v30 = vld [vmem:[%s10509_s5 + $0x290] sm:$0xff] }
 0x60b   : > { %v5391_v25 = vpop.permute.xlu1 %5390 }
 0x60c   : > { %5393 = vst.msk [vmem:[#allocation4 + $0x20] sm:$0xff] %vm5326_vm3, %v5391_v25  ;;  %5825 = vmatpush.msrb.mxu3 %v5597_v37  ;;  %v5610_v25 = vld [vmem:[%s10509_s5 + $0x280] sm:$0xff] }
 0x60d   : > { %4865 = vrot.lane.b32.xlu1 %v9569_v6, %s6272_s19 }
 0x60e   : > { %5826 = vmatpush.msrb.mxu3 %v5596_v18 }
 0x60f   : > { %v5089_v63 = vpop.permute.xlu0 %5088  ;;  %v5093_v29 = vpop.permute.xlu2 %5092 }
 0x610   : > { %v5202_v0 = vmax.f32 %v9740_v41, %v5089_v63  ;;  %5827 = vmatpush.msrb.mxu3 %v5595_v2  ;;  %v10029_v41 = vmax.f32 %v9682_v39, %v4870_v16  ;;  %v5622_v39 = vld [vmem:[%s10509_s5 + $0x2e0] sm:$0xff]  ;;  %v5204_v43 = vmax.f32 %v9800_v14, %v5093_v29  ;;  %v5641_v2 = vld [vmem:[%s10509_s5 + $0x378] sm:$0xff]  ;;  %v5632_v29 = vld [vmem:[%s10509_s5 + $0x330] sm:$0xff] }
 0x611   : > { %5086 = vrot.lane.b32.xlu2 %v10012_v24, %s6271_s16  ;;  %v5638_v63 = vld [vmem:[%s10509_s5 + $0x360] sm:$0xff] }
 0x612   : > { %v5255_v10 = vadd.f32 %v9971_v51, %v5202_v0  ;;  %5828 = vmatpush.msrb.mxu3 %v5594_v58  ;;  %v5257_v14 = vadd.f32 %v9971_v51, %v5204_v43  ;;  %v5637_v0 = vld [vmem:[%s10509_s5 + $0x358] sm:$0xff] }
 0x613   : > { %v5091_v59 = vpop.permute.xlu1 %5090 }
 0x614   : > { %5833 = vmatpush.msra.mxu3 %v5625_v1  ;;  %v5304_v60 = vmax.f32 %v5255_v10, 0.0  ;;  %v5203_v61 = vmax.f32 %v9754_v23, %v5091_v59  ;;  %v10055_v23 = vmax.f32 %v9519_v40, %v9833_v45  ;;  %v5618_v40 = vld [vmem:[%s10509_s5 + $0x2c0] sm:$0xff]  ;;  %v5306_v31 = vmax.f32 %v5257_v14, 0.0  ;;  %v5631_v59 = vld [vmem:[%s10509_s5 + $0x328] sm:$0xff] }
 0x615   : > { %5114 = vrot.lane.b32.xlu1 %v10029_v41, %s6271_s16 }
 0x616   : > { %5834 = vmatpush.msra.mxu3 %v5624_v35  ;;  %5454 = vrot.lane.b32.xlu0 %v5304_v60, %s6273_s12  ;;  %v5256_v46 = vadd.f32 %v9971_v51, %v5203_v61  ;;  %v5634_v35 = vld [vmem:[%s10509_s5 + $0x340] sm:$0xff]  ;;  %v5628_v61 = vld [vmem:[%s10509_s5 + $0x310] sm:$0xff]  ;;  %v5750_v42 = vpop.f32.mrf.mxu3 }
 0x617   : > { %v5396_v44 = vpop.permute.xlu0 %5395  ;;  %v5630_v60 = vld [vmem:[%s10509_s5 + $0x320] sm:$0xff] }
 0x618   : > { %5835 = vmatpush.msra.mxu3 %v5623_v50  ;;  %5398 = vst.msk [vmem:[#allocation4 + $0x20] sm:$0xff] %vm5332_vm4, %v5396_v44  ;;  %v5305_v45 = vmax.f32 %v5256_v46, 0.0 }
 0x619   : > { %5116 = vrot.lane.b32.xlu2 %v10041_v11, %s6271_s16 }
 0x61a   : > { %5836 = vmatpush.msra.mxu3 %v5622_v39 }
 0x61b   : > { %v5401_v21 = vpop.permute.xlu1 %5400  ;;  %v5407_v57 = vpop.permute.xlu2 %5406 }
 0x61c   : > { %5837 = vmatpush.msra.mxu3 %v5621_v55  ;;  %5403 = vst.msk [vmem:[#allocation4 + $0x20] sm:$0xff] %vm5338_vm5, %v5401_v21  ;;  %v5627_v55 = vld [vmem:[%s10509_s5 + $0x308] sm:$0xff] }
 0x61d   : > { %5409 = vst.msk [vmem:[#allocation4 + $0x28] sm:$0xff] %vm5326_vm3, %v5407_v57  ;;  %5094 = vrot.lane.b32.xlu1 %v10055_v23, %s6271_s16  ;;  %v5657_v57 = vld [vmem:[%s10509_s5 + $0x3f8] sm:$0xff] }
 0x61e   : > { %5838 = vmatpush.msra.mxu3 %v5620_v38  ;;  %4873 = vrot.lane.b32.xlu0 %v10059_v27, %s6272_s19  ;;  %v6242_v38 = vld [vmem:[%s10510_s6] ss:$0 sm:$0xff] }
 0x61f   : > { %v5751_v46 = vadd.f32 %v6242_v38, %v5750_v42 }
 0x620   : > { %5839 = vmatpush.msra.mxu3 %v5619_v8 }
 0x621   : > { %5459 = vrot.lane.b32.xlu2 %v5305_v45, %s6271_s16 }
 0x622   : > { %5840 = vmatpush.msra.mxu3 %v5618_v40 }
 0x623   : > { %v5097_v34 = vpop.permute.xlu2 %5096  ;;  %v5521_v16 = vld [vmem:[#allocation4 + $0x20] sm:$0xff] }
 0x624   : > { %5841 = vmatpush.msra.mxu3 %v5617_v3  ;;  %v5206_v4 = vmax.f32 %v9843_v33, %v5097_v34  ;;  %v5613_v33 = vld [vmem:[%s10509_s5 + $0x298] sm:$0xff]  ;;  %v5656_v3 = vld [vmem:[%s10509_s5 + $0x3f0] sm:$0xff] }
 0x625   : > { %5829 = vmatmul.f32.vlgmr.msrb.gmra.mxu3 %v5521_v16  ;;  %5464 = vrot.lane.b32.xlu1 %v5306_v31, %s6272_s19  ;;  %v5655_v31 = vld [vmem:[%s10509_s5 + $0x3e8] sm:$0xff] }
 0x626   : > { %5842 = vmatpush.msra.mxu3 %v5616_v52  ;;  %v5259_v54 = vadd.f32 %v9971_v51, %v5206_v4  ;;  %v5654_v4 = vld [vmem:[%s10509_s5 + $0x3e0] sm:$0xff] }
 0x628   : > { %5843 = vmatpush.msra.mxu3 %v5615_v56  ;;  %v5308_v36 = vmax.f32 %v5259_v54, 0.0 }
 0x62a   : > { %5844 = vmatpush.msra.mxu3 %v5614_v15  ;;  %5470 = vrot.lane.b32.xlu2 %v5308_v36, %s6273_s12  ;;  %v5652_v36 = vld [vmem:[%s10509_s5 + $0x3d0] sm:$0xff] }
 0x62b   : > { %v5423_v37 = vpop.permute.xlu2 %5422 }
 0x62c   : > { %5845 = vmatpush.msra.mxu3 %v5613_v33  ;;  %5425 = vst.msk [vmem:[#allocation4 + $0x30] sm:$0xff] %vm5326_vm3, %v5423_v37  ;;  %v5651_v33 = vld [vmem:[%s10509_s5 + $0x3c8] sm:$0xff] }
 0x62e   : > { %5846 = vmatpush.msra.mxu3 %v5612_v30 }
 0x62f   : > { %v5412_v18 = vpop.permute.xlu1 %5411 }
 0x630   : > { %5847 = vmatpush.msra.mxu3 %v5611_v17  ;;  %5414 = vst.msk [vmem:[#allocation4 + $0x28] sm:$0xff] %vm5332_vm4, %v5412_v18 }
 0x632   : > { %5848 = vmatpush.msra.mxu3 %v5610_v25 }
 0x633   : > { %v5107_v43 = vpop.permute.xlu2 %5106 }
 0x634   : > { %5853 = vmatpush.msrb.mxu3 %v5641_v2  ;;  %v5211_v54 = vmax.f32 %v9869_v49, %v5107_v43  ;;  %v5649_v49 = vld [vmem:[%s10509_s5 + $0x3b8] sm:$0xff] }
 0x635   : > { %v5669_v43 = vld [vmem:[%s10509_s5 + $0x458] sm:$0xff] }
 0x636   : > { %5854 = vmatpush.msrb.mxu3 %v5640_v48  ;;  %v5264_v37 = vadd.f32 %v9971_v51, %v5211_v54  ;;  %v5648_v48 = vld [vmem:[%s10509_s5 + $0x3b0] sm:$0xff]  ;;  %v5662_v54 = vld [vmem:[%s10509_s5 + $0x420] sm:$0xff] }
 0x637   : > { %v5101_v58 = vpop.permute.xlu1 %5100 }
 0x638   : > { %5855 = vmatpush.msrb.mxu3 %v5639_v32  ;;  %v5208_v1 = vmax.f32 %v9836_v20, %v5101_v58  ;;  %v5633_v20 = vld [vmem:[%s10509_s5 + $0x338] sm:$0xff]  ;;  %v5313_v18 = vmax.f32 %v5264_v37, 0.0 }
 0x63a   : > { %5856 = vmatpush.msrb.mxu3 %v5638_v63  ;;  %v5261_v12 = vadd.f32 %v9971_v51, %v5208_v1  ;;  %v5647_v63 = vld [vmem:[%s10509_s5 + $0x3a8] sm:$0xff] }
 0x63b   : > { %v5433_v34 = vpop.permute.xlu2 %5432 }
 0x63c   : > { %5857 = vmatpush.msrb.mxu3 %v5637_v0  ;;  %v5310_v10 = vmax.f32 %v5261_v12, 0.0  ;;  %v5645_v12 = vld [vmem:[%s10509_s5 + $0x398] sm:$0xff] }
 0x63e   : > { %5858 = vmatpush.msrb.mxu3 %v5636_v22  ;;  %5480 = vrot.lane.b32.xlu1 %v5310_v10, %s6272_s19 }
 0x640   : > { %5859 = vmatpush.msrb.mxu3 %v5635_v9 }
 0x642   : > { %5860 = vmatpush.msrb.mxu3 %v5634_v35 }
 0x644   : > { %5861 = vmatpush.msrb.mxu3 %v5633_v20 }
 0x646   : > { %5862 = vmatpush.msrb.mxu3 %v5632_v29 }
 0x647   : > { %v5099_v50 = vpop.permute.xlu0 %5098 }
 0x648   : > { %5863 = vmatpush.msrb.mxu3 %v5631_v59  ;;  %v5207_v39 = vmax.f32 %v9857_v7, %v5099_v50  ;;  %v5643_v59 = vld [vmem:[%s10509_s5 + $0x388] sm:$0xff] }
 0x64a   : > { %5864 = vmatpush.msrb.mxu3 %v5630_v60  ;;  %v5260_v44 = vadd.f32 %v9971_v51, %v5207_v39 }
 0x64c   : > { %5865 = vmatpush.msrb.mxu3 %v5629_v19  ;;  %v5309_v47 = vmax.f32 %v5260_v44, 0.0  ;;  %v5642_v19 = vld [vmem:[%s10509_s5 + $0x380] sm:$0xff] }
 0x64e   : > { %5866 = vmatpush.msrb.mxu3 %v5628_v61  ;;  %5475 = vrot.lane.b32.xlu0 %v5309_v47, %s6271_s16  ;;  %v5673_v61 = vld [vmem:[%s10509_s5 + $0x478] sm:$0xff]  ;;  %v5671_v47 = vld [vmem:[%s10509_s5 + $0x468] sm:$0xff] }
 0x64f   : > { %v5417_v7 = vpop.permute.xlu0 %5416 }
 0x650   : > { %5867 = vmatpush.msrb.mxu3 %v5627_v55  ;;  %5419 = vst.msk [vmem:[#allocation4 + $0x28] sm:$0xff] %vm5338_vm5, %v5417_v7  ;;  %v5670_v7 = vld [vmem:[%s10509_s5 + $0x460] sm:$0xff] }
 0x652   : > { %5868 = vmatpush.msrb.mxu3 %v5626_v62 }
 0x656   : > { %v5770_v21 = vpop.f32.mrf.mxu3 }
 0x657   : > { %v10166_v8 = vadd.f32 %v5770_v21, %v5751_v46  ;;  %v5079_v40 = vpop.permute.xlu0 %5078  ;;  %v5522_v14 = vld [vmem:[#allocation4 + $0x28] sm:$0xff] }
 0x658   : > { %v5197_v45 = vmax.f32 %v9901_v13, %v5079_v40  ;;  %5849 = vmatmul.f32.vlgmr.msra.gmra.mxu3 %v5522_v14  ;;  %v5653_v13 = vld [vmem:[%s10509_s5 + $0x3d8] sm:$0xff]  ;;  %v5668_v40 = vld [vmem:[%s10509_s5 + $0x450] sm:$0xff]  ;;  %v5667_v14 = vld [vmem:[%s10509_s5 + $0x448] sm:$0xff] }
 0x659   : > { %5873 = vmatpush.msra.mxu3 %v5657_v57 }
 0x65a   : > { %v5250_v52 = vadd.f32 %v9971_v51, %v5197_v45 }
 0x65b   : > { %5874 = vmatpush.msra.mxu3 %v5656_v3  ;;  %v5665_v3 = vld [vmem:[%s10509_s5 + $0x438] sm:$0xff] }
 0x65c   : > { %v5299_v16 = vmax.f32 %v5250_v52, 0.0 }
 0x65d   : > { %5875 = vmatpush.msra.mxu3 %v5655_v31 }
 0x65e   : > { %5436 = vst.msk [vmem:[#allocation4 + $0x38] sm:$0xff] %vm5320_vm2, %v5299_v16 }
 0x65f   : > { %v4858_v56 = vpop.permute.xlu0 %4857  ;;  %5876 = vmatpush.msra.mxu3 %v5654_v4  ;;  %v5664_v4 = vld [vmem:[%s10509_s5 + $0x430] sm:$0xff] }
 0x660   : > { %v10185_v15 = vmax.f32 %v9477_v5, %v4858_v56  ;;  %v5650_v5 = vld [vmem:[%s10509_s5 + $0x3c0] sm:$0xff] }
 0x661   : > { %5877 = vmatpush.msra.mxu3 %v5653_v13 }
 0x662   : > { %5102 = vrot.lane.b32.xlu2 %v10185_v15, %s6271_s16 }
 0x663   : > { %v5449_v30 = vpop.permute.xlu2 %5448  ;;  %5878 = vmatpush.msra.mxu3 %v5652_v36 }
 0x665   : > { %5879 = vmatpush.msra.mxu3 %v5651_v33  ;;  %v5661_v33 = vld [vmem:[%s10509_s5 + $0x418] sm:$0xff] }
 0x667   : > { %v5439_v17 = vpop.permute.xlu0 %5438  ;;  %v5105_v25 = vpop.permute.xlu1 %5104  ;;  %5880 = vmatpush.msra.mxu3 %v5650_v5 }
 0x668   : > { %5441 = vst.msk [vmem:[#allocation4 + $0x38] sm:$0xff] %vm5326_vm3, %v5439_v17  ;;  %v5210_v2 = vmax.f32 %v9937_v26, %v5105_v25  ;;  %v5646_v26 = vld [vmem:[%s10509_s5 + $0x3a0] sm:$0xff]  ;;  %v5659_v25 = vld [vmem:[%s10509_s5 + $0x408] sm:$0xff] }
 0x669   : > { %5881 = vmatpush.msra.mxu3 %v5649_v49  ;;  %v5660_v49 = vld [vmem:[%s10509_s5 + $0x410] sm:$0xff] }
 0x66a   : > { %v5263_v32 = vadd.f32 %v9971_v51, %v5210_v2  ;;  %5491 = vrot.lane.b32.xlu2 %v5313_v18, %s6271_s16  ;;  %v5689_v2 = vld [vmem:[%s10509_s5 + $0x4f8] sm:$0xff] }
 0x66b   : > { %v5087_v58 = vpop.permute.xlu2 %5086  ;;  %5882 = vmatpush.msra.mxu3 %v5648_v48 }
 0x66c   : > { %v5312_v0 = vmax.f32 %v5263_v32, 0.0  ;;  %v5201_v1 = vmax.f32 %v10012_v24, %v5087_v58  ;;  %v5644_v24 = vld [vmem:[%s10509_s5 + $0x390] sm:$0xff]  ;;  %v5686_v58 = vld [vmem:[%s10509_s5 + $0x4e0] sm:$0xff] }
 0x66d   : > { %5883 = vmatpush.msra.mxu3 %v5647_v63  ;;  %v5688_v32 = vld [vmem:[%s10509_s5 + $0x4f0] sm:$0xff]  ;;  %v5687_v63 = vld [vmem:[%s10509_s5 + $0x4e8] sm:$0xff] }
 0x66e   : > { %v5254_v22 = vadd.f32 %v9971_v51, %v5201_v1  ;;  %5486 = vrot.lane.b32.xlu0 %v5312_v0, %s6273_s12  ;;  %v5685_v0 = vld [vmem:[%s10509_s5 + $0x4d8] sm:$0xff] }
 0x66f   : > { %v5109_v9 = vpop.permute.xlu0 %5108  ;;  %v5428_v10 = vpop.permute.xlu1 %5427  ;;  %5884 = vmatpush.msra.mxu3 %v5646_v26  ;;  %v5684_v26 = vld [vmem:[%s10509_s5 + $0x4d0] sm:$0xff] }
 0x670   : > { %v5303_v35 = vmax.f32 %v5254_v22, 0.0  ;;  %v5212_v20 = vmax.f32 %v9957_v28, %v5109_v9  ;;  %5430 = vst.msk [vmem:[#allocation4 + $0x30] sm:$0xff] %vm5332_vm4, %v5428_v10  ;;  %v5683_v22 = vld [vmem:[%s10509_s5 + $0x4c8] sm:$0xff]  ;;  %v5681_v9 = vld [vmem:[%s10509_s5 + $0x4b8] sm:$0xff]  ;;  %v5680_v10 = vld [vmem:[%s10509_s5 + $0x4b0] sm:$0xff] }
 0x671   : > { %5435 = vst.msk [vmem:[#allocation4 + $0x30] sm:$0xff] %vm5338_vm5, %v5433_v34  ;;  %5885 = vmatpush.msra.mxu3 %v5645_v12  ;;  %v5682_v12 = vld [vmem:[%s10509_s5 + $0x4c0] sm:$0xff] }
 0x672   : > { %5452 = vst.msk [vmem:[#allocation4 + $0x40] sm:$0xff] %vm5320_vm2, %v5303_v35  ;;  %v5265_v29 = vadd.f32 %v9971_v51, %v5212_v20  ;;  %v5679_v35 = vld [vmem:[%s10509_s5 + $0x4a8] sm:$0xff]  ;;  %v5678_v20 = vld [vmem:[%s10509_s5 + $0x4a0] sm:$0xff] }
 0x673   : > { %v5117_v60 = vpop.permute.xlu2 %5116  ;;  %5886 = vmatpush.msra.mxu3 %v5644_v24  ;;  %v5677_v24 = vld [vmem:[%s10509_s5 + $0x498] sm:$0xff] }
 0x674   : > { %v5314_v28 = vmax.f32 %v5265_v29, 0.0  ;;  %v5216_v50 = vmax.f32 %v10041_v11, %v5117_v60  ;;  %v5672_v11 = vld [vmem:[%s10509_s5 + $0x470] sm:$0xff]  ;;  %v5674_v60 = vld [vmem:[%s10509_s5 + $0x480] sm:$0xff] }
 0x675   : > { %5887 = vmatpush.msra.mxu3 %v5643_v59  ;;  %v5676_v29 = vld [vmem:[%s10509_s5 + $0x490] sm:$0xff]  ;;  %v5675_v59 = vld [vmem:[%s10509_s5 + $0x488] sm:$0xff] }
 0x676   : > { %5496 = vrot.lane.b32.xlu0 %v5314_v28, %s6272_s19  ;;  %v5269_v44 = vadd.f32 %v9971_v51, %v5216_v50  ;;  %v5705_v28 = vld [vmem:[%s10509_s5 + $0x578] sm:$0xff]  ;;  %v5704_v50 = vld [vmem:[%s10509_s5 + $0x570] sm:$0xff] }
 0x677   : > { %v5444_v39 = vpop.permute.xlu1 %5443  ;;  %5888 = vmatpush.msra.mxu3 %v5642_v19  ;;  %v5113_v42 = vpop.permute.xlu0 %5112  ;;  %v5703_v19 = vld [vmem:[%s10509_s5 + $0x568] sm:$0xff] }
 0x678   : > { %5446 = vst.msk [vmem:[#allocation4 + $0x38] sm:$0xff] %vm5332_vm4, %v5444_v39  ;;  %v5523_v55 = vld [vmem:[#allocation4 + $0x30] sm:$0xff]  ;;  %v5318_v62 = vmax.f32 %v5269_v44, 0.0  ;;  %v5214_v46 = vmax.f32 %v9981_v53, %v5113_v42 }
 0x679   : > { %5451 = vst.msk [vmem:[#allocation4 + $0x38] sm:$0xff] %vm5338_vm5, %v5449_v30  ;;  %5869 = vmatmul.f32.vlgmr.msrb.gmra.mxu3 %v5523_v55  ;;  %v5702_v39 = vld [vmem:[%s10509_s5 + $0x560] sm:$0xff]  ;;  %v5701_v55 = vld [vmem:[%s10509_s5 + $0x558] sm:$0xff] }
 0x67a   : > { %5893 = vmatpush.msrb.mxu3 %v5673_v61  ;;  %v5267_v53 = vadd.f32 %v9971_v51, %v5214_v46  ;;  %v5696_v46 = vld [vmem:[%s10509_s5 + $0x530] sm:$0xff] }
 0x67b   : > { %v5460_v16 = vpop.permute.xlu2 %5459 }
 0x67c   : > { %5894 = vmatpush.msrb.mxu3 %v5672_v11  ;;  %v5316_v52 = vmax.f32 %v5267_v53, 0.0  ;;  %v5693_v53 = vld [vmem:[%s10509_s5 + $0x518] sm:$0xff] }
 0x67e   : > { %5512 = vrot.lane.b32.xlu0 %v5318_v62, %s6272_s19  ;;  %5895 = vmatpush.msrb.mxu3 %v5671_v47  ;;  %v5700_v47 = vld [vmem:[%s10509_s5 + $0x550] sm:$0xff] }
 0x67f   : > { %v4866_v38 = vpop.permute.xlu1 %4865 }
 0x680   : > { %v10258_v21 = vmax.f32 %v9569_v6, %v4866_v38  ;;  %v5524_v57 = vld [vmem:[#allocation4 + $0x38] sm:$0xff]  ;;  %5896 = vmatpush.msrb.mxu3 %v5670_v7  ;;  %v5666_v6 = vld [vmem:[%s10509_s5 + $0x440] sm:$0xff] }
 0x681   : > { %5889 = vmatmul.f32.vlgmr.msra.gmra.mxu3 %v5524_v57  ;;  %v5698_v38 = vld [vmem:[%s10509_s5 + $0x540] sm:$0xff] }
 0x682   : > { %5110 = vrot.lane.b32.xlu1 %v10258_v21, %s6271_s16  ;;  %5897 = vmatpush.msrb.mxu3 %v5669_v43  ;;  %v5697_v43 = vld [vmem:[%s10509_s5 + $0x538] sm:$0xff] }
 0x684   : > { %5898 = vmatpush.msrb.mxu3 %v5668_v40  ;;  %v5471_v18 = vpop.permute.xlu2 %5470  ;;  %v5695_v40 = vld [vmem:[%s10509_s5 + $0x528] sm:$0xff] }
 0x686   : > { %5899 = vmatpush.msrb.mxu3 %v5667_v14  ;;  %v5694_v14 = vld [vmem:[%s10509_s5 + $0x520] sm:$0xff] }
 0x687   : > { %v5115_v45 = vpop.permute.xlu1 %5114 }
 0x688   : > { %v5215_v31 = vmax.f32 %v10029_v41, %v5115_v45  ;;  %v5455_v34 = vpop.permute.xlu0 %5454  ;;  %5900 = vmatpush.msrb.mxu3 %v5666_v6  ;;  %v5663_v41 = vld [vmem:[%s10509_s5 + $0x428] sm:$0xff]  ;;  %v5692_v6 = vld [vmem:[%s10509_s5 + $0x510] sm:$0xff] }
 0x689   : > { %5457 = vst.msk [vmem:[#allocation4 + $0x40] sm:$0xff] %vm5326_vm3, %v5455_v34  ;;  %v5691_v45 = vld [vmem:[%s10509_s5 + $0x508] sm:$0xff] }
 0x68a   : > { %v5268_v13 = vadd.f32 %v9971_v51, %v5215_v31  ;;  %5462 = vst.msk [vmem:[#allocation4 + $0x40] sm:$0xff] %vm5332_vm4, %v5460_v16  ;;  %5502 = vrot.lane.b32.xlu1 %v5316_v52, %s6273_s12  ;;  %5901 = vmatpush.msrb.mxu3 %v5665_v3  ;;  %v5690_v3 = vld [vmem:[%s10509_s5 + $0x500] sm:$0xff]  ;;  %v5721_v52 = vld [vmem:[%s10509_s5 + $0x5f8] sm:$0xff]  ;;  %v5720_v31 = vld [vmem:[%s10509_s5 + $0x5f0] sm:$0xff] }
 0x68b   : > { %v5719_v34 = vld [vmem:[%s10509_s5 + $0x5e8] sm:$0xff]  ;;  %v5718_v16 = vld [vmem:[%s10509_s5 + $0x5e0] sm:$0xff] }
 0x68c   : > { %v5317_v56 = vmax.f32 %v5268_v13, 0.0  ;;  %5902 = vmatpush.msrb.mxu3 %v5664_v4  ;;  %v5717_v4 = vld [vmem:[%s10509_s5 + $0x5d8] sm:$0xff]  ;;  %v5716_v13 = vld [vmem:[%s10509_s5 + $0x5d0] sm:$0xff] }
 0x68e   : > { %5507 = vrot.lane.b32.xlu2 %v5317_v56, %s6271_s16  ;;  %5903 = vmatpush.msrb.mxu3 %v5663_v41 }
 0x68f   : > { %v5095_v36 = vpop.permute.xlu1 %5094 }
 0x690   : > { %v5205_v30 = vmax.f32 %v10055_v23, %v5095_v36  ;;  %v4874_v37 = vpop.permute.xlu0 %4873  ;;  %5904 = vmatpush.msrb.mxu3 %v5662_v54  ;;  %v5715_v54 = vld [vmem:[%s10509_s5 + $0x5c8] sm:$0xff]  ;;  %v5714_v36 = vld [vmem:[%s10509_s5 + $0x5c0] sm:$0xff] }
 0x691   : > { %v10295_v5 = vmax.f32 %v10059_v27, %v4874_v37  ;;  %v5658_v27 = vld [vmem:[%s10509_s5 + $0x400] sm:$0xff] }
 0x692   : > { %v5258_v17 = vadd.f32 %v9971_v51, %v5205_v30  ;;  %5905 = vmatpush.msrb.mxu3 %v5661_v33  ;;  %v5713_v33 = vld [vmem:[%s10509_s5 + $0x5b8] sm:$0xff]  ;;  %v5712_v30 = vld [vmem:[%s10509_s5 + $0x5b0] sm:$0xff] }
 0x693   : > { %5118 = vrot.lane.b32.xlu1 %v10295_v5, %s6271_s16 }
 0x694   : > { %v5307_v23 = vmax.f32 %v5258_v17, 0.0  ;;  %5906 = vmatpush.msrb.mxu3 %v5660_v49  ;;  %v5711_v49 = vld [vmem:[%s10509_s5 + $0x5a8] sm:$0xff]  ;;  %v5710_v17 = vld [vmem:[%s10509_s5 + $0x5a0] sm:$0xff] }
 0x696   : > { %5468 = vst.msk [vmem:[#allocation4 + $0x48] sm:$0xff] %vm5320_vm2, %v5307_v23  ;;  %5907 = vmatpush.msrb.mxu3 %v5659_v25  ;;  %v5709_v25 = vld [vmem:[%s10509_s5 + $0x598] sm:$0xff]  ;;  %v5708_v23 = vld [vmem:[%s10509_s5 + $0x590] sm:$0xff] }
 0x697   : > { %5473 = vst.msk [vmem:[#allocation4 + $0x48] sm:$0xff] %vm5326_vm3, %v5471_v18  ;;  %v5465_v48 = vpop.permute.xlu1 %5464  ;;  %v5707_v18 = vld [vmem:[%s10509_s5 + $0x588] sm:$0xff] }
 0x698   : > { %5467 = vst.msk [vmem:[#allocation4 + $0x40] sm:$0xff] %vm5338_vm5, %v5465_v48  ;;  %5908 = vmatpush.msrb.mxu3 %v5658_v27 }
 0x69a   : > { %5913 = vmatpush.msra.mxu3 %v5689_v2  ;;  %v5706_v2 = vld [vmem:[%s10509_s5 + $0x580] sm:$0xff] }
 0x69c   : > { %5914 = vmatpush.msra.mxu3 %v5688_v32  ;;  %v5725_v32 = vld [vmem:[%s10509_s5 + $0x618] sm:$0xff] }
 0x69e   : > { %5915 = vmatpush.msra.mxu3 %v5687_v63 }
 0x69f   : > { %v5525_v1 = vld [vmem:[#allocation4 + $0x40] sm:$0xff] }
 0x6a0   : > { %5916 = vmatpush.msra.mxu3 %v5686_v58  ;;  %v5724_v58 = vld [vmem:[%s10509_s5 + $0x610] sm:$0xff] }
 0x6a1   : > { %5909 = vmatmul.f32.vlgmr.msrb.gmra.mxu3 %v5525_v1  ;;  %v5723_v1 = vld [vmem:[%s10509_s5 + $0x608] sm:$0xff] }
 0x6a2   : > { %5917 = vmatpush.msra.mxu3 %v5685_v0 }
 0x6a4   : > { %5918 = vmatpush.msra.mxu3 %v5684_v26 }
 0x6a6   : > { %5919 = vmatpush.msra.mxu3 %v5683_v22  ;;  %v5722_v22 = vld [vmem:[%s10509_s5 + $0x600] sm:$0xff] }
 0x6a8   : > { %5920 = vmatpush.msra.mxu3 %v5682_v12 }
 0x6aa   : > { %5921 = vmatpush.msra.mxu3 %v5681_v9 }
 0x6ac   : > { %5922 = vmatpush.msra.mxu3 %v5680_v10 }
 0x6ae   : > { %5923 = vmatpush.msra.mxu3 %v5679_v35 }
 0x6b0   : > { %5924 = vmatpush.msra.mxu3 %v5678_v20  ;;  %v5481_v42 = vpop.permute.xlu1 %5480 }
 0x6b2   : > { %5925 = vmatpush.msra.mxu3 %v5677_v24 }
 0x6b4   : > { %5926 = vmatpush.msra.mxu3 %v5676_v29 }
 0x6b6   : > { %5927 = vmatpush.msra.mxu3 %v5675_v59 }
 0x6b8   : > { %5928 = vmatpush.msra.mxu3 %v5674_v60  ;;  %v5790_v60 = vpop.f32.mrf.mxu3 }
 0x6ba   : > { %5933 = vmatpush.msrb.mxu3 %v5705_v28 }
 0x6bc   : > { %5934 = vmatpush.msrb.mxu3 %v5704_v50  ;;  %v5103_v61 = vpop.permute.xlu2 %5102 }
 0x6bd   : > { %v5209_v44 = vmax.f32 %v10185_v15, %v5103_v61  ;;  %v5699_v15 = vld [vmem:[%s10509_s5 + $0x548] sm:$0xff] }
 0x6be   : > { %5935 = vmatpush.msrb.mxu3 %v5703_v19 }
 0x6bf   : > { %v5262_v11 = vadd.f32 %v9971_v51, %v5209_v44 }
 0x6c0   : > { %5936 = vmatpush.msrb.mxu3 %v5702_v39  ;;  %v5476_v62 = vpop.permute.xlu0 %5475  ;;  %v5810_v28 = vpop.f32.mrf.mxu3 }
 0x6c1   : > { %v5311_v7 = vmax.f32 %v5262_v11, 0.0  ;;  %5478 = vst.msk [vmem:[#allocation4 + $0x48] sm:$0xff] %vm5332_vm4, %v5476_v62 }
 0x6c2   : > { %5937 = vmatpush.msrb.mxu3 %v5701_v55  ;;  %5483 = vst.msk [vmem:[#allocation4 + $0x48] sm:$0xff] %vm5338_vm5, %v5481_v42  ;;  %v5791_v55 = vadd.f32 %v5790_v60, %v10166_v8 }
 0x6c3   : > { %5484 = vst.msk [vmem:[#allocation4 + $0x50] sm:$0xff] %vm5320_vm2, %v5311_v7 }
 0x6c4   : > { %5938 = vmatpush.msrb.mxu3 %v5700_v47  ;;  %v5492_v56 = vpop.permute.xlu2 %5491  ;;  %v5811_v11 = vadd.f32 %v5810_v28, %v5791_v55 }
 0x6c6   : > { %5939 = vmatpush.msrb.mxu3 %v5699_v15 }
 0x6c8   : > { %5940 = vmatpush.msrb.mxu3 %v5698_v38  ;;  %v5830_v50 = vpop.f32.mrf.mxu3 }
 0x6c9   : > { %v5526_v57 = vld [vmem:[#allocation4 + $0x48] sm:$0xff]  ;;  %v5831_v47 = vadd.f32 %v5830_v50, %v5811_v11 }
 0x6ca   : > { %5941 = vmatpush.msrb.mxu3 %v5697_v43 }
 0x6cb   : > { %5929 = vmatmul.f32.vlgmr.msra.gmra.mxu3 %v5526_v57 }
 0x6cc   : > { %5942 = vmatpush.msrb.mxu3 %v5696_v46 }
 0x6ce   : > { %5943 = vmatpush.msrb.mxu3 %v5695_v40 }
 0x6d0   : > { %5944 = vmatpush.msrb.mxu3 %v5694_v14 }
 0x6d2   : > { %5945 = vmatpush.msrb.mxu3 %v5693_v53 }
 0x6d4   : > { %5946 = vmatpush.msrb.mxu3 %v5692_v6 }
 0x6d6   : > { %5947 = vmatpush.msrb.mxu3 %v5691_v45 }
 0x6d8   : > { %5948 = vmatpush.msrb.mxu3 %v5690_v3 }
 0x6da   : > { %5953 = vmatpush.msra.mxu3 %v5721_v52 }
 0x6db   : > { %v5850_v19 = vpop.f32.mrf.mxu3 }
 0x6dc   : > { %5954 = vmatpush.msra.mxu3 %v5720_v31  ;;  %v5851_v62 = vadd.f32 %v5850_v19, %v5831_v47 }
 0x6de   : > { %5955 = vmatpush.msra.mxu3 %v5719_v34 }
 0x6e0   : > { %5956 = vmatpush.msra.mxu3 %v5718_v16  ;;  %v5487_v41 = vpop.permute.xlu0 %5486 }
 0x6e1   : > { %5489 = vst.msk [vmem:[#allocation4 + $0x50] sm:$0xff] %vm5326_vm3, %v5487_v41 }
 0x6e2   : > { %5957 = vmatpush.msra.mxu3 %v5717_v4  ;;  %5494 = vst.msk [vmem:[#allocation4 + $0x50] sm:$0xff] %vm5332_vm4, %v5492_v56 }
 0x6e4   : > { %5958 = vmatpush.msra.mxu3 %v5716_v13 }
 0x6e6   : > { %5959 = vmatpush.msra.mxu3 %v5715_v54 }
 0x6e8   : > { %5960 = vmatpush.msra.mxu3 %v5714_v36  ;;  %v5497_v37 = vpop.permute.xlu0 %5496  ;;  %v5508_v12 = vpop.permute.xlu2 %5507 }
 0x6e9   : > { %5499 = vst.msk [vmem:[#allocation4 + $0x50] sm:$0xff] %vm5338_vm5, %v5497_v37 }
 0x6ea   : > { %5961 = vmatpush.msra.mxu3 %v5713_v33 }
 0x6ec   : > { %5962 = vmatpush.msra.mxu3 %v5712_v30 }
 0x6ee   : > { %5963 = vmatpush.msra.mxu3 %v5711_v49 }
 0x6f0   : > { %5964 = vmatpush.msra.mxu3 %v5710_v17  ;;  %v5527_v27 = vld [vmem:[#allocation4 + $0x50] sm:$0xff]  ;;  %v5513_v9 = vpop.permute.xlu0 %5512 }
 0x6f1   : > { %5949 = vmatmul.f32.vlgmr.msrb.gmra.mxu3 %v5527_v27 }
 0x6f2   : > { %5965 = vmatpush.msra.mxu3 %v5709_v25 }
 0x6f4   : > { %5966 = vmatpush.msra.mxu3 %v5708_v23  ;;  %v5111_v48 = vpop.permute.xlu1 %5110 }
 0x6f5   : > { %v5213_v63 = vmax.f32 %v10258_v21, %v5111_v48 }
 0x6f6   : > { %5967 = vmatpush.msra.mxu3 %v5707_v18 }
 0x6f7   : > { %v5266_v0 = vadd.f32 %v9971_v51, %v5213_v63 }
 0x6f8   : > { %5968 = vmatpush.msra.mxu3 %v5706_v2 }
 0x6f9   : > { %v5315_v26 = vmax.f32 %v5266_v0, 0.0 }
 0x6fa   : > { %5985 = vmatpush.msrb.mxu3 %v5725_v32 }
 0x6fb   : > { %5500 = vst.msk [vmem:[#allocation4 + $0x58] sm:$0xff] %vm5320_vm2, %v5315_v26 }
 0x6fc   : > { %5986 = vmatpush.msrb.mxu3 %v5724_v58  ;;  %v5503_v21 = vpop.permute.xlu1 %5502  ;;  %v5870_v39 = vpop.f32.mrf.mxu3 }
 0x6fd   : > { %5505 = vst.msk [vmem:[#allocation4 + $0x58] sm:$0xff] %vm5326_vm3, %v5503_v21  ;;  %v5871_v42 = vadd.f32 %v5870_v39, %v5851_v62 }
 0x6fe   : > { %5987 = vmatpush.msrb.mxu3 %v5723_v1  ;;  %5510 = vst.msk [vmem:[#allocation4 + $0x58] sm:$0xff] %vm5332_vm4, %v5508_v12 }
 0x6ff   : > { %5515 = vst.msk [vmem:[#allocation4 + $0x58] sm:$0xff] %vm5338_vm5, %v5513_v9 }
 0x700   : > { %5988 = vmatpush.msrb.mxu3 %v5722_v22 }
 0x704   : > { %v5890_v61 = vpop.f32.mrf.mxu3 }
 0x705   : > { %v5119_v10 = vpop.permute.xlu1 %5118  ;;  %v5891_v7 = vadd.f32 %v5890_v61, %v5871_v42 }
 0x706   : > { %v5217_v35 = vmax.f32 %v10295_v5, %v5119_v10  ;;  %v5528_v20 = vld [vmem:[#allocation4 + $0x58] sm:$0xff] }
 0x707   : > { %5969 = vmatmul.f32.vlgmr.msra.gmra.mxu3 %v5528_v20 }
 0x708   : > { %v5270_v24 = vadd.f32 %v9971_v51, %v5217_v35 }
 0x70a   : > { %v5319_v29 = vmax.f32 %v5270_v24, 0.0 }
 0x70c   : > { %5516 = vst.msk [vmem:[#allocation4 + $0x60] sm:$0xff] %vm5320_vm2, %v5319_v29 }
 0x713   : > { %v5529_v59 = vld [vmem:[#allocation4 + $0x60] sm:$0xff] }
 0x714   : > { %6207 = vmatmul.msk.f32.vlgmr.msrb.gmra.mxu3 %vm5320_vm2, %v5529_v59 }
 0x724   : > { %v5910_v44 = vpop.f32.mrf.mxu3 }
 0x725   : > { %v5911_v38 = vadd.f32 %v5910_v44, %v5891_v7 }
 0x74e   : > { %v5930_v5 = vpop.f32.mrf.mxu3 }
 0x74f   : > { %v5931_v43 = vadd.f32 %v5930_v5, %v5911_v38 }
 0x774   : > { %v5950_v51 = vpop.f32.mrf.mxu3 }
 0x775   : > { %v5951_v46 = vadd.f32 %v5950_v51, %v5931_v43 }
 0x78a   : > { %v5970_v15 = vpop.f32.mrf.mxu3 }
 0x78b   : > { %v5971_v57 = vadd.f32 %v5970_v15, %v5951_v46 }
 0x797   : > { %v5990_v8 = vpop.f32.mrf.mxu3 }
 0x798   : > { %v5991_v40 = vadd.f32 %v5990_v8, %v5971_v57 }
 0x79a   : > { %5993 = vst [vmem:[%s503_s29] sm:$0xff] %v5991_v40 }
 0x79b PF: > { %p14_p9 = scmp.ge.s32.totalorder %s6331_s28, 4   ;;  %s10739_s24 = smov %s6264_s25 }
 0x79c   : > { %s10740_s25 = smov %s6340_s8  ;;  %s10741_s26 = smov %s6331_s28 }
 0x79d   :  { %16 = sbr.rel (!%p14_p9) target bundleno = 2 (0x2), region = 131 }

</bundles_post_ra>
